<compile_context>
chip_gen: v6e
topology: v6e:2x2x1
jax: 0.10.0
libtpu: 0.0.40
codegen_flags: <defaults>
</compile_context>

<pallas_src>
from functools import partial

import jax
import jax.numpy as jnp
from jax.experimental import pallas as pl
from jax.experimental.pallas import tpu as pltpu

EPS = 1e-5
LANE = 128


def _round_up(n, m):
    return (n + m - 1) // m * m


def _pad_vec(v, size, fill):
    pad = size - v.shape[0]
    if pad == 0:
        return v
    return jnp.concatenate([v, jnp.full((pad,), fill, v.dtype)])


def _pick_tk(kp, cap=2048):
    """Largest multiple-of-128 divisor of kp that is <= cap."""
    best = LANE
    d = LANE
    while d <= min(kp, cap):
        if kp % d == 0:
            best = d
        d += LANE
    return best


# ----------------------------------------------------------------------------
# Fused conv (matmul) + bias + InstanceNorm(+ReLU / +residual) / Tanh kernel
# ----------------------------------------------------------------------------
def _fused_conv_kernel(*refs, mode, inv_p):
    if mode == "in_add":
        a_ref, b_ref, bias_ref, g_ref, be_ref, r_ref, o_ref, acc_ref = refs
    elif mode == "in_relu":
        a_ref, b_ref, bias_ref, g_ref, be_ref, o_ref, acc_ref = refs
    else:  # "tanh" / "none"
        a_ref, b_ref, bias_ref, o_ref, acc_ref = refs

    @pl.when(pl.program_id(2) == 0)
    def _():
        # Bias folded into the accumulator init (no epilogue add).
        acc_ref[...] = jnp.zeros_like(acc_ref) + bias_ref[...]

    acc_ref[...] += jnp.dot(a_ref[...], b_ref[...],
                            preferred_element_type=jnp.float32)

    @pl.when(pl.program_id(2) == pl.num_programs(2) - 1)
    def _():
        y = acc_ref[...]                       # (Ho*Wo, tn) f32 of ONE image
        if mode in ("in_relu", "in_add"):
            # Two-pass per-channel instance statistics over the spatial rows.
            mean = jnp.sum(y, axis=0, keepdims=True) * inv_p
            d = y - mean
            var = jnp.sum(d * d, axis=0, keepdims=True) * inv_p
            y = d * jax.lax.rsqrt(var + EPS) * g_ref[...] + be_ref[...]
            if mode == "in_relu":
                y = jnp.maximum(y, 0.0)
            else:                              # residual add (ResidualBlock)
                y = y + r_ref[...].astype(jnp.float32)
        elif mode == "tanh":
            y = jnp.tanh(y)
        o_ref[...] = y.astype(o_ref.dtype)


def _im2col(x, kh, kw, stride, pad):
    """x: (N,H,W,C) bf16 -> ((N*Ho*Wo, kh*kw*C), Ho, Wo).  Tap-major K order."""
    N, H, W, C = x.shape
    if pad:
        x = jnp.pad(x, ((0, 0), (pad, pad), (pad, pad), (0, 0)))
    Ho = (H + 2 * pad - kh) // stride + 1
    Wo = (W + 2 * pad - kw) // stride + 1
    cols = [x[:, i:i + stride * Ho:stride, j:j + stride * Wo:stride, :]
            for i in range(kh) for j in range(kw)]
    patches = jnp.stack(cols, axis=3)          # (N, Ho, Wo, kh*kw, C)
    return patches.reshape(N * Ho * Wo, kh * kw * C), Ho, Wo


def conv_fused(x, w, b, stride, pad, gamma=None, beta=None, residual=None,
               mode="in_relu"):
    """Conv2d (torch OIHW weights) fused with bias + epilogue (IN/ReLU/add/tanh).

    x: (N,H,W,C) bf16; C may already contain zero-padded channels (C >= Cin).
    Returns (N, Ho, Wo, Cpad) bf16 with Cout zero-padded up to a 128 multiple.
    """
    N = x.shape[0]
    C = x.shape[3]
    Cout, Cin, kh, kw = w.shape

    A, Ho, Wo = _im2col(x, kh, kw, stride, pad)          # (N*M, kh*kw*C) bf16
    M_img = Ho * Wo
    K = kh * kw * C
    Kp = _round_up(K, LANE)
    Np = _round_up(Cout, LANE)
    if Kp != K:
        A = jnp.pad(A, ((0, 0), (0, Kp - K)))

    # Weight matrix, tap-major, channel rows padded to C and cols to Np.
    wt = jnp.transpose(w, (2, 3, 1, 0)).astype(jnp.float32)   # (kh,kw,Cin,Cout)
    wt = jnp.pad(wt, ((0, 0), (0, 0), (0, C - Cin), (0, Np - Cout)))
    Bm = wt.reshape(kh * kw * C, Np)
    if Kp != K:
        Bm = jnp.pad(Bm, ((0, Kp - K), (0, 0)))
    Bm = Bm.astype(jnp.bfloat16)

    bias = _pad_vec(b.astype(jnp.float32), Np, 0.0).reshape(1, Np)

    tm = M_img                                   # one image per M block
    tn = 256 if Np % 256 == 0 else LANE
    tk = _pick_tk(Kp)
    grid = (N, Np // tn, Kp // tk)

    assert tm % 8 == 0, "fused IN epilogue needs Ho*Wo to be a multiple of 8"
    # TODO(synk): spatially tiled IN fallback for accumulators that exceed VMEM.
    assert tm * tn * 4 <= 8 * 1024 * 1024, "per-image accumulator too large"

    inputs = [A, Bm, bias]
    in_specs = [
        pl.BlockSpec((tm, tk), lambda i, j, k: (i, k)),
        pl.BlockSpec((tk, tn), lambda i, j, k: (k, j)),
        pl.BlockSpec((1, tn), lambda i, j, k: (0, j)),
    ]
    if mode in ("in_relu", "in_add"):
        inputs += [_pad_vec(gamma.astype(jnp.float32), Np, 1.0).reshape(1, Np),
                   _pad_vec(beta.astype(jnp.float32), Np, 0.0).reshape(1, Np)]
        in_specs += [pl.BlockSpec((1, tn), lambda i, j, k: (0, j)),
                     pl.BlockSpec((1, tn), lambda i, j, k: (0, j))]
    if mode == "in_add":
        inputs.append(residual.reshape(N * M_img, Np))
        in_specs.append(pl.BlockSpec((tm, tn), lambda i, j, k: (i, j)))

    flops = 2 * N * M_img * Np * Kp
    transcend = N * M_img * Np if mode == "tanh" else N * Np
    bytes_accessed = (N * M_img * Kp + Kp * Np + 2 * N * M_img * Np) * 2 + 3 * Np * 4

    out = pl.pallas_call(
        partial(_fused_conv_kernel, mode=mode, inv_p=1.0 / M_img),
        out_shape=jax.ShapeDtypeStruct((N * M_img, Np), jnp.bfloat16),
        grid=grid,
        in_specs=in_specs,
        out_specs=pl.BlockSpec((tm, tn), lambda i, j, k: (i, j)),
        scratch_shapes=[pltpu.VMEM((tm, tn), jnp.float32)],
        compiler_params=pltpu.CompilerParams(
            dimension_semantics=("parallel", "parallel", "arbitrary"),
            vmem_limit_bytes=32 * 1024 * 1024),
        cost_estimate=pl.CostEstimate(flops=flops, transcendentals=transcend,
                                      bytes_accessed=bytes_accessed),
    )(*inputs)
    return out.reshape(N, Ho, Wo, Np)


# ----------------------------------------------------------------------------
# Layer wrappers (one fused pallas_call each)
# ----------------------------------------------------------------------------
def conv_in_relu(x, w, b, gamma, beta, stride, pad):
    return conv_fused(x, w, b, stride, pad, gamma=gamma, beta=beta,
                      mode="in_relu")


def conv_in_add(x, w, b, gamma, beta, residual, stride, pad):
    return conv_fused(x, w, b, stride, pad, gamma=gamma, beta=beta,
                      residual=residual, mode="in_add")


def _dilate_and_pad(x, stride, outer):
    """Zero-dilate the spatial dims by `stride`, pad `outer` zeros on each side."""
    cfg = ((0, 0, 0),
           (outer, outer, stride - 1),
           (outer, outer, stride - 1),
           (0, 0, 0))
    return jax.lax.pad(x, jnp.zeros((), x.dtype), cfg)


def convt_in_relu(x, w_t, b, gamma, beta):
    """ConvTranspose2d(k=4, s=2, p=1) -> InstanceNorm -> ReLU as ONE fused call:
    stride-1 conv of the zero-dilated input with the flipped/swapped kernel."""
    k = w_t.shape[2]                                     # 4
    w_conv = jnp.transpose(w_t[:, :, ::-1, ::-1], (1, 0, 2, 3))
    xd = _dilate_and_pad(x, stride=2, outer=k - 1 - 1)   # pad = k - 1 - p
    return conv_fused(xd, w_conv, b, stride=1, pad=0,
                      gamma=gamma, beta=beta, mode="in_relu")


def convt_tanh(x, w_t, b):
    """ConvTranspose2d(k=7, s=1, p=3) + Tanh fused into the matmul epilogue."""
    k = w_t.shape[2]                                     # 7
    w_conv = jnp.transpose(w_t[:, :, ::-1, ::-1], (1, 0, 2, 3))
    return conv_fused(x, w_conv, b, stride=1, pad=k - 1 - 3, mode="tanh")


# ----------------------------------------------------------------------------
# Parameters & forward pass (mirrors Generator.__init__ / forward)
# ----------------------------------------------------------------------------
def make_params(key, conv_dim, num_attr, num_repeat):
    keys = iter(jax.random.split(key, 128))

    def conv_p(cin, cout, k):
        w = 0.05 * jax.random.normal(next(keys), (cout, cin, k, k), jnp.float32)
        b = 0.05 * jax.random.normal(next(keys), (cout,), jnp.float32)
        return w, b

    def convt_p(cin, cout, k):
        w = 0.05 * jax.random.normal(next(keys), (cin, cout, k, k), jnp.float32)
        b = 0.05 * jax.random.normal(next(keys), (cout,), jnp.float32)
        return w, b

    def in_p(c):  # torch affine InstanceNorm init: weight=1, bias=0
        return jnp.ones((c,), jnp.float32), jnp.zeros((c,), jnp.float32)

    p = {}
    c = conv_dim
    p["stem_conv"] = conv_p(3 + num_attr, c, 7)
    p["stem_in"] = in_p(c)
    p["down"] = []
    for _ in range(2):
        p["down"].append((conv_p(c, 2 * c, 4), in_p(2 * c)))
        c *= 2
    p["res"] = []
    for _ in range(num_repeat):
        p["res"].append((conv_p(c, c, 3), in_p(c), conv_p(c, c, 3), in_p(c)))
    p["up"] = []
    for _ in range(2):
        p["up"].append((convt_p(c, c // 2, 4), in_p(c // 2)))
        c //= 2
    p["out_convt"] = convt_p(c, 3, 7)
    return p


def generator_forward(params, images, c_trg):
    """images: (N,3,H,W) NCHW, c_trg: (N,num_attr).  Returns (N,3,H,W) f32."""
    N, _, H, W = images.shape
    na = c_trg.shape[1]
    c_map = jnp.broadcast_to(c_trg[:, :, None, None], (N, na, H, W))
    x = jnp.concatenate([images, c_map], axis=1)              # NCHW concat dim=1
    x = jnp.transpose(x, (0, 2, 3, 1)).astype(jnp.bfloat16)   # -> NHWC bf16

    (w, b), (g, be) = params["stem_conv"], params["stem_in"]
    x = conv_in_relu(x, w, b, g, be, stride=1, pad=3)          # (N,H,W,128)

    for (cw, cb), (g, be) in params["down"]:
        x = conv_in_relu(x, cw, cb, g, be, stride=2, pad=1)

    for (c1w, c1b), (g1, b1), (c2w, c2b), (g2, b2) in params["res"]:
        res = x                                                # stays channel-padded
        h = conv_in_relu(x, c1w, c1b, g1, b1, stride=1, pad=1)
        x = conv_in_add(h, c2w, c2b, g2, b2, res, stride=1, pad=1)

    for (tw, tb), (g, be) in params["up"]:
        x = convt_in_relu(x, tw, tb, g, be)

    tw, tb = params["out_convt"]
    x = convt_tanh(x, tw, tb)                                  # (N,H,W,128)
    x = x[:, :, :, :3].astype(jnp.float32)
    return jnp.transpose(x, (0, 3, 1, 2))                      # back to NCHW


# ----------------------------------------------------------------------------
# Pure-lax reference (same bf16 storage / f32 accumulation strategy)
# ----------------------------------------------------------------------------
def reference_forward(params, images, c_trg):
    N, _, H, W = images.shape
    na = c_trg.shape[1]
    c_map = jnp.broadcast_to(c_trg[:, :, None, None], (N, na, H, W))
    x = jnp.concatenate([images, c_map], axis=1)
    x = jnp.transpose(x, (0, 2, 3, 1)).astype(jnp.bfloat16)

    def conv(x, w, b, stride, pad):
        y = jax.lax.conv_general_dilated(
            x, w.astype(jnp.bfloat16), (stride, stride),
            ((pad, pad), (pad, pad)),
            dimension_numbers=("NHWC", "OIHW", "NHWC"),
            preferred_element_type=jnp.float32)
        return y + b.reshape(1, 1, 1, -1)

    def convt(x, w_t, b, stride, pad):
        k = w_t.shape[2]
        w_conv = jnp.transpose(w_t[:, :, ::-1, ::-1], (1, 0, 2, 3))
        y = jax.lax.conv_general_dilated(
            x, w_conv.astype(jnp.bfloat16), (1, 1),
            ((k - 1 - pad,) * 2, (k - 1 - pad,) * 2),
            lhs_dilation=(stride, stride),
            dimension_numbers=("NHWC", "OIHW", "NHWC"),
            preferred_element_type=jnp.float32)
        return y + b.reshape(1, 1, 1, -1)

    def inorm(y, g, be):
        mean = jnp.mean(y, axis=(1, 2), keepdims=True)
        var = jnp.mean(jnp.square(y - mean), axis=(1, 2), keepdims=True)
        return ((y - mean) * jax.lax.rsqrt(var + EPS) * g.reshape(1, 1, 1, -1)
                + be.reshape(1, 1, 1, -1))

    (w, b), (g, be) = params["stem_conv"], params["stem_in"]
    x = jnp.maximum(inorm(conv(x, w, b, 1, 3), g, be), 0.0).astype(jnp.bfloat16)
    for (cw, cb), (g, be) in params["down"]:
        x = jnp.maximum(inorm(conv(x, cw, cb, 2, 1), g, be), 0.0).astype(jnp.bfloat16)
    for (c1w, c1b), (g1, b1), (c2w, c2b), (g2, b2) in params["res"]:
        res = x
        h = jnp.maximum(inorm(conv(x, c1w, c1b, 1, 1), g1, b1), 0.0).astype(jnp.bfloat16)
        x = (inorm(conv(h, c2w, c2b, 1, 1), g2, b2)
             + res.astype(jnp.float32)).astype(jnp.bfloat16)
    for (tw, tb), (g, be) in params["up"]:
        x = jnp.maximum(inorm(convt(x, tw, tb, 2, 1), g, be), 0.0).astype(jnp.bfloat16)
    tw, tb = params["out_convt"]
    x = jnp.tanh(convt(x, tw, tb, 1, 3)).astype(jnp.bfloat16)
    return jnp.transpose(x.astype(jnp.float32), (0, 3, 1, 2))


# ----------------------------------------------------------------------------
if __name__ == "__main__":
    # opt.G_filter_size = 8, opt.num_attr = 4, opt.num_repeat = 2
    CONV_DIM, NUM_ATTR, NUM_REPEAT = 8, 4, 2
    N, H, W = 2, 16, 16

    key = jax.random.PRNGKey(0)
    k_img, k_attr, k_par = jax.random.split(key, 3)

    images = jax.random.normal(k_img, (N, 3, H, W), jnp.float32)
    c_trg = jax.random.uniform(k_attr, (N, NUM_ATTR), jnp.float32)
    params = make_params(k_par, CONV_DIM, NUM_ATTR, NUM_REPEAT)

    fwd = jax.jit(generator_forward)
    out = jax.block_until_ready(fwd(params, images, c_trg))

    assert out.shape == (N, 3, H, W), out.shape
    assert bool(jnp.all(jnp.isfinite(out)))
    assert bool(jnp.all(jnp.abs(out) <= 1.0 + 1e-6))          # tanh range

    ref = jax.block_until_ready(jax.jit(reference_forward)(params, images, c_trg))
    max_diff = float(jnp.max(jnp.abs(out - ref)))
    assert max_diff < 1e-1, f"mismatch vs lax reference: {max_diff}"

    print("KERNEL_OK")
</pallas_src>

<mosaic_0001>
module attributes {stable_mosaic.version = 11 : i64} {
  func.func @_fused_conv_kernel(%arg0: i32, %arg1: i32, %arg2: i32, %arg3: memref<256x384xbf16, #tpu.memory_space<vmem>>, %arg4: memref<384x128xbf16, #tpu.memory_space<vmem>>, %arg5: memref<1x128xf32, #tpu.memory_space<vmem>>, %arg6: memref<1x128xf32, #tpu.memory_space<vmem>>, %arg7: memref<1x128xf32, #tpu.memory_space<vmem>>, %arg8: memref<256x128xbf16, #tpu.memory_space<vmem>>, %arg9: memref<256x128xf32, #tpu.memory_space<vmem>>) attributes {dimension_semantics = [#tpu.dimension_semantics<parallel>, #tpu.dimension_semantics<parallel>, #tpu.dimension_semantics<arbitrary>], iteration_bounds = array<i64: 2, 1, 1>, scalar_prefetch = 0 : i64, scratch_operands = 1 : i64, tpu.core_type = #tpu.core_type<tc>, window_params = [{transform_indices = @transform_0, window_bounds = array<i64: 256, 384>}, {transform_indices = @transform_1, window_bounds = array<i64: 384, 128>}, {transform_indices = @transform_2, window_bounds = array<i64: 1, 128>}, {transform_indices = @transform_3, window_bounds = array<i64: 1, 128>}, {transform_indices = @transform_4, window_bounds = array<i64: 1, 128>}, {transform_indices = @transform_5, window_bounds = array<i64: 256, 128>}]} {
    %c0_i32 = arith.constant 0 : i32
    %0 = arith.cmpi eq, %arg2, %c0_i32 : i32
    %1 = arith.extui %0 : i1 to i32
    %c0_i32_0 = arith.constant 0 : i32
    %2 = arith.cmpi ne, %1, %c0_i32_0 : i32
    scf.if %2 {
      %cst_10 = arith.constant 0.000000e+00 : f32
      %12 = vector.broadcast %cst_10 : f32 to vector<256x128xf32>
      %c0_11 = arith.constant 0 : index
      %c0_12 = arith.constant 0 : index
      %13 = vector.load %arg5[%c0_11, %c0_12] : memref<1x128xf32, #tpu.memory_space<vmem>>, vector<1x128xf32>
      %14 = vector.broadcast %13 : vector<1x128xf32> to vector<256x128xf32>
      %15 = arith.addf %12, %14 : vector<256x128xf32>
      %c0_13 = arith.constant 0 : index
      %c0_14 = arith.constant 0 : index
      %16 = vector.load %arg9[%c0_13, %c0_14] : memref<256x128xf32, #tpu.memory_space<vmem>>, vector<256x128xf32>
      tpu.vector_store %arg9[%c0_13, %c0_14], %15 {strides = array<i32>} : memref<256x128xf32, #tpu.memory_space<vmem>>, vector<256x128xf32>,
    } else {
    }
    %c0 = arith.constant 0 : index
    %c0_1 = arith.constant 0 : index
    %3 = vector.load %arg9[%c0, %c0_1] : memref<256x128xf32, #tpu.memory_space<vmem>>, vector<256x128xf32>
    %c0_2 = arith.constant 0 : index
    %c0_3 = arith.constant 0 : index
    %4 = vector.load %arg3[%c0_2, %c0_3] : memref<256x384xbf16, #tpu.memory_space<vmem>>, vector<256x384xbf16>
    %c0_4 = arith.constant 0 : index
    %c0_5 = arith.constant 0 : index
    %5 = vector.load %arg4[%c0_4, %c0_5] : memref<384x128xbf16, #tpu.memory_space<vmem>>, vector<384x128xbf16>
    %cst = arith.constant dense<0.000000e+00> : vector<256x128xf32>
    %6 = tpu.matmul %4, %5, %cst {dimension_numbers = #tpu.dot_dimension_numbers<[1], [0], [0], [1], [0, 0, 1, 1], [], []>} : vector<256x384xbf16>, vector<384x128xbf16>, vector<256x128xf32> -> vector<256x128xf32>
    %7 = arith.addf %3, %6 : vector<256x128xf32>
    %c0_6 = arith.constant 0 : index
    %c0_7 = arith.constant 0 : index
    %8 = vector.load %arg9[%c0_6, %c0_7] : memref<256x128xf32, #tpu.memory_space<vmem>>, vector<256x128xf32>
    tpu.vector_store %arg9[%c0_6, %c0_7], %7 {strides = array<i32>} : memref<256x128xf32, #tpu.memory_space<vmem>>, vector<256x128xf32>,
    %c0_i32_8 = arith.constant 0 : i32
    %9 = arith.cmpi eq, %arg2, %c0_i32_8 : i32
    %10 = arith.extui %9 : i1 to i32
    %c0_i32_9 = arith.constant 0 : i32
    %11 = arith.cmpi ne, %10, %c0_i32_9 : i32
    scf.if %11 {
      %c0_10 = arith.constant 0 : index
      %c0_11 = arith.constant 0 : index
      %12 = vector.load %arg9[%c0_10, %c0_11] : memref<256x128xf32, #tpu.memory_space<vmem>>, vector<256x128xf32>
      %cst_12 = arith.constant dense<0.000000e+00> : vector<128xf32>
      %13 = vector.multi_reduction <add>, %12, %cst_12 [0] : vector<256x128xf32> to vector<128xf32>
      %14 = vector.shape_cast %13 : vector<128xf32> to vector<1x128xf32>
      %cst_13 = arith.constant 3.906250e-03 : f32
      %15 = vector.broadcast %cst_13 : f32 to vector<1x128xf32>
      %16 = arith.mulf %14, %15 : vector<1x128xf32>
      %17 = vector.broadcast %16 : vector<1x128xf32> to vector<256x128xf32>
      %18 = arith.subf %12, %17 : vector<256x128xf32>
      %19 = arith.mulf %18, %18 : vector<256x128xf32>
      %cst_14 = arith.constant dense<0.000000e+00> : vector<128xf32>
      %20 = vector.multi_reduction <add>, %19, %cst_14 [0] : vector<256x128xf32> to vector<128xf32>
      %21 = vector.shape_cast %20 : vector<128xf32> to vector<1x128xf32>
      %cst_15 = arith.constant 3.906250e-03 : f32
      %22 = vector.broadcast %cst_15 : f32 to vector<1x128xf32>
      %23 = arith.mulf %21, %22 : vector<1x128xf32>
      %cst_16 = arith.constant 9.99999974E-6 : f32
      %24 = vector.broadcast %cst_16 : f32 to vector<1x128xf32>
      %25 = arith.addf %23, %24 : vector<1x128xf32>
      %26 = math.rsqrt %25 : vector<1x128xf32>
      %27 = vector.broadcast %26 : vector<1x128xf32> to vector<256x128xf32>
      %28 = arith.mulf %18, %27 : vector<256x128xf32>
      %c0_17 = arith.constant 0 : index
      %c0_18 = arith.constant 0 : index
      %29 = vector.load %arg6[%c0_17, %c0_18] : memref<1x128xf32, #tpu.memory_space<vmem>>, vector<1x128xf32>
      %30 = vector.broadcast %29 : vector<1x128xf32> to vector<256x128xf32>
      %31 = arith.mulf %28, %30 : vector<256x128xf32>
      %c0_19 = arith.constant 0 : index
      %c0_20 = arith.constant 0 : index
      %32 = vector.load %arg7[%c0_19, %c0_20] : memref<1x128xf32, #tpu.memory_space<vmem>>, vector<1x128xf32>
      %33 = vector.broadcast %32 : vector<1x128xf32> to vector<256x128xf32>
      %34 = arith.addf %31, %33 : vector<256x128xf32>
      %cst_21 = arith.constant 0.000000e+00 : f32
      %35 = vector.broadcast %cst_21 : f32 to vector<256x128xf32>
      %36 = arith.maximumf %34, %35 : vector<256x128xf32>
      %37 = arith.truncf %36 : vector<256x128xf32> to vector<256x128xbf16>
      %c0_22 = arith.constant 0 : index
      %c0_23 = arith.constant 0 : index
      %38 = vector.load %arg8[%c0_22, %c0_23] : memref<256x128xbf16, #tpu.memory_space<vmem>>, vector<256x128xbf16>
      tpu.vector_store %arg8[%c0_22, %c0_23], %37 {strides = array<i32>} : memref<256x128xbf16, #tpu.memory_space<vmem>>, vector<256x128xbf16>,
    } else {
    }
    return
  }
  func.func @transform_0(%arg0: i32, %arg1: i32, %arg2: i32) -> (i32, i32) {
    %c0_i32 = arith.constant 0 : i32
    return %arg0, %arg2 : i32, i32
  }
  func.func @transform_1(%arg0: i32, %arg1: i32, %arg2: i32) -> (i32, i32) {
    %c0_i32 = arith.constant 0 : i32
    return %arg2, %arg1 : i32, i32
  }
  func.func @transform_2(%arg0: i32, %arg1: i32, %arg2: i32) -> (i32, i32) {
    %c0_i32 = arith.constant 0 : i32
    %c0_i32_0 = arith.constant 0 : i32
    return %c0_i32, %arg1 : i32, i32
  }
  func.func @transform_3(%arg0: i32, %arg1: i32, %arg2: i32) -> (i32, i32) {
    %c0_i32 = arith.constant 0 : i32
    %c0_i32_0 = arith.constant 0 : i32
    return %c0_i32, %arg1 : i32, i32
  }
  func.func @transform_4(%arg0: i32, %arg1: i32, %arg2: i32) -> (i32, i32) {
    %c0_i32 = arith.constant 0 : i32
    %c0_i32_0 = arith.constant 0 : i32
    return %c0_i32, %arg1 : i32, i32
  }
  func.func @transform_5(%arg0: i32, %arg1: i32, %arg2: i32) -> (i32, i32) {
    %c0_i32 = arith.constant 0 : i32
    return %arg0, %arg1 : i32, i32
  }
}

module attributes {stable_mosaic.version = 11 : i64} {
  func.func @_fused_conv_kernel(%arg0: i32, %arg1: i32, %arg2: i32, %arg3: memref<64x2048xbf16, #tpu.memory_space<vmem>>, %arg4: memref<2048x128xbf16, #tpu.memory_space<vmem>>, %arg5: memref<1x128xf32, #tpu.memory_space<vmem>>, %arg6: memref<1x128xf32, #tpu.memory_space<vmem>>, %arg7: memref<1x128xf32, #tpu.memory_space<vmem>>, %arg8: memref<64x128xbf16, #tpu.memory_space<vmem>>, %arg9: memref<64x128xf32, #tpu.memory_space<vmem>>) attributes {dimension_semantics = [#tpu.dimension_semantics<parallel>, #tpu.dimension_semantics<parallel>, #tpu.dimension_semantics<arbitrary>], iteration_bounds = array<i64: 2, 1, 1>, scalar_prefetch = 0 : i64, scratch_operands = 1 : i64, tpu.core_type = #tpu.core_type<tc>, window_params = [{transform_indices = @transform_0, window_bounds = array<i64: 64, 2048>}, {transform_indices = @transform_1, window_bounds = array<i64: 2048, 128>}, {transform_indices = @transform_2, window_bounds = array<i64: 1, 128>}, {transform_indices = @transform_3, window_bounds = array<i64: 1, 128>}, {transform_indices = @transform_4, window_bounds = array<i64: 1, 128>}, {transform_indices = @transform_5, window_bounds = array<i64: 64, 128>}]} {
    %c0_i32 = arith.constant 0 : i32
    %0 = arith.cmpi eq, %arg2, %c0_i32 : i32
    %1 = arith.extui %0 : i1 to i32
    %c0_i32_0 = arith.constant 0 : i32
    %2 = arith.cmpi ne, %1, %c0_i32_0 : i32
    scf.if %2 {
      %cst_10 = arith.constant 0.000000e+00 : f32
      %12 = vector.broadcast %cst_10 : f32 to vector<64x128xf32>
      %c0_11 = arith.constant 0 : index
      %c0_12 = arith.constant 0 : index
      %13 = vector.load %arg5[%c0_11, %c0_12] : memref<1x128xf32, #tpu.memory_space<vmem>>, vector<1x128xf32>
      %14 = vector.broadcast %13 : vector<1x128xf32> to vector<64x128xf32>
      %15 = arith.addf %12, %14 : vector<64x128xf32>
      %c0_13 = arith.constant 0 : index
      %c0_14 = arith.constant 0 : index
      %16 = vector.load %arg9[%c0_13, %c0_14] : memref<64x128xf32, #tpu.memory_space<vmem>>, vector<64x128xf32>
      tpu.vector_store %arg9[%c0_13, %c0_14], %15 {strides = array<i32>} : memref<64x128xf32, #tpu.memory_space<vmem>>, vector<64x128xf32>,
    } else {
    }
    %c0 = arith.constant 0 : index
    %c0_1 = arith.constant 0 : index
    %3 = vector.load %arg9[%c0, %c0_1] : memref<64x128xf32, #tpu.memory_space<vmem>>, vector<64x128xf32>
    %c0_2 = arith.constant 0 : index
    %c0_3 = arith.constant 0 : index
    %4 = vector.load %arg3[%c0_2, %c0_3] : memref<64x2048xbf16, #tpu.memory_space<vmem>>, vector<64x2048xbf16>
    %c0_4 = arith.constant 0 : index
    %c0_5 = arith.constant 0 : index
    %5 = vector.load %arg4[%c0_4, %c0_5] : memref<2048x128xbf16, #tpu.memory_space<vmem>>, vector<2048x128xbf16>
    %cst = arith.constant dense<0.000000e+00> : vector<64x128xf32>
    %6 = tpu.matmul %4, %5, %cst {dimension_numbers = #tpu.dot_dimension_numbers<[1], [0], [0], [1], [0, 0, 1, 1], [], []>} : vector<64x2048xbf16>, vector<2048x128xbf16>, vector<64x128xf32> -> vector<64x128xf32>
    %7 = arith.addf %3, %6 : vector<64x128xf32>
    %c0_6 = arith.constant 0 : index
    %c0_7 = arith.constant 0 : index
    %8 = vector.load %arg9[%c0_6, %c0_7] : memref<64x128xf32, #tpu.memory_space<vmem>>, vector<64x128xf32>
    tpu.vector_store %arg9[%c0_6, %c0_7], %7 {strides = array<i32>} : memref<64x128xf32, #tpu.memory_space<vmem>>, vector<64x128xf32>,
    %c0_i32_8 = arith.constant 0 : i32
    %9 = arith.cmpi eq, %arg2, %c0_i32_8 : i32
    %10 = arith.extui %9 : i1 to i32
    %c0_i32_9 = arith.constant 0 : i32
    %11 = arith.cmpi ne, %10, %c0_i32_9 : i32
    scf.if %11 {
      %c0_10 = arith.constant 0 : index
      %c0_11 = arith.constant 0 : index
      %12 = vector.load %arg9[%c0_10, %c0_11] : memref<64x128xf32, #tpu.memory_space<vmem>>, vector<64x128xf32>
      %cst_12 = arith.constant dense<0.000000e+00> : vector<128xf32>
      %13 = vector.multi_reduction <add>, %12, %cst_12 [0] : vector<64x128xf32> to vector<128xf32>
      %14 = vector.shape_cast %13 : vector<128xf32> to vector<1x128xf32>
      %cst_13 = arith.constant 1.562500e-02 : f32
      %15 = vector.broadcast %cst_13 : f32 to vector<1x128xf32>
      %16 = arith.mulf %14, %15 : vector<1x128xf32>
      %17 = vector.broadcast %16 : vector<1x128xf32> to vector<64x128xf32>
      %18 = arith.subf %12, %17 : vector<64x128xf32>
      %19 = arith.mulf %18, %18 : vector<64x128xf32>
      %cst_14 = arith.constant dense<0.000000e+00> : vector<128xf32>
      %20 = vector.multi_reduction <add>, %19, %cst_14 [0] : vector<64x128xf32> to vector<128xf32>
      %21 = vector.shape_cast %20 : vector<128xf32> to vector<1x128xf32>
      %cst_15 = arith.constant 1.562500e-02 : f32
      %22 = vector.broadcast %cst_15 : f32 to vector<1x128xf32>
      %23 = arith.mulf %21, %22 : vector<1x128xf32>
      %cst_16 = arith.constant 9.99999974E-6 : f32
      %24 = vector.broadcast %cst_16 : f32 to vector<1x128xf32>
      %25 = arith.addf %23, %24 : vector<1x128xf32>
      %26 = math.rsqrt %25 : vector<1x128xf32>
      %27 = vector.broadcast %26 : vector<1x128xf32> to vector<64x128xf32>
      %28 = arith.mulf %18, %27 : vector<64x128xf32>
      %c0_17 = arith.constant 0 : index
      %c0_18 = arith.constant 0 : index
      %29 = vector.load %arg6[%c0_17, %c0_18] : memref<1x128xf32, #tpu.memory_space<vmem>>, vector<1x128xf32>
      %30 = vector.broadcast %29 : vector<1x128xf32> to vector<64x128xf32>
      %31 = arith.mulf %28, %30 : vector<64x128xf32>
      %c0_19 = arith.constant 0 : index
      %c0_20 = arith.constant 0 : index
      %32 = vector.load %arg7[%c0_19, %c0_20] : memref<1x128xf32, #tpu.memory_space<vmem>>, vector<1x128xf32>
      %33 = vector.broadcast %32 : vector<1x128xf32> to vector<64x128xf32>
      %34 = arith.addf %31, %33 : vector<64x128xf32>
      %cst_21 = arith.constant 0.000000e+00 : f32
      %35 = vector.broadcast %cst_21 : f32 to vector<64x128xf32>
      %36 = arith.maximumf %34, %35 : vector<64x128xf32>
      %37 = arith.truncf %36 : vector<64x128xf32> to vector<64x128xbf16>
      %c0_22 = arith.constant 0 : index
      %c0_23 = arith.constant 0 : index
      %38 = vector.load %arg8[%c0_22, %c0_23] : memref<64x128xbf16, #tpu.memory_space<vmem>>, vector<64x128xbf16>
      tpu.vector_store %arg8[%c0_22, %c0_23], %37 {strides = array<i32>} : memref<64x128xbf16, #tpu.memory_space<vmem>>, vector<64x128xbf16>,
    } else {
    }
    return
  }
  func.func @transform_0(%arg0: i32, %arg1: i32, %arg2: i32) -> (i32, i32) {
    %c0_i32 = arith.constant 0 : i32
    return %arg0, %arg2 : i32, i32
  }
  func.func @transform_1(%arg0: i32, %arg1: i32, %arg2: i32) -> (i32, i32) {
    %c0_i32 = arith.constant 0 : i32
    return %arg2, %arg1 : i32, i32
  }
  func.func @transform_2(%arg0: i32, %arg1: i32, %arg2: i32) -> (i32, i32) {
    %c0_i32 = arith.constant 0 : i32
    %c0_i32_0 = arith.constant 0 : i32
    return %c0_i32, %arg1 : i32, i32
  }
  func.func @transform_3(%arg0: i32, %arg1: i32, %arg2: i32) -> (i32, i32) {
    %c0_i32 = arith.constant 0 : i32
    %c0_i32_0 = arith.constant 0 : i32
    return %c0_i32, %arg1 : i32, i32
  }
  func.func @transform_4(%arg0: i32, %arg1: i32, %arg2: i32) -> (i32, i32) {
    %c0_i32 = arith.constant 0 : i32
    %c0_i32_0 = arith.constant 0 : i32
    return %c0_i32, %arg1 : i32, i32
  }
  func.func @transform_5(%arg0: i32, %arg1: i32, %arg2: i32) -> (i32, i32) {
    %c0_i32 = arith.constant 0 : i32
    return %arg0, %arg1 : i32, i32
  }
}

module attributes {stable_mosaic.version = 11 : i64} {
  func.func @_fused_conv_kernel(%arg0: i32, %arg1: i32, %arg2: i32, %arg3: memref<16x2048xbf16, #tpu.memory_space<vmem>>, %arg4: memref<2048x128xbf16, #tpu.memory_space<vmem>>, %arg5: memref<1x128xf32, #tpu.memory_space<vmem>>, %arg6: memref<1x128xf32, #tpu.memory_space<vmem>>, %arg7: memref<1x128xf32, #tpu.memory_space<vmem>>, %arg8: memref<16x128xbf16, #tpu.memory_space<vmem>>, %arg9: memref<16x128xf32, #tpu.memory_space<vmem>>) attributes {dimension_semantics = [#tpu.dimension_semantics<parallel>, #tpu.dimension_semantics<parallel>, #tpu.dimension_semantics<arbitrary>], iteration_bounds = array<i64: 2, 1, 1>, scalar_prefetch = 0 : i64, scratch_operands = 1 : i64, tpu.core_type = #tpu.core_type<tc>, window_params = [{transform_indices = @transform_0, window_bounds = array<i64: 16, 2048>}, {transform_indices = @transform_1, window_bounds = array<i64: 2048, 128>}, {transform_indices = @transform_2, window_bounds = array<i64: 1, 128>}, {transform_indices = @transform_3, window_bounds = array<i64: 1, 128>}, {transform_indices = @transform_4, window_bounds = array<i64: 1, 128>}, {transform_indices = @transform_5, window_bounds = array<i64: 16, 128>}]} {
    %c0_i32 = arith.constant 0 : i32
    %0 = arith.cmpi eq, %arg2, %c0_i32 : i32
    %1 = arith.extui %0 : i1 to i32
    %c0_i32_0 = arith.constant 0 : i32
    %2 = arith.cmpi ne, %1, %c0_i32_0 : i32
    scf.if %2 {
      %cst_10 = arith.constant 0.000000e+00 : f32
      %12 = vector.broadcast %cst_10 : f32 to vector<16x128xf32>
      %c0_11 = arith.constant 0 : index
      %c0_12 = arith.constant 0 : index
      %13 = vector.load %arg5[%c0_11, %c0_12] : memref<1x128xf32, #tpu.memory_space<vmem>>, vector<1x128xf32>
      %14 = vector.broadcast %13 : vector<1x128xf32> to vector<16x128xf32>
      %15 = arith.addf %12, %14 : vector<16x128xf32>
      %c0_13 = arith.constant 0 : index
      %c0_14 = arith.constant 0 : index
      %16 = vector.load %arg9[%c0_13, %c0_14] : memref<16x128xf32, #tpu.memory_space<vmem>>, vector<16x128xf32>
      tpu.vector_store %arg9[%c0_13, %c0_14], %15 {strides = array<i32>} : memref<16x128xf32, #tpu.memory_space<vmem>>, vector<16x128xf32>,
    } else {
    }
    %c0 = arith.constant 0 : index
    %c0_1 = arith.constant 0 : index
    %3 = vector.load %arg9[%c0, %c0_1] : memref<16x128xf32, #tpu.memory_space<vmem>>, vector<16x128xf32>
    %c0_2 = arith.constant 0 : index
    %c0_3 = arith.constant 0 : index
    %4 = vector.load %arg3[%c0_2, %c0_3] : memref<16x2048xbf16, #tpu.memory_space<vmem>>, vector<16x2048xbf16>
    %c0_4 = arith.constant 0 : index
    %c0_5 = arith.constant 0 : index
    %5 = vector.load %arg4[%c0_4, %c0_5] : memref<2048x128xbf16, #tpu.memory_space<vmem>>, vector<2048x128xbf16>
    %cst = arith.constant dense<0.000000e+00> : vector<16x128xf32>
    %6 = tpu.matmul %4, %5, %cst {dimension_numbers = #tpu.dot_dimension_numbers<[1], [0], [0], [1], [0, 0, 1, 1], [], []>} : vector<16x2048xbf16>, vector<2048x128xbf16>, vector<16x128xf32> -> vector<16x128xf32>
    %7 = arith.addf %3, %6 : vector<16x128xf32>
    %c0_6 = arith.constant 0 : index
    %c0_7 = arith.constant 0 : index
    %8 = vector.load %arg9[%c0_6, %c0_7] : memref<16x128xf32, #tpu.memory_space<vmem>>, vector<16x128xf32>
    tpu.vector_store %arg9[%c0_6, %c0_7], %7 {strides = array<i32>} : memref<16x128xf32, #tpu.memory_space<vmem>>, vector<16x128xf32>,
    %c0_i32_8 = arith.constant 0 : i32
    %9 = arith.cmpi eq, %arg2, %c0_i32_8 : i32
    %10 = arith.extui %9 : i1 to i32
    %c0_i32_9 = arith.constant 0 : i32
    %11 = arith.cmpi ne, %10, %c0_i32_9 : i32
    scf.if %11 {
      %c0_10 = arith.constant 0 : index
      %c0_11 = arith.constant 0 : index
      %12 = vector.load %arg9[%c0_10, %c0_11] : memref<16x128xf32, #tpu.memory_space<vmem>>, vector<16x128xf32>
      %cst_12 = arith.constant dense<0.000000e+00> : vector<128xf32>
      %13 = vector.multi_reduction <add>, %12, %cst_12 [0] : vector<16x128xf32> to vector<128xf32>
      %14 = vector.shape_cast %13 : vector<128xf32> to vector<1x128xf32>
      %cst_13 = arith.constant 6.250000e-02 : f32
      %15 = vector.broadcast %cst_13 : f32 to vector<1x128xf32>
      %16 = arith.mulf %14, %15 : vector<1x128xf32>
      %17 = vector.broadcast %16 : vector<1x128xf32> to vector<16x128xf32>
      %18 = arith.subf %12, %17 : vector<16x128xf32>
      %19 = arith.mulf %18, %18 : vector<16x128xf32>
      %cst_14 = arith.constant dense<0.000000e+00> : vector<128xf32>
      %20 = vector.multi_reduction <add>, %19, %cst_14 [0] : vector<16x128xf32> to vector<128xf32>
      %21 = vector.shape_cast %20 : vector<128xf32> to vector<1x128xf32>
      %cst_15 = arith.constant 6.250000e-02 : f32
      %22 = vector.broadcast %cst_15 : f32 to vector<1x128xf32>
      %23 = arith.mulf %21, %22 : vector<1x128xf32>
      %cst_16 = arith.constant 9.99999974E-6 : f32
      %24 = vector.broadcast %cst_16 : f32 to vector<1x128xf32>
      %25 = arith.addf %23, %24 : vector<1x128xf32>
      %26 = math.rsqrt %25 : vector<1x128xf32>
      %27 = vector.broadcast %26 : vector<1x128xf32> to vector<16x128xf32>
      %28 = arith.mulf %18, %27 : vector<16x128xf32>
      %c0_17 = arith.constant 0 : index
      %c0_18 = arith.constant 0 : index
      %29 = vector.load %arg6[%c0_17, %c0_18] : memref<1x128xf32, #tpu.memory_space<vmem>>, vector<1x128xf32>
      %30 = vector.broadcast %29 : vector<1x128xf32> to vector<16x128xf32>
      %31 = arith.mulf %28, %30 : vector<16x128xf32>
      %c0_19 = arith.constant 0 : index
      %c0_20 = arith.constant 0 : index
      %32 = vector.load %arg7[%c0_19, %c0_20] : memref<1x128xf32, #tpu.memory_space<vmem>>, vector<1x128xf32>
      %33 = vector.broadcast %32 : vector<1x128xf32> to vector<16x128xf32>
      %34 = arith.addf %31, %33 : vector<16x128xf32>
      %cst_21 = arith.constant 0.000000e+00 : f32
      %35 = vector.broadcast %cst_21 : f32 to vector<16x128xf32>
      %36 = arith.maximumf %34, %35 : vector<16x128xf32>
      %37 = arith.truncf %36 : vector<16x128xf32> to vector<16x128xbf16>
      %c0_22 = arith.constant 0 : index
      %c0_23 = arith.constant 0 : index
      %38 = vector.load %arg8[%c0_22, %c0_23] : memref<16x128xbf16, #tpu.memory_space<vmem>>, vector<16x128xbf16>
      tpu.vector_store %arg8[%c0_22, %c0_23], %37 {strides = array<i32>} : memref<16x128xbf16, #tpu.memory_space<vmem>>, vector<16x128xbf16>,
    } else {
    }
    return
  }
  func.func @transform_0(%arg0: i32, %arg1: i32, %arg2: i32) -> (i32, i32) {
    %c0_i32 = arith.constant 0 : i32
    return %arg0, %arg2 : i32, i32
  }
  func.func @transform_1(%arg0: i32, %arg1: i32, %arg2: i32) -> (i32, i32) {
    %c0_i32 = arith.constant 0 : i32
    return %arg2, %arg1 : i32, i32
  }
  func.func @transform_2(%arg0: i32, %arg1: i32, %arg2: i32) -> (i32, i32) {
    %c0_i32 = arith.constant 0 : i32
    %c0_i32_0 = arith.constant 0 : i32
    return %c0_i32, %arg1 : i32, i32
  }
  func.func @transform_3(%arg0: i32, %arg1: i32, %arg2: i32) -> (i32, i32) {
    %c0_i32 = arith.constant 0 : i32
    %c0_i32_0 = arith.constant 0 : i32
    return %c0_i32, %arg1 : i32, i32
  }
  func.func @transform_4(%arg0: i32, %arg1: i32, %arg2: i32) -> (i32, i32) {
    %c0_i32 = arith.constant 0 : i32
    %c0_i32_0 = arith.constant 0 : i32
    return %c0_i32, %arg1 : i32, i32
  }
  func.func @transform_5(%arg0: i32, %arg1: i32, %arg2: i32) -> (i32, i32) {
    %c0_i32 = arith.constant 0 : i32
    return %arg0, %arg1 : i32, i32
  }
}

module attributes {stable_mosaic.version = 11 : i64} {
  func.func @_fused_conv_kernel(%arg0: i32, %arg1: i32, %arg2: i32, %arg3: memref<16x1152xbf16, #tpu.memory_space<vmem>>, %arg4: memref<1152x128xbf16, #tpu.memory_space<vmem>>, %arg5: memref<1x128xf32, #tpu.memory_space<vmem>>, %arg6: memref<1x128xf32, #tpu.memory_space<vmem>>, %arg7: memref<1x128xf32, #tpu.memory_space<vmem>>, %arg8: memref<16x128xbf16, #tpu.memory_space<vmem>>, %arg9: memref<16x128xf32, #tpu.memory_space<vmem>>) attributes {dimension_semantics = [#tpu.dimension_semantics<parallel>, #tpu.dimension_semantics<parallel>, #tpu.dimension_semantics<arbitrary>], iteration_bounds = array<i64: 2, 1, 1>, scalar_prefetch = 0 : i64, scratch_operands = 1 : i64, tpu.core_type = #tpu.core_type<tc>, window_params = [{transform_indices = @transform_0, window_bounds = array<i64: 16, 1152>}, {transform_indices = @transform_1, window_bounds = array<i64: 1152, 128>}, {transform_indices = @transform_2, window_bounds = array<i64: 1, 128>}, {transform_indices = @transform_3, window_bounds = array<i64: 1, 128>}, {transform_indices = @transform_4, window_bounds = array<i64: 1, 128>}, {transform_indices = @transform_5, window_bounds = array<i64: 16, 128>}]} {
    %c0_i32 = arith.constant 0 : i32
    %0 = arith.cmpi eq, %arg2, %c0_i32 : i32
    %1 = arith.extui %0 : i1 to i32
    %c0_i32_0 = arith.constant 0 : i32
    %2 = arith.cmpi ne, %1, %c0_i32_0 : i32
    scf.if %2 {
      %cst_10 = arith.constant 0.000000e+00 : f32
      %12 = vector.broadcast %cst_10 : f32 to vector<16x128xf32>
      %c0_11 = arith.constant 0 : index
      %c0_12 = arith.constant 0 : index
      %13 = vector.load %arg5[%c0_11, %c0_12] : memref<1x128xf32, #tpu.memory_space<vmem>>, vector<1x128xf32>
      %14 = vector.broadcast %13 : vector<1x128xf32> to vector<16x128xf32>
      %15 = arith.addf %12, %14 : vector<16x128xf32>
      %c0_13 = arith.constant 0 : index
      %c0_14 = arith.constant 0 : index
      %16 = vector.load %arg9[%c0_13, %c0_14] : memref<16x128xf32, #tpu.memory_space<vmem>>, vector<16x128xf32>
      tpu.vector_store %arg9[%c0_13, %c0_14], %15 {strides = array<i32>} : memref<16x128xf32, #tpu.memory_space<vmem>>, vector<16x128xf32>,
    } else {
    }
    %c0 = arith.constant 0 : index
    %c0_1 = arith.constant 0 : index
    %3 = vector.load %arg9[%c0, %c0_1] : memref<16x128xf32, #tpu.memory_space<vmem>>, vector<16x128xf32>
    %c0_2 = arith.constant 0 : index
    %c0_3 = arith.constant 0 : index
    %4 = vector.load %arg3[%c0_2, %c0_3] : memref<16x1152xbf16, #tpu.memory_space<vmem>>, vector<16x1152xbf16>
    %c0_4 = arith.constant 0 : index
    %c0_5 = arith.constant 0 : index
    %5 = vector.load %arg4[%c0_4, %c0_5] : memref<1152x128xbf16, #tpu.memory_space<vmem>>, vector<1152x128xbf16>
    %cst = arith.constant dense<0.000000e+00> : vector<16x128xf32>
    %6 = tpu.matmul %4, %5, %cst {dimension_numbers = #tpu.dot_dimension_numbers<[1], [0], [0], [1], [0, 0, 1, 1], [], []>} : vector<16x1152xbf16>, vector<1152x128xbf16>, vector<16x128xf32> -> vector<16x128xf32>
    %7 = arith.addf %3, %6 : vector<16x128xf32>
    %c0_6 = arith.constant 0 : index
    %c0_7 = arith.constant 0 : index
    %8 = vector.load %arg9[%c0_6, %c0_7] : memref<16x128xf32, #tpu.memory_space<vmem>>, vector<16x128xf32>
    tpu.vector_store %arg9[%c0_6, %c0_7], %7 {strides = array<i32>} : memref<16x128xf32, #tpu.memory_space<vmem>>, vector<16x128xf32>,
    %c0_i32_8 = arith.constant 0 : i32
    %9 = arith.cmpi eq, %arg2, %c0_i32_8 : i32
    %10 = arith.extui %9 : i1 to i32
    %c0_i32_9 = arith.constant 0 : i32
    %11 = arith.cmpi ne, %10, %c0_i32_9 : i32
    scf.if %11 {
      %c0_10 = arith.constant 0 : index
      %c0_11 = arith.constant 0 : index
      %12 = vector.load %arg9[%c0_10, %c0_11] : memref<16x128xf32, #tpu.memory_space<vmem>>, vector<16x128xf32>
      %cst_12 = arith.constant dense<0.000000e+00> : vector<128xf32>
      %13 = vector.multi_reduction <add>, %12, %cst_12 [0] : vector<16x128xf32> to vector<128xf32>
      %14 = vector.shape_cast %13 : vector<128xf32> to vector<1x128xf32>
      %cst_13 = arith.constant 6.250000e-02 : f32
      %15 = vector.broadcast %cst_13 : f32 to vector<1x128xf32>
      %16 = arith.mulf %14, %15 : vector<1x128xf32>
      %17 = vector.broadcast %16 : vector<1x128xf32> to vector<16x128xf32>
      %18 = arith.subf %12, %17 : vector<16x128xf32>
      %19 = arith.mulf %18, %18 : vector<16x128xf32>
      %cst_14 = arith.constant dense<0.000000e+00> : vector<128xf32>
      %20 = vector.multi_reduction <add>, %19, %cst_14 [0] : vector<16x128xf32> to vector<128xf32>
      %21 = vector.shape_cast %20 : vector<128xf32> to vector<1x128xf32>
      %cst_15 = arith.constant 6.250000e-02 : f32
      %22 = vector.broadcast %cst_15 : f32 to vector<1x128xf32>
      %23 = arith.mulf %21, %22 : vector<1x128xf32>
      %cst_16 = arith.constant 9.99999974E-6 : f32
      %24 = vector.broadcast %cst_16 : f32 to vector<1x128xf32>
      %25 = arith.addf %23, %24 : vector<1x128xf32>
      %26 = math.rsqrt %25 : vector<1x128xf32>
      %27 = vector.broadcast %26 : vector<1x128xf32> to vector<16x128xf32>
      %28 = arith.mulf %18, %27 : vector<16x128xf32>
      %c0_17 = arith.constant 0 : index
      %c0_18 = arith.constant 0 : index
      %29 = vector.load %arg6[%c0_17, %c0_18] : memref<1x128xf32, #tpu.memory_space<vmem>>, vector<1x128xf32>
      %30 = vector.broadcast %29 : vector<1x128xf32> to vector<16x128xf32>
      %31 = arith.mulf %28, %30 : vector<16x128xf32>
      %c0_19 = arith.constant 0 : index
      %c0_20 = arith.constant 0 : index
      %32 = vector.load %arg7[%c0_19, %c0_20] : memref<1x128xf32, #tpu.memory_space<vmem>>, vector<1x128xf32>
      %33 = vector.broadcast %32 : vector<1x128xf32> to vector<16x128xf32>
      %34 = arith.addf %31, %33 : vector<16x128xf32>
      %cst_21 = arith.constant 0.000000e+00 : f32
      %35 = vector.broadcast %cst_21 : f32 to vector<16x128xf32>
      %36 = arith.maximumf %34, %35 : vector<16x128xf32>
      %37 = arith.truncf %36 : vector<16x128xf32> to vector<16x128xbf16>
      %c0_22 = arith.constant 0 : index
      %c0_23 = arith.constant 0 : index
      %38 = vector.load %arg8[%c0_22, %c0_23] : memref<16x128xbf16, #tpu.memory_space<vmem>>, vector<16x128xbf16>
      tpu.vector_store %arg8[%c0_22, %c0_23], %37 {strides = array<i32>} : memref<16x128xbf16, #tpu.memory_space<vmem>>, vector<16x128xbf16>,
    } else {
    }
    return
  }
  func.func @transform_0(%arg0: i32, %arg1: i32, %arg2: i32) -> (i32, i32) {
    %c0_i32 = arith.constant 0 : i32
    return %arg0, %arg2 : i32, i32
  }
  func.func @transform_1(%arg0: i32, %arg1: i32, %arg2: i32) -> (i32, i32) {
    %c0_i32 = arith.constant 0 : i32
    return %arg2, %arg1 : i32, i32
  }
  func.func @transform_2(%arg0: i32, %arg1: i32, %arg2: i32) -> (i32, i32) {
    %c0_i32 = arith.constant 0 : i32
    %c0_i32_0 = arith.constant 0 : i32
    return %c0_i32, %arg1 : i32, i32
  }
  func.func @transform_3(%arg0: i32, %arg1: i32, %arg2: i32) -> (i32, i32) {
    %c0_i32 = arith.constant 0 : i32
    %c0_i32_0 = arith.constant 0 : i32
    return %c0_i32, %arg1 : i32, i32
  }
  func.func @transform_4(%arg0: i32, %arg1: i32, %arg2: i32) -> (i32, i32) {
    %c0_i32 = arith.constant 0 : i32
    %c0_i32_0 = arith.constant 0 : i32
    return %c0_i32, %arg1 : i32, i32
  }
  func.func @transform_5(%arg0: i32, %arg1: i32, %arg2: i32) -> (i32, i32) {
    %c0_i32 = arith.constant 0 : i32
    return %arg0, %arg1 : i32, i32
  }
}

module attributes {stable_mosaic.version = 11 : i64} {
  func.func @_fused_conv_kernel(%arg0: i32, %arg1: i32, %arg2: i32, %arg3: memref<16x1152xbf16, #tpu.memory_space<vmem>>, %arg4: memref<1152x128xbf16, #tpu.memory_space<vmem>>, %arg5: memref<1x128xf32, #tpu.memory_space<vmem>>, %arg6: memref<1x128xf32, #tpu.memory_space<vmem>>, %arg7: memref<1x128xf32, #tpu.memory_space<vmem>>, %arg8: memref<16x128xbf16, #tpu.memory_space<vmem>>, %arg9: memref<16x128xbf16, #tpu.memory_space<vmem>>, %arg10: memref<16x128xf32, #tpu.memory_space<vmem>>) attributes {dimension_semantics = [#tpu.dimension_semantics<parallel>, #tpu.dimension_semantics<parallel>, #tpu.dimension_semantics<arbitrary>], iteration_bounds = array<i64: 2, 1, 1>, scalar_prefetch = 0 : i64, scratch_operands = 1 : i64, tpu.core_type = #tpu.core_type<tc>, window_params = [{transform_indices = @transform_0, window_bounds = array<i64: 16, 1152>}, {transform_indices = @transform_1, window_bounds = array<i64: 1152, 128>}, {transform_indices = @transform_2, window_bounds = array<i64: 1, 128>}, {transform_indices = @transform_3, window_bounds = array<i64: 1, 128>}, {transform_indices = @transform_4, window_bounds = array<i64: 1, 128>}, {transform_indices = @transform_5, window_bounds = array<i64: 16, 128>}, {transform_indices = @transform_6, window_bounds = array<i64: 16, 128>}]} {
    %c0_i32 = arith.constant 0 : i32
    %0 = arith.cmpi eq, %arg2, %c0_i32 : i32
    %1 = arith.extui %0 : i1 to i32
    %c0_i32_0 = arith.constant 0 : i32
    %2 = arith.cmpi ne, %1, %c0_i32_0 : i32
    scf.if %2 {
      %cst_10 = arith.constant 0.000000e+00 : f32
      %12 = vector.broadcast %cst_10 : f32 to vector<16x128xf32>
      %c0_11 = arith.constant 0 : index
      %c0_12 = arith.constant 0 : index
      %13 = vector.load %arg5[%c0_11, %c0_12] : memref<1x128xf32, #tpu.memory_space<vmem>>, vector<1x128xf32>
      %14 = vector.broadcast %13 : vector<1x128xf32> to vector<16x128xf32>
      %15 = arith.addf %12, %14 : vector<16x128xf32>
      %c0_13 = arith.constant 0 : index
      %c0_14 = arith.constant 0 : index
      %16 = vector.load %arg10[%c0_13, %c0_14] : memref<16x128xf32, #tpu.memory_space<vmem>>, vector<16x128xf32>
      tpu.vector_store %arg10[%c0_13, %c0_14], %15 {strides = array<i32>} : memref<16x128xf32, #tpu.memory_space<vmem>>, vector<16x128xf32>,
    } else {
    }
    %c0 = arith.constant 0 : index
    %c0_1 = arith.constant 0 : index
    %3 = vector.load %arg10[%c0, %c0_1] : memref<16x128xf32, #tpu.memory_space<vmem>>, vector<16x128xf32>
    %c0_2 = arith.constant 0 : index
    %c0_3 = arith.constant 0 : index
    %4 = vector.load %arg3[%c0_2, %c0_3] : memref<16x1152xbf16, #tpu.memory_space<vmem>>, vector<16x1152xbf16>
    %c0_4 = arith.constant 0 : index
    %c0_5 = arith.constant 0 : index
    %5 = vector.load %arg4[%c0_4, %c0_5] : memref<1152x128xbf16, #tpu.memory_space<vmem>>, vector<1152x128xbf16>
    %cst = arith.constant dense<0.000000e+00> : vector<16x128xf32>
    %6 = tpu.matmul %4, %5, %cst {dimension_numbers = #tpu.dot_dimension_numbers<[1], [0], [0], [1], [0, 0, 1, 1], [], []>} : vector<16x1152xbf16>, vector<1152x128xbf16>, vector<16x128xf32> -> vector<16x128xf32>
    %7 = arith.addf %3, %6 : vector<16x128xf32>
    %c0_6 = arith.constant 0 : index
    %c0_7 = arith.constant 0 : index
    %8 = vector.load %arg10[%c0_6, %c0_7] : memref<16x128xf32, #tpu.memory_space<vmem>>, vector<16x128xf32>
    tpu.vector_store %arg10[%c0_6, %c0_7], %7 {strides = array<i32>} : memref<16x128xf32, #tpu.memory_space<vmem>>, vector<16x128xf32>,
    %c0_i32_8 = arith.constant 0 : i32
    %9 = arith.cmpi eq, %arg2, %c0_i32_8 : i32
    %10 = arith.extui %9 : i1 to i32
    %c0_i32_9 = arith.constant 0 : i32
    %11 = arith.cmpi ne, %10, %c0_i32_9 : i32
    scf.if %11 {
      %c0_10 = arith.constant 0 : index
      %c0_11 = arith.constant 0 : index
      %12 = vector.load %arg10[%c0_10, %c0_11] : memref<16x128xf32, #tpu.memory_space<vmem>>, vector<16x128xf32>
      %cst_12 = arith.constant dense<0.000000e+00> : vector<128xf32>
      %13 = vector.multi_reduction <add>, %12, %cst_12 [0] : vector<16x128xf32> to vector<128xf32>
      %14 = vector.shape_cast %13 : vector<128xf32> to vector<1x128xf32>
      %cst_13 = arith.constant 6.250000e-02 : f32
      %15 = vector.broadcast %cst_13 : f32 to vector<1x128xf32>
      %16 = arith.mulf %14, %15 : vector<1x128xf32>
      %17 = vector.broadcast %16 : vector<1x128xf32> to vector<16x128xf32>
      %18 = arith.subf %12, %17 : vector<16x128xf32>
      %19 = arith.mulf %18, %18 : vector<16x128xf32>
      %cst_14 = arith.constant dense<0.000000e+00> : vector<128xf32>
      %20 = vector.multi_reduction <add>, %19, %cst_14 [0] : vector<16x128xf32> to vector<128xf32>
      %21 = vector.shape_cast %20 : vector<128xf32> to vector<1x128xf32>
      %cst_15 = arith.constant 6.250000e-02 : f32
      %22 = vector.broadcast %cst_15 : f32 to vector<1x128xf32>
      %23 = arith.mulf %21, %22 : vector<1x128xf32>
      %cst_16 = arith.constant 9.99999974E-6 : f32
      %24 = vector.broadcast %cst_16 : f32 to vector<1x128xf32>
      %25 = arith.addf %23, %24 : vector<1x128xf32>
      %26 = math.rsqrt %25 : vector<1x128xf32>
      %27 = vector.broadcast %26 : vector<1x128xf32> to vector<16x128xf32>
      %28 = arith.mulf %18, %27 : vector<16x128xf32>
      %c0_17 = arith.constant 0 : index
      %c0_18 = arith.constant 0 : index
      %29 = vector.load %arg6[%c0_17, %c0_18] : memref<1x128xf32, #tpu.memory_space<vmem>>, vector<1x128xf32>
      %30 = vector.broadcast %29 : vector<1x128xf32> to vector<16x128xf32>
      %31 = arith.mulf %28, %30 : vector<16x128xf32>
      %c0_19 = arith.constant 0 : index
      %c0_20 = arith.constant 0 : index
      %32 = vector.load %arg7[%c0_19, %c0_20] : memref<1x128xf32, #tpu.memory_space<vmem>>, vector<1x128xf32>
      %33 = vector.broadcast %32 : vector<1x128xf32> to vector<16x128xf32>
      %34 = arith.addf %31, %33 : vector<16x128xf32>
      %c0_21 = arith.constant 0 : index
      %c0_22 = arith.constant 0 : index
      %35 = vector.load %arg8[%c0_21, %c0_22] : memref<16x128xbf16, #tpu.memory_space<vmem>>, vector<16x128xbf16>
      %36 = arith.extf %35 : vector<16x128xbf16> to vector<16x128xf32>
      %37 = arith.addf %34, %36 : vector<16x128xf32>
      %38 = arith.truncf %37 : vector<16x128xf32> to vector<16x128xbf16>
      %c0_23 = arith.constant 0 : index
      %c0_24 = arith.constant 0 : index
      %39 = vector.load %arg9[%c0_23, %c0_24] : memref<16x128xbf16, #tpu.memory_space<vmem>>, vector<16x128xbf16>
      tpu.vector_store %arg9[%c0_23, %c0_24], %38 {strides = array<i32>} : memref<16x128xbf16, #tpu.memory_space<vmem>>, vector<16x128xbf16>,
    } else {
    }
    return
  }
  func.func @transform_0(%arg0: i32, %arg1: i32, %arg2: i32) -> (i32, i32) {
    %c0_i32 = arith.constant 0 : i32
    return %arg0, %arg2 : i32, i32
  }
  func.func @transform_1(%arg0: i32, %arg1: i32, %arg2: i32) -> (i32, i32) {
    %c0_i32 = arith.constant 0 : i32
    return %arg2, %arg1 : i32, i32
  }
  func.func @transform_2(%arg0: i32, %arg1: i32, %arg2: i32) -> (i32, i32) {
    %c0_i32 = arith.constant 0 : i32
    %c0_i32_0 = arith.constant 0 : i32
    return %c0_i32, %arg1 : i32, i32
  }
  func.func @transform_3(%arg0: i32, %arg1: i32, %arg2: i32) -> (i32, i32) {
    %c0_i32 = arith.constant 0 : i32
    %c0_i32_0 = arith.constant 0 : i32
    return %c0_i32, %arg1 : i32, i32
  }
  func.func @transform_4(%arg0: i32, %arg1: i32, %arg2: i32) -> (i32, i32) {
    %c0_i32 = arith.constant 0 : i32
    %c0_i32_0 = arith.constant 0 : i32
    return %c0_i32, %arg1 : i32, i32
  }
  func.func @transform_5(%arg0: i32, %arg1: i32, %arg2: i32) -> (i32, i32) {
    %c0_i32 = arith.constant 0 : i32
    return %arg0, %arg1 : i32, i32
  }
  func.func @transform_6(%arg0: i32, %arg1: i32, %arg2: i32) -> (i32, i32) {
    %c0_i32 = arith.constant 0 : i32
    return %arg0, %arg1 : i32, i32
  }
}

module attributes {stable_mosaic.version = 11 : i64} {
  func.func @_fused_conv_kernel(%arg0: i32, %arg1: i32, %arg2: i32, %arg3: memref<256x2048xbf16, #tpu.memory_space<vmem>>, %arg4: memref<2048x128xbf16, #tpu.memory_space<vmem>>, %arg5: memref<1x128xf32, #tpu.memory_space<vmem>>, %arg6: memref<1x128xf32, #tpu.memory_space<vmem>>, %arg7: memref<1x128xf32, #tpu.memory_space<vmem>>, %arg8: memref<256x128xbf16, #tpu.memory_space<vmem>>, %arg9: memref<256x128xf32, #tpu.memory_space<vmem>>) attributes {dimension_semantics = [#tpu.dimension_semantics<parallel>, #tpu.dimension_semantics<parallel>, #tpu.dimension_semantics<arbitrary>], iteration_bounds = array<i64: 2, 1, 1>, scalar_prefetch = 0 : i64, scratch_operands = 1 : i64, tpu.core_type = #tpu.core_type<tc>, window_params = [{transform_indices = @transform_0, window_bounds = array<i64: 256, 2048>}, {transform_indices = @transform_1, window_bounds = array<i64: 2048, 128>}, {transform_indices = @transform_2, window_bounds = array<i64: 1, 128>}, {transform_indices = @transform_3, window_bounds = array<i64: 1, 128>}, {transform_indices = @transform_4, window_bounds = array<i64: 1, 128>}, {transform_indices = @transform_5, window_bounds = array<i64: 256, 128>}]} {
    %c0_i32 = arith.constant 0 : i32
    %0 = arith.cmpi eq, %arg2, %c0_i32 : i32
    %1 = arith.extui %0 : i1 to i32
    %c0_i32_0 = arith.constant 0 : i32
    %2 = arith.cmpi ne, %1, %c0_i32_0 : i32
    scf.if %2 {
      %cst_10 = arith.constant 0.000000e+00 : f32
      %12 = vector.broadcast %cst_10 : f32 to vector<256x128xf32>
      %c0_11 = arith.constant 0 : index
      %c0_12 = arith.constant 0 : index
      %13 = vector.load %arg5[%c0_11, %c0_12] : memref<1x128xf32, #tpu.memory_space<vmem>>, vector<1x128xf32>
      %14 = vector.broadcast %13 : vector<1x128xf32> to vector<256x128xf32>
      %15 = arith.addf %12, %14 : vector<256x128xf32>
      %c0_13 = arith.constant 0 : index
      %c0_14 = arith.constant 0 : index
      %16 = vector.load %arg9[%c0_13, %c0_14] : memref<256x128xf32, #tpu.memory_space<vmem>>, vector<256x128xf32>
      tpu.vector_store %arg9[%c0_13, %c0_14], %15 {strides = array<i32>} : memref<256x128xf32, #tpu.memory_space<vmem>>, vector<256x128xf32>,
    } else {
    }
    %c0 = arith.constant 0 : index
    %c0_1 = arith.constant 0 : index
    %3 = vector.load %arg9[%c0, %c0_1] : memref<256x128xf32, #tpu.memory_space<vmem>>, vector<256x128xf32>
    %c0_2 = arith.constant 0 : index
    %c0_3 = arith.constant 0 : index
    %4 = vector.load %arg3[%c0_2, %c0_3] : memref<256x2048xbf16, #tpu.memory_space<vmem>>, vector<256x2048xbf16>
    %c0_4 = arith.constant 0 : index
    %c0_5 = arith.constant 0 : index
    %5 = vector.load %arg4[%c0_4, %c0_5] : memref<2048x128xbf16, #tpu.memory_space<vmem>>, vector<2048x128xbf16>
    %cst = arith.constant dense<0.000000e+00> : vector<256x128xf32>
    %6 = tpu.matmul %4, %5, %cst {dimension_numbers = #tpu.dot_dimension_numbers<[1], [0], [0], [1], [0, 0, 1, 1], [], []>} : vector<256x2048xbf16>, vector<2048x128xbf16>, vector<256x128xf32> -> vector<256x128xf32>
    %7 = arith.addf %3, %6 : vector<256x128xf32>
    %c0_6 = arith.constant 0 : index
    %c0_7 = arith.constant 0 : index
    %8 = vector.load %arg9[%c0_6, %c0_7] : memref<256x128xf32, #tpu.memory_space<vmem>>, vector<256x128xf32>
    tpu.vector_store %arg9[%c0_6, %c0_7], %7 {strides = array<i32>} : memref<256x128xf32, #tpu.memory_space<vmem>>, vector<256x128xf32>,
    %c0_i32_8 = arith.constant 0 : i32
    %9 = arith.cmpi eq, %arg2, %c0_i32_8 : i32
    %10 = arith.extui %9 : i1 to i32
    %c0_i32_9 = arith.constant 0 : i32
    %11 = arith.cmpi ne, %10, %c0_i32_9 : i32
    scf.if %11 {
      %c0_10 = arith.constant 0 : index
      %c0_11 = arith.constant 0 : index
      %12 = vector.load %arg9[%c0_10, %c0_11] : memref<256x128xf32, #tpu.memory_space<vmem>>, vector<256x128xf32>
      %cst_12 = arith.constant dense<0.000000e+00> : vector<128xf32>
      %13 = vector.multi_reduction <add>, %12, %cst_12 [0] : vector<256x128xf32> to vector<128xf32>
      %14 = vector.shape_cast %13 : vector<128xf32> to vector<1x128xf32>
      %cst_13 = arith.constant 3.906250e-03 : f32
      %15 = vector.broadcast %cst_13 : f32 to vector<1x128xf32>
      %16 = arith.mulf %14, %15 : vector<1x128xf32>
      %17 = vector.broadcast %16 : vector<1x128xf32> to vector<256x128xf32>
      %18 = arith.subf %12, %17 : vector<256x128xf32>
      %19 = arith.mulf %18, %18 : vector<256x128xf32>
      %cst_14 = arith.constant dense<0.000000e+00> : vector<128xf32>
      %20 = vector.multi_reduction <add>, %19, %cst_14 [0] : vector<256x128xf32> to vector<128xf32>
      %21 = vector.shape_cast %20 : vector<128xf32> to vector<1x128xf32>
      %cst_15 = arith.constant 3.906250e-03 : f32
      %22 = vector.broadcast %cst_15 : f32 to vector<1x128xf32>
      %23 = arith.mulf %21, %22 : vector<1x128xf32>
      %cst_16 = arith.constant 9.99999974E-6 : f32
      %24 = vector.broadcast %cst_16 : f32 to vector<1x128xf32>
      %25 = arith.addf %23, %24 : vector<1x128xf32>
      %26 = math.rsqrt %25 : vector<1x128xf32>
      %27 = vector.broadcast %26 : vector<1x128xf32> to vector<256x128xf32>
      %28 = arith.mulf %18, %27 : vector<256x128xf32>
      %c0_17 = arith.constant 0 : index
      %c0_18 = arith.constant 0 : index
      %29 = vector.load %arg6[%c0_17, %c0_18] : memref<1x128xf32, #tpu.memory_space<vmem>>, vector<1x128xf32>
      %30 = vector.broadcast %29 : vector<1x128xf32> to vector<256x128xf32>
      %31 = arith.mulf %28, %30 : vector<256x128xf32>
      %c0_19 = arith.constant 0 : index
      %c0_20 = arith.constant 0 : index
      %32 = vector.load %arg7[%c0_19, %c0_20] : memref<1x128xf32, #tpu.memory_space<vmem>>, vector<1x128xf32>
      %33 = vector.broadcast %32 : vector<1x128xf32> to vector<256x128xf32>
      %34 = arith.addf %31, %33 : vector<256x128xf32>
      %cst_21 = arith.constant 0.000000e+00 : f32
      %35 = vector.broadcast %cst_21 : f32 to vector<256x128xf32>
      %36 = arith.maximumf %34, %35 : vector<256x128xf32>
      %37 = arith.truncf %36 : vector<256x128xf32> to vector<256x128xbf16>
      %c0_22 = arith.constant 0 : index
      %c0_23 = arith.constant 0 : index
      %38 = vector.load %arg8[%c0_22, %c0_23] : memref<256x128xbf16, #tpu.memory_space<vmem>>, vector<256x128xbf16>
      tpu.vector_store %arg8[%c0_22, %c0_23], %37 {strides = array<i32>} : memref<256x128xbf16, #tpu.memory_space<vmem>>, vector<256x128xbf16>,
    } else {
    }
    return
  }
  func.func @transform_0(%arg0: i32, %arg1: i32, %arg2: i32) -> (i32, i32) {
    %c0_i32 = arith.constant 0 : i32
    return %arg0, %arg2 : i32, i32
  }
  func.func @transform_1(%arg0: i32, %arg1: i32, %arg2: i32) -> (i32, i32) {
    %c0_i32 = arith.constant 0 : i32
    return %arg2, %arg1 : i32, i32
  }
  func.func @transform_2(%arg0: i32, %arg1: i32, %arg2: i32) -> (i32, i32) {
    %c0_i32 = arith.constant 0 : i32
    %c0_i32_0 = arith.constant 0 : i32
    return %c0_i32, %arg1 : i32, i32
  }
  func.func @transform_3(%arg0: i32, %arg1: i32, %arg2: i32) -> (i32, i32) {
    %c0_i32 = arith.constant 0 : i32
    %c0_i32_0 = arith.constant 0 : i32
    return %c0_i32, %arg1 : i32, i32
  }
  func.func @transform_4(%arg0: i32, %arg1: i32, %arg2: i32) -> (i32, i32) {
    %c0_i32 = arith.constant 0 : i32
    %c0_i32_0 = arith.constant 0 : i32
    return %c0_i32, %arg1 : i32, i32
  }
  func.func @transform_5(%arg0: i32, %arg1: i32, %arg2: i32) -> (i32, i32) {
    %c0_i32 = arith.constant 0 : i32
    return %arg0, %arg1 : i32, i32
  }
}

module attributes {stable_mosaic.version = 11 : i64} {
  func.func @_fused_conv_kernel(%arg0: i32, %arg1: i32, %arg2: i32, %arg3: memref<256x896xbf16, #tpu.memory_space<vmem>>, %arg4: memref<896x128xbf16, #tpu.memory_space<vmem>>, %arg5: memref<1x128xf32, #tpu.memory_space<vmem>>, %arg6: memref<256x128xbf16, #tpu.memory_space<vmem>>, %arg7: memref<256x128xf32, #tpu.memory_space<vmem>>) attributes {dimension_semantics = [#tpu.dimension_semantics<parallel>, #tpu.dimension_semantics<parallel>, #tpu.dimension_semantics<arbitrary>], iteration_bounds = array<i64: 2, 1, 7>, scalar_prefetch = 0 : i64, scratch_operands = 1 : i64, tpu.core_type = #tpu.core_type<tc>, window_params = [{transform_indices = @transform_0, window_bounds = array<i64: 256, 896>}, {transform_indices = @transform_1, window_bounds = array<i64: 896, 128>}, {transform_indices = @transform_2, window_bounds = array<i64: 1, 128>}, {transform_indices = @transform_3, window_bounds = array<i64: 256, 128>}]} {
    %c0_i32 = arith.constant 0 : i32
    %0 = arith.cmpi eq, %arg2, %c0_i32 : i32
    %1 = arith.extui %0 : i1 to i32
    %c0_i32_0 = arith.constant 0 : i32
    %2 = arith.cmpi ne, %1, %c0_i32_0 : i32
    scf.if %2 {
      %cst_9 = arith.constant 0.000000e+00 : f32
      %12 = vector.broadcast %cst_9 : f32 to vector<256x128xf32>
      %c0_10 = arith.constant 0 : index
      %c0_11 = arith.constant 0 : index
      %13 = vector.load %arg5[%c0_10, %c0_11] : memref<1x128xf32, #tpu.memory_space<vmem>>, vector<1x128xf32>
      %14 = vector.broadcast %13 : vector<1x128xf32> to vector<256x128xf32>
      %15 = arith.addf %12, %14 : vector<256x128xf32>
      %c0_12 = arith.constant 0 : index
      %c0_13 = arith.constant 0 : index
      %16 = vector.load %arg7[%c0_12, %c0_13] : memref<256x128xf32, #tpu.memory_space<vmem>>, vector<256x128xf32>
      tpu.vector_store %arg7[%c0_12, %c0_13], %15 {strides = array<i32>} : memref<256x128xf32, #tpu.memory_space<vmem>>, vector<256x128xf32>,
    } else {
    }
    %c0 = arith.constant 0 : index
    %c0_1 = arith.constant 0 : index
    %3 = vector.load %arg7[%c0, %c0_1] : memref<256x128xf32, #tpu.memory_space<vmem>>, vector<256x128xf32>
    %c0_2 = arith.constant 0 : index
    %c0_3 = arith.constant 0 : index
    %4 = vector.load %arg3[%c0_2, %c0_3] : memref<256x896xbf16, #tpu.memory_space<vmem>>, vector<256x896xbf16>
    %c0_4 = arith.constant 0 : index
    %c0_5 = arith.constant 0 : index
    %5 = vector.load %arg4[%c0_4, %c0_5] : memref<896x128xbf16, #tpu.memory_space<vmem>>, vector<896x128xbf16>
    %cst = arith.constant dense<0.000000e+00> : vector<256x128xf32>
    %6 = tpu.matmul %4, %5, %cst {dimension_numbers = #tpu.dot_dimension_numbers<[1], [0], [0], [1], [0, 0, 1, 1], [], []>} : vector<256x896xbf16>, vector<896x128xbf16>, vector<256x128xf32> -> vector<256x128xf32>
    %7 = arith.addf %3, %6 : vector<256x128xf32>
    %c0_6 = arith.constant 0 : index
    %c0_7 = arith.constant 0 : index
    %8 = vector.load %arg7[%c0_6, %c0_7] : memref<256x128xf32, #tpu.memory_space<vmem>>, vector<256x128xf32>
    tpu.vector_store %arg7[%c0_6, %c0_7], %7 {strides = array<i32>} : memref<256x128xf32, #tpu.memory_space<vmem>>, vector<256x128xf32>,
    %c6_i32 = arith.constant 6 : i32
    %9 = arith.cmpi eq, %arg2, %c6_i32 : i32
    %10 = arith.extui %9 : i1 to i32
    %c0_i32_8 = arith.constant 0 : i32
    %11 = arith.cmpi ne, %10, %c0_i32_8 : i32
    scf.if %11 {
      %c0_9 = arith.constant 0 : index
      %c0_10 = arith.constant 0 : index
      %12 = vector.load %arg7[%c0_9, %c0_10] : memref<256x128xf32, #tpu.memory_space<vmem>>, vector<256x128xf32>
      %13 = math.tanh %12 : vector<256x128xf32>
      %14 = arith.truncf %13 : vector<256x128xf32> to vector<256x128xbf16>
      %c0_11 = arith.constant 0 : index
      %c0_12 = arith.constant 0 : index
      %15 = vector.load %arg6[%c0_11, %c0_12] : memref<256x128xbf16, #tpu.memory_space<vmem>>, vector<256x128xbf16>
      tpu.vector_store %arg6[%c0_11, %c0_12], %14 {strides = array<i32>} : memref<256x128xbf16, #tpu.memory_space<vmem>>, vector<256x128xbf16>,
    } else {
    }
    return
  }
  func.func @transform_0(%arg0: i32, %arg1: i32, %arg2: i32) -> (i32, i32) {
    %c0_i32 = arith.constant 0 : i32
    return %arg0, %arg2 : i32, i32
  }
  func.func @transform_1(%arg0: i32, %arg1: i32, %arg2: i32) -> (i32, i32) {
    %c0_i32 = arith.constant 0 : i32
    return %arg2, %arg1 : i32, i32
  }
  func.func @transform_2(%arg0: i32, %arg1: i32, %arg2: i32) -> (i32, i32) {
    %c0_i32 = arith.constant 0 : i32
    %c0_i32_0 = arith.constant 0 : i32
    return %c0_i32, %arg1 : i32, i32
  }
  func.func @transform_3(%arg0: i32, %arg1: i32, %arg2: i32) -> (i32, i32) {
    %c0_i32 = arith.constant 0 : i32
    return %arg0, %arg1 : i32, i32
  }
}

</mosaic_0001>

<bundles_post_ra>
// kernel: generator_forward.10
= control target key start
LH: loop header
LB: loop body
LE: loop exit
PB: predicated region body
PF: predicated region fallthrough
CT: control target
= control target key end

     0   :  { %s2559_s18 = smov 0   ;;  %s2561_s19 = smov 0   ;;  %s3068_s0 = inlined_call_operand.vmem [shape: bf16[512,384], index: 0, kind: input, shape index: {}]   ;;  %s3069_s1 = inlined_call_operand.vmem [shape: bf16[384,128], index: 1, kind: input, shape index: {}]   ;;  %s3070_s2 = inlined_call_operand.vmem [shape: f32[1,128], index: 2, kind: input, shape index: {}]   ;;  %s3071_s3 = inlined_call_operand.vmem [shape: f32[1,128], index: 3, kind: input, shape index: {}]   ;;  %s3072_s4 = inlined_call_operand.vmem [shape: f32[1,128], index: 4, kind: input, shape index: {}]   ;;  %s3073_s5 = inlined_call_operand.vmem [shape: bf16[512,128], index: 5, kind: output, shape index: {}]  }
   0x1   :  { %s2563_s20 = smov 0  }
   0x2 LB: > { %s34_s21 = sadd.s32 1, %s2523_s19  ;;  %p1949_p0 = scmp.ge.s32.totalorder %s2527_s20, 1  ;;  %s2527_s20 = sphi %s2563_s20, %s15_s20   ;;  %s2523_s19 = sphi %s2561_s19, %s3075_s19   ;;  %s2519_s18 = sphi %s2559_s18, %s3074_s18  }
   0x3   : > { %p36_p1 = scmp.ge.s32.totalorder %s34_s21, 2  ;;  %p257_p2 = scmp.lt.s32.totalorder %s2527_s20, 3 }
   0x5   : > { %s3077_s21 = smov (%p36_p1, %s34_s21), 0  ;;  %p258_p3 = pnand %p1949_p0, %p257_p2 }
   0x6   : > { %s1950_s24 = sshll.u32 (!%p258_p3), %s2519_s18, 5 }
   0x7   : > { %261 = sbr.rel (%p258_p3) target bundleno = 512 (0x200), region = 40  ;;  %p312_p4 = scmp.lt.s32.totalorder (!%p258_p3), %s1950_s24, 63 }
   0xc   : > { %v2415_v0 = vld [vmem:[%s3069_s1 + $0x78] sm:$0xff]   ;;  %v2417_v2 = vld [vmem:[%s3069_s1 + $0x70] sm:$0xff]   ;;  %v2419_v4 = vld [vmem:[%s3069_s1 + $0x68] sm:$0xff]   ;;  %s3079_s24 = smov (!%p312_p4, %s1950_s24), 63 }
   0xd   : > { %v2416_v1 = vld [vmem:[%s3069_s1 + $0x38] sm:$0xff]   ;;  %2190 = vmatprep.subr.bf16.mxu0 %v2415_v0  ;;  %2374 = vmatprep.subr.bf16.mxu1 %v2415_v0  ;;  %v2418_v3 = vld [vmem:[%s3069_s1 + $0x30] sm:$0xff]   ;;  %v2420_v5 = vld [vmem:[%s3069_s1 + $0x28] sm:$0xff]   ;;  %s2390_s12 = smul.u32 12, %s3079_s24  ;;  %s1953_s14 = sshll.u32 %s3079_s24, 2 }
   0xe   : > { %2191 = vmatpush3.bf16.msra.mxu0 %v2416_v1  ;;  %2382 = vmatpush3.bf16.msra.mxu1 %v2416_v1  ;;  %v2421_v6 = vld [vmem:[%s3069_s1 + $0x60] sm:$0xff]   ;;  %v2423_v8 = vld [vmem:[%s3069_s1 + $0x58] sm:$0xff]   ;;  %v2425_v10 = vld [vmem:[%s3069_s1 + $0x50] sm:$0xff]   ;;  %s3041_s17 = scalar_lea.vmem %s3073_s5, %s1953_s14 }
   0xf   : > { %2192 = vmatprep.subr.bf16.mxu0 %v2417_v2  ;;  %2375 = vmatprep.subr.bf16.mxu1 %v2417_v2  ;;  %v2422_v7 = vld [vmem:[%s3069_s1 + $0x20] sm:$0xff]   ;;  %s2610_s22 = scalar_lea.vmem %s3068_s0, %s2390_s12  ;;  %v2424_v9 = vld [vmem:[%s3069_s1 + $0x18] sm:$0xff]   ;;  %v2426_v13 = vld [vmem:[%s3069_s1 + $0x10] sm:$0xff]  }
  0x10   : > { %v2433_v11 = vld [vmem:[%s2610_s22 + $0x4] ss:$12 sps:$4 sm:$0xff]   ;;  %v2427_v14 = vld [vmem:[%s3069_s1 + $0x48] sm:$0xff]   ;;  %v2437_v18 = vld [vmem:[%s3069_s1 + $0xb8] sm:$0xff]  }
  0x11   : > { %v2436_v12 = vld [vmem:[%s2610_s22 + $0x124] ss:$12 sps:$4 sm:$0xff]   ;;  %970 = vmatprep.mubr.bf16.mxu0 %v2433_v11  ;;  %v2428_v15 = vld [vmem:[%s3069_s1 + $0x8] sm:$0xff]   ;;  %v2447_v28 = vld [vmem:[%s2610_s22 + $0x34] ss:$12 sps:$4 sm:$0xff]  }
  0x12   : > { %2193 = vmatpush3.bf16.msra.mxu0 %v2418_v3  ;;  %2383 = vmatpush3.bf16.msra.mxu1 %v2418_v3  ;;  %v2429_v16 = vld [vmem:[%s3069_s1 + $0x40] sm:$0xff]   ;;  %v2439_v21 = vld [vmem:[%s2610_s22 + $0x1c] ss:$12 sps:$4 sm:$0xff]   ;;  %v2438_v22 = vld [vmem:[%s3069_s1 + $0xb0] sm:$0xff]  }
  0x13   : > { %2194 = vmatprep.subr.bf16.mxu0 %v2419_v4  ;;  %2376 = vmatprep.subr.bf16.mxu1 %v2419_v4  ;;  %v2430_v17 = vld [vmem:[%s3069_s1] sm:$0xff]   ;;  %v2441_v23 = vld [vmem:[%s2610_s22 + $0x13c] ss:$12 sps:$4 sm:$0xff]   ;;  %v2454_v33 = vld [vmem:[%s3069_s1 + $0x90] sm:$0xff]  }
  0x14   : > { %1066 = vmatprep.mubr.bf16.mxu1 %v2436_v12  ;;  %v2431_v19 = vld [vmem:[%s2610_s22] ss:$12 sps:$4 sm:$0xff]   ;;  %v2443_v24 = vld [vmem:[%s2610_s22 + $0x18] ss:$12 sps:$4 sm:$0xff]   ;;  %v2451_v31 = vld [vmem:[%s2610_s22 + $0x30] ss:$12 sps:$4 sm:$0xff]  }
  0x15   : > { %v2434_v20 = vld [vmem:[%s2610_s22 + $0x120] ss:$12 sps:$4 sm:$0xff]   ;;  %v2444_v26 = vld [vmem:[%s2610_s22 + $0x138] ss:$12 sps:$4 sm:$0xff]   ;;  %v2452_v32 = vld [vmem:[%s2610_s22 + $0x150] ss:$12 sps:$4 sm:$0xff]  }
  0x16   : > { %2195 = vmatpush3.bf16.msra.mxu0 %v2420_v5  ;;  %2384 = vmatpush3.bf16.msra.mxu1 %v2420_v5  ;;  %v2445_v25 = vld [vmem:[%s3069_s1 + $0xa8] sm:$0xff]   ;;  %v2446_v27 = vld [vmem:[%s3069_s1 + $0xa0] sm:$0xff]   ;;  %v2453_v30 = vld [vmem:[%s3069_s1 + $0x98] sm:$0xff]  }
  0x17   : > { %2196 = vmatprep.subr.bf16.mxu0 %v2421_v6  ;;  %2377 = vmatprep.subr.bf16.mxu1 %v2421_v6  ;;  %v2449_v29 = vld [vmem:[%s2610_s22 + $0x154] ss:$12 sps:$4 sm:$0xff]   ;;  %v2455_v34 = vld [vmem:[%s2610_s22 + $0x4c] ss:$12 sps:$4 sm:$0xff]   ;;  %v2463_v39 = vld [vmem:[%s2610_s22 + $0x64] ss:$12 sps:$4 sm:$0xff]  }
  0x18   : > { %v2457_v35 = vld [vmem:[%s2610_s22 + $0x16c] ss:$12 sps:$4 sm:$0xff]   ;;  %v2459_v37 = vld [vmem:[%s2610_s22 + $0x48] ss:$12 sps:$4 sm:$0xff]   ;;  %v2462_v40 = vld [vmem:[%s3069_s1 + $0x80] sm:$0xff]  }
  0x19   : > { %v2461_v36 = vld [vmem:[%s3069_s1 + $0x88] sm:$0xff]   ;;  %v2470_v45 = vld [vmem:[%s2610_s22 + $0x38] ss:$12 sps:$4 sm:$0xff]   ;;  %v2472_v47 = vld [vmem:[%s2610_s22 + $0x50] ss:$12 sps:$4 sm:$0xff]  }
  0x1a   : > { %2197 = vmatpush3.bf16.msra.mxu0 %v2422_v7  ;;  %2385 = vmatpush3.bf16.msra.mxu1 %v2422_v7  ;;  %v2460_v38 = vld [vmem:[%s2610_s22 + $0x168] ss:$12 sps:$4 sm:$0xff]   ;;  %v2466_v42 = vld [vmem:[%s2610_s22 + $0x60] ss:$12 sps:$4 sm:$0xff]   ;;  %v2471_v46 = vld [vmem:[%s2610_s22 + $0x78] ss:$12 sps:$4 sm:$0xff]  }
  0x1b   : > { %2198 = vmatprep.subr.bf16.mxu0 %v2423_v8  ;;  %2378 = vmatprep.subr.bf16.mxu1 %v2423_v8  ;;  %v2465_v41 = vld [vmem:[%s2610_s22 + $0x8] ss:$12 sps:$4 sm:$0xff]   ;;  %v2467_v43 = vld [vmem:[%s2610_s22 + $0x20] ss:$12 sps:$4 sm:$0xff]   ;;  %v2476_v50 = vld [vmem:[%s2610_s22 + $0x90] ss:$12 sps:$4 sm:$0xff]  }
  0x1c   : > { %v2468_v44 = vld [vmem:[%s2610_s22 + $0x7c] ss:$12 sps:$4 sm:$0xff]   ;;  %v2473_v48 = vld [vmem:[%s2610_s22 + $0x94] ss:$12 sps:$4 sm:$0xff]   ;;  %v2478_v52 = vld [vmem:[%s2610_s22 + $0xac] ss:$12 sps:$4 sm:$0xff]  }
  0x1d   : > { %v2475_v49 = vld [vmem:[%s2610_s22 + $0x68] ss:$12 sps:$4 sm:$0xff]   ;;  %v2477_v51 = vld [vmem:[%s2610_s22 + $0x80] ss:$12 sps:$4 sm:$0xff]   ;;  %v2480_v53 = vld [vmem:[%s2610_s22 + $0x98] ss:$12 sps:$4 sm:$0xff]  }
  0x1e   : > { %2199 = vmatpush3.bf16.msra.mxu0 %v2424_v9  ;;  %2386 = vmatpush3.bf16.msra.mxu1 %v2424_v9  ;;  %v2481_v54 = vld [vmem:[%s2610_s22 + $0xa8] ss:$12 sps:$4 sm:$0xff]   ;;  %v2482_v55 = vld [vmem:[%s2610_s22 + $0xb0] ss:$12 sps:$4 sm:$0xff]   ;;  %v2486_v58 = vld [vmem:[%s2610_s22 + $0xc0] ss:$12 sps:$4 sm:$0xff]  }
  0x1f   : > { %2200 = vmatprep.subr.bf16.mxu0 %v2425_v10  ;;  %2379 = vmatprep.subr.bf16.mxu1 %v2425_v10  ;;  %v2483_v56 = vld [vmem:[%s2610_s22 + $0xc4] ss:$12 sps:$4 sm:$0xff]   ;;  %v2485_v57 = vld [vmem:[%s2610_s22 + $0xc8] ss:$12 sps:$4 sm:$0xff]   ;;  %v2487_v59 = vld [vmem:[%s2610_s22 + $0xe0] ss:$12 sps:$4 sm:$0xff]  }
  0x20   : > { %v2488_v60 = vld [vmem:[%s2610_s22 + $0xdc] ss:$12 sps:$4 sm:$0xff]   ;;  %v2490_v61 = vld [vmem:[%s2610_s22 + $0xf8] ss:$12 sps:$4 sm:$0xff]   ;;  %v2493_v0 = vld [vmem:[%s2610_s22 + $0xf4] ss:$12 sps:$4 sm:$0xff]  }
  0x21   : > { %v2491_v62 = vld [vmem:[%s2610_s22 + $0xd8] ss:$12 sps:$4 sm:$0xff]   ;;  %v2492_v63 = vld [vmem:[%s2610_s22 + $0x110] ss:$12 sps:$4 sm:$0xff]   ;;  %v2495_v1 = vld [vmem:[%s2610_s22 + $0x128] ss:$12 sps:$4 sm:$0xff]  }
  0x22   : > { %2201 = vmatpush3.bf16.msra.mxu0 %v2426_v13  ;;  %2387 = vmatpush3.bf16.msra.mxu1 %v2426_v13  ;;  %v2496_v2 = vld [vmem:[%s2610_s22 + $0xf0] ss:$12 sps:$4 sm:$0xff]   ;;  %v2497_v3 = vld [vmem:[%s2610_s22 + $0x140] ss:$12 sps:$4 sm:$0xff]   ;;  %v2500_v5 = vld [vmem:[%s2610_s22 + $0x158] ss:$12 sps:$4 sm:$0xff]  }
  0x23   : > { %2202 = vmatprep.subr.bf16.mxu0 %v2427_v14  ;;  %2380 = vmatprep.subr.bf16.mxu1 %v2427_v14  ;;  %v2498_v4 = vld [vmem:[%s2610_s22 + $0x10c] ss:$12 sps:$4 sm:$0xff]   ;;  %v2501_v6 = vld [vmem:[%s2610_s22 + $0x108] ss:$12 sps:$4 sm:$0xff]   ;;  %v2502_v7 = vld [vmem:[%s2610_s22 + $0x170] ss:$12 sps:$4 sm:$0xff]  }
  0x26   : > { %2203 = vmatpush3.bf16.msra.mxu0 %v2428_v15  ;;  %2388 = vmatpush3.bf16.msra.mxu1 %v2428_v15 }
  0x27   : > { %2204 = vmatprep.subr.bf16.mxu0 %v2429_v16  ;;  %2381 = vmatprep.subr.bf16.mxu1 %v2429_v16 }
  0x2a   : > { %2205 = vmatpush3.bf16.msra.mxu0 %v2430_v17  ;;  %2389 = vmatpush3.bf16.msra.mxu1 %v2430_v17 }
  0x2b   : > { %2326 = vmatprep.subr.bf16.mxu1 %v2437_v18 }
  0x2d   : > { %971 = vmatmul.mubr.bf16.vlgmr.msra.gmra.mxu0 %v2431_v19  ;;  %1067 = vmatmul.mubr.bf16.vlgmr.msra.gmra.mxu1 %v2434_v20 }
  0x2e   : > { %2327 = vmatpush3.bf16.msra.mxu1 %v2437_v18  ;;  %978 = vmatprep.mubr.bf16.mxu0 %v2439_v21 }
  0x2f   : > { %2328 = vmatprep.subr.bf16.mxu1 %v2438_v22  ;;  %1074 = vmatprep.mubr.bf16.mxu1 %v2441_v23 }
  0x32   : > { %2329 = vmatpush3.bf16.msra.mxu1 %v2438_v22 }
  0x33   : > { %2330 = vmatprep.subr.bf16.mxu1 %v2445_v25 }
  0x35   : > { %979 = vmatmul.mubr.bf16.gmra.mxu0 %v2443_v24  ;;  %1075 = vmatmul.mubr.bf16.gmra.mxu1 %v2444_v26 }
  0x36   : > { %2331 = vmatpush3.bf16.msra.mxu1 %v2445_v25  ;;  %986 = vmatprep.mubr.bf16.mxu0 %v2447_v28 }
  0x37   : > { %2332 = vmatprep.subr.bf16.mxu1 %v2446_v27  ;;  %1082 = vmatprep.mubr.bf16.mxu1 %v2449_v29 }
  0x3a   : > { %2333 = vmatpush3.bf16.msra.mxu1 %v2446_v27 }
  0x3b   : > { %2334 = vmatprep.subr.bf16.mxu1 %v2453_v30 }
  0x3d   : > { %987 = vmatmul.mubr.bf16.gmra.mxu0 %v2451_v31  ;;  %1083 = vmatmul.mubr.bf16.gmra.mxu1 %v2452_v32 }
  0x3e   : > { %2335 = vmatpush3.bf16.msra.mxu1 %v2453_v30  ;;  %994 = vmatprep.mubr.bf16.mxu0 %v2455_v34 }
  0x3f   : > { %2336 = vmatprep.subr.bf16.mxu1 %v2454_v33  ;;  %1090 = vmatprep.mubr.bf16.mxu1 %v2457_v35 }
  0x42   : > { %2337 = vmatpush3.bf16.msra.mxu1 %v2454_v33 }
  0x43   : > { %2338 = vmatprep.subr.bf16.mxu1 %v2461_v36 }
  0x45   : > { %995 = vmatmul.mubr.bf16.gmra.mxu0 %v2459_v37  ;;  %1091 = vmatmul.mubr.bf16.gmra.mxu1 %v2460_v38 }
  0x46   : > { %2339 = vmatpush3.bf16.msra.mxu1 %v2461_v36  ;;  %1002 = vmatprep.mubr.bf16.mxu0 %v2463_v39 }
  0x47   : > { %2340 = vmatprep.subr.bf16.mxu1 %v2462_v40  ;;  %2342 = vmatprep.mubr.bf16.mxu1 %v2465_v41 }
  0x4a   : > { %2341 = vmatpush3.bf16.msra.mxu1 %v2462_v40 }
  0x4d   : > { %1003 = vmatmul.mubr.bf16.gmra.mxu0 %v2466_v42  ;;  %2343 = vmatmul.mubr.bf16.vlgmr.msra.gmra.mxu1 %v2467_v43 }
  0x4e   : > { %1010 = vmatprep.mubr.bf16.mxu0 %v2468_v44  ;;  %2346 = vmatprep.mubr.bf16.mxu1 %v2470_v45 }
  0x55   : > { %1011 = vmatmul.mubr.bf16.gmra.mxu0 %v2471_v46  ;;  %2347 = vmatmul.mubr.bf16.gmra.mxu1 %v2472_v47 }
  0x56   : > { %1018 = vmatprep.mubr.bf16.mxu0 %v2473_v48  ;;  %2350 = vmatprep.mubr.bf16.mxu1 %v2475_v49 }
  0x5d   : > { %1019 = vmatmul.mubr.bf16.gmra.mxu0 %v2476_v50  ;;  %2351 = vmatmul.mubr.bf16.gmra.mxu1 %v2477_v51 }
  0x5e   : > { %1026 = vmatprep.mubr.bf16.mxu0 %v2478_v52  ;;  %2354 = vmatprep.mubr.bf16.mxu1 %v2480_v53 }
  0x65   : > { %1027 = vmatmul.mubr.bf16.gmra.mxu0 %v2481_v54  ;;  %2355 = vmatmul.mubr.bf16.gmra.mxu1 %v2482_v55 }
  0x66   : > { %1034 = vmatprep.mubr.bf16.mxu0 %v2483_v56  ;;  %2358 = vmatprep.mubr.bf16.mxu1 %v2485_v57 }
  0x6d   : > { %1035 = vmatmul.mubr.bf16.gmra.mxu0 %v2486_v58  ;;  %2359 = vmatmul.mubr.bf16.gmra.mxu1 %v2487_v59 }
  0x6e   : > { %1042 = vmatprep.mubr.bf16.mxu0 %v2488_v60  ;;  %2362 = vmatprep.mubr.bf16.mxu1 %v2490_v61 }
  0x75   : > { %1043 = vmatmul.mubr.bf16.gmra.mxu0 %v2491_v62  ;;  %2363 = vmatmul.mubr.bf16.gmra.mxu1 %v2492_v63  ;;  %v2724_v63 = vld [vmem:[%s3070_s2] ss:$0 sm:$0xff] }
  0x76   : > { %1050 = vmatprep.mubr.bf16.mxu0 %v2493_v0  ;;  %2366 = vmatprep.mubr.bf16.mxu1 %v2495_v1 }
  0x7d   : > { %1051 = vmatmul.mubr.bf16.gmra.mxu0 %v2496_v2  ;;  %2367 = vmatmul.mubr.bf16.gmra.mxu1 %v2497_v3 }
  0x7e   : > { %1058 = vmatprep.mubr.bf16.mxu0 %v2498_v4  ;;  %2370 = vmatprep.mubr.bf16.mxu1 %v2500_v5 }
  0x85   : > { %1059 = vmatmul.mubr.bf16.gmra.mxu0 %v2501_v6  ;;  %2371 = vmatmul.mubr.bf16.gmra.mxu1 %v2502_v7 }
  0xed   : > { %v2206_v8 = vpop.f32.mrf.mxu0  ;;  %v2278_v9 = vpop.f32.mrf.mxu1 }
  0xef   : > { %v2207_v10 = vpop.f32.mrf.mxu0  ;;  %v2279_v11 = vpop.f32.mrf.mxu1 }
  0xf0   : > { %v2705_v12 = vadd.f32 %v2279_v11, %v2278_v9  ;;  %v2208_v52 = vadd.f32 %v2207_v10, %v2206_v8 }
  0xf1   : > { %v2209_v13 = vpop.f32.mrf.mxu0  ;;  %v2281_v14 = vpop.f32.mrf.mxu1 }
  0xf3   : > { %v2210_v15 = vpop.f32.mrf.mxu0  ;;  %v2282_v16 = vpop.f32.mrf.mxu1 }
  0xf4   : > { %v2707_v17 = vadd.f32 %v2282_v16, %v2281_v14  ;;  %v2211_v55 = vadd.f32 %v2210_v15, %v2209_v13 }
  0xf5   : > { %v2212_v18 = vpop.f32.mrf.mxu0  ;;  %v2284_v19 = vpop.f32.mrf.mxu1 }
  0xf7   : > { %v2213_v20 = vpop.f32.mrf.mxu0  ;;  %v2285_v21 = vpop.f32.mrf.mxu1 }
  0xf8   : > { %v2709_v22 = vadd.f32 %v2285_v21, %v2284_v19  ;;  %v2214_v56 = vadd.f32 %v2213_v20, %v2212_v18 }
  0xf9   : > { %v2215_v23 = vpop.f32.mrf.mxu0  ;;  %v2287_v24 = vpop.f32.mrf.mxu1 }
  0xfb   : > { %v2216_v25 = vpop.f32.mrf.mxu0  ;;  %v2288_v26 = vpop.f32.mrf.mxu1 }
  0xfc   : > { %v2711_v27 = vadd.f32 %v2288_v26, %v2287_v24  ;;  %v2217_v60 = vadd.f32 %v2216_v25, %v2215_v23 }
  0xfd   : > { %v2218_v28 = vpop.f32.mrf.mxu0  ;;  %v2290_v29 = vpop.f32.mrf.mxu1 }
  0xff   : > { %v2219_v30 = vpop.f32.mrf.mxu0  ;;  %v2291_v31 = vpop.f32.mrf.mxu1 }
 0x100   : > { %v2713_v32 = vadd.f32 %v2291_v31, %v2290_v29  ;;  %v2220_v2 = vadd.f32 %v2219_v30, %v2218_v28 }
 0x101   : > { %v2221_v33 = vpop.f32.mrf.mxu0  ;;  %v2293_v34 = vpop.f32.mrf.mxu1 }
 0x103   : > { %v2222_v35 = vpop.f32.mrf.mxu0  ;;  %v2294_v36 = vpop.f32.mrf.mxu1 }
 0x104   : > { %v2715_v37 = vadd.f32 %v2294_v36, %v2293_v34  ;;  %v2223_v14 = vadd.f32 %v2222_v35, %v2221_v33 }
 0x105   : > { %v2224_v38 = vpop.f32.mrf.mxu0  ;;  %v2296_v39 = vpop.f32.mrf.mxu1 }
 0x107   : > { %v2225_v40 = vpop.f32.mrf.mxu0  ;;  %v2297_v41 = vpop.f32.mrf.mxu1 }
 0x108   : > { %v2717_v42 = vadd.f32 %v2297_v41, %v2296_v39  ;;  %v2226_v15 = vadd.f32 %v2225_v40, %v2224_v38 }
 0x109   : > { %v2227_v43 = vpop.f32.mrf.mxu0  ;;  %v2299_v44 = vpop.f32.mrf.mxu1 }
 0x10b   : > { %v2228_v45 = vpop.f32.mrf.mxu0  ;;  %v2300_v46 = vpop.f32.mrf.mxu1 }
 0x10c   : > { %v2719_v47 = vadd.f32 %v2300_v46, %v2299_v44  ;;  %v2229_v19 = vadd.f32 %v2228_v45, %v2227_v43 }
 0x10d   : > { %v2230_v48 = vpop.f32.mrf.mxu0  ;;  %v2344_v49 = vpop.f32.mrf.mxu1 }
 0x10e   : > { %v1142_v61 = vadd.f32 %v2344_v49, %v2214_v56 }
 0x10f   : > { %v2231_v50 = vpop.f32.mrf.mxu0  ;;  %v1133_v51 = vpop.f32.mrf.mxu1 }
 0x110   : > { %v1134_v57 = vadd.f32 %v2208_v52, %v1133_v51  ;;  %v2733_v8 = vadd.f32 %v2724_v63, %v1142_v61  ;;  %v2232_v30 = vadd.f32 %v2231_v50, %v2230_v48 }
 0x111   : > { %v2233_v53 = vpop.f32.mrf.mxu0  ;;  %v2345_v54 = vpop.f32.mrf.mxu1 }
 0x112   : > { %v2727_v3 = vadd.f32 %v2724_v63, %v1134_v57  ;;  %v1145_v4 = vadd.f32 %v2345_v54, %v2217_v60 }
 0x113   : > { %v2234_v58 = vpop.f32.mrf.mxu0  ;;  %v1136_v59 = vpop.f32.mrf.mxu1 }
 0x114   : > { %v1137_v62 = vadd.f32 %v2211_v55, %v1136_v59  ;;  %v2738_v16 = vadd.f32 %v2724_v63, %v1145_v4  ;;  %v2235_v44 = vadd.f32 %v2234_v58, %v2233_v53 }
 0x115   : > { %v2236_v0 = vpop.f32.mrf.mxu0  ;;  %v2348_v1 = vpop.f32.mrf.mxu1 }
 0x116   : > { %v2730_v5 = vadd.f32 %v2724_v63, %v1137_v62  ;;  %v1158_v23 = vadd.f32 %v2348_v1, %v2226_v15 }
 0x117   : > { %v2237_v6 = vpop.f32.mrf.mxu0  ;;  %v1149_v7 = vpop.f32.mrf.mxu1 }
 0x118   : > { %v1359_v9 = vadd.f32 %v2730_v5, %v2727_v3  ;;  %v1150_v10 = vadd.f32 %v2220_v2, %v1149_v7  ;;  %v2750_v38 = vadd.f32 %v2724_v63, %v1158_v23  ;;  %v2238_v50 = vadd.f32 %v2237_v6, %v2236_v0 }
 0x119   : > { %v2239_v11 = vpop.f32.mrf.mxu0  ;;  %v2349_v13 = vpop.f32.mrf.mxu1 }
 0x11a   : > { %v1360_v18 = vadd.f32 %v1359_v9, %v2733_v8  ;;  %v2742_v24 = vadd.f32 %v2724_v63, %v1150_v10  ;;  %v1161_v33 = vadd.f32 %v2349_v13, %v2229_v19 }
 0x11b   : > { %v2240_v20 = vpop.f32.mrf.mxu0  ;;  %v1152_v21 = vpop.f32.mrf.mxu1 }
 0x11c   : > { %v1361_v25 = vadd.f32 %v1360_v18, %v2738_v16  ;;  %v1153_v26 = vadd.f32 %v2223_v14, %v1152_v21  ;;  %v2754_v45 = vadd.f32 %v2724_v63, %v1161_v33  ;;  %v2241_v61 = vadd.f32 %v2240_v20, %v2239_v11 }
 0x11d   : > { %v2242_v28 = vpop.f32.mrf.mxu0  ;;  %v2352_v29 = vpop.f32.mrf.mxu1 }
 0x11e   : > { %v1362_v31 = vadd.f32 %v1361_v25, %v2742_v24  ;;  %v2747_v34 = vadd.f32 %v2724_v63, %v1153_v26  ;;  %v1174_v57 = vadd.f32 %v2352_v29, %v2238_v50 }
 0x11f   : > { %v2243_v35 = vpop.f32.mrf.mxu0  ;;  %v1165_v36 = vpop.f32.mrf.mxu1 }
 0x120   : > { %v1363_v39 = vadd.f32 %v1362_v31, %v2747_v34  ;;  %v1166_v40 = vadd.f32 %v2232_v30, %v1165_v36  ;;  %v2767_v2 = vadd.f32 %v2724_v63, %v1174_v57  ;;  %v2244_v9 = vadd.f32 %v2243_v35, %v2242_v28 }
 0x121   : > { %v2245_v41 = vpop.f32.mrf.mxu0  ;;  %v2353_v43 = vpop.f32.mrf.mxu1 }
 0x122   : > { %v1364_v46 = vadd.f32 %v1363_v39, %v2750_v38  ;;  %v2758_v51 = vadd.f32 %v2724_v63, %v1166_v40  ;;  %v1177_v4 = vadd.f32 %v2353_v43, %v2241_v61 }
 0x123   : > { %v2246_v48 = vpop.f32.mrf.mxu0  ;;  %v1168_v49 = vpop.f32.mrf.mxu1 }
 0x124   : > { %v1365_v52 = vadd.f32 %v1364_v46, %v2754_v45  ;;  %v1169_v54 = vadd.f32 %v2235_v44, %v1168_v49  ;;  %v2771_v15 = vadd.f32 %v2724_v63, %v1177_v4  ;;  %v2247_v18 = vadd.f32 %v2246_v48, %v2245_v41 }
 0x125   : > { %v2248_v55 = vpop.f32.mrf.mxu0  ;;  %v2356_v56 = vpop.f32.mrf.mxu1 }
 0x126   : > { %v1366_v59 = vadd.f32 %v1365_v52, %v2758_v51  ;;  %v2763_v53 = vadd.f32 %v2724_v63, %v1169_v54 }
 0x127   : > { %v2249_v58 = vpop.f32.mrf.mxu0  ;;  %v1181_v60 = vpop.f32.mrf.mxu1 }
 0x128   : > { %v1367_v62 = vadd.f32 %v1366_v59, %v2763_v53  ;;  %v1182_v11 = vadd.f32 %v2244_v9, %v1181_v60  ;;  %v2250_v29 = vadd.f32 %v2249_v58, %v2248_v55 }
 0x129   : > { %v2251_v0 = vpop.f32.mrf.mxu0  ;;  %v2357_v1 = vpop.f32.mrf.mxu1 }
 0x12a   : > { %v1368_v10 = vadd.f32 %v1367_v62, %v2767_v2  ;;  %v2775_v30 = vadd.f32 %v2724_v63, %v1182_v11  ;;  %v1190_v40 = vadd.f32 %v2356_v56, %v2250_v29 }
 0x12b   : > { %v2252_v6 = vpop.f32.mrf.mxu0  ;;  %v1184_v7 = vpop.f32.mrf.mxu1 }
 0x12c   : > { %v1369_v21 = vadd.f32 %v1368_v10, %v2771_v15  ;;  %v1185_v23 = vadd.f32 %v2247_v18, %v1184_v7  ;;  %v2253_v41 = vadd.f32 %v2252_v6, %v2251_v0  ;;  %v2783_v52 = vadd.f32 %v2724_v63, %v1190_v40 }
 0x12d   : > { %v2254_v13 = vpop.f32.mrf.mxu0  ;;  %v2360_v14 = vpop.f32.mrf.mxu1 }
 0x12e   : > { %v1370_v33 = vadd.f32 %v1369_v21, %v2775_v30  ;;  %v2779_v35 = vadd.f32 %v2724_v63, %v1185_v23  ;;  %v1193_v54 = vadd.f32 %v2357_v1, %v2253_v41 }
 0x12f   : > { %v2255_v19 = vpop.f32.mrf.mxu0  ;;  %v1197_v20 = vpop.f32.mrf.mxu1 }
 0x130   : > { %v1371_v46 = vadd.f32 %v1370_v33, %v2779_v35  ;;  %v2256_v48 = vadd.f32 %v2255_v19, %v2254_v13  ;;  %v2787_v0 = vadd.f32 %v2724_v63, %v1193_v54 }
 0x131   : > { %v2257_v25 = vpop.f32.mrf.mxu0  ;;  %v2361_v26 = vpop.f32.mrf.mxu1 }
 0x132   : > { %v1372_v58 = vadd.f32 %v1371_v46, %v2783_v52  ;;  %v1198_v60 = vadd.f32 %v2256_v48, %v1197_v20 }
 0x133   : > { %v2258_v28 = vpop.f32.mrf.mxu0  ;;  %v1200_v31 = vpop.f32.mrf.mxu1 }
 0x134   : > { %v2259_v55 = vadd.f32 %v2258_v28, %v2257_v25  ;;  %v2790_v10 = vadd.f32 %v2724_v63, %v1198_v60  ;;  %v1373_v1 = vadd.f32 %v1372_v58, %v2787_v0 }
 0x135   : > { %v2260_v36 = vpop.f32.mrf.mxu0  ;;  %v2364_v39 = vpop.f32.mrf.mxu1 }
 0x136   : > { %v1201_v4 = vadd.f32 %v2259_v55, %v1200_v31  ;;  %v1374_v25 = vadd.f32 %v1373_v1, %v2790_v10 }
 0x137   : > { %v2261_v43 = vpop.f32.mrf.mxu0  ;;  %v1213_v44 = vpop.f32.mrf.mxu1 }
 0x138   : > { %v2262_v61 = vadd.f32 %v2261_v43, %v2260_v36  ;;  %v2794_v20 = vadd.f32 %v2724_v63, %v1201_v4 }
 0x139   : > { %v2263_v49 = vpop.f32.mrf.mxu0  ;;  %v2365_v50 = vpop.f32.mrf.mxu1 }
 0x13a   : > { %v1206_v13 = vadd.f32 %v2360_v14, %v2262_v61  ;;  %v1375_v40 = vadd.f32 %v1374_v25, %v2794_v20 }
 0x13b   : > { %v2264_v57 = vpop.f32.mrf.mxu0  ;;  %v1216_v59 = vpop.f32.mrf.mxu1 }
 0x13c   : > { %v2265_v6 = vadd.f32 %v2264_v57, %v2263_v49  ;;  %v1278_v29 = vadd.f32 %v2724_v63, %v1206_v13 }
 0x13d   : > { %v2266_v56 = vpop.f32.mrf.mxu0  ;;  %v2368_v62 = vpop.f32.mrf.mxu1 }
 0x13e   : > { %v1209_v21 = vadd.f32 %v2361_v26, %v2265_v6  ;;  %v1376_v46 = vadd.f32 %v1375_v40, %v1278_v29 }
 0x13f   : > { %v2267_v7 = vpop.f32.mrf.mxu0  ;;  %v1229_v9 = vpop.f32.mrf.mxu1 }
 0x140   : > { %v2268_v18 = vadd.f32 %v2267_v7, %v2266_v56  ;;  %v1279_v14 = vadd.f32 %v2724_v63, %v1209_v21  ;;  %v1230_v6 = vadd.f32 %v2705_v12, %v1229_v9  ;;  %v1238_v21 = vadd.f32 %v2368_v62, %v2709_v22 }
 0x141   : > { %v2269_v11 = vpop.f32.mrf.mxu0  ;;  %v2369_v19 = vpop.f32.mrf.mxu1 }
 0x142   : > { %v1214_v28 = vadd.f32 %v2268_v18, %v1213_v44  ;;  %v1377_v55 = vadd.f32 %v1376_v46, %v1279_v14  ;;  %v1241_v25 = vadd.f32 %v2369_v19, %v2711_v27  ;;  %v1286_v12 = vadd.f32 %v2724_v63, %v1238_v21 }
 0x143   : > { %v2270_v23 = vpop.f32.mrf.mxu0  ;;  %v1232_v33 = vpop.f32.mrf.mxu1 }
 0x144   : > { %v2271_v31 = vadd.f32 %v2270_v23, %v2269_v11  ;;  %v1280_v48 = vadd.f32 %v2724_v63, %v1214_v28  ;;  %v1233_v1 = vadd.f32 %v2707_v17, %v1232_v33  ;;  %v1287_v9 = vadd.f32 %v2724_v63, %v1241_v25 }
 0x145   : > { %v2272_v36 = vpop.f32.mrf.mxu0  ;;  %v2372_v26 = vpop.f32.mrf.mxu1 }
 0x146   : > { %v1217_v41 = vadd.f32 %v2271_v31, %v1216_v59  ;;  %v1378_v60 = vadd.f32 %v1377_v55, %v1280_v48  ;;  %v1285_v28 = vadd.f32 %v2724_v63, %v1233_v1  ;;  %v1254_v22 = vadd.f32 %v2372_v26, %v2717_v42 }
 0x147   : > { %v2273_v43 = vpop.f32.mrf.mxu0  ;;  %v1245_v4 = vpop.f32.mrf.mxu1 }
 0x148   : > { %v2274_v49 = vadd.f32 %v2273_v43, %v2272_v36  ;;  %v1281_v57 = vadd.f32 %v2724_v63, %v1217_v41  ;;  %v1290_v46 = vadd.f32 %v2724_v63, %v1254_v22 }
 0x149   : > { %v2275_v54 = vpop.f32.mrf.mxu0  ;;  %v2373_v11 = vpop.f32.mrf.mxu1 }
 0x14a   : > { %v1222_v58 = vadd.f32 %v2364_v39, %v2274_v49  ;;  %v1379_v59 = vadd.f32 %v1378_v60, %v1281_v57  ;;  %v1284_v39 = vadd.f32 %v2724_v63, %v1230_v6  ;;  %v1257_v27 = vadd.f32 %v2373_v11, %v2719_v47 }
 0x14b   : > { %v2276_v44 = vpop.f32.mrf.mxu0  ;;  %v1248_v36 = vpop.f32.mrf.mxu1 }
 0x14c   : > { %v1282_v61 = vadd.f32 %v2724_v63, %v1222_v58  ;;  %v2277_v56 = vadd.f32 %v2276_v44, %v2275_v54  ;;  %v1249_v33 = vadd.f32 %v2715_v37, %v1248_v36 }
 0x14e   : > { %v1225_v7 = vadd.f32 %v2365_v50, %v2277_v56  ;;  %v1380_v13 = vadd.f32 %v1379_v59, %v1282_v61  ;;  %v1246_v50 = vadd.f32 %v2713_v32, %v1245_v4  ;;  %v1289_v19 = vadd.f32 %v2724_v63, %v1249_v33 }
 0x14f   : > { %v1291_v32 = vadd.f32 %v2724_v63, %v1257_v27 }
 0x150   : > { %v1283_v18 = vadd.f32 %v2724_v63, %v1225_v7  ;;  %v1288_v62 = vadd.f32 %v2724_v63, %v1246_v50 }
 0x152   : > { %v1381_v23 = vadd.f32 %v1380_v13, %v1283_v18 }
 0x154   : > { %v1382_v31 = vadd.f32 %v1381_v23, %v1284_v39 }
 0x156   : > { %v1383_v17 = vadd.f32 %v1382_v31, %v1285_v28 }
 0x158   : > { %v1384_v40 = vadd.f32 %v1383_v17, %v1286_v12 }
 0x15a   : > { %v1385_v41 = vadd.f32 %v1384_v40, %v1287_v9 }
 0x15c   : > { %v1386_v43 = vadd.f32 %v1385_v41, %v1288_v62 }
 0x15e   : > { %v1387_v49 = vadd.f32 %v1386_v43, %v1289_v19 }
 0x160   : > { %v1388_v54 = vadd.f32 %v1387_v49, %v1290_v46 }
 0x162   : > { %v1389_v55 = vadd.f32 %v1388_v54, %v1291_v32 }
 0x164   : > { %v1390_v58 = vrot.slane %v1389_v55, 4 }
 0x166   : > { %v1391_v37 = vadd.f32 %v1390_v58, %v1389_v55 }
 0x168   : > { %v1392_v44 = vrot.slane %v1391_v37, 2 }
 0x16a   : > { %v1393_v60 = vadd.f32 %v1392_v44, %v1391_v37 }
 0x16c   : > { %v1394_v42 = vrot.slane %v1393_v60, 1 }
 0x16e   : > { %v1395_v26 = vadd.f32 %v1394_v42, %v1393_v60 }
 0x170   : > { %v1396_v56 = vmul.f32 0.00390625, %v1395_v26 }
 0x172   : > { %v2821_v4 = vsub.f32 %v2790_v10, %v1396_v56  ;;  %v2824_v47 = vsub.f32 %v2794_v20, %v1396_v56  ;;  %v2826_v6 = vsub.f32 %v1278_v29, %v1396_v56  ;;  %v2828_v59 = vsub.f32 %v1279_v14, %v1396_v56 }
 0x173   : > { %v2830_v63 = vsub.f32 %v1280_v48, %v1396_v56  ;;  %v2832_v7 = vsub.f32 %v1281_v57, %v1396_v56  ;;  %v2834_v1 = vsub.f32 %v1282_v61, %v1396_v56  ;;  %v2836_v13 = vsub.f32 %v1283_v18, %v1396_v56 }
 0x174   : > { %v2838_v11 = vsub.f32 %v1284_v39, %v1396_v56  ;;  %v2840_v21 = vsub.f32 %v1285_v28, %v1396_v56  ;;  %v2842_v10 = vsub.f32 %v1286_v12, %v1396_v56  ;;  %v2844_v20 = vsub.f32 %v1287_v9, %v1396_v56 }
 0x175   : > { %v2846_v29 = vsub.f32 %v1288_v62, %v1396_v56  ;;  %v2848_v14 = vsub.f32 %v1289_v19, %v1396_v56  ;;  %v2850_v48 = vsub.f32 %v1290_v46, %v1396_v56  ;;  %v2852_v57 = vsub.f32 %v1291_v32, %v1396_v56 }
 0x176   : > { %v2855_v61 = vsub.f32 %v2727_v3, %v1396_v56  ;;  %v2858_v18 = vsub.f32 %v2730_v5, %v1396_v56  ;;  %v2861_v39 = vsub.f32 %v2733_v8, %v1396_v56  ;;  %v2868_v28 = vsub.f32 %v2738_v16, %v1396_v56 }
 0x177   : > { %v2871_v31 = vsub.f32 %v2742_v24, %v1396_v56  ;;  %v2876_v36 = vsub.f32 %v2747_v34, %v1396_v56  ;;  %v2881_v50 = vsub.f32 %v2750_v38, %v1396_v56  ;;  %v2886_v24 = vsub.f32 %v2754_v45, %v1396_v56 }
 0x178   : > { %v1429_v23 = vmul.f32 %v2855_v61, %v2855_v61  ;;  %v1430_v25 = vmul.f32 %v2858_v18, %v2858_v18  ;;  %v1431_v3 = vmul.f32 %v2861_v39, %v2861_v39  ;;  %v1432_v8 = vmul.f32 %v2868_v28, %v2868_v28 }
 0x179   : > { %v1433_v16 = vmul.f32 %v2871_v31, %v2871_v31  ;;  %v1434_v9 = vmul.f32 %v2876_v36, %v2876_v36  ;;  %v2891_v34 = vsub.f32 %v2758_v51, %v1396_v56  ;;  %v1435_v40 = vmul.f32 %v2881_v50, %v2881_v50 }
 0x17a   : > { %v1461_v5 = vadd.f32 %v1430_v25, %v1429_v23  ;;  %v2896_v38 = vsub.f32 %v2763_v53, %v1396_v56  ;;  %v1436_v62 = vmul.f32 %v2886_v24, %v2886_v24  ;;  %v2901_v45 = vsub.f32 %v2767_v2, %v1396_v56 }
 0x17b   : > { %v1437_v27 = vmul.f32 %v2891_v34, %v2891_v34  ;;  %v2906_v51 = vsub.f32 %v2771_v15, %v1396_v56  ;;  %v2911_v53 = vsub.f32 %v2775_v30, %v1396_v56  ;;  %v2916_v2 = vsub.f32 %v2779_v35, %v1396_v56 }
 0x17c   : > { %v1462_v12 = vadd.f32 %v1461_v5, %v1431_v3  ;;  %v1438_v43 = vmul.f32 %v2896_v38, %v2896_v38  ;;  %v1439_v49 = vmul.f32 %v2901_v45, %v2901_v45  ;;  %v2921_v15 = vsub.f32 %v2783_v52, %v1396_v56 }
 0x17d   : > { %v1440_v54 = vmul.f32 %v2906_v51, %v2906_v51  ;;  %v1441_v58 = vmul.f32 %v2911_v53, %v2911_v53  ;;  %v2926_v30 = vsub.f32 %v2787_v0, %v1396_v56  ;;  %v1442_v44 = vmul.f32 %v2916_v2, %v2916_v2 }
 0x17e   : > { %v1463_v17 = vadd.f32 %v1462_v12, %v1432_v8  ;;  %v1443_v35 = vmul.f32 %v2921_v15, %v2921_v15  ;;  %v1445_v23 = vmul.f32 %v2821_v4, %v2821_v4  ;;  %v1446_v0 = vmul.f32 %v2824_v47, %v2824_v47 }
 0x17f   : > { %v1444_v26 = vmul.f32 %v2926_v30, %v2926_v30  ;;  %v1447_v3 = vmul.f32 %v2826_v6, %v2826_v6  ;;  %v1448_v8 = vmul.f32 %v2828_v59, %v2828_v59 }
 0x180   : > { %v1464_v33 = vadd.f32 %v1463_v17, %v1433_v16  ;;  %v1449_v16 = vmul.f32 %v2830_v63, %v2830_v63 }
 0x182   : > { %v1465_v22 = vadd.f32 %v1464_v33, %v1434_v9  ;;  %v1450_v9 = vmul.f32 %v2832_v7, %v2832_v7 }
 0x184   : > { %v1466_v41 = vadd.f32 %v1465_v22, %v1435_v40  ;;  %v1451_v40 = vmul.f32 %v2834_v1, %v2834_v1 }
 0x186   : > { %v1467_v19 = vadd.f32 %v1466_v41, %v1436_v62  ;;  %v1452_v62 = vmul.f32 %v2836_v13, %v2836_v13 }
 0x188   : > { %v1468_v46 = vadd.f32 %v1467_v19, %v1437_v27  ;;  %v1453_v27 = vmul.f32 %v2838_v11, %v2838_v11 }
 0x18a   : > { %v1469_v32 = vadd.f32 %v1468_v46, %v1438_v43  ;;  %v1454_v43 = vmul.f32 %v2840_v21, %v2840_v21 }
 0x18c   : > { %v1470_v55 = vadd.f32 %v1469_v32, %v1439_v49  ;;  %v1455_v49 = vmul.f32 %v2842_v10, %v2842_v10 }
 0x18e   : > { %v1471_v37 = vadd.f32 %v1470_v55, %v1440_v54  ;;  %v1456_v54 = vmul.f32 %v2844_v20, %v2844_v20 }
 0x190   : > { %v1472_v60 = vadd.f32 %v1471_v37, %v1441_v58  ;;  %v1457_v58 = vmul.f32 %v2846_v29, %v2846_v29 }
 0x192   : > { %v1473_v42 = vadd.f32 %v1472_v60, %v1442_v44  ;;  %v1458_v44 = vmul.f32 %v2848_v14, %v2848_v14 }
 0x194   : > { %v1474_v52 = vadd.f32 %v1473_v42, %v1443_v35  ;;  %v1459_v35 = vmul.f32 %v2850_v48, %v2850_v48 }
 0x196   : > { %v1475_v25 = vadd.f32 %v1474_v52, %v1444_v26  ;;  %v1460_v26 = vmul.f32 %v2852_v57, %v2852_v57 }
 0x198   : > { %v1476_v56 = vadd.f32 %v1475_v25, %v1445_v23 }
 0x19a   : > { %v1477_v5 = vadd.f32 %v1476_v56, %v1446_v0 }
 0x19c   : > { %v1478_v12 = vadd.f32 %v1477_v5, %v1447_v3 }
 0x19e   : > { %v1479_v17 = vadd.f32 %v1478_v12, %v1448_v8 }
 0x1a0   : > { %v1480_v33 = vadd.f32 %v1479_v17, %v1449_v16 }
 0x1a2   : > { %v1481_v22 = vadd.f32 %v1480_v33, %v1450_v9 }
 0x1a4   : > { %v1482_v41 = vadd.f32 %v1481_v22, %v1451_v40 }
 0x1a6   : > { %v1483_v19 = vadd.f32 %v1482_v41, %v1452_v62 }
 0x1a8   : > { %v1484_v46 = vadd.f32 %v1483_v19, %v1453_v27 }
 0x1aa   : > { %v1485_v32 = vadd.f32 %v1484_v46, %v1454_v43 }
 0x1ac   : > { %v1486_v55 = vadd.f32 %v1485_v32, %v1455_v49 }
 0x1ae   : > { %v1487_v37 = vadd.f32 %v1486_v55, %v1456_v54 }
 0x1b0   : > { %v1488_v60 = vadd.f32 %v1487_v37, %v1457_v58 }
 0x1b2   : > { %v1489_v42 = vadd.f32 %v1488_v60, %v1458_v44 }
 0x1b4   : > { %v1490_v52 = vadd.f32 %v1489_v42, %v1459_v35 }
 0x1b6   : > { %v1491_v23 = vadd.f32 %v1490_v52, %v1460_v26 }
 0x1b8   : > { %v1492_v25 = vrot.slane %v1491_v23, 4 }
 0x1ba   : > { %v1493_v0 = vadd.f32 %v1492_v25, %v1491_v23 }
 0x1bc   : > { %v1494_v56 = vrot.slane %v1493_v0, 2 }
 0x1be   : > { %v1495_v3 = vadd.f32 %v1494_v56, %v1493_v0  ;;  %v2028_v56 = vld [vmem:[%s3072_s4] ss:$0 sm:$0xff] }
 0x1c0   : > { %v1496_v5 = vrot.slane %v1495_v3, 1 }
 0x1c2   : > { %v1497_v8 = vadd.f32 %v1496_v5, %v1495_v3 }
 0x1c4   : > { %v1498_v12 = vmul.f32 0.00390625, %v1497_v8 }
 0x1c6   : > { %v1499_v16 = vadd.f32 1e-05, %v1498_v12 }
 0x1c8   : > { %2503 = vrsqrt.f32 %v1499_v16 }
 0x1d5   : > { %v2504_v17 = vpop.eup %2503 }
 0x1d6   : > { %v1501_v9 = vmul.f32 %v2504_v17, %v2855_v61  ;;  %v1502_v33 = vmul.f32 %v2504_v17, %v2858_v18  ;;  %v1503_v40 = vmul.f32 %v2504_v17, %v2861_v39  ;;  %v1504_v22 = vmul.f32 %v2504_v17, %v2868_v28 }
 0x1d7   : > { %v1505_v62 = vmul.f32 %v2504_v17, %v2871_v31  ;;  %v1506_v41 = vmul.f32 %v2504_v17, %v2876_v36  ;;  %v1507_v27 = vmul.f32 %v2504_v17, %v2881_v50  ;;  %v1508_v19 = vmul.f32 %v2504_v17, %v2886_v24 }
 0x1d8   : > { %v1509_v43 = vmul.f32 %v2504_v17, %v2891_v34  ;;  %v1510_v46 = vmul.f32 %v2504_v17, %v2896_v38  ;;  %v1511_v61 = vmul.f32 %v2504_v17, %v2901_v45  ;;  %v1512_v18 = vmul.f32 %v2504_v17, %v2906_v51 }
 0x1d9   : > { %v1513_v39 = vmul.f32 %v2504_v17, %v2911_v53  ;;  %v1514_v28 = vmul.f32 %v2504_v17, %v2916_v2  ;;  %v1515_v31 = vmul.f32 %v2504_v17, %v2921_v15  ;;  %v1516_v36 = vmul.f32 %v2504_v17, %v2926_v30  ;;  %v2027_v15 = vld [vmem:[%s3071_s3] ss:$0 sm:$0xff] }
 0x1da   : > { %v1517_v50 = vmul.f32 %v2504_v17, %v2821_v4  ;;  %v1518_v24 = vmul.f32 %v2504_v17, %v2824_v47  ;;  %v1519_v34 = vmul.f32 %v2504_v17, %v2826_v6  ;;  %v1520_v38 = vmul.f32 %v2504_v17, %v2828_v59 }
 0x1db   : > { %v1521_v45 = vmul.f32 %v2504_v17, %v2830_v63  ;;  %v1522_v51 = vmul.f32 %v2504_v17, %v2832_v7  ;;  %v1523_v53 = vmul.f32 %v2504_v17, %v2834_v1  ;;  %v1524_v2 = vmul.f32 %v2504_v17, %v2836_v13 }
 0x1dc   : > { %v1525_v4 = vmul.f32 %v2504_v17, %v2838_v11  ;;  %v1526_v47 = vmul.f32 %v2504_v17, %v2840_v21  ;;  %v1527_v6 = vmul.f32 %v2504_v17, %v2842_v10  ;;  %v1528_v59 = vmul.f32 %v2504_v17, %v2844_v20 }
 0x1dd   : > { %v1529_v63 = vmul.f32 %v2504_v17, %v2846_v29  ;;  %v1530_v7 = vmul.f32 %v2504_v17, %v2848_v14  ;;  %v1531_v1 = vmul.f32 %v2504_v17, %v2850_v48  ;;  %v1532_v13 = vmul.f32 %v2504_v17, %v2852_v57 }
 0x1de   : > { %v1540_v30 = vmul.f32 %v2027_v15, %v1501_v9  ;;  %v1541_v49 = vmul.f32 %v2027_v15, %v1502_v33  ;;  %v1542_v32 = vmul.f32 %v2027_v15, %v1503_v40  ;;  %v1543_v54 = vmul.f32 %v2027_v15, %v1504_v22 }
 0x1df   : > { %v1544_v55 = vmul.f32 %v2027_v15, %v1505_v62  ;;  %v1545_v11 = vmul.f32 %v2027_v15, %v1506_v41  ;;  %v1546_v58 = vmul.f32 %v2027_v15, %v1507_v27  ;;  %v1547_v21 = vmul.f32 %v2027_v15, %v1508_v19 }
 0x1e0   : > { %v1548_v37 = vmul.f32 %v2027_v15, %v1509_v43  ;;  %v1549_v10 = vmul.f32 %v2027_v15, %v1510_v46  ;;  %v1550_v44 = vmul.f32 %v2027_v15, %v1511_v61  ;;  %v1551_v20 = vmul.f32 %v2027_v15, %v1512_v18 }
 0x1e1   : > { %v1552_v60 = vmul.f32 %v2027_v15, %v1513_v39  ;;  %v1553_v29 = vmul.f32 %v2027_v15, %v1514_v28  ;;  %v1554_v35 = vmul.f32 %v2027_v15, %v1515_v31  ;;  %v1555_v14 = vmul.f32 %v2027_v15, %v1516_v36 }
 0x1e2   : > { %v1556_v42 = vmul.f32 %v2027_v15, %v1517_v50  ;;  %v1557_v48 = vmul.f32 %v2027_v15, %v1518_v24  ;;  %v1558_v26 = vmul.f32 %v2027_v15, %v1519_v34  ;;  %v1559_v57 = vmul.f32 %v2027_v15, %v1520_v38 }
 0x1e3   : > { %v1560_v52 = vmul.f32 %v2027_v15, %v1521_v45  ;;  %v1561_v23 = vmul.f32 %v2027_v15, %v1522_v51  ;;  %v1562_v25 = vmul.f32 %v2027_v15, %v1523_v53  ;;  %v1563_v0 = vmul.f32 %v2027_v15, %v1524_v2 }
 0x1e4   : > { %v1564_v3 = vmul.f32 %v2027_v15, %v1525_v4  ;;  %v1565_v5 = vmul.f32 %v2027_v15, %v1526_v47  ;;  %v1566_v8 = vmul.f32 %v2027_v15, %v1527_v6  ;;  %v1567_v12 = vmul.f32 %v2027_v15, %v1528_v59 }
 0x1e5   : > { %v1568_v16 = vmul.f32 %v2027_v15, %v1529_v63  ;;  %v1569_v17 = vmul.f32 %v2027_v15, %v1530_v7  ;;  %v1570_v9 = vmul.f32 %v2027_v15, %v1531_v1  ;;  %v1571_v33 = vmul.f32 %v2027_v15, %v1532_v13 }
 0x1e6   : > { %v3004_v40 = vadd.f32 %v2028_v56, %v1540_v30  ;;  %v3006_v22 = vadd.f32 %v2028_v56, %v1541_v49  ;;  %v3008_v62 = vadd.f32 %v2028_v56, %v1542_v32  ;;  %v3010_v41 = vadd.f32 %v2028_v56, %v1543_v54 }
 0x1e7   : > { %v3012_v27 = vadd.f32 %v2028_v56, %v1544_v55  ;;  %v3014_v19 = vadd.f32 %v2028_v56, %v1545_v11  ;;  %v3016_v43 = vadd.f32 %v2028_v56, %v1546_v58  ;;  %v3018_v46 = vadd.f32 %v2028_v56, %v1547_v21 }
 0x1e8   : > { %v3020_v61 = vadd.f32 %v2028_v56, %v1548_v37  ;;  %v1588_v18 = vadd.f32 %v2028_v56, %v1549_v10  ;;  %v1589_v39 = vadd.f32 %v2028_v56, %v1550_v44  ;;  %v1590_v28 = vadd.f32 %v2028_v56, %v1551_v20 }
 0x1e9   : > { %v1591_v31 = vadd.f32 %v2028_v56, %v1552_v60  ;;  %v1592_v36 = vadd.f32 %v2028_v56, %v1553_v29  ;;  %v1593_v50 = vadd.f32 %v2028_v56, %v1554_v35  ;;  %v1594_v24 = vadd.f32 %v2028_v56, %v1555_v14 }
 0x1ea   : > { %v3022_v34 = vadd.f32 %v2028_v56, %v1556_v42  ;;  %v1596_v38 = vadd.f32 %v2028_v56, %v1557_v48  ;;  %v1597_v45 = vadd.f32 %v2028_v56, %v1558_v26  ;;  %v1598_v51 = vadd.f32 %v2028_v56, %v1559_v57 }
 0x1eb   : > { %v1599_v53 = vadd.f32 %v2028_v56, %v1560_v52  ;;  %v1600_v2 = vadd.f32 %v2028_v56, %v1561_v23  ;;  %v1601_v15 = vadd.f32 %v2028_v56, %v1562_v25  ;;  %v1602_v4 = vadd.f32 %v2028_v56, %v1563_v0 }
 0x1ec   : > { %v3024_v47 = vadd.f32 %v2028_v56, %v1564_v3  ;;  %v1604_v6 = vadd.f32 %v2028_v56, %v1565_v5  ;;  %v1605_v59 = vadd.f32 %v2028_v56, %v1566_v8  ;;  %v1606_v63 = vadd.f32 %v2028_v56, %v1567_v12 }
 0x1ed   : > { %v1607_v7 = vadd.f32 %v2028_v56, %v1568_v16  ;;  %v1608_v1 = vadd.f32 %v2028_v56, %v1569_v17  ;;  %v1609_v13 = vadd.f32 %v2028_v56, %v1570_v9  ;;  %v1610_v30 = vadd.f32 %v2028_v56, %v1571_v33 }
 0x1ee   : > { %v1611_v49 = vmax.f32 %v3004_v40, 0.0  ;;  %v1612_v32 = vmax.f32 %v3006_v22, 0.0  ;;  %v1613_v54 = vmax.f32 %v3008_v62, 0.0  ;;  %v1614_v55 = vmax.f32 %v3010_v41, 0.0 }
 0x1ef   : > { %v1615_v11 = vmax.f32 %v3012_v27, 0.0  ;;  %v1616_v58 = vmax.f32 %v3014_v19, 0.0  ;;  %v1617_v21 = vmax.f32 %v3016_v43, 0.0  ;;  %v1618_v37 = vmax.f32 %v3018_v46, 0.0 }
 0x1f0   : > { %v1619_v10 = vmax.f32 %v3020_v61, 0.0  ;;  %v1620_v44 = vmax.f32 %v1588_v18, 0.0  ;;  %v1621_v20 = vmax.f32 %v1589_v39, 0.0  ;;  %v1622_v60 = vmax.f32 %v1590_v28, 0.0 }
 0x1f1   : > { %v1623_v29 = vmax.f32 %v1591_v31, 0.0  ;;  %v1624_v35 = vmax.f32 %v1592_v36, 0.0  ;;  %v1625_v14 = vmax.f32 %v1593_v50, 0.0  ;;  %v1626_v42 = vmax.f32 %v1594_v24, 0.0 }
 0x1f2   : > { %v1627_v48 = vmax.f32 %v3022_v34, 0.0  ;;  %v1628_v26 = vmax.f32 %v1596_v38, 0.0  ;;  %v1629_v57 = vmax.f32 %v1597_v45, 0.0  ;;  %v1630_v52 = vmax.f32 %v1598_v51, 0.0 }
 0x1f3   : > { %v1631_v23 = vmax.f32 %v1599_v53, 0.0  ;;  %v1632_v25 = vmax.f32 %v1600_v2, 0.0  ;;  %v1633_v0 = vmax.f32 %v1601_v15, 0.0  ;;  %v1634_v56 = vmax.f32 %v1602_v4, 0.0 }
 0x1f4   : > { %v1635_v3 = vmax.f32 %v3024_v47, 0.0  ;;  %v1636_v5 = vmax.f32 %v1604_v6, 0.0  ;;  %v1637_v8 = vmax.f32 %v1605_v59, 0.0  ;;  %v1638_v12 = vmax.f32 %v1606_v63, 0.0 }
 0x1f5   : > { %v1639_v16 = vmax.f32 %v1607_v7, 0.0  ;;  %v1640_v17 = vmax.f32 %v1608_v1, 0.0  ;;  %v1641_v9 = vmax.f32 %v1609_v13, 0.0  ;;  %v1642_v33 = vmax.f32 %v1610_v30, 0.0 }
 0x1f6   : > { %v2098_v40 = vpack.c.bf16 %v1612_v32, %v1611_v49  ;;  %v2103_v22 = vpack.c.bf16 %v1614_v55, %v1613_v54  ;;  %v2108_v62 = vpack.c.bf16 %v1616_v58, %v1615_v11  ;;  %v2113_v41 = vpack.c.bf16 %v1618_v37, %v1617_v21 }
 0x1f7   : > { %v2118_v27 = vpack.c.bf16 %v1620_v44, %v1619_v10  ;;  %v2123_v19 = vpack.c.bf16 %v1622_v60, %v1621_v20  ;;  %v2128_v43 = vpack.c.bf16 %v1624_v35, %v1623_v29  ;;  %v2133_v46 = vpack.c.bf16 %v1626_v42, %v1625_v14 }
 0x1f8   : > { %2099 = vst [vmem:[%s3041_s17] sm:$0xff] %v2098_v40   ;;  %2175 = vst [vmem:[%s3041_s17 + $0x8] sm:$0xff] %v2103_v22   ;;  %v2138_v61 = vpack.c.bf16 %v1628_v26, %v1627_v48  ;;  %v2143_v18 = vpack.c.bf16 %v1630_v52, %v1629_v57  ;;  %v2148_v39 = vpack.c.bf16 %v1632_v25, %v1631_v23 }
 0x1f9   : > { %2176 = vst [vmem:[%s3041_s17 + $0x10] sm:$0xff] %v2108_v62   ;;  %2177 = vst [vmem:[%s3041_s17 + $0x18] sm:$0xff] %v2113_v41   ;;  %v2153_v28 = vpack.c.bf16 %v1634_v56, %v1633_v0  ;;  %v2158_v31 = vpack.c.bf16 %v1636_v5, %v1635_v3  ;;  %v2163_v36 = vpack.c.bf16 %v1638_v12, %v1637_v8 }
 0x1fa   : > { %2178 = vst [vmem:[%s3041_s17 + $0x20] sm:$0xff] %v2118_v27   ;;  %2179 = vst [vmem:[%s3041_s17 + $0x28] sm:$0xff] %v2123_v19   ;;  %v2168_v50 = vpack.c.bf16 %v1640_v17, %v1639_v16  ;;  %v2173_v24 = vpack.c.bf16 %v1642_v33, %v1641_v9 }
 0x1fb   : > { %2180 = vst [vmem:[%s3041_s17 + $0x30] sm:$0xff] %v2128_v43   ;;  %2181 = vst [vmem:[%s3041_s17 + $0x38] sm:$0xff] %v2133_v46  }
 0x1fc   : > { %2182 = vst [vmem:[%s3041_s17 + $0x40] sm:$0xff] %v2138_v61   ;;  %2183 = vst [vmem:[%s3041_s17 + $0x48] sm:$0xff] %v2143_v18  }
 0x1fd   : > { %2184 = vst [vmem:[%s3041_s17 + $0x50] sm:$0xff] %v2148_v39   ;;  %2185 = vst [vmem:[%s3041_s17 + $0x58] sm:$0xff] %v2153_v28  }
 0x1fe   : > { %2186 = vst [vmem:[%s3041_s17 + $0x60] sm:$0xff] %v2158_v31   ;;  %2187 = vst [vmem:[%s3041_s17 + $0x68] sm:$0xff] %v2163_v36  }
 0x1ff   : > { %2188 = vst [vmem:[%s3041_s17 + $0x70] sm:$0xff] %v2168_v50   ;;  %2189 = vst [vmem:[%s3041_s17 + $0x78] sm:$0xff] %v2173_v24  }
 0x200 PF: > { %s15_s20 = sadd.s32 1, %s2527_s20   ;;  %s3074_s18 = smov %s2523_s19 }
 0x201   : > { %p12_p5 = scmp.ge.s32.totalorder %s15_s20, 4   ;;  %s3075_s19 = smov %s3077_s21 }
 0x203   :  { %14 = sbr.rel (!%p12_p5) target bundleno = 2 (0x2), region = 90 }

// kernel: generator_forward.11
= control target key start
LH: loop header
LB: loop body
LE: loop exit
PB: predicated region body
PF: predicated region fallthrough
CT: control target
= control target key end

     0   :  { %s3382_s18 = smov 0   ;;  %s3384_s19 = smov 0   ;;  %s3999_s0 = inlined_call_operand.vmem [shape: bf16[128,2048], index: 0, kind: input, shape index: {}]   ;;  %s4000_s1 = inlined_call_operand.vmem [shape: bf16[2048,128], index: 1, kind: input, shape index: {}]   ;;  %s4001_s2 = inlined_call_operand.vmem [shape: f32[1,128], index: 2, kind: input, shape index: {}]   ;;  %s4002_s3 = inlined_call_operand.vmem [shape: f32[1,128], index: 3, kind: input, shape index: {}]   ;;  %s4003_s4 = inlined_call_operand.vmem [shape: f32[1,128], index: 4, kind: input, shape index: {}]   ;;  %s4004_s5 = inlined_call_operand.vmem [shape: bf16[128,128], index: 5, kind: output, shape index: {}]  }
   0x1   :  { %s3386_s20 = smov 0  }
   0x2 LB: > { %s34_s21 = sadd.s32 1, %s3346_s19  ;;  %p2611_p0 = scmp.ge.s32.totalorder %s3350_s20, 1  ;;  %s3350_s20 = sphi %s3386_s20, %s15_s20   ;;  %s3346_s19 = sphi %s3384_s19, %s4016_s19   ;;  %s3342_s18 = sphi %s3382_s18, %s4015_s18  }
   0x3   : > { %p36_p1 = scmp.ge.s32.totalorder %s34_s21, 2  ;;  %p257_p2 = scmp.lt.s32.totalorder %s3350_s20, 3 }
   0x5   : > { %s4018_s21 = smov (%p36_p1, %s34_s21), 0  ;;  %p258_p3 = pnand %p2611_p0, %p257_p2 }
   0x7   : > { %261 = sbr.rel (%p258_p3) target bundleno = 449 (0x1c1), region = 40 }
   0xc   : > { %v3198_v0 = vld [vmem:[%s4000_s1 + $0x78] sm:$0xff]   ;;  %v3202_v4 = vld [vmem:[%s4000_s1 + $0x70] sm:$0xff]   ;;  %v3206_v8 = vld [vmem:[%s4000_s1 + $0x68] sm:$0xff]   ;;  %s2612_s8 = sshll.u32 %s3342_s18, 3 }
   0xd   : > { %v3199_v1 = vld [vmem:[%s4000_s1 + $0xf8] sm:$0xff]   ;;  %2854 = vmatprep.subr.bf16.mxu0 %v3198_v0  ;;  %v3203_v5 = vld [vmem:[%s4000_s1 + $0xf0] sm:$0xff]   ;;  %v3207_v9 = vld [vmem:[%s4000_s1 + $0xe8] sm:$0xff]   ;;  %p312_p4 = scmp.lt.s32.totalorder %s2612_s8, 15 }
   0xe   : > { %v3200_v2 = vld [vmem:[%s4000_s1 + $0x38] sm:$0xff]   ;;  %2894 = vmatprep.subr.bf16.mxu1 %v3199_v1  ;;  %v3204_v6 = vld [vmem:[%s4000_s1 + $0x30] sm:$0xff]   ;;  %v3208_v10 = vld [vmem:[%s4000_s1 + $0x28] sm:$0xff]  }
   0xf   : > { %v3201_v3 = vld [vmem:[%s4000_s1 + $0xb8] sm:$0xff]   ;;  %2855 = vmatpush3.bf16.msra.mxu0 %v3200_v2  ;;  %v3205_v7 = vld [vmem:[%s4000_s1 + $0xb0] sm:$0xff]   ;;  %v3209_v11 = vld [vmem:[%s4000_s1 + $0xa8] sm:$0xff]   ;;  %s4020_s8 = smov (!%p312_p4, %s2612_s8), 15 }
  0x10   : > { %2895 = vmatpush3.bf16.msra.mxu1 %v3201_v3  ;;  %2856 = vmatprep.subr.bf16.mxu0 %v3202_v4  ;;  %v3210_v12 = vld [vmem:[%s4000_s1 + $0x60] sm:$0xff]   ;;  %v3214_v16 = vld [vmem:[%s4000_s1 + $0x58] sm:$0xff]   ;;  %v3218_v20 = vld [vmem:[%s4000_s1 + $0x50] sm:$0xff]   ;;  %s2822_s10 = sshll.u32 %s4020_s8, 6  ;;  %s2616_s24 = sshll.u32 %s4020_s8, 2 }
  0x11   : > { %2896 = vmatprep.subr.bf16.mxu1 %v3203_v5  ;;  %v3211_v13 = vld [vmem:[%s4000_s1 + $0xe0] sm:$0xff]   ;;  %v3215_v17 = vld [vmem:[%s4000_s1 + $0xd8] sm:$0xff]   ;;  %v3219_v21 = vld [vmem:[%s4000_s1 + $0xd0] sm:$0xff]   ;;  %s3499_s22 = scalar_lea.vmem %s3999_s0, %s2822_s10  ;;  %s347_s27 = scalar_lea.vmem %s4004_s5, %s2616_s24 }
  0x12   : > { %v3212_v14 = vld [vmem:[%s4000_s1 + $0x20] sm:$0xff]   ;;  %v3216_v18 = vld [vmem:[%s4000_s1 + $0x18] sm:$0xff]   ;;  %v3220_v22 = vld [vmem:[%s4000_s1 + $0x10] sm:$0xff]  }
  0x13   : > { %2857 = vmatpush3.bf16.msra.mxu0 %v3204_v6  ;;  %v3213_v15 = vld [vmem:[%s4000_s1 + $0xa0] sm:$0xff]   ;;  %v3217_v19 = vld [vmem:[%s4000_s1 + $0x98] sm:$0xff]   ;;  %v3221_v23 = vld [vmem:[%s4000_s1 + $0x90] sm:$0xff]  }
  0x14   : > { %2897 = vmatpush3.bf16.msra.mxu1 %v3205_v7  ;;  %2858 = vmatprep.subr.bf16.mxu0 %v3206_v8  ;;  %v3222_v24 = vld [vmem:[%s4000_s1 + $0x48] sm:$0xff]   ;;  %v3226_v28 = vld [vmem:[%s4000_s1 + $0x40] sm:$0xff]   ;;  %v3230_v40 = vld [vmem:[%s4000_s1 + $0x178] sm:$0xff]  }
  0x15   : > { %2898 = vmatprep.subr.bf16.mxu1 %v3207_v9  ;;  %v3223_v25 = vld [vmem:[%s4000_s1 + $0xc8] sm:$0xff]   ;;  %v3227_v29 = vld [vmem:[%s4000_s1 + $0xc0] sm:$0xff]   ;;  %v3231_v41 = vld [vmem:[%s4000_s1 + $0x1f8] sm:$0xff]  }
  0x16   : > { %v3224_v26 = vld [vmem:[%s4000_s1 + $0x8] sm:$0xff]   ;;  %v3228_v30 = vld [vmem:[%s4000_s1] sm:$0xff]   ;;  %v3232_v42 = vld [vmem:[%s4000_s1 + $0x138] sm:$0xff]  }
  0x17   : > { %2859 = vmatpush3.bf16.msra.mxu0 %v3208_v10  ;;  %v3225_v27 = vld [vmem:[%s4000_s1 + $0x88] sm:$0xff]   ;;  %v3229_v31 = vld [vmem:[%s4000_s1 + $0x80] sm:$0xff]   ;;  %v3233_v43 = vld [vmem:[%s4000_s1 + $0x1b8] sm:$0xff]  }
  0x18   : > { %2899 = vmatpush3.bf16.msra.mxu1 %v3209_v11  ;;  %2860 = vmatprep.subr.bf16.mxu0 %v3210_v12  ;;  %v378_v32 = vld [vmem:[%s3499_s22] sm:$0xff]  ;;  %v379_v34 = vld [vmem:[%s3499_s22 + $0x8] sm:$0xff]  ;;  %v3234_v44 = vld [vmem:[%s4000_s1 + $0x170] sm:$0xff]  }
  0x19   : > { %2900 = vmatprep.subr.bf16.mxu1 %v3211_v13  ;;  %v386_v33 = vld [vmem:[%s3499_s22 + $0x40] sm:$0xff]  ;;  %v387_v37 = vld [vmem:[%s3499_s22 + $0x48] sm:$0xff]  ;;  %v3235_v45 = vld [vmem:[%s4000_s1 + $0x1f0] sm:$0xff]  }
  0x1a   : > { %v2618_v35 = vcombine.low %v378_v32, %v386_v33  ;;  %v2619_v36 = vcombine.high %v378_v32, %v386_v33  ;;  %v2620_v38 = vcombine.low %v379_v34, %v387_v37  ;;  %v2621_v39 = vcombine.high %v379_v34, %v387_v37  ;;  %v3236_v46 = vld [vmem:[%s4000_s1 + $0x130] sm:$0xff]   ;;  %v394_v48 = vld [vmem:[%s3499_s22 + $0x80] sm:$0xff]  ;;  %v395_v51 = vld [vmem:[%s3499_s22 + $0x88] sm:$0xff] }
  0x1b   : > { %2861 = vmatpush3.bf16.msra.mxu0 %v3212_v14  ;;  %v3237_v47 = vld [vmem:[%s4000_s1 + $0x1b0] sm:$0xff]   ;;  %v402_v49 = vld [vmem:[%s3499_s22 + $0xc0] sm:$0xff]  ;;  %v403_v52 = vld [vmem:[%s3499_s22 + $0xc8] sm:$0xff] }
  0x1c   : > { %2901 = vmatpush3.bf16.msra.mxu1 %v3213_v15  ;;  %2862 = vmatprep.subr.bf16.mxu0 %v3214_v16  ;;  %v2635_v50 = vcombine.high %v394_v48, %v402_v49  ;;  %v2634_v53 = vcombine.low %v394_v48, %v402_v49  ;;  %v2637_v54 = vcombine.high %v395_v51, %v403_v52  ;;  %v3238_v56 = vld [vmem:[%s4000_s1 + $0x168] sm:$0xff]   ;;  %v3242_v60 = vld [vmem:[%s4000_s1 + $0x160] sm:$0xff]   ;;  %v3246_v8 = vld [vmem:[%s4000_s1 + $0x158] sm:$0xff]  }
  0x1d   : > { %2902 = vmatprep.subr.bf16.mxu1 %v3215_v17  ;;  %1818 = vmatprep.mubr.bf16.mxu0 %v2619_v36  ;;  %v2636_v55 = vcombine.low %v395_v51, %v403_v52  ;;  %v3239_v57 = vld [vmem:[%s4000_s1 + $0x1e8] sm:$0xff]   ;;  %v3243_v61 = vld [vmem:[%s4000_s1 + $0x1e0] sm:$0xff]   ;;  %v3247_v9 = vld [vmem:[%s4000_s1 + $0x1d8] sm:$0xff]  }
  0x1e   : > { %1883 = vmatprep.mubr.bf16.mxu1 %v2621_v39  ;;  %v3240_v58 = vld [vmem:[%s4000_s1 + $0x128] sm:$0xff]   ;;  %v3244_v62 = vld [vmem:[%s4000_s1 + $0x120] sm:$0xff]   ;;  %v3248_v10 = vld [vmem:[%s4000_s1 + $0x118] sm:$0xff]  }
  0x1f   : > { %2863 = vmatpush3.bf16.msra.mxu0 %v3216_v18  ;;  %v3241_v59 = vld [vmem:[%s4000_s1 + $0x1a8] sm:$0xff]   ;;  %v3245_v63 = vld [vmem:[%s4000_s1 + $0x1a0] sm:$0xff]   ;;  %v3249_v11 = vld [vmem:[%s4000_s1 + $0x198] sm:$0xff]  }
  0x20   : > { %2903 = vmatpush3.bf16.msra.mxu1 %v3217_v19  ;;  %2864 = vmatprep.subr.bf16.mxu0 %v3218_v20  ;;  %v410_v0 = vld [vmem:[%s3499_s22 + $0x100] sm:$0xff]  ;;  %v411_v2 = vld [vmem:[%s3499_s22 + $0x108] sm:$0xff]  ;;  %v3250_v12 = vld [vmem:[%s4000_s1 + $0x150] sm:$0xff]  }
  0x21   : > { %2904 = vmatprep.subr.bf16.mxu1 %v3219_v21  ;;  %v418_v1 = vld [vmem:[%s3499_s22 + $0x140] sm:$0xff]  ;;  %v419_v3 = vld [vmem:[%s3499_s22 + $0x148] sm:$0xff]  ;;  %v3251_v13 = vld [vmem:[%s4000_s1 + $0x1d0] sm:$0xff]  }
  0x22   : > { %v2651_v4 = vcombine.high %v410_v0, %v418_v1  ;;  %v2653_v5 = vcombine.high %v411_v2, %v419_v3  ;;  %v2650_v6 = vcombine.low %v410_v0, %v418_v1  ;;  %v2652_v7 = vcombine.low %v411_v2, %v419_v3  ;;  %v3252_v14 = vld [vmem:[%s4000_s1 + $0x110] sm:$0xff]   ;;  %v426_v16 = vld [vmem:[%s3499_s22 + $0x180] sm:$0xff]  ;;  %v427_v18 = vld [vmem:[%s3499_s22 + $0x188] sm:$0xff] }
  0x23   : > { %2865 = vmatpush3.bf16.msra.mxu0 %v3220_v22  ;;  %v3253_v15 = vld [vmem:[%s4000_s1 + $0x190] sm:$0xff]   ;;  %v434_v17 = vld [vmem:[%s3499_s22 + $0x1c0] sm:$0xff]  ;;  %v435_v20 = vld [vmem:[%s3499_s22 + $0x1c8] sm:$0xff] }
  0x24   : > { %2905 = vmatpush3.bf16.msra.mxu1 %v3221_v23  ;;  %2866 = vmatprep.subr.bf16.mxu0 %v3222_v24  ;;  %v2667_v19 = vcombine.high %v426_v16, %v434_v17  ;;  %v2666_v21 = vcombine.low %v426_v16, %v434_v17  ;;  %v2669_v22 = vcombine.high %v427_v18, %v435_v20  ;;  %v3254_v24 = vld [vmem:[%s4000_s1 + $0x148] sm:$0xff]   ;;  %v380_v32 = vld [vmem:[%s3499_s22 + $0x10] sm:$0xff]  ;;  %v381_v36 = vld [vmem:[%s3499_s22 + $0x18] sm:$0xff] }
  0x25   : > { %2906 = vmatprep.subr.bf16.mxu1 %v3223_v25  ;;  %v2668_v23 = vcombine.low %v427_v18, %v435_v20  ;;  %v3255_v25 = vld [vmem:[%s4000_s1 + $0x1c8] sm:$0xff]   ;;  %v388_v33 = vld [vmem:[%s3499_s22 + $0x50] sm:$0xff]  ;;  %v389_v37 = vld [vmem:[%s3499_s22 + $0x58] sm:$0xff] }
  0x26   : > { %v2622_v34 = vcombine.low %v380_v32, %v388_v33  ;;  %v2625_v39 = vcombine.high %v381_v36, %v389_v37  ;;  %v396_v48 = vld [vmem:[%s3499_s22 + $0x90] sm:$0xff]  ;;  %v405_v51 = vld [vmem:[%s3499_s22 + $0xd8] sm:$0xff] }
  0x27   : > { %2867 = vmatpush3.bf16.msra.mxu0 %v3224_v26  ;;  %v3256_v26 = vld [vmem:[%s4000_s1 + $0x108] sm:$0xff]   ;;  %v404_v49 = vld [vmem:[%s3499_s22 + $0xd0] sm:$0xff]  ;;  %v413_v2 = vld [vmem:[%s3499_s22 + $0x118] sm:$0xff] }
  0x28   : > { %2907 = vmatpush3.bf16.msra.mxu1 %v3225_v27  ;;  %2868 = vmatprep.subr.bf16.mxu0 %v3226_v28  ;;  %v3257_v27 = vld [vmem:[%s4000_s1 + $0x188] sm:$0xff]   ;;  %v3258_v28 = vld [vmem:[%s4000_s1 + $0x140] sm:$0xff]   ;;  %v2639_v52 = vcombine.high %v396_v48, %v404_v49  ;;  %v412_v0 = vld [vmem:[%s3499_s22 + $0x110] sm:$0xff] }
  0x29   : > { %2908 = vmatprep.subr.bf16.mxu1 %v3227_v29  ;;  %v3259_v29 = vld [vmem:[%s4000_s1 + $0x1c0] sm:$0xff]   ;;  %v420_v1 = vld [vmem:[%s3499_s22 + $0x150] sm:$0xff]  ;;  %v437_v20 = vld [vmem:[%s3499_s22 + $0x1d8] sm:$0xff] }
  0x2a   : > { %v2655_v3 = vcombine.high %v412_v0, %v420_v1  ;;  %v428_v16 = vld [vmem:[%s3499_s22 + $0x190] sm:$0xff] }
  0x2b   : > { %2869 = vmatpush3.bf16.msra.mxu0 %v3228_v30  ;;  %v3260_v30 = vld [vmem:[%s4000_s1 + $0x100] sm:$0xff]   ;;  %v436_v17 = vld [vmem:[%s3499_s22 + $0x1d0] sm:$0xff] }
  0x2c   : > { %2909 = vmatpush3.bf16.msra.mxu1 %v3229_v31  ;;  %2934 = vmatprep.subr.bf16.mxu0 %v3230_v40  ;;  %v3261_v31 = vld [vmem:[%s4000_s1 + $0x180] sm:$0xff]   ;;  %v3262_v40 = vld [vmem:[%s4000_s1 + $0x278] sm:$0xff]   ;;  %v2671_v18 = vcombine.high %v428_v16, %v436_v17 }
  0x2d   : > { %2974 = vmatprep.subr.bf16.mxu1 %v3231_v41  ;;  %v3263_v41 = vld [vmem:[%s4000_s1 + $0x2f8] sm:$0xff]  }
  0x2e   : > { %1819 = vmatmul.mubr.bf16.vlgmr.msra.gmra.mxu0 %v2618_v35  ;;  %v2623_v35 = vcombine.high %v380_v32, %v388_v33  ;;  %v382_v32 = vld [vmem:[%s3499_s22 + $0x20] sm:$0xff] }
  0x2f   : > { %1884 = vmatmul.mubr.bf16.vlgmr.msra.gmra.mxu1 %v2620_v38  ;;  %2935 = vmatpush3.bf16.msra.mxu0 %v3232_v42  ;;  %v2624_v38 = vcombine.low %v381_v36, %v389_v37  ;;  %v3264_v42 = vld [vmem:[%s4000_s1 + $0x238] sm:$0xff]   ;;  %v390_v33 = vld [vmem:[%s3499_s22 + $0x60] sm:$0xff] }
  0x30   : > { %2975 = vmatpush3.bf16.msra.mxu1 %v3233_v43  ;;  %2936 = vmatprep.subr.bf16.mxu0 %v3234_v44  ;;  %v3265_v43 = vld [vmem:[%s4000_s1 + $0x2b8] sm:$0xff]   ;;  %v3266_v44 = vld [vmem:[%s4000_s1 + $0x270] sm:$0xff]   ;;  %v2626_v36 = vcombine.low %v382_v32, %v390_v33  ;;  %v2627_v37 = vcombine.high %v382_v32, %v390_v33 }
  0x31   : > { %2976 = vmatprep.subr.bf16.mxu1 %v3235_v45  ;;  %1826 = vmatprep.mubr.bf16.mxu0 %v2635_v50  ;;  %v3267_v45 = vld [vmem:[%s4000_s1 + $0x2f0] sm:$0xff]   ;;  %v397_v50 = vld [vmem:[%s3499_s22 + $0x98] sm:$0xff] }
  0x32   : > { %1891 = vmatprep.mubr.bf16.mxu1 %v2637_v54  ;;  %v2638_v54 = vcombine.low %v396_v48, %v404_v49  ;;  %v398_v48 = vld [vmem:[%s3499_s22 + $0xa0] sm:$0xff]  ;;  %v384_v32 = vld [vmem:[%s3499_s22 + $0x30] sm:$0xff] }
  0x33   : > { %2937 = vmatpush3.bf16.msra.mxu0 %v3236_v46  ;;  %v3268_v46 = vld [vmem:[%s4000_s1 + $0x230] sm:$0xff]   ;;  %v406_v49 = vld [vmem:[%s3499_s22 + $0xe0] sm:$0xff] }
  0x34   : > { %2977 = vmatpush3.bf16.msra.mxu1 %v3237_v47  ;;  %2938 = vmatprep.subr.bf16.mxu0 %v3238_v56  ;;  %v3269_v47 = vld [vmem:[%s4000_s1 + $0x2b0] sm:$0xff]   ;;  %v3270_v56 = vld [vmem:[%s4000_s1 + $0x268] sm:$0xff]  }
  0x35   : > { %2978 = vmatprep.subr.bf16.mxu1 %v3239_v57  ;;  %v3271_v57 = vld [vmem:[%s4000_s1 + $0x2e8] sm:$0xff]   ;;  %v392_v33 = vld [vmem:[%s3499_s22 + $0x70] sm:$0xff] }
  0x36   : > { %1827 = vmatmul.mubr.bf16.gmra.mxu0 %v2634_v53  ;;  %v2641_v53 = vcombine.high %v397_v50, %v405_v51 }
  0x37   : > { %1892 = vmatmul.mubr.bf16.gmra.mxu1 %v2636_v55  ;;  %2939 = vmatpush3.bf16.msra.mxu0 %v3240_v58  ;;  %v2640_v55 = vcombine.low %v397_v50, %v405_v51  ;;  %v3272_v58 = vld [vmem:[%s4000_s1 + $0x228] sm:$0xff]   ;;  %v2643_v51 = vcombine.high %v398_v48, %v406_v49 }
  0x38   : > { %2979 = vmatpush3.bf16.msra.mxu1 %v3241_v59  ;;  %2940 = vmatprep.subr.bf16.mxu0 %v3242_v60  ;;  %v3273_v59 = vld [vmem:[%s4000_s1 + $0x2a8] sm:$0xff]   ;;  %v3274_v60 = vld [vmem:[%s4000_s1 + $0x260] sm:$0xff]  }
  0x39   : > { %2980 = vmatprep.subr.bf16.mxu1 %v3243_v61  ;;  %1834 = vmatprep.mubr.bf16.mxu0 %v2651_v4  ;;  %v3275_v61 = vld [vmem:[%s4000_s1 + $0x2e0] sm:$0xff]   ;;  %v421_v4 = vld [vmem:[%s3499_s22 + $0x158] sm:$0xff]  ;;  %v399_v50 = vld [vmem:[%s3499_s22 + $0xa8] sm:$0xff] }
  0x3a   : > { %1899 = vmatprep.mubr.bf16.mxu1 %v2653_v5  ;;  %v2654_v5 = vcombine.low %v412_v0, %v420_v1  ;;  %v414_v0 = vld [vmem:[%s3499_s22 + $0x120] sm:$0xff] }
  0x3b   : > { %2941 = vmatpush3.bf16.msra.mxu0 %v3244_v62  ;;  %v3276_v62 = vld [vmem:[%s4000_s1 + $0x220] sm:$0xff]  }
  0x3c   : > { %2981 = vmatpush3.bf16.msra.mxu1 %v3245_v63  ;;  %2942 = vmatprep.subr.bf16.mxu0 %v3246_v8  ;;  %v3277_v63 = vld [vmem:[%s4000_s1 + $0x2a0] sm:$0xff]   ;;  %v3278_v8 = vld [vmem:[%s4000_s1 + $0x258] sm:$0xff]  }
  0x3d   : > { %2982 = vmatprep.subr.bf16.mxu1 %v3247_v9  ;;  %v3279_v9 = vld [vmem:[%s4000_s1 + $0x2d8] sm:$0xff]   ;;  %v422_v1 = vld [vmem:[%s3499_s22 + $0x160] sm:$0xff] }
  0x3e   : > { %1835 = vmatmul.mubr.bf16.gmra.mxu0 %v2650_v6  ;;  %v2657_v6 = vcombine.high %v413_v2, %v421_v4 }
  0x3f   : > { %1900 = vmatmul.mubr.bf16.gmra.mxu1 %v2652_v7  ;;  %2943 = vmatpush3.bf16.msra.mxu0 %v3248_v10  ;;  %v2656_v7 = vcombine.low %v413_v2, %v421_v4  ;;  %v3280_v10 = vld [vmem:[%s4000_s1 + $0x218] sm:$0xff]   ;;  %v2659_v2 = vcombine.high %v414_v0, %v422_v1  ;;  %v423_v4 = vld [vmem:[%s3499_s22 + $0x168] sm:$0xff] }
  0x40   : > { %2983 = vmatpush3.bf16.msra.mxu1 %v3249_v11  ;;  %2944 = vmatprep.subr.bf16.mxu0 %v3250_v12  ;;  %v3281_v11 = vld [vmem:[%s4000_s1 + $0x298] sm:$0xff]   ;;  %v3282_v12 = vld [vmem:[%s4000_s1 + $0x250] sm:$0xff]  }
  0x41   : > { %2984 = vmatprep.subr.bf16.mxu1 %v3251_v13  ;;  %1842 = vmatprep.mubr.bf16.mxu0 %v2667_v19  ;;  %v3283_v13 = vld [vmem:[%s4000_s1 + $0x2d0] sm:$0xff]   ;;  %v429_v19 = vld [vmem:[%s3499_s22 + $0x198] sm:$0xff] }
  0x42   : > { %1907 = vmatprep.mubr.bf16.mxu1 %v2669_v22  ;;  %v2673_v22 = vcombine.high %v429_v19, %v437_v20 }
  0x43   : > { %2945 = vmatpush3.bf16.msra.mxu0 %v3252_v14  ;;  %v3284_v14 = vld [vmem:[%s4000_s1 + $0x210] sm:$0xff]  }
  0x44   : > { %2985 = vmatpush3.bf16.msra.mxu1 %v3253_v15  ;;  %2946 = vmatprep.subr.bf16.mxu0 %v3254_v24  ;;  %v3285_v15 = vld [vmem:[%s4000_s1 + $0x290] sm:$0xff]   ;;  %v3286_v24 = vld [vmem:[%s4000_s1 + $0x248] sm:$0xff]  }
  0x45   : > { %2986 = vmatprep.subr.bf16.mxu1 %v3255_v25  ;;  %v3287_v25 = vld [vmem:[%s4000_s1 + $0x2c8] sm:$0xff]  }
  0x46   : > { %1843 = vmatmul.mubr.bf16.gmra.mxu0 %v2666_v21  ;;  %v2670_v21 = vcombine.low %v428_v16, %v436_v17  ;;  %v430_v16 = vld [vmem:[%s3499_s22 + $0x1a0] sm:$0xff] }
  0x47   : > { %1908 = vmatmul.mubr.bf16.gmra.mxu1 %v2668_v23  ;;  %2947 = vmatpush3.bf16.msra.mxu0 %v3256_v26  ;;  %v2672_v23 = vcombine.low %v429_v19, %v437_v20  ;;  %v3288_v26 = vld [vmem:[%s4000_s1 + $0x208] sm:$0xff]   ;;  %v438_v17 = vld [vmem:[%s3499_s22 + $0x1e0] sm:$0xff] }
  0x48   : > { %2987 = vmatpush3.bf16.msra.mxu1 %v3257_v27  ;;  %2948 = vmatprep.subr.bf16.mxu0 %v3258_v28  ;;  %v3289_v27 = vld [vmem:[%s4000_s1 + $0x288] sm:$0xff]   ;;  %v3290_v28 = vld [vmem:[%s4000_s1 + $0x240] sm:$0xff]   ;;  %v2675_v20 = vcombine.high %v430_v16, %v438_v17 }
  0x49   : > { %2988 = vmatprep.subr.bf16.mxu1 %v3259_v29  ;;  %1948 = vmatprep.mubr.bf16.mxu0 %v2623_v35  ;;  %v3291_v29 = vld [vmem:[%s4000_s1 + $0x2c0] sm:$0xff]   ;;  %v391_v35 = vld [vmem:[%s3499_s22 + $0x68] sm:$0xff] }
  0x4a   : > { %2013 = vmatprep.mubr.bf16.mxu1 %v2625_v39  ;;  %v439_v19 = vld [vmem:[%s3499_s22 + $0x1e8] sm:$0xff] }
  0x4b   : > { %2949 = vmatpush3.bf16.msra.mxu0 %v3260_v30  ;;  %v3292_v30 = vld [vmem:[%s4000_s1 + $0x200] sm:$0xff]  }
  0x4c   : > { %2989 = vmatpush3.bf16.msra.mxu1 %v3261_v31  ;;  %3014 = vmatprep.subr.bf16.mxu0 %v3262_v40  ;;  %v3293_v31 = vld [vmem:[%s4000_s1 + $0x280] sm:$0xff]   ;;  %v3294_v40 = vld [vmem:[%s4000_s1 + $0x378] sm:$0xff]  }
  0x4d   : > { %3054 = vmatprep.subr.bf16.mxu1 %v3263_v41  ;;  %v3295_v41 = vld [vmem:[%s4000_s1 + $0x3f8] sm:$0xff]  }
  0x4e   : > { %1949 = vmatmul.mubr.bf16.vlgmr.msra.gmra.mxu0 %v2622_v34  ;;  %v383_v34 = vld [vmem:[%s3499_s22 + $0x28] sm:$0xff] }
  0x4f   : > { %2014 = vmatmul.mubr.bf16.vlgmr.msra.gmra.mxu1 %v2624_v38  ;;  %3015 = vmatpush3.bf16.msra.mxu0 %v3264_v42  ;;  %v2628_v38 = vcombine.low %v383_v34, %v391_v35  ;;  %v2629_v39 = vcombine.high %v383_v34, %v391_v35  ;;  %v3296_v42 = vld [vmem:[%s4000_s1 + $0x338] sm:$0xff]   ;;  %v2630_v35 = vcombine.low %v384_v32, %v392_v33 }
  0x50   : > { %3055 = vmatpush3.bf16.msra.mxu1 %v3265_v43  ;;  %3016 = vmatprep.subr.bf16.mxu0 %v3266_v44  ;;  %v3297_v43 = vld [vmem:[%s4000_s1 + $0x3b8] sm:$0xff]   ;;  %v3298_v44 = vld [vmem:[%s4000_s1 + $0x370] sm:$0xff]  }
  0x51   : > { %3056 = vmatprep.subr.bf16.mxu1 %v3267_v45  ;;  %1956 = vmatprep.mubr.bf16.mxu0 %v2639_v52  ;;  %v3299_v45 = vld [vmem:[%s4000_s1 + $0x3f0] sm:$0xff]   ;;  %v407_v52 = vld [vmem:[%s3499_s22 + $0xe8] sm:$0xff]  ;;  %v385_v34 = vld [vmem:[%s3499_s22 + $0x38] sm:$0xff] }
  0x52   : > { %2021 = vmatprep.mubr.bf16.mxu1 %v2641_v53  ;;  %v2642_v53 = vcombine.low %v398_v48, %v406_v49  ;;  %v417_v48 = vld [vmem:[%s3499_s22 + $0x138] sm:$0xff] }
  0x53   : > { %3017 = vmatpush3.bf16.msra.mxu0 %v3268_v46  ;;  %v3300_v46 = vld [vmem:[%s4000_s1 + $0x330] sm:$0xff]   ;;  %v425_v49 = vld [vmem:[%s3499_s22 + $0x178] sm:$0xff] }
  0x54   : > { %3057 = vmatpush3.bf16.msra.mxu1 %v3269_v47  ;;  %3018 = vmatprep.subr.bf16.mxu0 %v3270_v56  ;;  %v3301_v47 = vld [vmem:[%s4000_s1 + $0x3b0] sm:$0xff]   ;;  %v3302_v56 = vld [vmem:[%s4000_s1 + $0x368] sm:$0xff]  }
  0x55   : > { %3058 = vmatprep.subr.bf16.mxu1 %v3271_v57  ;;  %v3303_v57 = vld [vmem:[%s4000_s1 + $0x3e8] sm:$0xff]  }
  0x56   : > { %1957 = vmatmul.mubr.bf16.gmra.mxu0 %v2638_v54  ;;  %v2645_v54 = vcombine.high %v399_v50, %v407_v52 }
  0x57   : > { %2022 = vmatmul.mubr.bf16.gmra.mxu1 %v2640_v55  ;;  %3019 = vmatpush3.bf16.msra.mxu0 %v3272_v58  ;;  %v2644_v55 = vcombine.low %v399_v50, %v407_v52  ;;  %v3304_v58 = vld [vmem:[%s4000_s1 + $0x328] sm:$0xff]  }
  0x58   : > { %3059 = vmatpush3.bf16.msra.mxu1 %v3273_v59  ;;  %3020 = vmatprep.subr.bf16.mxu0 %v3274_v60  ;;  %v3305_v59 = vld [vmem:[%s4000_s1 + $0x3a8] sm:$0xff]   ;;  %v3306_v60 = vld [vmem:[%s4000_s1 + $0x360] sm:$0xff]  }
  0x59   : > { %3060 = vmatprep.subr.bf16.mxu1 %v3275_v61  ;;  %1964 = vmatprep.mubr.bf16.mxu0 %v2655_v3  ;;  %v3307_v61 = vld [vmem:[%s4000_s1 + $0x3e0] sm:$0xff]   ;;  %v415_v3 = vld [vmem:[%s3499_s22 + $0x128] sm:$0xff] }
  0x5a   : > { %2029 = vmatprep.mubr.bf16.mxu1 %v2657_v6  ;;  %v2661_v6 = vcombine.high %v415_v3, %v423_v4 }
  0x5b   : > { %3021 = vmatpush3.bf16.msra.mxu0 %v3276_v62  ;;  %v3308_v62 = vld [vmem:[%s4000_s1 + $0x320] sm:$0xff]  }
  0x5c   : > { %3061 = vmatpush3.bf16.msra.mxu1 %v3277_v63  ;;  %3022 = vmatprep.subr.bf16.mxu0 %v3278_v8  ;;  %v3309_v63 = vld [vmem:[%s4000_s1 + $0x3a0] sm:$0xff]   ;;  %v3310_v8 = vld [vmem:[%s4000_s1 + $0x358] sm:$0xff]  }
  0x5d   : > { %3062 = vmatprep.subr.bf16.mxu1 %v3279_v9  ;;  %v3311_v9 = vld [vmem:[%s4000_s1 + $0x3d8] sm:$0xff]  }
  0x5e   : > { %1965 = vmatmul.mubr.bf16.gmra.mxu0 %v2654_v5  ;;  %v2658_v5 = vcombine.low %v414_v0, %v422_v1 }
  0x5f   : > { %2030 = vmatmul.mubr.bf16.gmra.mxu1 %v2656_v7  ;;  %3023 = vmatpush3.bf16.msra.mxu0 %v3280_v10  ;;  %v2660_v7 = vcombine.low %v415_v3, %v423_v4  ;;  %v3312_v10 = vld [vmem:[%s4000_s1 + $0x318] sm:$0xff]  }
  0x60   : > { %3063 = vmatpush3.bf16.msra.mxu1 %v3281_v11  ;;  %3024 = vmatprep.subr.bf16.mxu0 %v3282_v12  ;;  %v3313_v11 = vld [vmem:[%s4000_s1 + $0x398] sm:$0xff]   ;;  %v3314_v12 = vld [vmem:[%s4000_s1 + $0x350] sm:$0xff]  }
  0x61   : > { %3064 = vmatprep.subr.bf16.mxu1 %v3283_v13  ;;  %1972 = vmatprep.mubr.bf16.mxu0 %v2671_v18  ;;  %v3315_v13 = vld [vmem:[%s4000_s1 + $0x3d0] sm:$0xff]   ;;  %v431_v18 = vld [vmem:[%s3499_s22 + $0x1a8] sm:$0xff] }
  0x62   : > { %2037 = vmatprep.mubr.bf16.mxu1 %v2673_v22  ;;  %v2674_v22 = vcombine.low %v430_v16, %v438_v17 }
  0x63   : > { %3025 = vmatpush3.bf16.msra.mxu0 %v3284_v14  ;;  %v3316_v14 = vld [vmem:[%s4000_s1 + $0x310] sm:$0xff]  }
  0x64   : > { %3065 = vmatpush3.bf16.msra.mxu1 %v3285_v15  ;;  %3026 = vmatprep.subr.bf16.mxu0 %v3286_v24  ;;  %v3317_v15 = vld [vmem:[%s4000_s1 + $0x390] sm:$0xff]   ;;  %v3318_v24 = vld [vmem:[%s4000_s1 + $0x348] sm:$0xff]  }
  0x65   : > { %3066 = vmatprep.subr.bf16.mxu1 %v3287_v25  ;;  %v3319_v25 = vld [vmem:[%s4000_s1 + $0x3c8] sm:$0xff]  }
  0x66   : > { %1973 = vmatmul.mubr.bf16.gmra.mxu0 %v2670_v21  ;;  %v2677_v21 = vcombine.high %v431_v18, %v439_v19 }
  0x67   : > { %2038 = vmatmul.mubr.bf16.gmra.mxu1 %v2672_v23  ;;  %3027 = vmatpush3.bf16.msra.mxu0 %v3288_v26  ;;  %v2676_v23 = vcombine.low %v431_v18, %v439_v19  ;;  %v3320_v26 = vld [vmem:[%s4000_s1 + $0x308] sm:$0xff]  }
  0x68   : > { %3067 = vmatpush3.bf16.msra.mxu1 %v3289_v27  ;;  %3028 = vmatprep.subr.bf16.mxu0 %v3290_v28  ;;  %v3321_v27 = vld [vmem:[%s4000_s1 + $0x388] sm:$0xff]   ;;  %v3322_v28 = vld [vmem:[%s4000_s1 + $0x340] sm:$0xff]  }
  0x69   : > { %3068 = vmatprep.subr.bf16.mxu1 %v3291_v29  ;;  %2078 = vmatprep.mubr.bf16.mxu0 %v2627_v37  ;;  %v3323_v29 = vld [vmem:[%s4000_s1 + $0x3c0] sm:$0xff]   ;;  %v393_v37 = vld [vmem:[%s3499_s22 + $0x78] sm:$0xff] }
  0x6a   : > { %2143 = vmatprep.mubr.bf16.mxu1 %v2629_v39  ;;  %v408_v39 = vld [vmem:[%s3499_s22 + $0xf0] sm:$0xff] }
  0x6b   : > { %3029 = vmatpush3.bf16.msra.mxu0 %v3292_v30  ;;  %v3324_v30 = vld [vmem:[%s4000_s1 + $0x300] sm:$0xff]  }
  0x6c   : > { %3069 = vmatpush3.bf16.msra.mxu1 %v3293_v31  ;;  %3094 = vmatprep.subr.bf16.mxu0 %v3294_v40  ;;  %v3325_v31 = vld [vmem:[%s4000_s1 + $0x380] sm:$0xff]   ;;  %v2632_v40 = vcombine.low %v385_v34, %v393_v37 }
  0x6d   : > { %3134 = vmatprep.subr.bf16.mxu1 %v3295_v41  ;;  %v2633_v41 = vcombine.high %v385_v34, %v393_v37 }
  0x6e   : > { %2079 = vmatmul.mubr.bf16.vlgmr.msra.gmra.mxu0 %v2626_v36  ;;  %v2631_v36 = vcombine.high %v384_v32, %v392_v33 }
  0x6f   : > { %2144 = vmatmul.mubr.bf16.vlgmr.msra.gmra.mxu1 %v2628_v38  ;;  %3095 = vmatpush3.bf16.msra.mxu0 %v3296_v42  ;;  %v400_v38 = vld [vmem:[%s3499_s22 + $0xb0] sm:$0xff] }
  0x70   : > { %3135 = vmatpush3.bf16.msra.mxu1 %v3297_v43  ;;  %3096 = vmatprep.subr.bf16.mxu0 %v3298_v44  ;;  %v2647_v42 = vcombine.high %v400_v38, %v408_v39  ;;  %v401_v43 = vld [vmem:[%s3499_s22 + $0xb8] sm:$0xff]  ;;  %v2646_v50 = vcombine.low %v400_v38, %v408_v39 }
  0x71   : > { %3136 = vmatprep.subr.bf16.mxu1 %v3299_v45  ;;  %2086 = vmatprep.mubr.bf16.mxu0 %v2643_v51  ;;  %v409_v44 = vld [vmem:[%s3499_s22 + $0xf8] sm:$0xff] }
  0x72   : > { %2151 = vmatprep.mubr.bf16.mxu1 %v2645_v54  ;;  %v2649_v45 = vcombine.high %v401_v43, %v409_v44  ;;  %v2648_v51 = vcombine.low %v401_v43, %v409_v44  ;;  %v432_v54 = vld [vmem:[%s3499_s22 + $0x1b0] sm:$0xff] }
  0x73   : > { %3097 = vmatpush3.bf16.msra.mxu0 %v3300_v46  ;;  %v416_v46 = vld [vmem:[%s3499_s22 + $0x130] sm:$0xff] }
  0x74   : > { %3137 = vmatpush3.bf16.msra.mxu1 %v3301_v47  ;;  %3098 = vmatprep.subr.bf16.mxu0 %v3302_v56  ;;  %v424_v47 = vld [vmem:[%s3499_s22 + $0x170] sm:$0xff]  ;;  %v433_v56 = vld [vmem:[%s3499_s22 + $0x1b8] sm:$0xff] }
  0x75   : > { %3138 = vmatprep.subr.bf16.mxu1 %v3303_v57  ;;  %v2663_v52 = vcombine.high %v416_v46, %v424_v47  ;;  %v441_v57 = vld [vmem:[%s3499_s22 + $0x1f8] sm:$0xff] }
  0x76   : > { %2087 = vmatmul.mubr.bf16.gmra.mxu0 %v2642_v53  ;;  %v2665_v53 = vcombine.high %v417_v48, %v425_v49 }
  0x77   : > { %2152 = vmatmul.mubr.bf16.gmra.mxu1 %v2644_v55  ;;  %3099 = vmatpush3.bf16.msra.mxu0 %v3304_v58  ;;  %v440_v55 = vld [vmem:[%s3499_s22 + $0x1f0] sm:$0xff]  ;;  %v2662_v58 = vcombine.low %v416_v46, %v424_v47 }
  0x78   : > { %3139 = vmatpush3.bf16.msra.mxu1 %v3305_v59  ;;  %3100 = vmatprep.subr.bf16.mxu0 %v3306_v60  ;;  %v2664_v59 = vcombine.low %v417_v48, %v425_v49  ;;  %v2679_v60 = vcombine.high %v432_v54, %v440_v55 }
  0x79   : > { %3140 = vmatprep.subr.bf16.mxu1 %v3307_v61  ;;  %2094 = vmatprep.mubr.bf16.mxu0 %v2659_v2  ;;  %v2681_v61 = vcombine.high %v433_v56, %v441_v57 }
  0x7a   : > { %2159 = vmatprep.mubr.bf16.mxu1 %v2661_v6 }
  0x7b   : > { %3101 = vmatpush3.bf16.msra.mxu0 %v3308_v62  ;;  %v2678_v62 = vcombine.low %v432_v54, %v440_v55 }
  0x7c   : > { %3141 = vmatpush3.bf16.msra.mxu1 %v3309_v63  ;;  %3102 = vmatprep.subr.bf16.mxu0 %v3310_v8  ;;  %v2680_v63 = vcombine.low %v433_v56, %v441_v57 }
  0x7d   : > { %3142 = vmatprep.subr.bf16.mxu1 %v3311_v9 }
  0x7e   : > { %2095 = vmatmul.mubr.bf16.gmra.mxu0 %v2658_v5 }
  0x7f   : > { %2160 = vmatmul.mubr.bf16.gmra.mxu1 %v2660_v7  ;;  %3103 = vmatpush3.bf16.msra.mxu0 %v3312_v10 }
  0x80   : > { %3143 = vmatpush3.bf16.msra.mxu1 %v3313_v11  ;;  %3104 = vmatprep.subr.bf16.mxu0 %v3314_v12 }
  0x81   : > { %3144 = vmatprep.subr.bf16.mxu1 %v3315_v13  ;;  %2102 = vmatprep.mubr.bf16.mxu0 %v2675_v20 }
  0x82   : > { %2167 = vmatprep.mubr.bf16.mxu1 %v2677_v21 }
  0x83   : > { %3105 = vmatpush3.bf16.msra.mxu0 %v3316_v14 }
  0x84   : > { %3145 = vmatpush3.bf16.msra.mxu1 %v3317_v15  ;;  %3106 = vmatprep.subr.bf16.mxu0 %v3318_v24 }
  0x85   : > { %3146 = vmatprep.subr.bf16.mxu1 %v3319_v25 }
  0x86   : > { %2103 = vmatmul.mubr.bf16.gmra.mxu0 %v2674_v22 }
  0x87   : > { %2168 = vmatmul.mubr.bf16.gmra.mxu1 %v2676_v23  ;;  %3107 = vmatpush3.bf16.msra.mxu0 %v3320_v26 }
  0x88   : > { %3147 = vmatpush3.bf16.msra.mxu1 %v3321_v27  ;;  %3108 = vmatprep.subr.bf16.mxu0 %v3322_v28 }
  0x89   : > { %3148 = vmatprep.subr.bf16.mxu1 %v3323_v29  ;;  %2208 = vmatprep.mubr.bf16.mxu0 %v2631_v36 }
  0x8a   : > { %2273 = vmatprep.mubr.bf16.mxu1 %v2633_v41 }
  0x8b   : > { %3109 = vmatpush3.bf16.msra.mxu0 %v3324_v30 }
  0x8c   : > { %3149 = vmatpush3.bf16.msra.mxu1 %v3325_v31 }
  0x8e   : > { %2209 = vmatmul.mubr.bf16.vlgmr.msra.gmra.mxu0 %v2630_v35 }
  0x8f   : > { %2274 = vmatmul.mubr.bf16.vlgmr.msra.gmra.mxu1 %v2632_v40  ;;  %2216 = vmatprep.mubr.bf16.mxu0 %v2647_v42 }
  0x90   : > { %2281 = vmatprep.mubr.bf16.mxu1 %v2649_v45 }
  0x96   : > { %2217 = vmatmul.mubr.bf16.gmra.mxu0 %v2646_v50 }
  0x97   : > { %2282 = vmatmul.mubr.bf16.gmra.mxu1 %v2648_v51  ;;  %2224 = vmatprep.mubr.bf16.mxu0 %v2663_v52 }
  0x98   : > { %2289 = vmatprep.mubr.bf16.mxu1 %v2665_v53 }
  0x9e   : > { %2225 = vmatmul.mubr.bf16.gmra.mxu0 %v2662_v58 }
  0x9f   : > { %2290 = vmatmul.mubr.bf16.gmra.mxu1 %v2664_v59  ;;  %2232 = vmatprep.mubr.bf16.mxu0 %v2679_v60 }
  0xa0   : > { %2297 = vmatprep.mubr.bf16.mxu1 %v2681_v61 }
  0xa6   : > { %2233 = vmatmul.mubr.bf16.gmra.mxu0 %v2678_v62 }
  0xa7   : > { %2298 = vmatmul.mubr.bf16.gmra.mxu1 %v2680_v63 }
  0xee   : > { %v2870_v0 = vpop.f32.mrf.mxu0 }
  0xef   : > { %v2910_v1 = vpop.f32.mrf.mxu1 }
  0xf0   : > { %v2871_v2 = vpop.f32.mrf.mxu0 }
  0xf1   : > { %v2872_v3 = vadd.f32 %v2871_v2, %v2870_v0  ;;  %v2911_v4 = vpop.f32.mrf.mxu1 }
  0xf2   : > { %v2912_v5 = vadd.f32 %v2911_v4, %v2910_v1  ;;  %v2873_v6 = vpop.f32.mrf.mxu0 }
  0xf3   : > { %v2913_v7 = vpop.f32.mrf.mxu1 }
  0xf4   : > { %v1886_v8 = vadd.f32 %v2912_v5, %v2872_v3  ;;  %v2874_v9 = vpop.f32.mrf.mxu0 }
  0xf5   : > { %v2875_v10 = vadd.f32 %v2874_v9, %v2873_v6  ;;  %v2914_v11 = vpop.f32.mrf.mxu1 }
  0xf6   : > { %v2915_v12 = vadd.f32 %v2914_v11, %v2913_v7  ;;  %v2876_v13 = vpop.f32.mrf.mxu0 }
  0xf7   : > { %v2916_v15 = vpop.f32.mrf.mxu1 }
  0xf8   : > { %v1889_v14 = vadd.f32 %v2915_v12, %v2875_v10  ;;  %v2877_v16 = vpop.f32.mrf.mxu0 }
  0xf9   : > { %v2878_v17 = vadd.f32 %v2877_v16, %v2876_v13  ;;  %v2917_v18 = vpop.f32.mrf.mxu1 }
  0xfa   : > { %v2918_v19 = vadd.f32 %v2917_v18, %v2916_v15  ;;  %v2879_v20 = vpop.f32.mrf.mxu0 }
  0xfb   : > { %v2919_v21 = vpop.f32.mrf.mxu1 }
  0xfc   : > { %v1894_v22 = vadd.f32 %v2918_v19, %v2878_v17  ;;  %v2880_v23 = vpop.f32.mrf.mxu0 }
  0xfd   : > { %v2881_v24 = vadd.f32 %v2880_v23, %v2879_v20  ;;  %v2920_v25 = vpop.f32.mrf.mxu1 }
  0xfe   : > { %v2921_v26 = vadd.f32 %v2920_v25, %v2919_v21  ;;  %v2882_v28 = vpop.f32.mrf.mxu0 }
  0xff   : > { %v2922_v29 = vpop.f32.mrf.mxu1 }
 0x100   : > { %v1897_v27 = vadd.f32 %v2921_v26, %v2881_v24  ;;  %v2883_v30 = vpop.f32.mrf.mxu0 }
 0x101   : > { %v2923_v31 = vpop.f32.mrf.mxu1  ;;  %v2884_v32 = vadd.f32 %v2883_v30, %v2882_v28 }
 0x102   : > { %v2924_v33 = vadd.f32 %v2923_v31, %v2922_v29  ;;  %v2885_v34 = vpop.f32.mrf.mxu0 }
 0x103   : > { %v2925_v35 = vpop.f32.mrf.mxu1 }
 0x104   : > { %v1902_v36 = vadd.f32 %v2924_v33, %v2884_v32  ;;  %v2886_v37 = vpop.f32.mrf.mxu0 }
 0x105   : > { %v2926_v38 = vpop.f32.mrf.mxu1  ;;  %v2887_v39 = vadd.f32 %v2886_v37, %v2885_v34 }
 0x106   : > { %v2927_v40 = vadd.f32 %v2926_v38, %v2925_v35  ;;  %v2888_v42 = vpop.f32.mrf.mxu0 }
 0x107   : > { %v2928_v43 = vpop.f32.mrf.mxu1 }
 0x108   : > { %v3859_v41 = vadd.f32 %v2927_v40, %v2887_v39  ;;  %v2889_v44 = vpop.f32.mrf.mxu0 }
 0x109   : > { %v2890_v45 = vadd.f32 %v2889_v44, %v2888_v42  ;;  %v2929_v46 = vpop.f32.mrf.mxu1 }
 0x10a   : > { %v2930_v47 = vadd.f32 %v2929_v46, %v2928_v43  ;;  %v2891_v48 = vpop.f32.mrf.mxu0 }
 0x10b   : > { %v2931_v49 = vpop.f32.mrf.mxu1 }
 0x10c   : > { %v3861_v50 = vadd.f32 %v2930_v47, %v2890_v45  ;;  %v2892_v51 = vpop.f32.mrf.mxu0 }
 0x10d   : > { %v2893_v52 = vadd.f32 %v2892_v51, %v2891_v48  ;;  %v2932_v53 = vpop.f32.mrf.mxu1 }
 0x10e   : > { %v2933_v54 = vadd.f32 %v2932_v53, %v2931_v49  ;;  %v2950_v55 = vpop.f32.mrf.mxu0 }
 0x10f   : > { %v2990_v57 = vpop.f32.mrf.mxu1 }
 0x110   : > { %v3863_v56 = vadd.f32 %v2933_v54, %v2893_v52  ;;  %v2951_v58 = vpop.f32.mrf.mxu0 }
 0x111   : > { %v2952_v59 = vadd.f32 %v2951_v58, %v2950_v55  ;;  %v2991_v60 = vpop.f32.mrf.mxu1 }
 0x112   : > { %v2992_v61 = vadd.f32 %v2991_v60, %v2990_v57  ;;  %v2953_v62 = vpop.f32.mrf.mxu0 }
 0x113   : > { %v1951_v63 = vadd.f32 %v2952_v59, %v1886_v8  ;;  %v2993_v0 = vpop.f32.mrf.mxu1 }
 0x114   : > { %v2954_v1 = vpop.f32.mrf.mxu0 }
 0x115   : > { %v3865_v2 = vadd.f32 %v2992_v61, %v1951_v63  ;;  %v2955_v3 = vadd.f32 %v2954_v1, %v2953_v62  ;;  %v2994_v4 = vpop.f32.mrf.mxu1 }
 0x116   : > { %v2995_v5 = vadd.f32 %v2994_v4, %v2993_v0  ;;  %v2956_v7 = vpop.f32.mrf.mxu0 }
 0x117   : > { %v1954_v6 = vadd.f32 %v2955_v3, %v1889_v14  ;;  %v2996_v9 = vpop.f32.mrf.mxu1 }
 0x118   : > { %v2957_v11 = vpop.f32.mrf.mxu0 }
 0x119   : > { %v3867_v10 = vadd.f32 %v2995_v5, %v1954_v6  ;;  %v2997_v12 = vpop.f32.mrf.mxu1  ;;  %v2958_v13 = vadd.f32 %v2957_v11, %v2956_v7 }
 0x11a   : > { %v2998_v15 = vadd.f32 %v2997_v12, %v2996_v9  ;;  %v2959_v16 = vpop.f32.mrf.mxu0 }
 0x11b   : > { %v2999_v17 = vpop.f32.mrf.mxu1  ;;  %v1959_v18 = vadd.f32 %v2958_v13, %v1894_v22 }
 0x11c   : > { %v2960_v8 = vpop.f32.mrf.mxu0 }
 0x11d   : > { %v3000_v19 = vpop.f32.mrf.mxu1  ;;  %v3869_v20 = vadd.f32 %v2998_v15, %v1959_v18  ;;  %v2961_v21 = vadd.f32 %v2960_v8, %v2959_v16 }
 0x11e   : > { %v3001_v23 = vadd.f32 %v3000_v19, %v2999_v17  ;;  %v2962_v25 = vpop.f32.mrf.mxu0 }
 0x11f   : > { %v1962_v24 = vadd.f32 %v2961_v21, %v1897_v27  ;;  %v3002_v14 = vpop.f32.mrf.mxu1 }
 0x120   : > { %v2963_v28 = vpop.f32.mrf.mxu0 }
 0x121   : > { %v3871_v26 = vadd.f32 %v3001_v23, %v1962_v24  ;;  %v2964_v29 = vadd.f32 %v2963_v28, %v2962_v25  ;;  %v3003_v30 = vpop.f32.mrf.mxu1 }
 0x122   : > { %v3873_v31 = vpop.f32.mrf.mxu0  ;;  %v3004_v33 = vadd.f32 %v3003_v30, %v3002_v14 }
 0x123   : > { %v1967_v32 = vadd.f32 %v2964_v29, %v1902_v36  ;;  %v3875_v34 = vpop.f32.mrf.mxu1 }
 0x124   : > { %v3877_v22 = vpop.f32.mrf.mxu0 }
 0x125   : > { %v3879_v35 = vadd.f32 %v3004_v33, %v1967_v32  ;;  %v3881_v37 = vpop.f32.mrf.mxu1 }
 0x126   : > { %v3883_v27 = vpop.f32.mrf.mxu0 }
 0x127   : > { %v3885_v38 = vpop.f32.mrf.mxu1 }
 0x128   : > { %v3887_v39 = vpop.f32.mrf.mxu0 }
 0x129   : > { %v3889_v40 = vpop.f32.mrf.mxu1 }
 0x12a   : > { %v3891_v42 = vpop.f32.mrf.mxu0 }
 0x12b   : > { %v3893_v36 = vpop.f32.mrf.mxu1 }
 0x12c   : > { %v3895_v43 = vpop.f32.mrf.mxu0 }
 0x12d   : > { %v3897_v44 = vpop.f32.mrf.mxu1 }
 0x12e   : > { %v3030_v45 = vpop.f32.mrf.mxu0 }
 0x12f   : > { %v3070_v46 = vpop.f32.mrf.mxu1 }
 0x130   : > { %v3031_v47 = vpop.f32.mrf.mxu0 }
 0x131   : > { %v3071_v48 = vpop.f32.mrf.mxu1  ;;  %v3032_v15 = vadd.f32 %v3031_v47, %v3030_v45 }
 0x132   : > { %v3033_v49 = vpop.f32.mrf.mxu0  ;;  %v3072_v24 = vadd.f32 %v3071_v48, %v3070_v46  ;;  %v2967_v48 = vadd.f32 %v3877_v22, %v3873_v31  ;;  %v2970_v22 = vadd.f32 %v3887_v39, %v3883_v27 }
 0x133   : > { %v3073_v51 = vpop.f32.mrf.mxu1  ;;  %v2081_v19 = vadd.f32 %v3032_v15, %v3865_v2 }
 0x134   : > { %v3034_v52 = vpop.f32.mrf.mxu0  ;;  %v1970_v31 = vadd.f32 %v2967_v48, %v3859_v41 }
 0x135   : > { %v3074_v53 = vpop.f32.mrf.mxu1  ;;  %v3035_v21 = vadd.f32 %v3034_v52, %v3033_v49  ;;  %v2146_v28 = vadd.f32 %v3072_v24, %v2081_v19 }
 0x136   : > { %v3036_v54 = vpop.f32.mrf.mxu0  ;;  %v3075_v47 = vadd.f32 %v3074_v53, %v3073_v51  ;;  %v3932_v53 = vld [vmem:[%s4001_s2] ss:$0 sm:$0xff] }
 0x137   : > { %v3076_v55 = vpop.f32.mrf.mxu1  ;;  %v2084_v29 = vadd.f32 %v3035_v21, %v3867_v10 }
 0x138   : > { %v3037_v57 = vpop.f32.mrf.mxu0 }
 0x139   : > { %v3077_v58 = vpop.f32.mrf.mxu1  ;;  %v3038_v30 = vadd.f32 %v3037_v57, %v3036_v54 }
 0x13a   : > { %v3039_v59 = vpop.f32.mrf.mxu0  ;;  %v3078_v10 = vadd.f32 %v3077_v58, %v3076_v55 }
 0x13b   : > { %v3079_v60 = vpop.f32.mrf.mxu1  ;;  %v2089_v2 = vadd.f32 %v3038_v30, %v3869_v20  ;;  %v2973_v30 = vadd.f32 %v3895_v43, %v3891_v42 }
 0x13c   : > { %v3040_v61 = vpop.f32.mrf.mxu0 }
 0x13d   : > { %v3080_v62 = vpop.f32.mrf.mxu1  ;;  %v1978_v48 = vadd.f32 %v2973_v30, %v3863_v56 }
 0x13e   : > { %v3042_v63 = vpop.f32.mrf.mxu0  ;;  %v3081_v55 = vadd.f32 %v3080_v62, %v3079_v60 }
 0x13f   : > { %v3899_v0 = vpop.f32.mrf.mxu1 }
 0x140   : > { %v3043_v1 = vpop.f32.mrf.mxu0 }
 0x141   : > { %v3901_v3 = vpop.f32.mrf.mxu1 }
 0x142   : > { %v3045_v4 = vpop.f32.mrf.mxu0 }
 0x143   : > { %v3903_v5 = vpop.f32.mrf.mxu1 }
 0x144   : > { %v3046_v6 = vpop.f32.mrf.mxu0 }
 0x145   : > { %v3905_v7 = vpop.f32.mrf.mxu1 }
 0x146   : > { %v3907_v9 = vpop.f32.mrf.mxu0 }
 0x147   : > { %v3909_v11 = vpop.f32.mrf.mxu1 }
 0x148   : > { %4005 = vst [vmem:[#allocation3_spill] sm:$0xff] %v3909_v11  ;;  %v3911_v12 = vpop.f32.mrf.mxu0  ;;  %v3041_v11 = vadd.f32 %v3040_v61, %v3039_v59  ;;  %v2154_v59 = vadd.f32 %v3078_v10, %v2089_v2  ;;  %v3044_v61 = vadd.f32 %v3043_v1, %v3042_v63  ;;  %v3007_v63 = vadd.f32 %v3881_v37, %v3875_v34 }
 0x149   : > { %v3913_v13 = vpop.f32.mrf.mxu1  ;;  %v3084_v34 = vadd.f32 %v3901_v3, %v3899_v0 }
 0x14a   : > { %4006 = vst [vmem:[#allocation4_spill] sm:$0xff] %v3913_v13  ;;  %v3915_v16 = vpop.f32.mrf.mxu0  ;;  %v2092_v51 = vadd.f32 %v3041_v11, %v3871_v26 }
 0x14b   : > { %v3917_v17 = vpop.f32.mrf.mxu1 }
 0x14c   : > { %4007 = vst [vmem:[#allocation5_spill] sm:$0xff] %v3917_v17  ;;  %v3919_v18 = vpop.f32.mrf.mxu0  ;;  %v2157_v1 = vadd.f32 %v3081_v55, %v2092_v51 }
 0x14d   : > { %4008 = vst [vmem:[#allocation6_spill] sm:$0xff] %v3919_v18  ;;  %v3921_v8 = vpop.f32.mrf.mxu1 }
 0x14e   : > { %4009 = vst [vmem:[#allocation7_spill] sm:$0xff] %v3921_v8  ;;  %v3110_v23 = vpop.f32.mrf.mxu0  ;;  %v2149_v8 = vadd.f32 %v3075_v47, %v2084_v29  ;;  %v1975_v29 = vadd.f32 %v2970_v22, %v3861_v50  ;;  %v3050_v50 = vadd.f32 %v3911_v12, %v3907_v9  ;;  %v3013_v9 = vadd.f32 %v3897_v44, %v3893_v36 }
 0x14f   : > { %v3150_v25 = vpop.f32.mrf.mxu1 }
 0x150   : > { %v3111_v14 = vpop.f32.mrf.mxu0 }
 0x151   : > { %v3112_v32 = vadd.f32 %v3111_v14, %v3110_v23  ;;  %v3151_v33 = vpop.f32.mrf.mxu1  ;;  %v2097_v14 = vadd.f32 %v3044_v61, %v3879_v35  ;;  %v4012_v56 = vld [vmem:[#allocation4_spill] sm:$0xff] }
 0x152   : > { %v3113_v45 = vpop.f32.mrf.mxu0  ;;  %v3152_v49 = vadd.f32 %v3151_v33, %v3150_v25  ;;  %v3047_v25 = vadd.f32 %v3046_v6, %v3045_v4  ;;  %v3010_v33 = vadd.f32 %v3889_v40, %v3885_v38 }
 0x153   : > { %v2211_v17 = vadd.f32 %v3112_v32, %v2146_v28  ;;  %v3153_v13 = vpop.f32.mrf.mxu1  ;;  %v2035_v28 = vadd.f32 %v3007_v63, %v1970_v31  ;;  %v2162_v2 = vadd.f32 %v3084_v34, %v2097_v14 }
 0x154   : > { %v3114_v18 = vpop.f32.mrf.mxu0  ;;  %v2040_v3 = vadd.f32 %v3010_v33, %v1975_v29 }
 0x155   : > { %v3115_v52 = vadd.f32 %v3114_v18, %v3113_v45  ;;  %v3154_v46 = vpop.f32.mrf.mxu1  ;;  %v2276_v54 = vadd.f32 %v3152_v49, %v2211_v17  ;;  %v2100_v45 = vadd.f32 %v3047_v25, %v2035_v28  ;;  %v4014_v25 = vld [vmem:[#allocation7_spill] sm:$0xff] }
 0x156   : > { %v3116_v15 = vpop.f32.mrf.mxu0  ;;  %v3155_v19 = vadd.f32 %v3154_v46, %v3153_v13 }
 0x157   : > { %v2214_v57 = vadd.f32 %v3115_v52, %v2149_v8  ;;  %v3156_v21 = vpop.f32.mrf.mxu1  ;;  %v3938_v26 = vadd.f32 %v3932_v53, %v2276_v54  ;;  %v3087_v52 = vadd.f32 %v3905_v7, %v3903_v5  ;;  %v2105_v54 = vadd.f32 %v3050_v50, %v2040_v3 }
 0x158   : > { %v3117_v20 = vpop.f32.mrf.mxu0 }
 0x159   : > { %v2279_v18 = vadd.f32 %v3155_v19, %v2214_v57  ;;  %v3118_v23 = vadd.f32 %v3117_v20, %v3116_v15  ;;  %v3157_v24 = vpop.f32.mrf.mxu1  ;;  %v2165_v12 = vadd.f32 %v3087_v52, %v2100_v45  ;;  %v4010_v19 = vld [vmem:[#allocation6_spill] sm:$0xff] }
 0x15a   : > { %v3119_v58 = vpop.f32.mrf.mxu0  ;;  %v3158_v17 = vadd.f32 %v3157_v24, %v3156_v21  ;;  %v3053_v21 = vadd.f32 %v4010_v19, %v3915_v16 }
 0x15b   : > { %v3941_v11 = vadd.f32 %v3932_v53, %v2279_v18  ;;  %v2219_v13 = vadd.f32 %v3118_v23, %v2154_v59  ;;  %v3159_v8 = vpop.f32.mrf.mxu1  ;;  %v4011_v59 = vld [vmem:[#allocation3_spill] sm:$0xff]  ;;  %v2043_v23 = vadd.f32 %v3013_v9, %v1978_v48 }
 0x15c   : > { %v3120_v41 = vpop.f32.mrf.mxu0  ;;  %v3090_v61 = vadd.f32 %v4012_v56, %v4011_v59 }
 0x15d   : > { %v2333_v27 = vadd.f32 %v3941_v11, %v3938_v26  ;;  %v2284_v39 = vadd.f32 %v3158_v17, %v2219_v13  ;;  %v3121_v60 = vadd.f32 %v3120_v41, %v3119_v58  ;;  %v3160_v62 = vpop.f32.mrf.mxu1  ;;  %v2108_v58 = vadd.f32 %v3053_v21, %v2043_v23 }
 0x15e   : > { %v3122_v32 = vpop.f32.mrf.mxu0  ;;  %v3161_v4 = vadd.f32 %v3160_v62, %v3159_v8  ;;  %v2170_v44 = vadd.f32 %v3090_v61, %v2105_v54 }
 0x15f   : > { %v3954_v37 = vadd.f32 %v3932_v53, %v2284_v39  ;;  %v2222_v35 = vadd.f32 %v3121_v60, %v2157_v1  ;;  %v3162_v6 = vpop.f32.mrf.mxu1  ;;  %v4013_v1 = vld [vmem:[#allocation5_spill] sm:$0xff] }
 0x160   : > { %v3123_v47 = vpop.f32.mrf.mxu0  ;;  %v3093_v41 = vadd.f32 %v4014_v25, %v4013_v1 }
 0x161   : > { %v2334_v42 = vadd.f32 %v2333_v27, %v3954_v37  ;;  %v2287_v43 = vadd.f32 %v3161_v4, %v2222_v35  ;;  %v3124_v49 = vadd.f32 %v3123_v47, %v3122_v32  ;;  %v3163_v0 = vpop.f32.mrf.mxu1 }
 0x162   : > { %v3125_v46 = vpop.f32.mrf.mxu0  ;;  %v3164_v15 = vadd.f32 %v3163_v0, %v3162_v6  ;;  %v2173_v28 = vadd.f32 %v3093_v41, %v2108_v58 }
 0x163   : > { %v2309_v38 = vadd.f32 %v3932_v53, %v2287_v43  ;;  %v2227_v40 = vadd.f32 %v3124_v49, %v2162_v2  ;;  %v3165_v10 = vpop.f32.mrf.mxu1 }
 0x164   : > { %v3126_v57 = vpop.f32.mrf.mxu0 }
 0x165   : > { %v2335_v51 = vadd.f32 %v2334_v42, %v2309_v38  ;;  %v2292_v20 = vadd.f32 %v3164_v15, %v2227_v40  ;;  %v3127_v5 = vadd.f32 %v3126_v57, %v3125_v46  ;;  %v3166_v7 = vpop.f32.mrf.mxu1 }
 0x166   : > { %v3128_v18 = vpop.f32.mrf.mxu0  ;;  %v3167_v22 = vadd.f32 %v3166_v7, %v3165_v10 }
 0x167   : > { %v2310_v24 = vadd.f32 %v3932_v53, %v2292_v20  ;;  %v2230_v31 = vadd.f32 %v3127_v5, %v2165_v12  ;;  %v3168_v36 = vpop.f32.mrf.mxu1 }
 0x168   : > { %v3129_v55 = vpop.f32.mrf.mxu0 }
 0x169   : > { %v2336_v13 = vadd.f32 %v2335_v51, %v2310_v24  ;;  %v2295_v17 = vadd.f32 %v3167_v22, %v2230_v31  ;;  %v3130_v16 = vadd.f32 %v3129_v55, %v3128_v18  ;;  %v3169_v8 = vpop.f32.mrf.mxu1 }
 0x16a   : > { %v3131_v63 = vpop.f32.mrf.mxu0  ;;  %v3170_v39 = vadd.f32 %v3169_v8, %v3168_v36 }
 0x16b   : > { %v2311_v14 = vadd.f32 %v3932_v53, %v2295_v17  ;;  %v2235_v27 = vadd.f32 %v3130_v16, %v2170_v44  ;;  %v3171_v60 = vpop.f32.mrf.mxu1 }
 0x16c   : > { %v3132_v62 = vpop.f32.mrf.mxu0 }
 0x16d   : > { %v2337_v29 = vadd.f32 %v2336_v13, %v2311_v14  ;;  %v2300_v30 = vadd.f32 %v3170_v39, %v2235_v27  ;;  %v3133_v32 = vadd.f32 %v3132_v62, %v3131_v63  ;;  %v3172_v34 = vpop.f32.mrf.mxu1  ;;  %v2810_v13 = vld [vmem:[%s4002_s3] ss:$0 sm:$0xff] }
 0x16e   : > { %v3173_v6 = vadd.f32 %v3172_v34, %v3171_v60  ;;  %v2811_v27 = vld [vmem:[%s4003_s4] ss:$0 sm:$0xff] }
 0x16f   : > { %v2312_v35 = vadd.f32 %v3932_v53, %v2300_v30  ;;  %v2238_v4 = vadd.f32 %v3133_v32, %v2173_v28 }
 0x171   : > { %v2338_v33 = vadd.f32 %v2337_v29, %v2312_v35  ;;  %v2303_v45 = vadd.f32 %v3173_v6, %v2238_v4 }
 0x173   : > { %v2313_v50 = vadd.f32 %v3932_v53, %v2303_v45 }
 0x175   : > { %v2339_v47 = vadd.f32 %v2338_v33, %v2313_v50 }
 0x177   : > { %v2340_v2 = vrot.slane %v2339_v47, 4 }
 0x179   : > { %v2341_v42 = vadd.f32 %v2340_v2, %v2339_v47 }
 0x17b   : > { %v2342_v43 = vrot.slane %v2341_v42, 2 }
 0x17d   : > { %v2343_v49 = vadd.f32 %v2342_v43, %v2341_v42 }
 0x17f   : > { %v2344_v0 = vrot.slane %v2343_v49, 1 }
 0x181   : > { %v2345_v3 = vadd.f32 %v2344_v0, %v2343_v49 }
 0x183   : > { %v2346_v52 = vmul.f32 0.015625, %v2345_v3 }
 0x185   : > { %v2347_v46 = vsub.f32 %v3938_v26, %v2346_v52  ;;  %v2348_v48 = vsub.f32 %v3941_v11, %v2346_v52  ;;  %v2349_v40 = vsub.f32 %v3954_v37, %v2346_v52  ;;  %v2350_v15 = vsub.f32 %v2309_v38, %v2346_v52 }
 0x186   : > { %v2351_v10 = vsub.f32 %v2310_v24, %v2346_v52  ;;  %v2352_v9 = vsub.f32 %v2311_v14, %v2346_v52  ;;  %v2353_v12 = vsub.f32 %v2312_v35, %v2346_v52  ;;  %v2354_v54 = vsub.f32 %v2313_v50, %v2346_v52 }
 0x187   : > { %v2355_v53 = vmul.f32 %v2347_v46, %v2347_v46  ;;  %v2356_v57 = vmul.f32 %v2348_v48, %v2348_v48  ;;  %v2357_v19 = vmul.f32 %v2349_v40, %v2349_v40  ;;  %v2358_v51 = vmul.f32 %v2350_v15, %v2350_v15 }
 0x188   : > { %v2359_v5 = vmul.f32 %v2351_v10, %v2351_v10  ;;  %v2360_v59 = vmul.f32 %v2352_v9, %v2352_v9  ;;  %v2361_v26 = vmul.f32 %v2353_v12, %v2353_v12  ;;  %v2362_v11 = vmul.f32 %v2354_v54, %v2354_v54 }
 0x189   : > { %v2363_v21 = vadd.f32 %v2356_v57, %v2355_v53 }
 0x18b   : > { %v2364_v20 = vadd.f32 %v2363_v21, %v2357_v19 }
 0x18d   : > { %v2365_v7 = vadd.f32 %v2364_v20, %v2358_v51 }
 0x18f   : > { %v2366_v56 = vadd.f32 %v2365_v7, %v2359_v5 }
 0x191   : > { %v2367_v61 = vadd.f32 %v2366_v56, %v2360_v59 }
 0x193   : > { %v2368_v18 = vadd.f32 %v2367_v61, %v2361_v26 }
 0x195   : > { %v2369_v37 = vadd.f32 %v2368_v18, %v2362_v11 }
 0x197   : > { %v2370_v38 = vrot.slane %v2369_v37, 4 }
 0x199   : > { %v2371_v23 = vadd.f32 %v2370_v38, %v2369_v37 }
 0x19b   : > { %v2372_v24 = vrot.slane %v2371_v23, 2 }
 0x19d   : > { %v2373_v31 = vadd.f32 %v2372_v24, %v2371_v23 }
 0x19f   : > { %v2374_v22 = vrot.slane %v2373_v31, 1 }
 0x1a1   : > { %v2375_v36 = vadd.f32 %v2374_v22, %v2373_v31 }
 0x1a3   : > { %v2376_v44 = vmul.f32 0.015625, %v2375_v36 }
 0x1a5   : > { %v2377_v55 = vadd.f32 1e-05, %v2376_v44 }
 0x1a7   : > { %3326 = vrsqrt.f32 %v2377_v55 }
 0x1b4   : > { %v3327_v58 = vpop.eup %3326 }
 0x1b5   : > { %v2379_v17 = vmul.f32 %v3327_v58, %v2347_v46  ;;  %v2380_v16 = vmul.f32 %v3327_v58, %v2348_v48  ;;  %v2381_v8 = vmul.f32 %v3327_v58, %v2349_v40  ;;  %v2382_v63 = vmul.f32 %v3327_v58, %v2350_v15 }
 0x1b6   : > { %v2383_v1 = vmul.f32 %v3327_v58, %v2351_v10  ;;  %v2384_v25 = vmul.f32 %v3327_v58, %v2352_v9  ;;  %v2385_v41 = vmul.f32 %v3327_v58, %v2353_v12  ;;  %v2386_v14 = vmul.f32 %v3327_v58, %v2354_v54 }
 0x1b7   : > { %v2394_v39 = vmul.f32 %v2810_v13, %v2379_v17  ;;  %v2395_v60 = vmul.f32 %v2810_v13, %v2380_v16  ;;  %v2396_v62 = vmul.f32 %v2810_v13, %v2381_v8  ;;  %v2397_v28 = vmul.f32 %v2810_v13, %v2382_v63 }
 0x1b8   : > { %v2398_v29 = vmul.f32 %v2810_v13, %v2383_v1  ;;  %v2399_v30 = vmul.f32 %v2810_v13, %v2384_v25  ;;  %v2400_v32 = vmul.f32 %v2810_v13, %v2385_v41  ;;  %v2401_v34 = vmul.f32 %v2810_v13, %v2386_v14 }
 0x1b9   : > { %v2409_v35 = vadd.f32 %v2811_v27, %v2394_v39  ;;  %v2410_v4 = vadd.f32 %v2811_v27, %v2395_v60  ;;  %v2411_v6 = vadd.f32 %v2811_v27, %v2396_v62  ;;  %v2412_v33 = vadd.f32 %v2811_v27, %v2397_v28 }
 0x1ba   : > { %v2413_v45 = vadd.f32 %v2811_v27, %v2398_v29  ;;  %v2414_v50 = vadd.f32 %v2811_v27, %v2399_v30  ;;  %v2415_v47 = vadd.f32 %v2811_v27, %v2400_v32  ;;  %v2416_v2 = vadd.f32 %v2811_v27, %v2401_v34 }
 0x1bb   : > { %v2417_v42 = vmax.f32 %v2409_v35, 0.0  ;;  %v2418_v43 = vmax.f32 %v2410_v4, 0.0  ;;  %v2419_v49 = vmax.f32 %v2411_v6, 0.0  ;;  %v2420_v0 = vmax.f32 %v2412_v33, 0.0 }
 0x1bc   : > { %v2421_v3 = vmax.f32 %v2413_v45, 0.0  ;;  %v2422_v52 = vmax.f32 %v2414_v50, 0.0  ;;  %v2423_v46 = vmax.f32 %v2415_v47, 0.0  ;;  %v2424_v48 = vmax.f32 %v2416_v2, 0.0 }
 0x1bd   : > { %v2834_v40 = vpack.c.bf16 %v2418_v43, %v2417_v42  ;;  %v2839_v15 = vpack.c.bf16 %v2420_v0, %v2419_v49 }
 0x1be   : > { %v2844_v10 = vpack.c.bf16 %v2422_v52, %v2421_v3  ;;  %v2849_v9 = vpack.c.bf16 %v2424_v48, %v2423_v46 }
 0x1bf   : > { %2835 = vst [vmem:[%s347_s27] sm:$0xff] %v2834_v40   ;;  %2851 = vst [vmem:[%s347_s27 + $0x8] sm:$0xff] %v2839_v15  }
 0x1c0   : > { %2852 = vst [vmem:[%s347_s27 + $0x10] sm:$0xff] %v2844_v10   ;;  %2853 = vst [vmem:[%s347_s27 + $0x18] sm:$0xff] %v2849_v9  }
 0x1c1 PF: > { %s15_s20 = sadd.s32 1, %s3350_s20   ;;  %s4015_s18 = smov %s3346_s19 }
 0x1c2   : > { %p12_p5 = scmp.ge.s32.totalorder %s15_s20, 4   ;;  %s4016_s19 = smov %s4018_s21 }
 0x1c4   :  { %14 = sbr.rel (!%p12_p5) target bundleno = 2 (0x2), region = 90 }

// kernel: generator_forward.12
= control target key start
LH: loop header
LB: loop body
LE: loop exit
PB: predicated region body
PF: predicated region fallthrough
CT: control target
= control target key end

     0   :  { %s2572_s18 = smov 0   ;;  %s2574_s19 = smov 0   ;;  %s3023_s0 = inlined_call_operand.vmem [shape: bf16[32,2048], index: 0, kind: input, shape index: {}]   ;;  %s3024_s1 = inlined_call_operand.vmem [shape: bf16[2048,128], index: 1, kind: input, shape index: {}]   ;;  %s3025_s2 = inlined_call_operand.vmem [shape: f32[1,128], index: 2, kind: input, shape index: {}]   ;;  %s3026_s3 = inlined_call_operand.vmem [shape: f32[1,128], index: 3, kind: input, shape index: {}]   ;;  %s3027_s4 = inlined_call_operand.vmem [shape: f32[1,128], index: 4, kind: input, shape index: {}]   ;;  %s3028_s5 = inlined_call_operand.vmem [shape: bf16[32,128], index: 5, kind: output, shape index: {}]  }
   0x1   :  { %s2576_s20 = smov 0  }
   0x2 LB: > { %s34_s21 = sadd.s32 1, %s2536_s19  ;;  %p2023_p0 = scmp.ge.s32.totalorder %s2540_s20, 1  ;;  %s2540_s20 = sphi %s2576_s20, %s15_s20   ;;  %s2536_s19 = sphi %s2574_s19, %s3030_s19   ;;  %s2532_s18 = sphi %s2572_s18, %s3029_s18  }
   0x3   : > { %p36_p1 = scmp.ge.s32.totalorder %s34_s21, 2  ;;  %p257_p2 = scmp.lt.s32.totalorder %s2540_s20, 3 }
   0x5   : > { %s3032_s21 = smov (%p36_p1, %s34_s21), 0  ;;  %p258_p3 = pnand %p2023_p0, %p257_p2 }
   0x6   : > { %s2024_s8 = sshll.u32 (!%p258_p3), %s2532_s18, 1 }
   0x7   : > { %261 = sbr.rel (%p258_p3) target bundleno = 412 (0x19c), region = 40  ;;  %p312_p4 = scmp.lt.s32.totalorder (!%p258_p3), %s2024_s8, 3 }
   0xc   : > { %v2388_v0 = vld [vmem:[%s3024_s1 + $0x78] sm:$0xff]   ;;  %v2392_v4 = vld [vmem:[%s3024_s1 + $0x70] sm:$0xff]   ;;  %v2396_v8 = vld [vmem:[%s3024_s1 + $0x68] sm:$0xff]   ;;  %s3034_s8 = smov (!%p312_p4, %s2024_s8), 3 }
   0xd   : > { %v2389_v1 = vld [vmem:[%s3024_s1 + $0xf8] sm:$0xff]   ;;  %2188 = vmatprep.subr.bf16.mxu0 %v2388_v0  ;;  %v2393_v5 = vld [vmem:[%s3024_s1 + $0xf0] sm:$0xff]   ;;  %v2397_v9 = vld [vmem:[%s3024_s1 + $0xe8] sm:$0xff]   ;;  %s2180_s10 = sshll.u32 %s3034_s8, 6  ;;  %s2028_s24 = sshll.u32 %s3034_s8, 2 }
   0xe   : > { %v2390_v2 = vld [vmem:[%s3024_s1 + $0x38] sm:$0xff]   ;;  %2210 = vmatprep.subr.bf16.mxu1 %v2389_v1  ;;  %v2394_v6 = vld [vmem:[%s3024_s1 + $0x30] sm:$0xff]   ;;  %v2398_v10 = vld [vmem:[%s3024_s1 + $0x28] sm:$0xff]   ;;  %s2689_s22 = scalar_lea.vmem %s3023_s0, %s2180_s10  ;;  %s347_s27 = scalar_lea.vmem %s3028_s5, %s2028_s24 }
   0xf   : > { %v2391_v3 = vld [vmem:[%s3024_s1 + $0xb8] sm:$0xff]   ;;  %2189 = vmatpush3.bf16.msra.mxu0 %v2390_v2  ;;  %v2395_v7 = vld [vmem:[%s3024_s1 + $0xb0] sm:$0xff]   ;;  %v2399_v11 = vld [vmem:[%s3024_s1 + $0xa8] sm:$0xff]  }
  0x10   : > { %2211 = vmatpush3.bf16.msra.mxu1 %v2391_v3  ;;  %2190 = vmatprep.subr.bf16.mxu0 %v2392_v4  ;;  %v2400_v12 = vld [vmem:[%s3024_s1 + $0x60] sm:$0xff]   ;;  %v2404_v16 = vld [vmem:[%s3024_s1 + $0x58] sm:$0xff]   ;;  %v2408_v20 = vld [vmem:[%s3024_s1 + $0x50] sm:$0xff]  }
  0x11   : > { %2212 = vmatprep.subr.bf16.mxu1 %v2393_v5  ;;  %v2401_v13 = vld [vmem:[%s3024_s1 + $0xe0] sm:$0xff]   ;;  %v2405_v17 = vld [vmem:[%s3024_s1 + $0xd8] sm:$0xff]   ;;  %v2409_v21 = vld [vmem:[%s3024_s1 + $0xd0] sm:$0xff]  }
  0x12   : > { %v2402_v14 = vld [vmem:[%s3024_s1 + $0x20] sm:$0xff]   ;;  %v2406_v18 = vld [vmem:[%s3024_s1 + $0x18] sm:$0xff]   ;;  %v2410_v22 = vld [vmem:[%s3024_s1 + $0x10] sm:$0xff]  }
  0x13   : > { %2191 = vmatpush3.bf16.msra.mxu0 %v2394_v6  ;;  %v2403_v15 = vld [vmem:[%s3024_s1 + $0xa0] sm:$0xff]   ;;  %v2407_v19 = vld [vmem:[%s3024_s1 + $0x98] sm:$0xff]   ;;  %v2411_v23 = vld [vmem:[%s3024_s1 + $0x90] sm:$0xff]  }
  0x14   : > { %2213 = vmatpush3.bf16.msra.mxu1 %v2395_v7  ;;  %2192 = vmatprep.subr.bf16.mxu0 %v2396_v8  ;;  %v2412_v24 = vld [vmem:[%s3024_s1 + $0x48] sm:$0xff]   ;;  %v2416_v28 = vld [vmem:[%s3024_s1 + $0x40] sm:$0xff]   ;;  %v2420_v40 = vld [vmem:[%s3024_s1 + $0x178] sm:$0xff]  }
  0x15   : > { %2214 = vmatprep.subr.bf16.mxu1 %v2397_v9  ;;  %v2413_v25 = vld [vmem:[%s3024_s1 + $0xc8] sm:$0xff]   ;;  %v2417_v29 = vld [vmem:[%s3024_s1 + $0xc0] sm:$0xff]   ;;  %v2421_v41 = vld [vmem:[%s3024_s1 + $0x1f8] sm:$0xff]  }
  0x16   : > { %v2414_v26 = vld [vmem:[%s3024_s1 + $0x8] sm:$0xff]   ;;  %v2418_v30 = vld [vmem:[%s3024_s1] sm:$0xff]   ;;  %v2422_v42 = vld [vmem:[%s3024_s1 + $0x138] sm:$0xff]  }
  0x17   : > { %2193 = vmatpush3.bf16.msra.mxu0 %v2398_v10  ;;  %v2415_v27 = vld [vmem:[%s3024_s1 + $0x88] sm:$0xff]   ;;  %v2419_v31 = vld [vmem:[%s3024_s1 + $0x80] sm:$0xff]   ;;  %v2423_v43 = vld [vmem:[%s3024_s1 + $0x1b8] sm:$0xff]  }
  0x18   : > { %2215 = vmatpush3.bf16.msra.mxu1 %v2399_v11  ;;  %2194 = vmatprep.subr.bf16.mxu0 %v2400_v12  ;;  %v366_v32 = vld [vmem:[%s2689_s22] sm:$0xff]  ;;  %v367_v34 = vld [vmem:[%s2689_s22 + $0x8] sm:$0xff]  ;;  %v2424_v44 = vld [vmem:[%s3024_s1 + $0x170] sm:$0xff]  }
  0x19   : > { %2216 = vmatprep.subr.bf16.mxu1 %v2401_v13  ;;  %v374_v33 = vld [vmem:[%s2689_s22 + $0x40] sm:$0xff]  ;;  %v375_v37 = vld [vmem:[%s2689_s22 + $0x48] sm:$0xff]  ;;  %v2425_v45 = vld [vmem:[%s3024_s1 + $0x1f0] sm:$0xff]  }
  0x1a   : > { %v2030_v35 = vcombine.low %v366_v32, %v374_v33  ;;  %v2031_v36 = vcombine.high %v366_v32, %v374_v33  ;;  %v2032_v38 = vcombine.low %v367_v34, %v375_v37  ;;  %v2033_v39 = vcombine.high %v367_v34, %v375_v37  ;;  %v2426_v46 = vld [vmem:[%s3024_s1 + $0x130] sm:$0xff]   ;;  %v2428_v48 = vld [vmem:[%s3024_s1 + $0x168] sm:$0xff]   ;;  %v2432_v52 = vld [vmem:[%s3024_s1 + $0x160] sm:$0xff]  }
  0x1b   : > { %2195 = vmatpush3.bf16.msra.mxu0 %v2402_v14  ;;  %v2427_v47 = vld [vmem:[%s3024_s1 + $0x1b0] sm:$0xff]   ;;  %v2429_v49 = vld [vmem:[%s3024_s1 + $0x1e8] sm:$0xff]   ;;  %v2433_v53 = vld [vmem:[%s3024_s1 + $0x1e0] sm:$0xff]  }
  0x1c   : > { %2217 = vmatpush3.bf16.msra.mxu1 %v2403_v15  ;;  %2196 = vmatprep.subr.bf16.mxu0 %v2404_v16  ;;  %v2430_v50 = vld [vmem:[%s3024_s1 + $0x128] sm:$0xff]   ;;  %v2434_v54 = vld [vmem:[%s3024_s1 + $0x120] sm:$0xff]   ;;  %v2436_v56 = vld [vmem:[%s3024_s1 + $0x158] sm:$0xff]  }
  0x1d   : > { %2218 = vmatprep.subr.bf16.mxu1 %v2405_v17  ;;  %1518 = vmatprep.mubr.bf16.mxu0 %v2031_v36  ;;  %v2431_v51 = vld [vmem:[%s3024_s1 + $0x1a8] sm:$0xff]   ;;  %v2435_v55 = vld [vmem:[%s3024_s1 + $0x1a0] sm:$0xff]   ;;  %v2437_v57 = vld [vmem:[%s3024_s1 + $0x1d8] sm:$0xff]  }
  0x1e   : > { %1559 = vmatprep.mubr.bf16.mxu1 %v2033_v39  ;;  %v2438_v58 = vld [vmem:[%s3024_s1 + $0x118] sm:$0xff]   ;;  %v2440_v60 = vld [vmem:[%s3024_s1 + $0x150] sm:$0xff]   ;;  %v2444_v0 = vld [vmem:[%s3024_s1 + $0x148] sm:$0xff]  }
  0x1f   : > { %2197 = vmatpush3.bf16.msra.mxu0 %v2406_v18  ;;  %v2439_v59 = vld [vmem:[%s3024_s1 + $0x198] sm:$0xff]   ;;  %v2441_v61 = vld [vmem:[%s3024_s1 + $0x1d0] sm:$0xff]   ;;  %v2445_v1 = vld [vmem:[%s3024_s1 + $0x1c8] sm:$0xff]  }
  0x20   : > { %2219 = vmatpush3.bf16.msra.mxu1 %v2407_v19  ;;  %2198 = vmatprep.subr.bf16.mxu0 %v2408_v20  ;;  %v2442_v62 = vld [vmem:[%s3024_s1 + $0x110] sm:$0xff]   ;;  %v2446_v2 = vld [vmem:[%s3024_s1 + $0x108] sm:$0xff]   ;;  %v2448_v4 = vld [vmem:[%s3024_s1 + $0x140] sm:$0xff]  }
  0x21   : > { %2220 = vmatprep.subr.bf16.mxu1 %v2409_v21  ;;  %v2443_v63 = vld [vmem:[%s3024_s1 + $0x190] sm:$0xff]   ;;  %v2447_v3 = vld [vmem:[%s3024_s1 + $0x188] sm:$0xff]   ;;  %v2449_v5 = vld [vmem:[%s3024_s1 + $0x1c0] sm:$0xff]  }
  0x22   : > { %v2450_v6 = vld [vmem:[%s3024_s1 + $0x100] sm:$0xff]   ;;  %v368_v8 = vld [vmem:[%s2689_s22 + $0x10] sm:$0xff]  ;;  %v369_v12 = vld [vmem:[%s2689_s22 + $0x18] sm:$0xff] }
  0x23   : > { %2199 = vmatpush3.bf16.msra.mxu0 %v2410_v22  ;;  %v2451_v7 = vld [vmem:[%s3024_s1 + $0x180] sm:$0xff]   ;;  %v376_v9 = vld [vmem:[%s2689_s22 + $0x50] sm:$0xff]  ;;  %v377_v13 = vld [vmem:[%s2689_s22 + $0x58] sm:$0xff] }
  0x24   : > { %2221 = vmatpush3.bf16.msra.mxu1 %v2411_v23  ;;  %2200 = vmatprep.subr.bf16.mxu0 %v2412_v24  ;;  %v2034_v10 = vcombine.low %v368_v8, %v376_v9  ;;  %v2035_v11 = vcombine.high %v368_v8, %v376_v9  ;;  %v2036_v14 = vcombine.low %v369_v12, %v377_v13  ;;  %v2452_v16 = vld [vmem:[%s3024_s1 + $0x278] sm:$0xff]   ;;  %v2456_v20 = vld [vmem:[%s3024_s1 + $0x270] sm:$0xff]   ;;  %v2460_v24 = vld [vmem:[%s3024_s1 + $0x268] sm:$0xff]  }
  0x25   : > { %2222 = vmatprep.subr.bf16.mxu1 %v2413_v25  ;;  %v2037_v15 = vcombine.high %v369_v12, %v377_v13  ;;  %v2453_v17 = vld [vmem:[%s3024_s1 + $0x2f8] sm:$0xff]   ;;  %v2457_v21 = vld [vmem:[%s3024_s1 + $0x2f0] sm:$0xff]   ;;  %v2461_v25 = vld [vmem:[%s3024_s1 + $0x2e8] sm:$0xff]  }
  0x26   : > { %v2454_v18 = vld [vmem:[%s3024_s1 + $0x238] sm:$0xff]   ;;  %v2458_v22 = vld [vmem:[%s3024_s1 + $0x230] sm:$0xff]  }
  0x27   : > { %2201 = vmatpush3.bf16.msra.mxu0 %v2414_v26  ;;  %v2455_v19 = vld [vmem:[%s3024_s1 + $0x2b8] sm:$0xff]   ;;  %v2459_v23 = vld [vmem:[%s3024_s1 + $0x2b0] sm:$0xff]   ;;  %v2462_v26 = vld [vmem:[%s3024_s1 + $0x228] sm:$0xff]  }
  0x28   : > { %2223 = vmatpush3.bf16.msra.mxu1 %v2415_v27  ;;  %2202 = vmatprep.subr.bf16.mxu0 %v2416_v28  ;;  %v2463_v27 = vld [vmem:[%s3024_s1 + $0x2a8] sm:$0xff]   ;;  %v2464_v28 = vld [vmem:[%s3024_s1 + $0x260] sm:$0xff]   ;;  %v2468_v32 = vld [vmem:[%s3024_s1 + $0x258] sm:$0xff]  }
  0x29   : > { %2224 = vmatprep.subr.bf16.mxu1 %v2417_v29  ;;  %v2465_v29 = vld [vmem:[%s3024_s1 + $0x2e0] sm:$0xff]   ;;  %v2469_v33 = vld [vmem:[%s3024_s1 + $0x2d8] sm:$0xff]   ;;  %v2472_v36 = vld [vmem:[%s3024_s1 + $0x250] sm:$0xff]  }
  0x2a   : > { %v2470_v34 = vld [vmem:[%s3024_s1 + $0x218] sm:$0xff]   ;;  %v2473_v37 = vld [vmem:[%s3024_s1 + $0x2d0] sm:$0xff]  }
  0x2b   : > { %2203 = vmatpush3.bf16.msra.mxu0 %v2418_v30  ;;  %v2466_v30 = vld [vmem:[%s3024_s1 + $0x220] sm:$0xff]   ;;  %v2475_v39 = vld [vmem:[%s3024_s1 + $0x290] sm:$0xff]   ;;  %v2500_v8 = vld [vmem:[%s3024_s1 + $0x358] sm:$0xff]  }
  0x2c   : > { %2225 = vmatpush3.bf16.msra.mxu1 %v2419_v31  ;;  %2232 = vmatprep.subr.bf16.mxu0 %v2420_v40  ;;  %v2467_v31 = vld [vmem:[%s3024_s1 + $0x2a0] sm:$0xff]   ;;  %v2476_v40 = vld [vmem:[%s3024_s1 + $0x248] sm:$0xff]   ;;  %v2501_v9 = vld [vmem:[%s3024_s1 + $0x3d8] sm:$0xff]  }
  0x2d   : > { %2254 = vmatprep.subr.bf16.mxu1 %v2421_v41  ;;  %v2477_v41 = vld [vmem:[%s3024_s1 + $0x2c8] sm:$0xff]   ;;  %v2504_v12 = vld [vmem:[%s3024_s1 + $0x350] sm:$0xff]  }
  0x2e   : > { %1519 = vmatmul.mubr.bf16.vlgmr.msra.gmra.mxu0 %v2030_v35  ;;  %v2471_v35 = vld [vmem:[%s3024_s1 + $0x298] sm:$0xff]   ;;  %v2505_v13 = vld [vmem:[%s3024_s1 + $0x3d0] sm:$0xff]  }
  0x2f   : > { %1560 = vmatmul.mubr.bf16.vlgmr.msra.gmra.mxu1 %v2032_v38  ;;  %2233 = vmatpush3.bf16.msra.mxu0 %v2422_v42  ;;  %v2474_v38 = vld [vmem:[%s3024_s1 + $0x210] sm:$0xff]   ;;  %v2478_v42 = vld [vmem:[%s3024_s1 + $0x208] sm:$0xff]  }
  0x30   : > { %2255 = vmatpush3.bf16.msra.mxu1 %v2423_v43  ;;  %2234 = vmatprep.subr.bf16.mxu0 %v2424_v44  ;;  %v2479_v43 = vld [vmem:[%s3024_s1 + $0x288] sm:$0xff]   ;;  %v2480_v44 = vld [vmem:[%s3024_s1 + $0x240] sm:$0xff]  }
  0x31   : > { %2256 = vmatprep.subr.bf16.mxu1 %v2425_v45  ;;  %1600 = vmatprep.mubr.bf16.mxu0 %v2035_v11  ;;  %v2481_v45 = vld [vmem:[%s3024_s1 + $0x2c0] sm:$0xff]   ;;  %v2503_v11 = vld [vmem:[%s3024_s1 + $0x398] sm:$0xff]  }
  0x32   : > { %1641 = vmatprep.mubr.bf16.mxu1 %v2037_v15  ;;  %v2507_v15 = vld [vmem:[%s3024_s1 + $0x390] sm:$0xff]  }
  0x33   : > { %2235 = vmatpush3.bf16.msra.mxu0 %v2426_v46  ;;  %v2482_v46 = vld [vmem:[%s3024_s1 + $0x200] sm:$0xff]  }
  0x34   : > { %2257 = vmatpush3.bf16.msra.mxu1 %v2427_v47  ;;  %2236 = vmatprep.subr.bf16.mxu0 %v2428_v48  ;;  %v2483_v47 = vld [vmem:[%s3024_s1 + $0x280] sm:$0xff]  }
  0x35   : > { %2258 = vmatprep.subr.bf16.mxu1 %v2429_v49  ;;  %v370_v48 = vld [vmem:[%s2689_s22 + $0x20] sm:$0xff] }
  0x36   : > { %v378_v49 = vld [vmem:[%s2689_s22 + $0x60] sm:$0xff] }
  0x37   : > { %2237 = vmatpush3.bf16.msra.mxu0 %v2430_v50  ;;  %v371_v50 = vld [vmem:[%s2689_s22 + $0x28] sm:$0xff] }
  0x38   : > { %2259 = vmatpush3.bf16.msra.mxu1 %v2431_v51  ;;  %2238 = vmatprep.subr.bf16.mxu0 %v2432_v52  ;;  %v379_v51 = vld [vmem:[%s2689_s22 + $0x68] sm:$0xff]  ;;  %v2038_v52 = vcombine.low %v370_v48, %v378_v49 }
  0x39   : > { %2260 = vmatprep.subr.bf16.mxu1 %v2433_v53  ;;  %v2039_v53 = vcombine.high %v370_v48, %v378_v49 }
  0x3b   : > { %2239 = vmatpush3.bf16.msra.mxu0 %v2434_v54  ;;  %v2040_v54 = vcombine.low %v371_v50, %v379_v51 }
  0x3c   : > { %2261 = vmatpush3.bf16.msra.mxu1 %v2435_v55  ;;  %2240 = vmatprep.subr.bf16.mxu0 %v2436_v56  ;;  %v2041_v55 = vcombine.high %v371_v50, %v379_v51  ;;  %v2484_v56 = vld [vmem:[%s3024_s1 + $0x378] sm:$0xff]  }
  0x3d   : > { %2262 = vmatprep.subr.bf16.mxu1 %v2437_v57  ;;  %v2485_v57 = vld [vmem:[%s3024_s1 + $0x3f8] sm:$0xff]  }
  0x3f   : > { %2241 = vmatpush3.bf16.msra.mxu0 %v2438_v58  ;;  %v2486_v58 = vld [vmem:[%s3024_s1 + $0x338] sm:$0xff]  }
  0x40   : > { %2263 = vmatpush3.bf16.msra.mxu1 %v2439_v59  ;;  %2242 = vmatprep.subr.bf16.mxu0 %v2440_v60  ;;  %v2487_v59 = vld [vmem:[%s3024_s1 + $0x3b8] sm:$0xff]   ;;  %v2488_v60 = vld [vmem:[%s3024_s1 + $0x370] sm:$0xff]  }
  0x41   : > { %2264 = vmatprep.subr.bf16.mxu1 %v2441_v61  ;;  %v2489_v61 = vld [vmem:[%s3024_s1 + $0x3f0] sm:$0xff]  }
  0x43   : > { %2243 = vmatpush3.bf16.msra.mxu0 %v2442_v62  ;;  %v2490_v62 = vld [vmem:[%s3024_s1 + $0x330] sm:$0xff]  }
  0x44   : > { %2265 = vmatpush3.bf16.msra.mxu1 %v2443_v63  ;;  %2244 = vmatprep.subr.bf16.mxu0 %v2444_v0  ;;  %v2491_v63 = vld [vmem:[%s3024_s1 + $0x3b0] sm:$0xff]   ;;  %v2492_v0 = vld [vmem:[%s3024_s1 + $0x368] sm:$0xff]  }
  0x45   : > { %2266 = vmatprep.subr.bf16.mxu1 %v2445_v1  ;;  %v2493_v1 = vld [vmem:[%s3024_s1 + $0x3e8] sm:$0xff]  }
  0x47   : > { %2245 = vmatpush3.bf16.msra.mxu0 %v2446_v2  ;;  %v2494_v2 = vld [vmem:[%s3024_s1 + $0x328] sm:$0xff]  }
  0x48   : > { %2267 = vmatpush3.bf16.msra.mxu1 %v2447_v3  ;;  %2246 = vmatprep.subr.bf16.mxu0 %v2448_v4  ;;  %v2495_v3 = vld [vmem:[%s3024_s1 + $0x3a8] sm:$0xff]   ;;  %v2496_v4 = vld [vmem:[%s3024_s1 + $0x360] sm:$0xff]  }
  0x49   : > { %2268 = vmatprep.subr.bf16.mxu1 %v2449_v5  ;;  %v2497_v5 = vld [vmem:[%s3024_s1 + $0x3e0] sm:$0xff]  }
  0x4b   : > { %2247 = vmatpush3.bf16.msra.mxu0 %v2450_v6  ;;  %v2498_v6 = vld [vmem:[%s3024_s1 + $0x320] sm:$0xff]  }
  0x4c   : > { %2269 = vmatpush3.bf16.msra.mxu1 %v2451_v7  ;;  %2276 = vmatprep.subr.bf16.mxu0 %v2452_v16  ;;  %v2499_v7 = vld [vmem:[%s3024_s1 + $0x3a0] sm:$0xff]   ;;  %v2508_v16 = vld [vmem:[%s3024_s1 + $0x348] sm:$0xff]  }
  0x4d   : > { %2298 = vmatprep.subr.bf16.mxu1 %v2453_v17  ;;  %v2509_v17 = vld [vmem:[%s3024_s1 + $0x3c8] sm:$0xff]  }
  0x4e   : > { %1601 = vmatmul.mubr.bf16.vlgmr.msra.gmra.mxu0 %v2034_v10  ;;  %v2502_v10 = vld [vmem:[%s3024_s1 + $0x318] sm:$0xff]  }
  0x4f   : > { %1642 = vmatmul.mubr.bf16.vlgmr.msra.gmra.mxu1 %v2036_v14  ;;  %2277 = vmatpush3.bf16.msra.mxu0 %v2454_v18  ;;  %v2506_v14 = vld [vmem:[%s3024_s1 + $0x310] sm:$0xff]   ;;  %v2510_v18 = vld [vmem:[%s3024_s1 + $0x308] sm:$0xff]  }
  0x50   : > { %2299 = vmatpush3.bf16.msra.mxu1 %v2455_v19  ;;  %2278 = vmatprep.subr.bf16.mxu0 %v2456_v20  ;;  %v2511_v19 = vld [vmem:[%s3024_s1 + $0x388] sm:$0xff]   ;;  %v2512_v20 = vld [vmem:[%s3024_s1 + $0x340] sm:$0xff]  }
  0x51   : > { %2300 = vmatprep.subr.bf16.mxu1 %v2457_v21  ;;  %1682 = vmatprep.mubr.bf16.mxu0 %v2039_v53  ;;  %v2513_v21 = vld [vmem:[%s3024_s1 + $0x3c0] sm:$0xff]  }
  0x52   : > { %1723 = vmatprep.mubr.bf16.mxu1 %v2041_v55 }
  0x53   : > { %2279 = vmatpush3.bf16.msra.mxu0 %v2458_v22  ;;  %v2514_v22 = vld [vmem:[%s3024_s1 + $0x300] sm:$0xff]  }
  0x54   : > { %2301 = vmatpush3.bf16.msra.mxu1 %v2459_v23  ;;  %2280 = vmatprep.subr.bf16.mxu0 %v2460_v24  ;;  %v2515_v23 = vld [vmem:[%s3024_s1 + $0x380] sm:$0xff]   ;;  %v372_v24 = vld [vmem:[%s2689_s22 + $0x30] sm:$0xff] }
  0x55   : > { %2302 = vmatprep.subr.bf16.mxu1 %v2461_v25  ;;  %v380_v25 = vld [vmem:[%s2689_s22 + $0x70] sm:$0xff] }
  0x57   : > { %2281 = vmatpush3.bf16.msra.mxu0 %v2462_v26  ;;  %v373_v26 = vld [vmem:[%s2689_s22 + $0x38] sm:$0xff] }
  0x58   : > { %2303 = vmatpush3.bf16.msra.mxu1 %v2463_v27  ;;  %2282 = vmatprep.subr.bf16.mxu0 %v2464_v28  ;;  %v2042_v27 = vcombine.low %v372_v24, %v380_v25  ;;  %v2043_v28 = vcombine.high %v372_v24, %v380_v25 }
  0x59   : > { %2304 = vmatprep.subr.bf16.mxu1 %v2465_v29  ;;  %v381_v29 = vld [vmem:[%s2689_s22 + $0x78] sm:$0xff] }
  0x5b   : > { %2283 = vmatpush3.bf16.msra.mxu0 %v2466_v30  ;;  %v2044_v30 = vcombine.low %v373_v26, %v381_v29 }
  0x5c   : > { %2305 = vmatpush3.bf16.msra.mxu1 %v2467_v31  ;;  %2284 = vmatprep.subr.bf16.mxu0 %v2468_v32  ;;  %v2045_v31 = vcombine.high %v373_v26, %v381_v29  ;;  %v2029_v29 = vld [vmem:[%s3025_s2] ss:$0 sm:$0xff] }
  0x5d   : > { %2306 = vmatprep.subr.bf16.mxu1 %v2469_v33 }
  0x5f   : > { %2285 = vmatpush3.bf16.msra.mxu0 %v2470_v34 }
  0x60   : > { %2307 = vmatpush3.bf16.msra.mxu1 %v2471_v35  ;;  %2286 = vmatprep.subr.bf16.mxu0 %v2472_v36 }
  0x61   : > { %2308 = vmatprep.subr.bf16.mxu1 %v2473_v37 }
  0x63   : > { %2287 = vmatpush3.bf16.msra.mxu0 %v2474_v38 }
  0x64   : > { %2309 = vmatpush3.bf16.msra.mxu1 %v2475_v39  ;;  %2288 = vmatprep.subr.bf16.mxu0 %v2476_v40 }
  0x65   : > { %2310 = vmatprep.subr.bf16.mxu1 %v2477_v41 }
  0x67   : > { %2289 = vmatpush3.bf16.msra.mxu0 %v2478_v42 }
  0x68   : > { %2311 = vmatpush3.bf16.msra.mxu1 %v2479_v43  ;;  %2290 = vmatprep.subr.bf16.mxu0 %v2480_v44 }
  0x69   : > { %2312 = vmatprep.subr.bf16.mxu1 %v2481_v45 }
  0x6b   : > { %2291 = vmatpush3.bf16.msra.mxu0 %v2482_v46 }
  0x6c   : > { %2313 = vmatpush3.bf16.msra.mxu1 %v2483_v47  ;;  %2320 = vmatprep.subr.bf16.mxu0 %v2484_v56 }
  0x6d   : > { %2342 = vmatprep.subr.bf16.mxu1 %v2485_v57 }
  0x6e   : > { %1683 = vmatmul.mubr.bf16.vlgmr.msra.gmra.mxu0 %v2038_v52 }
  0x6f   : > { %1724 = vmatmul.mubr.bf16.vlgmr.msra.gmra.mxu1 %v2040_v54  ;;  %2321 = vmatpush3.bf16.msra.mxu0 %v2486_v58 }
  0x70   : > { %2343 = vmatpush3.bf16.msra.mxu1 %v2487_v59  ;;  %2322 = vmatprep.subr.bf16.mxu0 %v2488_v60 }
  0x71   : > { %2344 = vmatprep.subr.bf16.mxu1 %v2489_v61  ;;  %1764 = vmatprep.mubr.bf16.mxu0 %v2043_v28 }
  0x72   : > { %1805 = vmatprep.mubr.bf16.mxu1 %v2045_v31 }
  0x73   : > { %2323 = vmatpush3.bf16.msra.mxu0 %v2490_v62 }
  0x74   : > { %2345 = vmatpush3.bf16.msra.mxu1 %v2491_v63  ;;  %2324 = vmatprep.subr.bf16.mxu0 %v2492_v0 }
  0x75   : > { %2346 = vmatprep.subr.bf16.mxu1 %v2493_v1 }
  0x77   : > { %2325 = vmatpush3.bf16.msra.mxu0 %v2494_v2 }
  0x78   : > { %2347 = vmatpush3.bf16.msra.mxu1 %v2495_v3  ;;  %2326 = vmatprep.subr.bf16.mxu0 %v2496_v4 }
  0x79   : > { %2348 = vmatprep.subr.bf16.mxu1 %v2497_v5 }
  0x7b   : > { %2327 = vmatpush3.bf16.msra.mxu0 %v2498_v6 }
  0x7c   : > { %2349 = vmatpush3.bf16.msra.mxu1 %v2499_v7  ;;  %2328 = vmatprep.subr.bf16.mxu0 %v2500_v8 }
  0x7d   : > { %2350 = vmatprep.subr.bf16.mxu1 %v2501_v9 }
  0x7f   : > { %2329 = vmatpush3.bf16.msra.mxu0 %v2502_v10 }
  0x80   : > { %2351 = vmatpush3.bf16.msra.mxu1 %v2503_v11  ;;  %2330 = vmatprep.subr.bf16.mxu0 %v2504_v12 }
  0x81   : > { %2352 = vmatprep.subr.bf16.mxu1 %v2505_v13 }
  0x83   : > { %2331 = vmatpush3.bf16.msra.mxu0 %v2506_v14 }
  0x84   : > { %2353 = vmatpush3.bf16.msra.mxu1 %v2507_v15  ;;  %2332 = vmatprep.subr.bf16.mxu0 %v2508_v16 }
  0x85   : > { %2354 = vmatprep.subr.bf16.mxu1 %v2509_v17 }
  0x87   : > { %2333 = vmatpush3.bf16.msra.mxu0 %v2510_v18 }
  0x88   : > { %2355 = vmatpush3.bf16.msra.mxu1 %v2511_v19  ;;  %2334 = vmatprep.subr.bf16.mxu0 %v2512_v20 }
  0x89   : > { %2356 = vmatprep.subr.bf16.mxu1 %v2513_v21 }
  0x8b   : > { %2335 = vmatpush3.bf16.msra.mxu0 %v2514_v22 }
  0x8c   : > { %2357 = vmatpush3.bf16.msra.mxu1 %v2515_v23 }
  0x8e   : > { %1765 = vmatmul.mubr.bf16.vlgmr.msra.gmra.mxu0 %v2042_v27 }
  0x8f   : > { %1806 = vmatmul.mubr.bf16.vlgmr.msra.gmra.mxu1 %v2044_v30 }
  0xee   : > { %v2204_v32 = vpop.f32.mrf.mxu0 }
  0xef   : > { %v2226_v33 = vpop.f32.mrf.mxu1 }
  0xf0   : > { %v2205_v34 = vpop.f32.mrf.mxu0 }
  0xf1   : > { %v2227_v35 = vpop.f32.mrf.mxu1  ;;  %v2206_v49 = vadd.f32 %v2205_v34, %v2204_v32 }
  0xf2   : > { %v2207_v36 = vpop.f32.mrf.mxu0  ;;  %v2228_v50 = vadd.f32 %v2227_v35, %v2226_v33 }
  0xf3   : > { %v2229_v37 = vpop.f32.mrf.mxu1 }
  0xf4   : > { %v2208_v38 = vpop.f32.mrf.mxu0  ;;  %v1562_v54 = vadd.f32 %v2228_v50, %v2206_v49 }
  0xf5   : > { %v2230_v40 = vpop.f32.mrf.mxu1  ;;  %v2209_v55 = vadd.f32 %v2208_v38, %v2207_v36 }
  0xf6   : > { %v2231_v56 = vadd.f32 %v2230_v40, %v2229_v37 }
  0xf8   : > { %v1565_v62 = vadd.f32 %v2231_v56, %v2209_v55  ;;  %v2174_v55 = vld [vmem:[%s3026_s3] ss:$0 sm:$0xff] }
 0x10e   : > { %v2248_v39 = vpop.f32.mrf.mxu0 }
 0x10f   : > { %v2270_v41 = vpop.f32.mrf.mxu1 }
 0x110   : > { %v2249_v42 = vpop.f32.mrf.mxu0 }
 0x111   : > { %v2271_v43 = vpop.f32.mrf.mxu1  ;;  %v2250_v53 = vadd.f32 %v2249_v42, %v2248_v39 }
 0x112   : > { %v2251_v44 = vpop.f32.mrf.mxu0  ;;  %v2272_v60 = vadd.f32 %v2271_v43, %v2270_v41 }
 0x113   : > { %v2273_v45 = vpop.f32.mrf.mxu1  ;;  %v1603_v59 = vadd.f32 %v2250_v53, %v1562_v54 }
 0x114   : > { %v2252_v46 = vpop.f32.mrf.mxu0 }
 0x115   : > { %v2274_v48 = vpop.f32.mrf.mxu1  ;;  %v2253_v61 = vadd.f32 %v2252_v46, %v2251_v44  ;;  %v1644_v2 = vadd.f32 %v2272_v60, %v1603_v59 }
 0x116   : > { %v2275_v4 = vadd.f32 %v2274_v48, %v2273_v45 }
 0x117   : > { %v1606_v3 = vadd.f32 %v2253_v61, %v1565_v62 }
 0x119   : > { %v1647_v10 = vadd.f32 %v2275_v4, %v1606_v3 }
 0x12e   : > { %v2292_v47 = vpop.f32.mrf.mxu0 }
 0x12f   : > { %v2314_v51 = vpop.f32.mrf.mxu1 }
 0x130   : > { %v2293_v52 = vpop.f32.mrf.mxu0 }
 0x131   : > { %v2315_v57 = vpop.f32.mrf.mxu1  ;;  %v2294_v63 = vadd.f32 %v2293_v52, %v2292_v47 }
 0x132   : > { %v2295_v58 = vpop.f32.mrf.mxu0  ;;  %v2316_v6 = vadd.f32 %v2315_v57, %v2314_v51 }
 0x133   : > { %v2317_v0 = vpop.f32.mrf.mxu1  ;;  %v1685_v5 = vadd.f32 %v2294_v63, %v1644_v2 }
 0x134   : > { %v2296_v1 = vpop.f32.mrf.mxu0 }
 0x135   : > { %v2297_v7 = vadd.f32 %v2296_v1, %v2295_v58  ;;  %v2318_v8 = vpop.f32.mrf.mxu1  ;;  %v1726_v13 = vadd.f32 %v2316_v6, %v1685_v5  ;;  %v2175_v58 = vld [vmem:[%s3027_s4] ss:$0 sm:$0xff] }
 0x136   : > { %v2319_v18 = vadd.f32 %v2318_v8, %v2317_v0 }
 0x137   : > { %v1688_v14 = vadd.f32 %v2297_v7, %v1647_v10 }
 0x139   : > { %v1729_v22 = vadd.f32 %v2319_v18, %v1688_v14 }
 0x14e   : > { %v2336_v9 = vpop.f32.mrf.mxu0 }
 0x14f   : > { %v2358_v11 = vpop.f32.mrf.mxu1 }
 0x150   : > { %v2337_v12 = vpop.f32.mrf.mxu0 }
 0x151   : > { %v2338_v15 = vadd.f32 %v2337_v12, %v2336_v9  ;;  %v2359_v16 = vpop.f32.mrf.mxu1 }
 0x152   : > { %v2339_v17 = vpop.f32.mrf.mxu0  ;;  %v2360_v23 = vadd.f32 %v2359_v16, %v2358_v11 }
 0x153   : > { %v1767_v19 = vadd.f32 %v2338_v15, %v1726_v13  ;;  %v2361_v20 = vpop.f32.mrf.mxu1 }
 0x154   : > { %v2340_v21 = vpop.f32.mrf.mxu0 }
 0x155   : > { %v2341_v24 = vadd.f32 %v2340_v21, %v2339_v17  ;;  %v2362_v25 = vpop.f32.mrf.mxu1  ;;  %v1808_v26 = vadd.f32 %v2360_v23, %v1767_v19 }
 0x156   : > { %v2363_v28 = vadd.f32 %v2362_v25, %v2361_v20 }
 0x157   : > { %v1770_v27 = vadd.f32 %v2341_v24, %v1729_v22  ;;  %v1814_v31 = vadd.f32 %v2029_v29, %v1808_v26 }
 0x159   : > { %v1811_v30 = vadd.f32 %v2363_v28, %v1770_v27 }
 0x15b   : > { %v1815_v32 = vadd.f32 %v2029_v29, %v1811_v30 }
 0x15d   : > { %v1823_v33 = vadd.f32 %v1815_v32, %v1814_v31 }
 0x15f   : > { %v1824_v34 = vrot.slane %v1823_v33, 4 }
 0x161   : > { %v1825_v35 = vadd.f32 %v1824_v34, %v1823_v33 }
 0x163   : > { %v1826_v36 = vrot.slane %v1825_v35, 2 }
 0x165   : > { %v1827_v37 = vadd.f32 %v1826_v36, %v1825_v35 }
 0x167   : > { %v1828_v38 = vrot.slane %v1827_v37, 1 }
 0x169   : > { %v1829_v39 = vadd.f32 %v1828_v38, %v1827_v37 }
 0x16b   : > { %v1830_v40 = vmul.f32 0.0625, %v1829_v39 }
 0x16d   : > { %v1831_v41 = vsub.f32 %v1814_v31, %v1830_v40  ;;  %v1832_v42 = vsub.f32 %v1815_v32, %v1830_v40 }
 0x16f   : > { %v1833_v43 = vmul.f32 %v1831_v41, %v1831_v41  ;;  %v1834_v44 = vmul.f32 %v1832_v42, %v1832_v42 }
 0x171   : > { %v1835_v45 = vadd.f32 %v1834_v44, %v1833_v43 }
 0x173   : > { %v1836_v46 = vrot.slane %v1835_v45, 4 }
 0x175   : > { %v1837_v47 = vadd.f32 %v1836_v46, %v1835_v45 }
 0x177   : > { %v1838_v48 = vrot.slane %v1837_v47, 2 }
 0x179   : > { %v1839_v49 = vadd.f32 %v1838_v48, %v1837_v47 }
 0x17b   : > { %v1840_v50 = vrot.slane %v1839_v49, 1 }
 0x17d   : > { %v1841_v51 = vadd.f32 %v1840_v50, %v1839_v49 }
 0x17f   : > { %v1842_v52 = vmul.f32 0.0625, %v1841_v51 }
 0x181   : > { %v1843_v53 = vadd.f32 1e-05, %v1842_v52 }
 0x183   : > { %2516 = vrsqrt.f32 %v1843_v53 }
 0x190   : > { %v2517_v54 = vpop.eup %2516 }
 0x191   : > { %v1845_v56 = vmul.f32 %v2517_v54, %v1831_v41  ;;  %v1846_v57 = vmul.f32 %v2517_v54, %v1832_v42 }
 0x193   : > { %v1854_v59 = vmul.f32 %v2174_v55, %v1845_v56  ;;  %v1855_v60 = vmul.f32 %v2174_v55, %v1846_v57 }
 0x195   : > { %v1863_v61 = vadd.f32 %v2175_v58, %v1854_v59  ;;  %v1864_v62 = vadd.f32 %v2175_v58, %v1855_v60 }
 0x197   : > { %v1865_v63 = vmax.f32 %v1863_v61, 0.0  ;;  %v1866_v0 = vmax.f32 %v1864_v62, 0.0 }
 0x199   : > { %v2186_v1 = vpack.c.bf16 %v1866_v0, %v1865_v63 }
 0x19b   : > { %2187 = vst [vmem:[%s347_s27] sm:$0xff] %v2186_v1  }
 0x19c PF: > { %s15_s20 = sadd.s32 1, %s2540_s20   ;;  %s3029_s18 = smov %s2536_s19 }
 0x19d   : > { %p12_p5 = scmp.ge.s32.totalorder %s15_s20, 4   ;;  %s3030_s19 = smov %s3032_s21 }
 0x19f   :  { %14 = sbr.rel (!%p12_p5) target bundleno = 2 (0x2), region = 90 }

// kernel: generator_forward.13
= control target key start
LH: loop header
LB: loop body
LE: loop exit
PB: predicated region body
PF: predicated region fallthrough
CT: control target
= control target key end

     0   :  { %s1799_s18 = smov 0   ;;  %s1801_s19 = smov 0   ;;  %s2075_s0 = inlined_call_operand.vmem [shape: bf16[32,1152], index: 0, kind: input, shape index: {}]   ;;  %s2076_s1 = inlined_call_operand.vmem [shape: bf16[1152,128], index: 1, kind: input, shape index: {}]   ;;  %s2077_s2 = inlined_call_operand.vmem [shape: f32[1,128], index: 2, kind: input, shape index: {}]   ;;  %s2078_s3 = inlined_call_operand.vmem [shape: f32[1,128], index: 3, kind: input, shape index: {}]   ;;  %s2079_s4 = inlined_call_operand.vmem [shape: f32[1,128], index: 4, kind: input, shape index: {}]   ;;  %s2080_s5 = inlined_call_operand.vmem [shape: bf16[32,128], index: 5, kind: output, shape index: {}]  }
   0x1   :  { %s1803_s20 = smov 0  }
   0x2 LB: > { %s34_s21 = sadd.s32 1, %s1761_s19  ;;  %p1412_p0 = scmp.ge.s32.totalorder %s1765_s20, 1  ;;  %s1765_s20 = sphi %s1803_s20, %s15_s20   ;;  %s1761_s19 = sphi %s1801_s19, %s2082_s19   ;;  %s1757_s18 = sphi %s1799_s18, %s2081_s18  }
   0x3   : > { %p36_p1 = scmp.ge.s32.totalorder %s34_s21, 2  ;;  %p257_p2 = scmp.lt.s32.totalorder %s1765_s20, 3 }
   0x5   : > { %s2084_s21 = smov (%p36_p1, %s34_s21), 0  ;;  %p258_p3 = pnand %p1412_p0, %p257_p2 }
   0x6   : > { %s1413_s6 = sshll.u32 (!%p258_p3), %s1757_s18, 1 }
   0x7   : > { %261 = sbr.rel (%p258_p3) target bundleno = 374 (0x176), region = 40  ;;  %p312_p4 = scmp.lt.s32.totalorder (!%p258_p3), %s1413_s6, 3 }
   0xc   : > { %v1656_v0 = vld [vmem:[%s2076_s1 + $0x78] sm:$0xff]   ;;  %v1660_v4 = vld [vmem:[%s2076_s1 + $0x70] sm:$0xff]   ;;  %v1664_v8 = vld [vmem:[%s2076_s1 + $0x68] sm:$0xff]   ;;  %s2086_s6 = smov (!%p312_p4, %s1413_s6), 3  ;;  %vm1768_vm0 = vmmov 0  }
   0xd   : > { %v1657_v1 = vld [vmem:[%s2076_s1 + $0xf8] sm:$0xff]   ;;  %1512 = vmatprep.subr.bf16.mxu0 %v1656_v0  ;;  %v1661_v5 = vld [vmem:[%s2076_s1 + $0xf0] sm:$0xff]   ;;  %v1665_v9 = vld [vmem:[%s2076_s1 + $0xe8] sm:$0xff]   ;;  %s1629_s8 = smul.u32 36, %s2086_s6 }
   0xe   : > { %v1658_v2 = vld [vmem:[%s2076_s1 + $0x38] sm:$0xff]   ;;  %1534 = vmatprep.subr.bf16.mxu1 %v1657_v1  ;;  %v1662_v6 = vld [vmem:[%s2076_s1 + $0x30] sm:$0xff]   ;;  %v1666_v10 = vld [vmem:[%s2076_s1 + $0x28] sm:$0xff]  }
   0xf   : > { %v1659_v3 = vld [vmem:[%s2076_s1 + $0xb8] sm:$0xff]   ;;  %1513 = vmatpush3.bf16.msra.mxu0 %v1658_v2  ;;  %v1663_v7 = vld [vmem:[%s2076_s1 + $0xb0] sm:$0xff]   ;;  %v1667_v11 = vld [vmem:[%s2076_s1 + $0xa8] sm:$0xff]   ;;  %s1916_s22 = scalar_lea.vmem %s2075_s0, %s1629_s8  ;;  %s1416_s8 = sshll.u32 %s2086_s6, 2 }
  0x10   : > { %1535 = vmatpush3.bf16.msra.mxu1 %v1659_v3  ;;  %1514 = vmatprep.subr.bf16.mxu0 %v1660_v4  ;;  %v1668_v12 = vld [vmem:[%s2076_s1 + $0x60] sm:$0xff]   ;;  %v1672_v16 = vld [vmem:[%s2076_s1 + $0x58] sm:$0xff]   ;;  %v1676_v20 = vld [vmem:[%s2076_s1 + $0x50] sm:$0xff]   ;;  %s347_s11 = scalar_lea.vmem %s2080_s5, %s1416_s8 }
  0x11   : > { %1536 = vmatprep.subr.bf16.mxu1 %v1661_v5  ;;  %v1669_v13 = vld [vmem:[%s2076_s1 + $0xe0] sm:$0xff]   ;;  %v1673_v17 = vld [vmem:[%s2076_s1 + $0xd8] sm:$0xff]   ;;  %v1677_v21 = vld [vmem:[%s2076_s1 + $0xd0] sm:$0xff]  }
  0x12   : > { %v1670_v14 = vld [vmem:[%s2076_s1 + $0x20] sm:$0xff]   ;;  %v1674_v18 = vld [vmem:[%s2076_s1 + $0x18] sm:$0xff]   ;;  %v1678_v22 = vld [vmem:[%s2076_s1 + $0x10] sm:$0xff]  }
  0x13   : > { %1515 = vmatpush3.bf16.msra.mxu0 %v1662_v6  ;;  %v1671_v15 = vld [vmem:[%s2076_s1 + $0xa0] sm:$0xff]   ;;  %v1675_v19 = vld [vmem:[%s2076_s1 + $0x98] sm:$0xff]   ;;  %v1679_v23 = vld [vmem:[%s2076_s1 + $0x90] sm:$0xff]   ;;  %v1767_v6 = vmov 0.0  }
  0x14   : > { %1537 = vmatpush3.bf16.msra.mxu1 %v1663_v7  ;;  %1516 = vmatprep.subr.bf16.mxu0 %v1664_v8  ;;  %v1680_v24 = vld [vmem:[%s2076_s1 + $0x48] sm:$0xff]   ;;  %v1684_v28 = vld [vmem:[%s2076_s1 + $0x40] sm:$0xff]   ;;  %v1694_v36 = vld [vmem:[%s2076_s1 + $0x178] sm:$0xff]  }
  0x15   : > { %1538 = vmatprep.subr.bf16.mxu1 %v1665_v9  ;;  %v1681_v25 = vld [vmem:[%s2076_s1 + $0xc8] sm:$0xff]   ;;  %v1685_v29 = vld [vmem:[%s2076_s1 + $0xc0] sm:$0xff]   ;;  %v1695_v37 = vld [vmem:[%s2076_s1 + $0x138] sm:$0xff]  }
  0x16   : > { %v1682_v26 = vld [vmem:[%s2076_s1 + $0x8] sm:$0xff]   ;;  %v1686_v30 = vld [vmem:[%s2076_s1] sm:$0xff]   ;;  %v1696_v38 = vld [vmem:[%s2076_s1 + $0x1f8] sm:$0xff]  }
  0x17   : > { %1517 = vmatpush3.bf16.msra.mxu0 %v1666_v10  ;;  %v1683_v27 = vld [vmem:[%s2076_s1 + $0x88] sm:$0xff]   ;;  %v1687_v31 = vld [vmem:[%s2076_s1 + $0x80] sm:$0xff]   ;;  %v1697_v39 = vld [vmem:[%s2076_s1 + $0x1b8] sm:$0xff]  }
  0x18   : > { %1539 = vmatpush3.bf16.msra.mxu1 %v1667_v11  ;;  %1518 = vmatprep.subr.bf16.mxu0 %v1668_v12  ;;  %v1688_v32 = vld [vmem:[%s1916_s22] ss:$36 sps:$4 sm:$0xff]   ;;  %v1691_v34 = vld [vmem:[%s1916_s22 + $0x8] ss:$36 sps:$4 sm:$0xff]   ;;  %v1698_v40 = vld [vmem:[%s2076_s1 + $0x170] sm:$0xff]  }
  0x19   : > { %1540 = vmatprep.subr.bf16.mxu1 %v1669_v13  ;;  %v1690_v33 = vld [vmem:[%s1916_s22 + $0x4] ss:$36 sps:$4 sm:$0xff]   ;;  %v1693_v35 = vld [vmem:[%s1916_s22 + $0xc] ss:$36 sps:$4 sm:$0xff]   ;;  %v1710_v52 = vld [vmem:[%s2076_s1 + $0x158] sm:$0xff]  }
  0x1a   : > { %1030 = vmatprep.mubr.bf16.mxu0 %v1690_v33  ;;  %1071 = vmatprep.mubr.bf16.mxu1 %v1693_v35  ;;  %v1699_v41 = vld [vmem:[%s2076_s1 + $0x130] sm:$0xff]   ;;  %v1702_v44 = vld [vmem:[%s2076_s1 + $0x168] sm:$0xff]   ;;  %v1706_v48 = vld [vmem:[%s2076_s1 + $0x160] sm:$0xff]  }
  0x1b   : > { %1519 = vmatpush3.bf16.msra.mxu0 %v1670_v14  ;;  %v1700_v42 = vld [vmem:[%s2076_s1 + $0x1f0] sm:$0xff]   ;;  %v1703_v45 = vld [vmem:[%s2076_s1 + $0x128] sm:$0xff]   ;;  %v1707_v49 = vld [vmem:[%s2076_s1 + $0x120] sm:$0xff]  }
  0x1c   : > { %1541 = vmatpush3.bf16.msra.mxu1 %v1671_v15  ;;  %1520 = vmatprep.subr.bf16.mxu0 %v1672_v16  ;;  %v1701_v43 = vld [vmem:[%s2076_s1 + $0x1b0] sm:$0xff]   ;;  %v1704_v46 = vld [vmem:[%s2076_s1 + $0x1e8] sm:$0xff]   ;;  %v1708_v50 = vld [vmem:[%s2076_s1 + $0x1e0] sm:$0xff]  }
  0x1d   : > { %1542 = vmatprep.subr.bf16.mxu1 %v1673_v17  ;;  %v1705_v47 = vld [vmem:[%s2076_s1 + $0x1a8] sm:$0xff]   ;;  %v1709_v51 = vld [vmem:[%s2076_s1 + $0x1a0] sm:$0xff]   ;;  %v1711_v53 = vld [vmem:[%s2076_s1 + $0x118] sm:$0xff]  }
  0x1e   : > { %v1712_v54 = vld [vmem:[%s2076_s1 + $0x1d8] sm:$0xff]   ;;  %v1714_v56 = vld [vmem:[%s2076_s1 + $0x150] sm:$0xff]   ;;  %v1718_v60 = vld [vmem:[%s2076_s1 + $0x148] sm:$0xff]  }
  0x1f   : > { %1521 = vmatpush3.bf16.msra.mxu0 %v1674_v18  ;;  %v1713_v55 = vld [vmem:[%s2076_s1 + $0x198] sm:$0xff]   ;;  %v1715_v57 = vld [vmem:[%s2076_s1 + $0x110] sm:$0xff]   ;;  %v1719_v61 = vld [vmem:[%s2076_s1 + $0x108] sm:$0xff]  }
  0x20   : > { %1543 = vmatpush3.bf16.msra.mxu1 %v1675_v19  ;;  %1522 = vmatprep.subr.bf16.mxu0 %v1676_v20  ;;  %v1716_v58 = vld [vmem:[%s2076_s1 + $0x1d0] sm:$0xff]   ;;  %v1720_v62 = vld [vmem:[%s2076_s1 + $0x1c8] sm:$0xff]   ;;  %v1722_v0 = vld [vmem:[%s2076_s1 + $0x140] sm:$0xff]  }
  0x21   : > { %1544 = vmatprep.subr.bf16.mxu1 %v1677_v21  ;;  %v1717_v59 = vld [vmem:[%s2076_s1 + $0x190] sm:$0xff]   ;;  %v1721_v63 = vld [vmem:[%s2076_s1 + $0x188] sm:$0xff]   ;;  %v1723_v1 = vld [vmem:[%s2076_s1 + $0x100] sm:$0xff]  }
  0x22   : > { %v1724_v2 = vld [vmem:[%s2076_s1 + $0x1c0] sm:$0xff]   ;;  %v1725_v3 = vld [vmem:[%s1916_s22 + $0x10] ss:$36 sps:$4 sm:$0xff]   ;;  %v1729_v7 = vld [vmem:[%s1916_s22 + $0x18] ss:$36 sps:$4 sm:$0xff]  }
  0x23   : > { %1523 = vmatpush3.bf16.msra.mxu0 %v1678_v22  ;;  %v1727_v4 = vld [vmem:[%s1916_s22 + $0x14] ss:$36 sps:$4 sm:$0xff]   ;;  %v1728_v5 = vld [vmem:[%s2076_s1 + $0x180] sm:$0xff]   ;;  %v1734_v11 = vld [vmem:[%s2076_s1 + $0x228] sm:$0xff]  }
  0x24   : > { %1545 = vmatpush3.bf16.msra.mxu1 %v1679_v23  ;;  %1524 = vmatprep.subr.bf16.mxu0 %v1680_v24  ;;  %v1731_v8 = vld [vmem:[%s1916_s22 + $0x1c] ss:$36 sps:$4 sm:$0xff]   ;;  %v1733_v10 = vld [vmem:[%s2076_s1 + $0x230] sm:$0xff]   ;;  %v1738_v15 = vld [vmem:[%s2076_s1 + $0x208] sm:$0xff]  }
  0x25   : > { %1546 = vmatprep.subr.bf16.mxu1 %v1681_v25  ;;  %v1732_v9 = vld [vmem:[%s2076_s1 + $0x238] sm:$0xff]   ;;  %v1735_v12 = vld [vmem:[%s2076_s1 + $0x220] sm:$0xff]   ;;  %v1737_v14 = vld [vmem:[%s2076_s1 + $0x210] sm:$0xff]  }
  0x26   : > { %v1736_v13 = vld [vmem:[%s2076_s1 + $0x218] sm:$0xff]   ;;  %v1739_v16 = vld [vmem:[%s2076_s1 + $0x200] sm:$0xff]  }
  0x27   : > { %1525 = vmatpush3.bf16.msra.mxu0 %v1682_v26  ;;  %v1740_v17 = vld [vmem:[%s1916_s22 + $0x20] ss:$36 sps:$4 sm:$0xff]  }
  0x28   : > { %1547 = vmatpush3.bf16.msra.mxu1 %v1683_v27  ;;  %1526 = vmatprep.subr.bf16.mxu0 %v1684_v28 }
  0x29   : > { %1548 = vmatprep.subr.bf16.mxu1 %v1685_v29 }
  0x2b   : > { %1527 = vmatpush3.bf16.msra.mxu0 %v1686_v30 }
  0x2c   : > { %1549 = vmatpush3.bf16.msra.mxu1 %v1687_v31  ;;  %1556 = vmatprep.subr.bf16.mxu0 %v1694_v36 }
  0x2d   : > { %1578 = vmatprep.subr.bf16.mxu1 %v1696_v38 }
  0x2e   : > { %1031 = vmatmul.mubr.bf16.vlgmr.msra.gmra.mxu0 %v1688_v32 }
  0x2f   : > { %1072 = vmatmul.mubr.bf16.vlgmr.msra.gmra.mxu1 %v1691_v34  ;;  %1557 = vmatpush3.bf16.msra.mxu0 %v1695_v37 }
  0x30   : > { %1579 = vmatpush3.bf16.msra.mxu1 %v1697_v39  ;;  %1558 = vmatprep.subr.bf16.mxu0 %v1698_v40 }
  0x31   : > { %1580 = vmatprep.subr.bf16.mxu1 %v1700_v42  ;;  %1112 = vmatprep.mubr.bf16.mxu0 %v1727_v4 }
  0x32   : > { %1153 = vmatprep.mubr.bf16.mxu1 %v1731_v8 }
  0x33   : > { %1559 = vmatpush3.bf16.msra.mxu0 %v1699_v41 }
  0x34   : > { %1581 = vmatpush3.bf16.msra.mxu1 %v1701_v43  ;;  %1560 = vmatprep.subr.bf16.mxu0 %v1702_v44 }
  0x35   : > { %1582 = vmatprep.subr.bf16.mxu1 %v1704_v46 }
  0x37   : > { %1561 = vmatpush3.bf16.msra.mxu0 %v1703_v45 }
  0x38   : > { %1583 = vmatpush3.bf16.msra.mxu1 %v1705_v47  ;;  %1562 = vmatprep.subr.bf16.mxu0 %v1706_v48 }
  0x39   : > { %1584 = vmatprep.subr.bf16.mxu1 %v1708_v50 }
  0x3b   : > { %1563 = vmatpush3.bf16.msra.mxu0 %v1707_v49 }
  0x3c   : > { %1585 = vmatpush3.bf16.msra.mxu1 %v1709_v51  ;;  %1564 = vmatprep.subr.bf16.mxu0 %v1710_v52  ;;  %v1417_v51 = vld [vmem:[%s2077_s2] ss:$0 sm:$0xff] }
  0x3d   : > { %1586 = vmatprep.subr.bf16.mxu1 %v1712_v54 }
  0x3f   : > { %1565 = vmatpush3.bf16.msra.mxu0 %v1711_v53 }
  0x40   : > { %1587 = vmatpush3.bf16.msra.mxu1 %v1713_v55  ;;  %1566 = vmatprep.subr.bf16.mxu0 %v1714_v56 }
  0x41   : > { %1588 = vmatprep.subr.bf16.mxu1 %v1716_v58 }
  0x43   : > { %1567 = vmatpush3.bf16.msra.mxu0 %v1715_v57 }
  0x44   : > { %1589 = vmatpush3.bf16.msra.mxu1 %v1717_v59  ;;  %1568 = vmatprep.subr.bf16.mxu0 %v1718_v60 }
  0x45   : > { %1590 = vmatprep.subr.bf16.mxu1 %v1720_v62 }
  0x47   : > { %1569 = vmatpush3.bf16.msra.mxu0 %v1719_v61 }
  0x48   : > { %1591 = vmatpush3.bf16.msra.mxu1 %v1721_v63  ;;  %1570 = vmatprep.subr.bf16.mxu0 %v1722_v0 }
  0x49   : > { %1592 = vmatprep.subr.bf16.mxu1 %v1724_v2 }
  0x4b   : > { %1571 = vmatpush3.bf16.msra.mxu0 %v1723_v1 }
  0x4c   : > { %1609 = vmatprep.subr.bf16.mxu0 %v1767_v6  ;;  %1593 = vmatpush3.bf16.msra.mxu1 %v1728_v5 }
  0x4e   : > { %1113 = vmatmul.mubr.bf16.vlgmr.msra.gmra.mxu0 %v1725_v3 }
  0x4f   : > { %1625 = vmatprep.mubr.msk.bf16.mxu0 %vm1768_vm0, %v1767_v6  ;;  %1610 = vmatpush3.bf16.msra.mxu0 %v1732_v9 }
  0x50   : > { %1154 = vmatmul.mubr.bf16.vlgmr.msra.gmra.mxu1 %v1729_v7  ;;  %1611 = vmatprep.subr.bf16.mxu0 %v1767_v6 }
  0x53   : > { %1612 = vmatpush3.bf16.msra.mxu0 %v1733_v10 }
  0x54   : > { %1613 = vmatprep.subr.bf16.mxu0 %v1767_v6 }
  0x57   : > { %1614 = vmatpush3.bf16.msra.mxu0 %v1734_v11 }
  0x58   : > { %1615 = vmatprep.subr.bf16.mxu0 %v1767_v6 }
  0x5b   : > { %1616 = vmatpush3.bf16.msra.mxu0 %v1735_v12 }
  0x5c   : > { %1617 = vmatprep.subr.bf16.mxu0 %v1767_v6 }
  0x5f   : > { %1618 = vmatpush3.bf16.msra.mxu0 %v1736_v13 }
  0x60   : > { %1619 = vmatprep.subr.bf16.mxu0 %v1767_v6 }
  0x63   : > { %1620 = vmatpush3.bf16.msra.mxu0 %v1737_v14 }
  0x64   : > { %1621 = vmatprep.subr.bf16.mxu0 %v1767_v6 }
  0x67   : > { %1622 = vmatpush3.bf16.msra.mxu0 %v1738_v15  ;;  %v1499_v15 = vld [vmem:[%s2078_s3] ss:$0 sm:$0xff] }
  0x68   : > { %1623 = vmatprep.subr.bf16.mxu0 %v1767_v6 }
  0x6b   : > { %1624 = vmatpush3.bf16.msra.mxu0 %v1739_v16 }
  0x6e   : > { %1626 = vmatmul.mubr.bf16.vlgmr.msra.gmra.mxu0 %v1740_v17 }
  0xee   : > { %v1528_v18 = vpop.f32.mrf.mxu0 }
  0xef   : > { %v1550_v19 = vpop.f32.mrf.mxu1 }
  0xf0   : > { %v1529_v20 = vpop.f32.mrf.mxu0 }
  0xf1   : > { %v1551_v21 = vpop.f32.mrf.mxu1  ;;  %v1530_v31 = vadd.f32 %v1529_v20, %v1528_v18  ;;  %v1500_v18 = vld [vmem:[%s2079_s4] ss:$0 sm:$0xff] }
  0xf2   : > { %v1531_v22 = vpop.f32.mrf.mxu0  ;;  %v1552_v32 = vadd.f32 %v1551_v21, %v1550_v19 }
  0xf3   : > { %v1553_v23 = vpop.f32.mrf.mxu1 }
  0xf4   : > { %v1532_v24 = vpop.f32.mrf.mxu0  ;;  %v1074_v38 = vadd.f32 %v1552_v32, %v1530_v31 }
  0xf5   : > { %v1554_v26 = vpop.f32.mrf.mxu1  ;;  %v1533_v35 = vadd.f32 %v1532_v24, %v1531_v22 }
  0xf6   : > { %v1555_v36 = vadd.f32 %v1554_v26, %v1553_v23 }
  0xf8   : > { %v1077_v41 = vadd.f32 %v1555_v36, %v1533_v35 }
 0x10e   : > { %v1572_v25 = vpop.f32.mrf.mxu0 }
 0x110   : > { %v1573_v27 = vpop.f32.mrf.mxu0  ;;  %v1594_v28 = vpop.f32.mrf.mxu1 }
 0x111   : > { %v1574_v37 = vadd.f32 %v1573_v27, %v1572_v25 }
 0x112   : > { %v1575_v29 = vpop.f32.mrf.mxu0  ;;  %v1595_v30 = vpop.f32.mrf.mxu1 }
 0x113   : > { %v1115_v42 = vadd.f32 %v1574_v37, %v1074_v38  ;;  %v1596_v43 = vadd.f32 %v1595_v30, %v1594_v28 }
 0x114   : > { %v1576_v33 = vpop.f32.mrf.mxu0  ;;  %v1597_v34 = vpop.f32.mrf.mxu1 }
 0x115   : > { %v1577_v39 = vadd.f32 %v1576_v33, %v1575_v29  ;;  %v1156_v47 = vadd.f32 %v1596_v43, %v1115_v42 }
 0x116   : > { %v1598_v40 = vpop.f32.mrf.mxu1 }
 0x117   : > { %v1118_v44 = vadd.f32 %v1577_v39, %v1077_v41  ;;  %v1599_v45 = vadd.f32 %v1598_v40, %v1597_v34 }
 0x119   : > { %v1159_v50 = vadd.f32 %v1599_v45, %v1118_v44 }
 0x12e   : > { %v1196_v46 = vpop.f32.mrf.mxu0 }
 0x12f   : > { %v1197_v49 = vadd.f32 %v1196_v46, %v1156_v47 }
 0x130   : > { %v1627_v48 = vpop.f32.mrf.mxu0 }
 0x131   : > { %v1203_v55 = vadd.f32 %v1417_v51, %v1197_v49 }
 0x132   : > { %v1199_v52 = vpop.f32.mrf.mxu0 }
 0x133   : > { %v1200_v53 = vadd.f32 %v1199_v52, %v1159_v50 }
 0x134   : > { %v1628_v54 = vpop.f32.mrf.mxu0 }
 0x135   : > { %v1204_v56 = vadd.f32 %v1417_v51, %v1200_v53 }
 0x137   : > { %v1212_v57 = vadd.f32 %v1204_v56, %v1203_v55 }
 0x139   : > { %v1213_v58 = vrot.slane %v1212_v57, 4 }
 0x13b   : > { %v1214_v59 = vadd.f32 %v1213_v58, %v1212_v57 }
 0x13d   : > { %v1215_v60 = vrot.slane %v1214_v59, 2 }
 0x13f   : > { %v1216_v61 = vadd.f32 %v1215_v60, %v1214_v59 }
 0x141   : > { %v1217_v62 = vrot.slane %v1216_v61, 1 }
 0x143   : > { %v1218_v63 = vadd.f32 %v1217_v62, %v1216_v61 }
 0x145   : > { %v1219_v0 = vmul.f32 0.0625, %v1218_v63 }
 0x147   : > { %v1220_v1 = vsub.f32 %v1203_v55, %v1219_v0  ;;  %v1221_v2 = vsub.f32 %v1204_v56, %v1219_v0 }
 0x149   : > { %v1222_v3 = vmul.f32 %v1220_v1, %v1220_v1  ;;  %v1223_v4 = vmul.f32 %v1221_v2, %v1221_v2 }
 0x14b   : > { %v1224_v5 = vadd.f32 %v1223_v4, %v1222_v3 }
 0x14d   : > { %v1225_v6 = vrot.slane %v1224_v5, 4 }
 0x14f   : > { %v1226_v7 = vadd.f32 %v1225_v6, %v1224_v5 }
 0x151   : > { %v1227_v8 = vrot.slane %v1226_v7, 2 }
 0x153   : > { %v1228_v9 = vadd.f32 %v1227_v8, %v1226_v7 }
 0x155   : > { %v1229_v10 = vrot.slane %v1228_v9, 1 }
 0x157   : > { %v1230_v11 = vadd.f32 %v1229_v10, %v1228_v9 }
 0x159   : > { %v1231_v12 = vmul.f32 0.0625, %v1230_v11 }
 0x15b   : > { %v1232_v13 = vadd.f32 1e-05, %v1231_v12 }
 0x15d   : > { %1741 = vrsqrt.f32 %v1232_v13 }
 0x16a   : > { %v1742_v14 = vpop.eup %1741 }
 0x16b   : > { %v1234_v16 = vmul.f32 %v1742_v14, %v1220_v1  ;;  %v1235_v17 = vmul.f32 %v1742_v14, %v1221_v2 }
 0x16d   : > { %v1243_v19 = vmul.f32 %v1499_v15, %v1234_v16  ;;  %v1244_v20 = vmul.f32 %v1499_v15, %v1235_v17 }
 0x16f   : > { %v1252_v21 = vadd.f32 %v1500_v18, %v1243_v19  ;;  %v1253_v22 = vadd.f32 %v1500_v18, %v1244_v20 }
 0x171   : > { %v1254_v23 = vmax.f32 %v1252_v21, 0.0  ;;  %v1255_v24 = vmax.f32 %v1253_v22, 0.0 }
 0x173   : > { %v1510_v25 = vpack.c.bf16 %v1255_v24, %v1254_v23 }
 0x175   : > { %1511 = vst [vmem:[%s347_s11] sm:$0xff] %v1510_v25  }
 0x176 PF: > { %s15_s20 = sadd.s32 1, %s1765_s20   ;;  %s2081_s18 = smov %s1761_s19 }
 0x177   : > { %p12_p5 = scmp.ge.s32.totalorder %s15_s20, 4   ;;  %s2082_s19 = smov %s2084_s21 }
 0x179   :  { %14 = sbr.rel (!%p12_p5) target bundleno = 2 (0x2), region = 90 }

// kernel: generator_forward.14
= control target key start
LH: loop header
LB: loop body
LE: loop exit
PB: predicated region body
PF: predicated region fallthrough
CT: control target
= control target key end

     0   :  { %s1889_s21 = smov 0   ;;  %s1891_s22 = smov 0   ;;  %s2168_s0 = inlined_call_operand.vmem [shape: bf16[32,1152], index: 0, kind: input, shape index: {}]   ;;  %s2169_s1 = inlined_call_operand.vmem [shape: bf16[1152,128], index: 1, kind: input, shape index: {}]   ;;  %s2170_s2 = inlined_call_operand.vmem [shape: f32[1,128], index: 2, kind: input, shape index: {}]   ;;  %s2171_s3 = inlined_call_operand.vmem [shape: f32[1,128], index: 3, kind: input, shape index: {}]   ;;  %s2172_s4 = inlined_call_operand.vmem [shape: f32[1,128], index: 4, kind: input, shape index: {}]   ;;  %s2173_s5 = inlined_call_operand.vmem [shape: bf16[32,128], index: 5, kind: input, shape index: {}]   ;;  %s2174_s6 = inlined_call_operand.vmem [shape: bf16[32,128], index: 6, kind: output, shape index: {}]  }
   0x1   :  { %s1893_s23 = smov 0  }
   0x2 LB: > { %s35_s24 = sadd.s32 1, %s1846_s22  ;;  %p1491_p0 = scmp.ge.s32.totalorder %s1850_s23, 1  ;;  %s1850_s23 = sphi %s1893_s23, %s16_s23   ;;  %s1846_s22 = sphi %s1891_s22, %s2176_s22   ;;  %s1842_s21 = sphi %s1889_s21, %s2175_s21  }
   0x3   : > { %p37_p1 = scmp.ge.s32.totalorder %s35_s24, 2  ;;  %p298_p2 = scmp.lt.s32.totalorder %s1850_s23, 3 }
   0x5   : > { %s2178_s24 = smov (%p37_p1, %s35_s24), 0  ;;  %p299_p3 = pnand %p1491_p0, %p298_p2 }
   0x6   : > { %s1492_s11 = sshll.u32 (!%p299_p3), %s1842_s21, 1 }
   0x7   : > { %302 = sbr.rel (%p299_p3) target bundleno = 374 (0x176), region = 44  ;;  %p363_p4 = scmp.lt.s32.totalorder (!%p299_p3), %s1492_s11, 3 }
   0xc   : > { %v1741_v0 = vld [vmem:[%s2169_s1 + $0x78] sm:$0xff]   ;;  %v1745_v4 = vld [vmem:[%s2169_s1 + $0x70] sm:$0xff]   ;;  %v1749_v8 = vld [vmem:[%s2169_s1 + $0x68] sm:$0xff]   ;;  %s2180_s11 = smov (!%p363_p4, %s1492_s11), 3  ;;  %vm1853_vm0 = vmmov 0  }
   0xd   : > { %v1742_v1 = vld [vmem:[%s2169_s1 + $0xf8] sm:$0xff]   ;;  %1597 = vmatprep.subr.bf16.mxu0 %v1741_v0  ;;  %v1746_v5 = vld [vmem:[%s2169_s1 + $0xf0] sm:$0xff]   ;;  %v1750_v9 = vld [vmem:[%s2169_s1 + $0xe8] sm:$0xff]   ;;  %s1714_s14 = smul.u32 36, %s2180_s11  ;;  %s1495_s15 = sshll.u32 %s2180_s11, 2 }
   0xe   : > { %v1743_v2 = vld [vmem:[%s2169_s1 + $0x38] sm:$0xff]   ;;  %1619 = vmatprep.subr.bf16.mxu1 %v1742_v1  ;;  %v1747_v6 = vld [vmem:[%s2169_s1 + $0x30] sm:$0xff]   ;;  %v1751_v10 = vld [vmem:[%s2169_s1 + $0x28] sm:$0xff]   ;;  %s398_s18 = scalar_lea.vmem %s2173_s5, %s1495_s15  ;;  %s407_s27 = scalar_lea.vmem %s2174_s6, %s1495_s15 }
   0xf   : > { %v1744_v3 = vld [vmem:[%s2169_s1 + $0xb8] sm:$0xff]   ;;  %1598 = vmatpush3.bf16.msra.mxu0 %v1743_v2  ;;  %v1748_v7 = vld [vmem:[%s2169_s1 + $0xb0] sm:$0xff]   ;;  %v1752_v11 = vld [vmem:[%s2169_s1 + $0xa8] sm:$0xff]   ;;  %s2006_s28 = scalar_lea.vmem %s2168_s0, %s1714_s14 }
  0x10   : > { %1620 = vmatpush3.bf16.msra.mxu1 %v1744_v3  ;;  %1599 = vmatprep.subr.bf16.mxu0 %v1745_v4  ;;  %v1753_v12 = vld [vmem:[%s2169_s1 + $0x60] sm:$0xff]   ;;  %v1757_v16 = vld [vmem:[%s2169_s1 + $0x58] sm:$0xff]   ;;  %v1761_v20 = vld [vmem:[%s2169_s1 + $0x50] sm:$0xff]  }
  0x11   : > { %1621 = vmatprep.subr.bf16.mxu1 %v1746_v5  ;;  %v1754_v13 = vld [vmem:[%s2169_s1 + $0xe0] sm:$0xff]   ;;  %v1758_v17 = vld [vmem:[%s2169_s1 + $0xd8] sm:$0xff]   ;;  %v1762_v21 = vld [vmem:[%s2169_s1 + $0xd0] sm:$0xff]  }
  0x12   : > { %v1755_v14 = vld [vmem:[%s2169_s1 + $0x20] sm:$0xff]   ;;  %v1759_v18 = vld [vmem:[%s2169_s1 + $0x18] sm:$0xff]   ;;  %v1763_v22 = vld [vmem:[%s2169_s1 + $0x10] sm:$0xff]  }
  0x13   : > { %1600 = vmatpush3.bf16.msra.mxu0 %v1747_v6  ;;  %v1756_v15 = vld [vmem:[%s2169_s1 + $0xa0] sm:$0xff]   ;;  %v1760_v19 = vld [vmem:[%s2169_s1 + $0x98] sm:$0xff]   ;;  %v1764_v23 = vld [vmem:[%s2169_s1 + $0x90] sm:$0xff]   ;;  %v1852_v6 = vmov 0.0  }
  0x14   : > { %1622 = vmatpush3.bf16.msra.mxu1 %v1748_v7  ;;  %1601 = vmatprep.subr.bf16.mxu0 %v1749_v8  ;;  %v1765_v24 = vld [vmem:[%s2169_s1 + $0x48] sm:$0xff]   ;;  %v1769_v28 = vld [vmem:[%s2169_s1 + $0x40] sm:$0xff]   ;;  %v1779_v36 = vld [vmem:[%s2169_s1 + $0x178] sm:$0xff]  }
  0x15   : > { %1623 = vmatprep.subr.bf16.mxu1 %v1750_v9  ;;  %v1766_v25 = vld [vmem:[%s2169_s1 + $0xc8] sm:$0xff]   ;;  %v1770_v29 = vld [vmem:[%s2169_s1 + $0xc0] sm:$0xff]   ;;  %v1780_v37 = vld [vmem:[%s2169_s1 + $0x138] sm:$0xff]  }
  0x16   : > { %v1767_v26 = vld [vmem:[%s2169_s1 + $0x8] sm:$0xff]   ;;  %v1771_v30 = vld [vmem:[%s2169_s1] sm:$0xff]   ;;  %v1781_v38 = vld [vmem:[%s2169_s1 + $0x1f8] sm:$0xff]  }
  0x17   : > { %1602 = vmatpush3.bf16.msra.mxu0 %v1751_v10  ;;  %v1768_v27 = vld [vmem:[%s2169_s1 + $0x88] sm:$0xff]   ;;  %v1772_v31 = vld [vmem:[%s2169_s1 + $0x80] sm:$0xff]   ;;  %v1782_v39 = vld [vmem:[%s2169_s1 + $0x1b8] sm:$0xff]  }
  0x18   : > { %1624 = vmatpush3.bf16.msra.mxu1 %v1752_v11  ;;  %1603 = vmatprep.subr.bf16.mxu0 %v1753_v12  ;;  %v1773_v32 = vld [vmem:[%s2006_s28] ss:$36 sps:$4 sm:$0xff]   ;;  %v1776_v34 = vld [vmem:[%s2006_s28 + $0x8] ss:$36 sps:$4 sm:$0xff]   ;;  %v1783_v40 = vld [vmem:[%s2169_s1 + $0x170] sm:$0xff]  }
  0x19   : > { %1625 = vmatprep.subr.bf16.mxu1 %v1754_v13  ;;  %v1775_v33 = vld [vmem:[%s2006_s28 + $0x4] ss:$36 sps:$4 sm:$0xff]   ;;  %v1778_v35 = vld [vmem:[%s2006_s28 + $0xc] ss:$36 sps:$4 sm:$0xff]   ;;  %v1795_v52 = vld [vmem:[%s2169_s1 + $0x158] sm:$0xff]  }
  0x1a   : > { %1090 = vmatprep.mubr.bf16.mxu0 %v1775_v33  ;;  %1131 = vmatprep.mubr.bf16.mxu1 %v1778_v35  ;;  %v1784_v41 = vld [vmem:[%s2169_s1 + $0x130] sm:$0xff]   ;;  %v1787_v44 = vld [vmem:[%s2169_s1 + $0x168] sm:$0xff]   ;;  %v1791_v48 = vld [vmem:[%s2169_s1 + $0x160] sm:$0xff]  }
  0x1b   : > { %1604 = vmatpush3.bf16.msra.mxu0 %v1755_v14  ;;  %v1785_v42 = vld [vmem:[%s2169_s1 + $0x1f0] sm:$0xff]   ;;  %v1788_v45 = vld [vmem:[%s2169_s1 + $0x128] sm:$0xff]   ;;  %v1792_v49 = vld [vmem:[%s2169_s1 + $0x120] sm:$0xff]  }
  0x1c   : > { %1626 = vmatpush3.bf16.msra.mxu1 %v1756_v15  ;;  %1605 = vmatprep.subr.bf16.mxu0 %v1757_v16  ;;  %v1786_v43 = vld [vmem:[%s2169_s1 + $0x1b0] sm:$0xff]   ;;  %v1789_v46 = vld [vmem:[%s2169_s1 + $0x1e8] sm:$0xff]   ;;  %v1793_v50 = vld [vmem:[%s2169_s1 + $0x1e0] sm:$0xff]  }
  0x1d   : > { %1627 = vmatprep.subr.bf16.mxu1 %v1758_v17  ;;  %v1790_v47 = vld [vmem:[%s2169_s1 + $0x1a8] sm:$0xff]   ;;  %v1794_v51 = vld [vmem:[%s2169_s1 + $0x1a0] sm:$0xff]   ;;  %v1796_v53 = vld [vmem:[%s2169_s1 + $0x118] sm:$0xff]  }
  0x1e   : > { %v1797_v54 = vld [vmem:[%s2169_s1 + $0x1d8] sm:$0xff]   ;;  %v1799_v56 = vld [vmem:[%s2169_s1 + $0x150] sm:$0xff]   ;;  %v1803_v60 = vld [vmem:[%s2169_s1 + $0x148] sm:$0xff]  }
  0x1f   : > { %1606 = vmatpush3.bf16.msra.mxu0 %v1759_v18  ;;  %v1798_v55 = vld [vmem:[%s2169_s1 + $0x198] sm:$0xff]   ;;  %v1800_v57 = vld [vmem:[%s2169_s1 + $0x110] sm:$0xff]   ;;  %v1804_v61 = vld [vmem:[%s2169_s1 + $0x108] sm:$0xff]  }
  0x20   : > { %1628 = vmatpush3.bf16.msra.mxu1 %v1760_v19  ;;  %1607 = vmatprep.subr.bf16.mxu0 %v1761_v20  ;;  %v1801_v58 = vld [vmem:[%s2169_s1 + $0x1d0] sm:$0xff]   ;;  %v1805_v62 = vld [vmem:[%s2169_s1 + $0x1c8] sm:$0xff]   ;;  %v1807_v0 = vld [vmem:[%s2169_s1 + $0x140] sm:$0xff]  }
  0x21   : > { %1629 = vmatprep.subr.bf16.mxu1 %v1762_v21  ;;  %v1802_v59 = vld [vmem:[%s2169_s1 + $0x190] sm:$0xff]   ;;  %v1806_v63 = vld [vmem:[%s2169_s1 + $0x188] sm:$0xff]   ;;  %v1808_v1 = vld [vmem:[%s2169_s1 + $0x100] sm:$0xff]  }
  0x22   : > { %v1809_v2 = vld [vmem:[%s2169_s1 + $0x1c0] sm:$0xff]   ;;  %v1810_v3 = vld [vmem:[%s2006_s28 + $0x10] ss:$36 sps:$4 sm:$0xff]   ;;  %v1814_v7 = vld [vmem:[%s2006_s28 + $0x18] ss:$36 sps:$4 sm:$0xff]  }
  0x23   : > { %1608 = vmatpush3.bf16.msra.mxu0 %v1763_v22  ;;  %v1812_v4 = vld [vmem:[%s2006_s28 + $0x14] ss:$36 sps:$4 sm:$0xff]   ;;  %v1813_v5 = vld [vmem:[%s2169_s1 + $0x180] sm:$0xff]   ;;  %v1819_v11 = vld [vmem:[%s2169_s1 + $0x228] sm:$0xff]  }
  0x24   : > { %1630 = vmatpush3.bf16.msra.mxu1 %v1764_v23  ;;  %1609 = vmatprep.subr.bf16.mxu0 %v1765_v24  ;;  %v1816_v8 = vld [vmem:[%s2006_s28 + $0x1c] ss:$36 sps:$4 sm:$0xff]   ;;  %v1818_v10 = vld [vmem:[%s2169_s1 + $0x230] sm:$0xff]   ;;  %v1823_v15 = vld [vmem:[%s2169_s1 + $0x208] sm:$0xff]  }
  0x25   : > { %1631 = vmatprep.subr.bf16.mxu1 %v1766_v25  ;;  %v1817_v9 = vld [vmem:[%s2169_s1 + $0x238] sm:$0xff]   ;;  %v1820_v12 = vld [vmem:[%s2169_s1 + $0x220] sm:$0xff]   ;;  %v1822_v14 = vld [vmem:[%s2169_s1 + $0x210] sm:$0xff]  }
  0x26   : > { %v1821_v13 = vld [vmem:[%s2169_s1 + $0x218] sm:$0xff]   ;;  %v1824_v16 = vld [vmem:[%s2169_s1 + $0x200] sm:$0xff]  }
  0x27   : > { %1610 = vmatpush3.bf16.msra.mxu0 %v1767_v26  ;;  %v1825_v17 = vld [vmem:[%s2006_s28 + $0x20] ss:$36 sps:$4 sm:$0xff]  }
  0x28   : > { %1632 = vmatpush3.bf16.msra.mxu1 %v1768_v27  ;;  %1611 = vmatprep.subr.bf16.mxu0 %v1769_v28 }
  0x29   : > { %1633 = vmatprep.subr.bf16.mxu1 %v1770_v29 }
  0x2b   : > { %1612 = vmatpush3.bf16.msra.mxu0 %v1771_v30 }
  0x2c   : > { %1634 = vmatpush3.bf16.msra.mxu1 %v1772_v31  ;;  %1641 = vmatprep.subr.bf16.mxu0 %v1779_v36 }
  0x2d   : > { %1663 = vmatprep.subr.bf16.mxu1 %v1781_v38 }
  0x2e   : > { %1091 = vmatmul.mubr.bf16.vlgmr.msra.gmra.mxu0 %v1773_v32 }
  0x2f   : > { %1132 = vmatmul.mubr.bf16.vlgmr.msra.gmra.mxu1 %v1776_v34  ;;  %1642 = vmatpush3.bf16.msra.mxu0 %v1780_v37 }
  0x30   : > { %1664 = vmatpush3.bf16.msra.mxu1 %v1782_v39  ;;  %1643 = vmatprep.subr.bf16.mxu0 %v1783_v40 }
  0x31   : > { %1665 = vmatprep.subr.bf16.mxu1 %v1785_v42  ;;  %1172 = vmatprep.mubr.bf16.mxu0 %v1812_v4 }
  0x32   : > { %1213 = vmatprep.mubr.bf16.mxu1 %v1816_v8 }
  0x33   : > { %1644 = vmatpush3.bf16.msra.mxu0 %v1784_v41 }
  0x34   : > { %1666 = vmatpush3.bf16.msra.mxu1 %v1786_v43  ;;  %1645 = vmatprep.subr.bf16.mxu0 %v1787_v44 }
  0x35   : > { %1667 = vmatprep.subr.bf16.mxu1 %v1789_v46 }
  0x37   : > { %1646 = vmatpush3.bf16.msra.mxu0 %v1788_v45 }
  0x38   : > { %1668 = vmatpush3.bf16.msra.mxu1 %v1790_v47  ;;  %1647 = vmatprep.subr.bf16.mxu0 %v1791_v48 }
  0x39   : > { %1669 = vmatprep.subr.bf16.mxu1 %v1793_v50 }
  0x3b   : > { %1648 = vmatpush3.bf16.msra.mxu0 %v1792_v49 }
  0x3c   : > { %1670 = vmatpush3.bf16.msra.mxu1 %v1794_v51  ;;  %1649 = vmatprep.subr.bf16.mxu0 %v1795_v52  ;;  %v1498_v51 = vld [vmem:[%s2170_s2] ss:$0 sm:$0xff] }
  0x3d   : > { %1671 = vmatprep.subr.bf16.mxu1 %v1797_v54 }
  0x3f   : > { %1650 = vmatpush3.bf16.msra.mxu0 %v1796_v53 }
  0x40   : > { %1672 = vmatpush3.bf16.msra.mxu1 %v1798_v55  ;;  %1651 = vmatprep.subr.bf16.mxu0 %v1799_v56 }
  0x41   : > { %1673 = vmatprep.subr.bf16.mxu1 %v1801_v58 }
  0x43   : > { %1652 = vmatpush3.bf16.msra.mxu0 %v1800_v57 }
  0x44   : > { %1674 = vmatpush3.bf16.msra.mxu1 %v1802_v59  ;;  %1653 = vmatprep.subr.bf16.mxu0 %v1803_v60 }
  0x45   : > { %1675 = vmatprep.subr.bf16.mxu1 %v1805_v62 }
  0x47   : > { %1654 = vmatpush3.bf16.msra.mxu0 %v1804_v61 }
  0x48   : > { %1676 = vmatpush3.bf16.msra.mxu1 %v1806_v63  ;;  %1655 = vmatprep.subr.bf16.mxu0 %v1807_v0 }
  0x49   : > { %1677 = vmatprep.subr.bf16.mxu1 %v1809_v2 }
  0x4b   : > { %1656 = vmatpush3.bf16.msra.mxu0 %v1808_v1 }
  0x4c   : > { %1694 = vmatprep.subr.bf16.mxu0 %v1852_v6  ;;  %1678 = vmatpush3.bf16.msra.mxu1 %v1813_v5 }
  0x4e   : > { %1173 = vmatmul.mubr.bf16.vlgmr.msra.gmra.mxu0 %v1810_v3 }
  0x4f   : > { %1710 = vmatprep.mubr.msk.bf16.mxu0 %vm1853_vm0, %v1852_v6  ;;  %1695 = vmatpush3.bf16.msra.mxu0 %v1817_v9 }
  0x50   : > { %1214 = vmatmul.mubr.bf16.vlgmr.msra.gmra.mxu1 %v1814_v7  ;;  %1696 = vmatprep.subr.bf16.mxu0 %v1852_v6 }
  0x53   : > { %1697 = vmatpush3.bf16.msra.mxu0 %v1818_v10 }
  0x54   : > { %1698 = vmatprep.subr.bf16.mxu0 %v1852_v6 }
  0x57   : > { %1699 = vmatpush3.bf16.msra.mxu0 %v1819_v11 }
  0x58   : > { %1700 = vmatprep.subr.bf16.mxu0 %v1852_v6 }
  0x5b   : > { %1701 = vmatpush3.bf16.msra.mxu0 %v1820_v12 }
  0x5c   : > { %1702 = vmatprep.subr.bf16.mxu0 %v1852_v6 }
  0x5f   : > { %1703 = vmatpush3.bf16.msra.mxu0 %v1821_v13 }
  0x60   : > { %1704 = vmatprep.subr.bf16.mxu0 %v1852_v6 }
  0x63   : > { %1705 = vmatpush3.bf16.msra.mxu0 %v1822_v14 }
  0x64   : > { %1706 = vmatprep.subr.bf16.mxu0 %v1852_v6 }
  0x67   : > { %1707 = vmatpush3.bf16.msra.mxu0 %v1823_v15  ;;  %v1580_v15 = vld [vmem:[%s2171_s3] ss:$0 sm:$0xff] }
  0x68   : > { %1708 = vmatprep.subr.bf16.mxu0 %v1852_v6 }
  0x6b   : > { %1709 = vmatpush3.bf16.msra.mxu0 %v1824_v16  ;;  %v1589_v16 = vld [vmem:[%s398_s18] sm:$0xff]  }
  0x6e   : > { %1711 = vmatmul.mubr.bf16.vlgmr.msra.gmra.mxu0 %v1825_v17 }
  0xee   : > { %v1613_v18 = vpop.f32.mrf.mxu0 }
  0xef   : > { %v1635_v19 = vpop.f32.mrf.mxu1 }
  0xf0   : > { %v1614_v20 = vpop.f32.mrf.mxu0 }
  0xf1   : > { %v1636_v21 = vpop.f32.mrf.mxu1  ;;  %v1615_v31 = vadd.f32 %v1614_v20, %v1613_v18 }
  0xf2   : > { %v1616_v22 = vpop.f32.mrf.mxu0  ;;  %v1637_v32 = vadd.f32 %v1636_v21, %v1635_v19  ;;  %v1581_v19 = vld [vmem:[%s2172_s4] ss:$0 sm:$0xff] }
  0xf3   : > { %v1638_v23 = vpop.f32.mrf.mxu1 }
  0xf4   : > { %v1617_v24 = vpop.f32.mrf.mxu0  ;;  %v1134_v38 = vadd.f32 %v1637_v32, %v1615_v31 }
  0xf5   : > { %v1639_v26 = vpop.f32.mrf.mxu1  ;;  %v1618_v35 = vadd.f32 %v1617_v24, %v1616_v22  ;;  %v1590_v22 = vunpack.c.l.bf16 %v1589_v16 }
  0xf6   : > { %v1640_v36 = vadd.f32 %v1639_v26, %v1638_v23  ;;  %v1591_v23 = vunpack.c.h.bf16 %v1589_v16 }
  0xf8   : > { %v1137_v41 = vadd.f32 %v1640_v36, %v1618_v35 }
 0x10e   : > { %v1657_v25 = vpop.f32.mrf.mxu0 }
 0x110   : > { %v1658_v27 = vpop.f32.mrf.mxu0  ;;  %v1679_v28 = vpop.f32.mrf.mxu1 }
 0x111   : > { %v1659_v37 = vadd.f32 %v1658_v27, %v1657_v25 }
 0x112   : > { %v1660_v29 = vpop.f32.mrf.mxu0  ;;  %v1680_v30 = vpop.f32.mrf.mxu1 }
 0x113   : > { %v1175_v42 = vadd.f32 %v1659_v37, %v1134_v38  ;;  %v1681_v43 = vadd.f32 %v1680_v30, %v1679_v28 }
 0x114   : > { %v1661_v33 = vpop.f32.mrf.mxu0  ;;  %v1682_v34 = vpop.f32.mrf.mxu1 }
 0x115   : > { %v1662_v39 = vadd.f32 %v1661_v33, %v1660_v29  ;;  %v1216_v47 = vadd.f32 %v1681_v43, %v1175_v42 }
 0x116   : > { %v1683_v40 = vpop.f32.mrf.mxu1 }
 0x117   : > { %v1178_v44 = vadd.f32 %v1662_v39, %v1137_v41  ;;  %v1684_v45 = vadd.f32 %v1683_v40, %v1682_v34 }
 0x119   : > { %v1219_v50 = vadd.f32 %v1684_v45, %v1178_v44 }
 0x12e   : > { %v1256_v46 = vpop.f32.mrf.mxu0 }
 0x12f   : > { %v1257_v49 = vadd.f32 %v1256_v46, %v1216_v47 }
 0x130   : > { %v1712_v48 = vpop.f32.mrf.mxu0 }
 0x131   : > { %v1263_v55 = vadd.f32 %v1498_v51, %v1257_v49 }
 0x132   : > { %v1259_v52 = vpop.f32.mrf.mxu0 }
 0x133   : > { %v1260_v53 = vadd.f32 %v1259_v52, %v1219_v50 }
 0x134   : > { %v1713_v54 = vpop.f32.mrf.mxu0 }
 0x135   : > { %v1264_v56 = vadd.f32 %v1498_v51, %v1260_v53 }
 0x137   : > { %v1272_v57 = vadd.f32 %v1264_v56, %v1263_v55 }
 0x139   : > { %v1273_v58 = vrot.slane %v1272_v57, 4 }
 0x13b   : > { %v1274_v59 = vadd.f32 %v1273_v58, %v1272_v57 }
 0x13d   : > { %v1275_v60 = vrot.slane %v1274_v59, 2 }
 0x13f   : > { %v1276_v61 = vadd.f32 %v1275_v60, %v1274_v59 }
 0x141   : > { %v1277_v62 = vrot.slane %v1276_v61, 1 }
 0x143   : > { %v1278_v63 = vadd.f32 %v1277_v62, %v1276_v61 }
 0x145   : > { %v1279_v0 = vmul.f32 0.0625, %v1278_v63 }
 0x147   : > { %v1280_v1 = vsub.f32 %v1263_v55, %v1279_v0  ;;  %v1281_v2 = vsub.f32 %v1264_v56, %v1279_v0 }
 0x149   : > { %v1282_v3 = vmul.f32 %v1280_v1, %v1280_v1  ;;  %v1283_v4 = vmul.f32 %v1281_v2, %v1281_v2 }
 0x14b   : > { %v1284_v5 = vadd.f32 %v1283_v4, %v1282_v3 }
 0x14d   : > { %v1285_v6 = vrot.slane %v1284_v5, 4 }
 0x14f   : > { %v1286_v7 = vadd.f32 %v1285_v6, %v1284_v5 }
 0x151   : > { %v1287_v8 = vrot.slane %v1286_v7, 2 }
 0x153   : > { %v1288_v9 = vadd.f32 %v1287_v8, %v1286_v7 }
 0x155   : > { %v1289_v10 = vrot.slane %v1288_v9, 1 }
 0x157   : > { %v1290_v11 = vadd.f32 %v1289_v10, %v1288_v9 }
 0x159   : > { %v1291_v12 = vmul.f32 0.0625, %v1290_v11 }
 0x15b   : > { %v1292_v13 = vadd.f32 1e-05, %v1291_v12 }
 0x15d   : > { %1826 = vrsqrt.f32 %v1292_v13 }
 0x16a   : > { %v1827_v14 = vpop.eup %1826 }
 0x16b   : > { %v1294_v17 = vmul.f32 %v1827_v14, %v1280_v1  ;;  %v1295_v18 = vmul.f32 %v1827_v14, %v1281_v2 }
 0x16d   : > { %v1303_v20 = vmul.f32 %v1580_v15, %v1294_v17  ;;  %v1304_v21 = vmul.f32 %v1580_v15, %v1295_v18 }
 0x16f   : > { %v1312_v24 = vadd.f32 %v1581_v19, %v1303_v20  ;;  %v1313_v25 = vadd.f32 %v1581_v19, %v1304_v21 }
 0x171   : > { %v1318_v26 = vadd.f32 %v1590_v22, %v1312_v24  ;;  %v1319_v27 = vadd.f32 %v1591_v23, %v1313_v25 }
 0x173   : > { %v1595_v28 = vpack.c.bf16 %v1319_v27, %v1318_v26 }
 0x175   : > { %1596 = vst [vmem:[%s407_s27] sm:$0xff] %v1595_v28  }
 0x176 PF: > { %s16_s23 = sadd.s32 1, %s1850_s23   ;;  %s2175_s21 = smov %s1846_s22 }
 0x177   : > { %p13_p5 = scmp.ge.s32.totalorder %s16_s23, 4   ;;  %s2176_s22 = smov %s2178_s24 }
 0x179   :  { %15 = sbr.rel (!%p13_p5) target bundleno = 2 (0x2), region = 97 }

// kernel: generator_forward.18
= control target key start
LH: loop header
LB: loop body
LE: loop exit
PB: predicated region body
PF: predicated region fallthrough
CT: control target
= control target key end

     0   :  { %s6622_s18 = smov 0   ;;  %s6624_s19 = smov 0   ;;  %s8055_s0 = inlined_call_operand.vmem [shape: bf16[512,2048], index: 0, kind: input, shape index: {}]   ;;  %s8056_s1 = inlined_call_operand.vmem [shape: bf16[2048,128], index: 1, kind: input, shape index: {}]   ;;  %s8057_s2 = inlined_call_operand.vmem [shape: f32[1,128], index: 2, kind: input, shape index: {}]   ;;  %s8058_s3 = inlined_call_operand.vmem [shape: f32[1,128], index: 3, kind: input, shape index: {}]   ;;  %s8059_s4 = inlined_call_operand.vmem [shape: f32[1,128], index: 4, kind: input, shape index: {}]   ;;  %s8060_s5 = inlined_call_operand.vmem [shape: bf16[512,128], index: 5, kind: output, shape index: {}]  }
   0x1   :  { %s6626_s20 = smov 0  }
   0x2 LB: > { %s34_s21 = sadd.s32 1, %s6586_s19  ;;  %p4963_p0 = scmp.ge.s32.totalorder %s6590_s20, 1  ;;  %s6590_s20 = sphi %s6626_s20, %s15_s20   ;;  %s6586_s19 = sphi %s6624_s19, %s8100_s19   ;;  %s6582_s18 = sphi %s6622_s18, %s8099_s18  }
   0x3   : > { %p36_p1 = scmp.ge.s32.totalorder %s34_s21, 2  ;;  %p257_p2 = scmp.lt.s32.totalorder %s6590_s20, 3 }
   0x5   : > { %s8102_s21 = smov (%p36_p1, %s34_s21), 0  ;;  %p258_p3 = pnand %p4963_p0, %p257_p2 }
   0x7   : > { %261 = sbr.rel (%p258_p3) target bundleno = 914 (0x392), region = 40 }
   0xc   : > { %v6438_v0 = vld [vmem:[%s8056_s1 + $0x78] sm:$0xff]   ;;  %v6442_v4 = vld [vmem:[%s8056_s1 + $0x70] sm:$0xff]   ;;  %v6446_v8 = vld [vmem:[%s8056_s1 + $0x68] sm:$0xff]   ;;  %s4964_s8 = sshll.u32 %s6582_s18, 5 }
   0xd   : > { %v6439_v1 = vld [vmem:[%s8056_s1 + $0xf8] sm:$0xff]   ;;  %5518 = vmatprep.subr.bf16.mxu0 %v6438_v0  ;;  %v6443_v5 = vld [vmem:[%s8056_s1 + $0xf0] sm:$0xff]   ;;  %v6447_v9 = vld [vmem:[%s8056_s1 + $0xe8] sm:$0xff]   ;;  %p312_p4 = scmp.lt.s32.totalorder %s4964_s8, 63 }
   0xe   : > { %v6440_v2 = vld [vmem:[%s8056_s1 + $0x38] sm:$0xff]   ;;  %5630 = vmatprep.subr.bf16.mxu1 %v6439_v1  ;;  %v6444_v6 = vld [vmem:[%s8056_s1 + $0x30] sm:$0xff]   ;;  %v6448_v10 = vld [vmem:[%s8056_s1 + $0x28] sm:$0xff]  }
   0xf   : > { %v6441_v3 = vld [vmem:[%s8056_s1 + $0xb8] sm:$0xff]   ;;  %5519 = vmatpush3.bf16.msra.mxu0 %v6440_v2  ;;  %v6445_v7 = vld [vmem:[%s8056_s1 + $0xb0] sm:$0xff]   ;;  %v6449_v11 = vld [vmem:[%s8056_s1 + $0xa8] sm:$0xff]   ;;  %s8104_s8 = smov (!%p312_p4, %s4964_s8), 63 }
  0x10   : > { %5631 = vmatpush3.bf16.msra.mxu1 %v6441_v3  ;;  %5520 = vmatprep.subr.bf16.mxu0 %v6442_v4  ;;  %v6450_v12 = vld [vmem:[%s8056_s1 + $0x60] sm:$0xff]   ;;  %v6454_v16 = vld [vmem:[%s8056_s1 + $0x58] sm:$0xff]   ;;  %v6458_v20 = vld [vmem:[%s8056_s1 + $0x50] sm:$0xff]   ;;  %s5390_s10 = sshll.u32 %s8104_s8, 6  ;;  %s4968_s24 = sshll.u32 %s8104_s8, 2 }
  0x11   : > { %5632 = vmatprep.subr.bf16.mxu1 %v6443_v5  ;;  %v6451_v13 = vld [vmem:[%s8056_s1 + $0xe0] sm:$0xff]   ;;  %v6455_v17 = vld [vmem:[%s8056_s1 + $0xd8] sm:$0xff]   ;;  %v6459_v21 = vld [vmem:[%s8056_s1 + $0xd0] sm:$0xff]   ;;  %s6739_s22 = scalar_lea.vmem %s8055_s0, %s5390_s10  ;;  %s8028_s27 = scalar_lea.vmem %s8060_s5, %s4968_s24 }
  0x12   : > { %v6452_v14 = vld [vmem:[%s8056_s1 + $0x20] sm:$0xff]   ;;  %v6456_v18 = vld [vmem:[%s8056_s1 + $0x18] sm:$0xff]   ;;  %v6460_v22 = vld [vmem:[%s8056_s1 + $0x10] sm:$0xff]  }
  0x13   : > { %5521 = vmatpush3.bf16.msra.mxu0 %v6444_v6  ;;  %v6453_v15 = vld [vmem:[%s8056_s1 + $0xa0] sm:$0xff]   ;;  %v6457_v19 = vld [vmem:[%s8056_s1 + $0x98] sm:$0xff]   ;;  %v6461_v23 = vld [vmem:[%s8056_s1 + $0x90] sm:$0xff]  }
  0x14   : > { %5633 = vmatpush3.bf16.msra.mxu1 %v6445_v7  ;;  %5522 = vmatprep.subr.bf16.mxu0 %v6446_v8  ;;  %v6462_v24 = vld [vmem:[%s8056_s1 + $0x48] sm:$0xff]   ;;  %v6466_v28 = vld [vmem:[%s8056_s1 + $0x40] sm:$0xff]   ;;  %v6470_v40 = vld [vmem:[%s8056_s1 + $0x178] sm:$0xff]  }
  0x15   : > { %5634 = vmatprep.subr.bf16.mxu1 %v6447_v9  ;;  %v6463_v25 = vld [vmem:[%s8056_s1 + $0xc8] sm:$0xff]   ;;  %v6467_v29 = vld [vmem:[%s8056_s1 + $0xc0] sm:$0xff]   ;;  %v6471_v41 = vld [vmem:[%s8056_s1 + $0x138] sm:$0xff]  }
  0x16   : > { %v6464_v26 = vld [vmem:[%s8056_s1 + $0x8] sm:$0xff]   ;;  %v6468_v30 = vld [vmem:[%s8056_s1] sm:$0xff]   ;;  %v6472_v42 = vld [vmem:[%s8056_s1 + $0x1f8] sm:$0xff]  }
  0x17   : > { %5523 = vmatpush3.bf16.msra.mxu0 %v6448_v10  ;;  %v6465_v27 = vld [vmem:[%s8056_s1 + $0x88] sm:$0xff]   ;;  %v6469_v31 = vld [vmem:[%s8056_s1 + $0x80] sm:$0xff]   ;;  %v6473_v43 = vld [vmem:[%s8056_s1 + $0x1b8] sm:$0xff]  }
  0x18   : > { %5635 = vmatpush3.bf16.msra.mxu1 %v6449_v11  ;;  %5524 = vmatprep.subr.bf16.mxu0 %v6450_v12  ;;  %v426_v32 = vld [vmem:[%s6739_s22] sm:$0xff]  ;;  %v427_v34 = vld [vmem:[%s6739_s22 + $0x8] sm:$0xff]  ;;  %v6474_v55 = vld [vmem:[%s8056_s1 + $0x170] sm:$0xff]  }
  0x19   : > { %5636 = vmatprep.subr.bf16.mxu1 %v6451_v13  ;;  %v434_v33 = vld [vmem:[%s6739_s22 + $0x40] sm:$0xff]  ;;  %v435_v37 = vld [vmem:[%s6739_s22 + $0x48] sm:$0xff]  ;;  %v6475_v58 = vld [vmem:[%s8056_s1 + $0x130] sm:$0xff]  }
  0x1a   : > { %v4970_v35 = vcombine.low %v426_v32, %v434_v33  ;;  %v4971_v36 = vcombine.high %v426_v32, %v434_v33  ;;  %v4972_v38 = vcombine.low %v427_v34, %v435_v37  ;;  %v4973_v39 = vcombine.high %v427_v34, %v435_v37  ;;  %v442_v44 = vld [vmem:[%s6739_s22 + $0x80] sm:$0xff]  ;;  %v443_v47 = vld [vmem:[%s6739_s22 + $0x88] sm:$0xff]  ;;  %v6476_v60 = vld [vmem:[%s8056_s1 + $0x1f0] sm:$0xff]  }
  0x1b   : > { %5525 = vmatpush3.bf16.msra.mxu0 %v6452_v14  ;;  %v450_v45 = vld [vmem:[%s6739_s22 + $0xc0] sm:$0xff]  ;;  %v451_v48 = vld [vmem:[%s6739_s22 + $0xc8] sm:$0xff]  ;;  %v6477_v61 = vld [vmem:[%s8056_s1 + $0x1b0] sm:$0xff]  }
  0x1c   : > { %5637 = vmatpush3.bf16.msra.mxu1 %v6453_v15  ;;  %5526 = vmatprep.subr.bf16.mxu0 %v6454_v16  ;;  %v4987_v46 = vcombine.high %v442_v44, %v450_v45  ;;  %v458_v49 = vld [vmem:[%s6739_s22 + $0x100] sm:$0xff]  ;;  %v4989_v50 = vcombine.high %v443_v47, %v451_v48  ;;  %v459_v52 = vld [vmem:[%s6739_s22 + $0x108] sm:$0xff]  ;;  %v4986_v54 = vcombine.low %v442_v44, %v450_v45  ;;  %v6490_v34 = vld [vmem:[%s8056_s1 + $0x150] sm:$0xff]  }
  0x1d   : > { %5638 = vmatprep.subr.bf16.mxu1 %v6455_v17  ;;  %3018 = vmatprep.mubr.bf16.mxu0 %v4971_v36  ;;  %v466_v51 = vld [vmem:[%s6739_s22 + $0x140] sm:$0xff]  ;;  %v467_v53 = vld [vmem:[%s6739_s22 + $0x148] sm:$0xff]  ;;  %v4988_v56 = vcombine.low %v443_v47, %v451_v48  ;;  %v6491_v36 = vld [vmem:[%s8056_s1 + $0x110] sm:$0xff]  }
  0x1e   : > { %3179 = vmatprep.mubr.bf16.mxu1 %v4973_v39  ;;  %v5003_v57 = vcombine.high %v458_v49, %v466_v51  ;;  %v5005_v59 = vcombine.high %v459_v52, %v467_v53  ;;  %v474_v62 = vld [vmem:[%s6739_s22 + $0x180] sm:$0xff]  ;;  %v475_v0 = vld [vmem:[%s6739_s22 + $0x188] sm:$0xff]  ;;  %v5002_v3 = vcombine.low %v458_v49, %v466_v51  ;;  %v5004_v5 = vcombine.low %v459_v52, %v467_v53  ;;  %v6492_v37 = vld [vmem:[%s8056_s1 + $0x1d0] sm:$0xff]  }
  0x1f   : > { %5527 = vmatpush3.bf16.msra.mxu0 %v6456_v18  ;;  %v482_v63 = vld [vmem:[%s6739_s22 + $0x1c0] sm:$0xff]  ;;  %v483_v1 = vld [vmem:[%s6739_s22 + $0x1c8] sm:$0xff]  ;;  %v6493_v39 = vld [vmem:[%s8056_s1 + $0x190] sm:$0xff]  }
  0x20   : > { %5639 = vmatpush3.bf16.msra.mxu1 %v6457_v19  ;;  %5528 = vmatprep.subr.bf16.mxu0 %v6458_v20  ;;  %v6478_v2 = vld [vmem:[%s8056_s1 + $0x168] sm:$0xff]   ;;  %v5019_v6 = vcombine.high %v474_v62, %v482_v63  ;;  %v5021_v8 = vcombine.high %v475_v0, %v483_v1  ;;  %v490_v10 = vld [vmem:[%s6739_s22 + $0x200] sm:$0xff]  ;;  %v5018_v16 = vcombine.low %v474_v62, %v482_v63 }
  0x21   : > { %5640 = vmatprep.subr.bf16.mxu1 %v6459_v21  ;;  %v6479_v4 = vld [vmem:[%s8056_s1 + $0x128] sm:$0xff]   ;;  %v498_v11 = vld [vmem:[%s6739_s22 + $0x240] sm:$0xff]  ;;  %v5020_v18 = vcombine.low %v475_v0, %v483_v1 }
  0x22   : > { %v6480_v7 = vld [vmem:[%s8056_s1 + $0x1e8] sm:$0xff]   ;;  %v6482_v14 = vld [vmem:[%s8056_s1 + $0x160] sm:$0xff]   ;;  %v5035_v19 = vcombine.high %v490_v10, %v498_v11 }
  0x23   : > { %5529 = vmatpush3.bf16.msra.mxu0 %v6460_v22  ;;  %v6481_v9 = vld [vmem:[%s8056_s1 + $0x1a8] sm:$0xff]   ;;  %v6483_v15 = vld [vmem:[%s8056_s1 + $0x120] sm:$0xff]  }
  0x24   : > { %5641 = vmatpush3.bf16.msra.mxu1 %v6461_v23  ;;  %5530 = vmatprep.subr.bf16.mxu0 %v6462_v24  ;;  %v491_v12 = vld [vmem:[%s6739_s22 + $0x208] sm:$0xff]  ;;  %v6484_v17 = vld [vmem:[%s8056_s1 + $0x1e0] sm:$0xff]   ;;  %v6486_v24 = vld [vmem:[%s8056_s1 + $0x158] sm:$0xff]  }
  0x25   : > { %5642 = vmatprep.subr.bf16.mxu1 %v6463_v25  ;;  %v499_v13 = vld [vmem:[%s6739_s22 + $0x248] sm:$0xff]  ;;  %v6485_v20 = vld [vmem:[%s8056_s1 + $0x1a0] sm:$0xff]  }
  0x26   : > { %v5037_v21 = vcombine.high %v491_v12, %v499_v13  ;;  %v506_v22 = vld [vmem:[%s6739_s22 + $0x280] sm:$0xff]  ;;  %v507_v25 = vld [vmem:[%s6739_s22 + $0x288] sm:$0xff] }
  0x27   : > { %5531 = vmatpush3.bf16.msra.mxu0 %v6464_v26  ;;  %v514_v23 = vld [vmem:[%s6739_s22 + $0x2c0] sm:$0xff]  ;;  %v515_v26 = vld [vmem:[%s6739_s22 + $0x2c8] sm:$0xff] }
  0x28   : > { %5643 = vmatpush3.bf16.msra.mxu1 %v6465_v27  ;;  %5532 = vmatprep.subr.bf16.mxu0 %v6466_v28  ;;  %v6487_v27 = vld [vmem:[%s8056_s1 + $0x118] sm:$0xff]   ;;  %v5051_v32 = vcombine.high %v506_v22, %v514_v23  ;;  %v5053_v33 = vcombine.high %v507_v25, %v515_v26  ;;  %v6495_v47 = vld [vmem:[%s8056_s1 + $0x108] sm:$0xff]   ;;  %v546_v51 = vld [vmem:[%s6739_s22 + $0x3c0] sm:$0xff] }
  0x29   : > { %5644 = vmatprep.subr.bf16.mxu1 %v6467_v29  ;;  %v6488_v28 = vld [vmem:[%s8056_s1 + $0x1d8] sm:$0xff]   ;;  %v6496_v48 = vld [vmem:[%s8056_s1 + $0x1c8] sm:$0xff]   ;;  %v554_v62 = vld [vmem:[%s6739_s22 + $0x400] sm:$0xff] }
  0x2a   : > { %v6489_v29 = vld [vmem:[%s8056_s1 + $0x198] sm:$0xff]   ;;  %v6497_v49 = vld [vmem:[%s8056_s1 + $0x188] sm:$0xff]   ;;  %v562_v63 = vld [vmem:[%s6739_s22 + $0x440] sm:$0xff] }
  0x2b   : > { %5533 = vmatpush3.bf16.msra.mxu0 %v6468_v30  ;;  %v5034_v30 = vcombine.low %v490_v10, %v498_v11  ;;  %v539_v52 = vld [vmem:[%s6739_s22 + $0x388] sm:$0xff] }
  0x2c   : > { %5645 = vmatpush3.bf16.msra.mxu1 %v6469_v31  ;;  %5742 = vmatprep.subr.bf16.mxu0 %v6470_v40  ;;  %v5036_v31 = vcombine.low %v491_v12, %v499_v13  ;;  %v523_v40 = vld [vmem:[%s6739_s22 + $0x308] sm:$0xff]  ;;  %v5098_v12 = vcombine.low %v554_v62, %v562_v63 }
  0x2d   : > { %5854 = vmatprep.subr.bf16.mxu1 %v6472_v42  ;;  %v5050_v42 = vcombine.low %v506_v22, %v514_v23  ;;  %v547_v53 = vld [vmem:[%s6739_s22 + $0x3c8] sm:$0xff] }
  0x2e   : > { %3019 = vmatmul.mubr.bf16.vlgmr.msra.gmra.mxu0 %v4970_v35  ;;  %v522_v35 = vld [vmem:[%s6739_s22 + $0x300] sm:$0xff]  ;;  %v555_v0 = vld [vmem:[%s6739_s22 + $0x408] sm:$0xff] }
  0x2f   : > { %3180 = vmatmul.mubr.bf16.vlgmr.msra.gmra.mxu1 %v4972_v38  ;;  %5743 = vmatpush3.bf16.msra.mxu0 %v6471_v41  ;;  %v530_v38 = vld [vmem:[%s6739_s22 + $0x340] sm:$0xff]  ;;  %v531_v41 = vld [vmem:[%s6739_s22 + $0x348] sm:$0xff] }
  0x30   : > { %5855 = vmatpush3.bf16.msra.mxu1 %v6473_v43  ;;  %3026 = vmatprep.mubr.bf16.mxu0 %v4987_v46  ;;  %v5052_v43 = vcombine.low %v507_v25, %v515_v26  ;;  %v5067_v44 = vcombine.high %v522_v35, %v530_v38  ;;  %v5069_v45 = vcombine.high %v523_v40, %v531_v41  ;;  %v6494_v46 = vld [vmem:[%s8056_s1 + $0x148] sm:$0xff]   ;;  %v610_v25 = vld [vmem:[%s6739_s22 + $0x5c0] sm:$0xff] }
  0x31   : > { %3187 = vmatprep.mubr.bf16.mxu1 %v4989_v50  ;;  %5744 = vmatprep.subr.bf16.mxu0 %v6474_v55  ;;  %v538_v50 = vld [vmem:[%s6739_s22 + $0x380] sm:$0xff]  ;;  %v563_v1 = vld [vmem:[%s6739_s22 + $0x448] sm:$0xff] }
  0x32   : > { %5856 = vmatprep.subr.bf16.mxu1 %v6476_v60  ;;  %v6498_v55 = vld [vmem:[%s8056_s1 + $0x140] sm:$0xff]   ;;  %v571_v10 = vld [vmem:[%s6739_s22 + $0x488] sm:$0xff]  ;;  %v5100_v13 = vcombine.low %v555_v0, %v563_v1 }
  0x33   : > { %5745 = vmatpush3.bf16.msra.mxu0 %v6475_v58  ;;  %v6499_v58 = vld [vmem:[%s8056_s1 + $0x100] sm:$0xff]   ;;  %v579_v11 = vld [vmem:[%s6739_s22 + $0x4c8] sm:$0xff] }
  0x34   : > { %5857 = vmatpush3.bf16.msra.mxu1 %v6477_v61  ;;  %5746 = vmatprep.subr.bf16.mxu0 %v6478_v2  ;;  %v6500_v60 = vld [vmem:[%s8056_s1 + $0x1c0] sm:$0xff]   ;;  %v6502_v2 = vld [vmem:[%s8056_s1 + $0x278] sm:$0xff]   ;;  %v603_v26 = vld [vmem:[%s6739_s22 + $0x588] sm:$0xff] }
  0x35   : > { %5858 = vmatprep.subr.bf16.mxu1 %v6480_v7  ;;  %v6501_v61 = vld [vmem:[%s8056_s1 + $0x180] sm:$0xff]   ;;  %v5101_v7 = vcombine.high %v555_v0, %v563_v1  ;;  %v428_v0 = vld [vmem:[%s6739_s22 + $0x10] sm:$0xff] }
  0x36   : > { %3027 = vmatmul.mubr.bf16.gmra.mxu0 %v4986_v54  ;;  %v5066_v54 = vcombine.low %v522_v35, %v530_v38  ;;  %v627_v35 = vld [vmem:[%s6739_s22 + $0x648] sm:$0xff]  ;;  %v436_v1 = vld [vmem:[%s6739_s22 + $0x50] sm:$0xff] }
  0x37   : > { %3188 = vmatmul.mubr.bf16.gmra.mxu1 %v4988_v56  ;;  %3034 = vmatprep.mubr.bf16.mxu0 %v5003_v57  ;;  %v5068_v56 = vcombine.low %v523_v40, %v531_v41  ;;  %v5083_v57 = vcombine.high %v538_v50, %v546_v51  ;;  %v634_v40 = vld [vmem:[%s6739_s22 + $0x680] sm:$0xff] }
  0x38   : > { %3195 = vmatprep.mubr.bf16.mxu1 %v5005_v59  ;;  %5747 = vmatpush3.bf16.msra.mxu0 %v6479_v4  ;;  %v5085_v59 = vcombine.high %v539_v52, %v547_v53  ;;  %v5084_v4 = vcombine.low %v539_v52, %v547_v53  ;;  %v642_v41 = vld [vmem:[%s6739_s22 + $0x6c0] sm:$0xff] }
  0x39   : > { %5859 = vmatpush3.bf16.msra.mxu1 %v6481_v9  ;;  %5748 = vmatprep.subr.bf16.mxu0 %v6482_v14  ;;  %v578_v9 = vld [vmem:[%s6739_s22 + $0x4c0] sm:$0xff]  ;;  %v5178_v52 = vcombine.low %v634_v40, %v642_v41 }
  0x3a   : > { %5860 = vmatprep.subr.bf16.mxu1 %v6484_v17  ;;  %v594_v17 = vld [vmem:[%s6739_s22 + $0x540] sm:$0xff] }
  0x3c   : > { %5749 = vmatpush3.bf16.msra.mxu0 %v6483_v15  ;;  %v5117_v15 = vcombine.high %v571_v10, %v579_v11 }
  0x3d   : > { %5861 = vmatpush3.bf16.msra.mxu1 %v6485_v20  ;;  %5750 = vmatprep.subr.bf16.mxu0 %v6486_v24  ;;  %v602_v24 = vld [vmem:[%s6739_s22 + $0x580] sm:$0xff] }
  0x3e   : > { %3035 = vmatmul.mubr.bf16.gmra.mxu0 %v5002_v3  ;;  %5862 = vmatprep.subr.bf16.mxu1 %v6488_v28  ;;  %v5082_v3 = vcombine.low %v538_v50, %v546_v51  ;;  %v651_v50 = vld [vmem:[%s6739_s22 + $0x708] sm:$0xff] }
  0x3f   : > { %3196 = vmatmul.mubr.bf16.gmra.mxu1 %v5004_v5  ;;  %3042 = vmatprep.mubr.bf16.mxu0 %v5019_v6  ;;  %v5099_v5 = vcombine.high %v554_v62, %v562_v63  ;;  %v6504_v6 = vld [vmem:[%s8056_s1 + $0x2f8] sm:$0xff]   ;;  %v659_v51 = vld [vmem:[%s6739_s22 + $0x748] sm:$0xff] }
  0x40   : > { %3203 = vmatprep.mubr.bf16.mxu1 %v5021_v8  ;;  %5751 = vmatpush3.bf16.msra.mxu0 %v6487_v27  ;;  %v570_v8 = vld [vmem:[%s6739_s22 + $0x480] sm:$0xff]  ;;  %v611_v27 = vld [vmem:[%s6739_s22 + $0x5c8] sm:$0xff] }
  0x41   : > { %5863 = vmatpush3.bf16.msra.mxu1 %v6489_v29  ;;  %5752 = vmatprep.subr.bf16.mxu0 %v6490_v34  ;;  %v5115_v14 = vcombine.high %v570_v8, %v578_v9  ;;  %v5114_v20 = vcombine.low %v570_v8, %v578_v9  ;;  %v619_v34 = vld [vmem:[%s6739_s22 + $0x608] sm:$0xff]  ;;  %v444_v8 = vld [vmem:[%s6739_s22 + $0x90] sm:$0xff] }
  0x42   : > { %5864 = vmatprep.subr.bf16.mxu1 %v6492_v37  ;;  %v5148_v37 = vcombine.low %v603_v26, %v611_v27  ;;  %v452_v9 = vld [vmem:[%s6739_s22 + $0xd0] sm:$0xff] }
  0x44   : > { %5753 = vmatpush3.bf16.msra.mxu0 %v6491_v36  ;;  %v5146_v36 = vcombine.low %v602_v24, %v610_v25 }
  0x45   : > { %5865 = vmatpush3.bf16.msra.mxu1 %v6493_v39  ;;  %5754 = vmatprep.subr.bf16.mxu0 %v6494_v46  ;;  %v5165_v39 = vcombine.high %v619_v34, %v627_v35  ;;  %v5179_v46 = vcombine.high %v634_v40, %v642_v41  ;;  %v485_v40 = vld [vmem:[%s6739_s22 + $0x1d8] sm:$0xff]  ;;  %v6517_v41 = vld [vmem:[%s8056_s1 + $0x2a0] sm:$0xff]  }
  0x46   : > { %3043 = vmatmul.mubr.bf16.gmra.mxu0 %v5018_v16  ;;  %5866 = vmatprep.subr.bf16.mxu1 %v6496_v48  ;;  %v586_v16 = vld [vmem:[%s6739_s22 + $0x500] sm:$0xff] }
  0x47   : > { %3204 = vmatmul.mubr.bf16.gmra.mxu1 %v5020_v18  ;;  %3050 = vmatprep.mubr.bf16.mxu0 %v5035_v19  ;;  %v587_v18 = vld [vmem:[%s6739_s22 + $0x508] sm:$0xff]  ;;  %v5131_v22 = vcombine.high %v586_v16, %v594_v17  ;;  %v5130_v28 = vcombine.low %v586_v16, %v594_v17  ;;  %v650_v48 = vld [vmem:[%s6739_s22 + $0x700] sm:$0xff]  ;;  %v4991_v16 = vcombine.high %v444_v8, %v452_v9 }
  0x48   : > { %3211 = vmatprep.mubr.bf16.mxu1 %v5037_v21  ;;  %5755 = vmatpush3.bf16.msra.mxu0 %v6495_v47  ;;  %v595_v19 = vld [vmem:[%s6739_s22 + $0x548] sm:$0xff]  ;;  %v5116_v21 = vcombine.low %v571_v10, %v579_v11  ;;  %v4974_v10 = vcombine.low %v428_v0, %v436_v1  ;;  %v445_v11 = vld [vmem:[%s6739_s22 + $0x98] sm:$0xff] }
  0x49   : > { %5867 = vmatpush3.bf16.msra.mxu1 %v6497_v49  ;;  %5756 = vmatprep.subr.bf16.mxu0 %v6498_v55  ;;  %v5133_v23 = vcombine.high %v587_v18, %v595_v19  ;;  %v5132_v29 = vcombine.low %v587_v18, %v595_v19  ;;  %v658_v49 = vld [vmem:[%s6739_s22 + $0x740] sm:$0xff]  ;;  %v5197_v55 = vcombine.high %v651_v50, %v659_v51  ;;  %v6506_v18 = vld [vmem:[%s8056_s1 + $0x270] sm:$0xff]  }
  0x4a   : > { %5868 = vmatprep.subr.bf16.mxu1 %v6500_v60  ;;  %v5194_v60 = vcombine.low %v650_v48, %v658_v49  ;;  %v6508_v19 = vld [vmem:[%s8056_s1 + $0x2f0] sm:$0xff]  }
  0x4c   : > { %5757 = vmatpush3.bf16.msra.mxu0 %v6499_v58  ;;  %v667_v58 = vld [vmem:[%s6739_s22 + $0x788] sm:$0xff] }
  0x4d   : > { %5869 = vmatpush3.bf16.msra.mxu1 %v6501_v61  ;;  %5966 = vmatprep.subr.bf16.mxu0 %v6502_v2  ;;  %v5196_v61 = vcombine.low %v651_v50, %v659_v51  ;;  %v429_v2 = vld [vmem:[%s6739_s22 + $0x18] sm:$0xff]  ;;  %v6522_v50 = vld [vmem:[%s8056_s1 + $0x250] sm:$0xff]  }
  0x4e   : > { %3051 = vmatmul.mubr.bf16.gmra.mxu0 %v5034_v30  ;;  %6078 = vmatprep.subr.bf16.mxu1 %v6504_v6  ;;  %v5147_v30 = vcombine.high %v602_v24, %v610_v25  ;;  %v4975_v6 = vcombine.high %v428_v0, %v436_v1  ;;  %v6510_v24 = vld [vmem:[%s8056_s1 + $0x268] sm:$0xff]   ;;  %v461_v25 = vld [vmem:[%s6739_s22 + $0x118] sm:$0xff]  ;;  %v6524_v51 = vld [vmem:[%s8056_s1 + $0x2d0] sm:$0xff]  }
  0x4f   : > { %3212 = vmatmul.mubr.bf16.gmra.mxu1 %v5036_v31  ;;  %3058 = vmatprep.mubr.bf16.mxu0 %v5051_v32  ;;  %v5149_v31 = vcombine.high %v603_v26, %v611_v27  ;;  %v618_v32 = vld [vmem:[%s6739_s22 + $0x600] sm:$0xff]  ;;  %v469_v26 = vld [vmem:[%s6739_s22 + $0x158] sm:$0xff]  ;;  %v6512_v27 = vld [vmem:[%s8056_s1 + $0x2e8] sm:$0xff]  }
  0x50   : > { %3219 = vmatprep.mubr.bf16.mxu1 %v5053_v33  ;;  %v626_v33 = vld [vmem:[%s6739_s22 + $0x640] sm:$0xff]  ;;  %v6527_v0 = vld [vmem:[%s8056_s1 + $0x208] sm:$0xff]  }
  0x51   : > { %v5163_v38 = vcombine.high %v618_v32, %v626_v33  ;;  %v6529_v1 = vld [vmem:[%s8056_s1 + $0x288] sm:$0xff]  }
  0x56   : > { %3059 = vmatmul.mubr.bf16.gmra.mxu0 %v5050_v42  ;;  %v635_v42 = vld [vmem:[%s6739_s22 + $0x688] sm:$0xff] }
  0x57   : > { %3220 = vmatmul.mubr.bf16.gmra.mxu1 %v5052_v43  ;;  %3066 = vmatprep.mubr.bf16.mxu0 %v5067_v44  ;;  %v643_v43 = vld [vmem:[%s6739_s22 + $0x6c8] sm:$0xff]  ;;  %v5162_v44 = vcombine.low %v618_v32, %v626_v33 }
  0x58   : > { %3227 = vmatprep.mubr.bf16.mxu1 %v5069_v45  ;;  %v5164_v45 = vcombine.low %v619_v34, %v627_v35  ;;  %v5181_v47 = vcombine.high %v635_v42, %v643_v43  ;;  %v5180_v53 = vcombine.low %v635_v42, %v643_v43  ;;  %v6511_v32 = vld [vmem:[%s8056_s1 + $0x228] sm:$0xff]   ;;  %v6514_v34 = vld [vmem:[%s8056_s1 + $0x260] sm:$0xff]   ;;  %v6518_v42 = vld [vmem:[%s8056_s1 + $0x258] sm:$0xff]  }
  0x59   : > { %v6513_v33 = vld [vmem:[%s8056_s1 + $0x2a8] sm:$0xff]   ;;  %v6516_v35 = vld [vmem:[%s8056_s1 + $0x2e0] sm:$0xff]  }
  0x5e   : > { %3067 = vmatmul.mubr.bf16.gmra.mxu0 %v5066_v54  ;;  %v5195_v54 = vcombine.high %v650_v48, %v658_v49  ;;  %v6519_v48 = vld [vmem:[%s8056_s1 + $0x218] sm:$0xff]  }
  0x5f   : > { %3228 = vmatmul.mubr.bf16.gmra.mxu1 %v5068_v56  ;;  %3074 = vmatprep.mubr.bf16.mxu0 %v5083_v57  ;;  %v666_v56 = vld [vmem:[%s6739_s22 + $0x780] sm:$0xff]  ;;  %v6521_v49 = vld [vmem:[%s8056_s1 + $0x298] sm:$0xff]  }
  0x60   : > { %3235 = vmatprep.mubr.bf16.mxu1 %v5085_v59  ;;  %v674_v57 = vld [vmem:[%s6739_s22 + $0x7c0] sm:$0xff]  ;;  %v675_v59 = vld [vmem:[%s6739_s22 + $0x7c8] sm:$0xff] }
  0x61   : > { %v5211_v62 = vcombine.high %v666_v56, %v674_v57  ;;  %v5213_v63 = vcombine.high %v667_v58, %v675_v59 }
  0x66   : > { %3075 = vmatmul.mubr.bf16.gmra.mxu0 %v5082_v3  ;;  %v437_v3 = vld [vmem:[%s6739_s22 + $0x58] sm:$0xff] }
  0x67   : > { %3236 = vmatmul.mubr.bf16.gmra.mxu1 %v5084_v4  ;;  %3082 = vmatprep.mubr.bf16.mxu0 %v5099_v5  ;;  %v5210_v4 = vcombine.low %v666_v56, %v674_v57  ;;  %v5212_v5 = vcombine.low %v667_v58, %v675_v59  ;;  %v501_v56 = vld [vmem:[%s6739_s22 + $0x258] sm:$0xff]  ;;  %v6525_v57 = vld [vmem:[%s8056_s1 + $0x290] sm:$0xff]   ;;  %v6526_v58 = vld [vmem:[%s8056_s1 + $0x248] sm:$0xff]  }
  0x68   : > { %3243 = vmatprep.mubr.bf16.mxu1 %v5101_v7  ;;  %v4977_v7 = vcombine.high %v429_v2, %v437_v3 }
  0x6e   : > { %3083 = vmatmul.mubr.bf16.gmra.mxu0 %v5098_v12  ;;  %v453_v12 = vld [vmem:[%s6739_s22 + $0xd8] sm:$0xff] }
  0x6f   : > { %3244 = vmatmul.mubr.bf16.gmra.mxu1 %v5100_v13  ;;  %3090 = vmatprep.mubr.bf16.mxu0 %v5115_v14  ;;  %v4976_v13 = vcombine.low %v429_v2, %v437_v3  ;;  %v6503_v14 = vld [vmem:[%s8056_s1 + $0x238] sm:$0xff]   ;;  %v4993_v17 = vcombine.high %v445_v11, %v453_v12  ;;  %v6530_v2 = vld [vmem:[%s8056_s1 + $0x240] sm:$0xff]  }
  0x70   : > { %3251 = vmatprep.mubr.bf16.mxu1 %v5117_v15  ;;  %v6505_v15 = vld [vmem:[%s8056_s1 + $0x2b8] sm:$0xff]   ;;  %v6532_v3 = vld [vmem:[%s8056_s1 + $0x2c0] sm:$0xff]  }
  0x76   : > { %3091 = vmatmul.mubr.bf16.gmra.mxu0 %v5114_v20  ;;  %v460_v20 = vld [vmem:[%s6739_s22 + $0x110] sm:$0xff] }
  0x77   : > { %3252 = vmatmul.mubr.bf16.gmra.mxu1 %v5116_v21  ;;  %3098 = vmatprep.mubr.bf16.mxu0 %v5131_v22  ;;  %v6507_v21 = vld [vmem:[%s8056_s1 + $0x230] sm:$0xff]  }
  0x78   : > { %3259 = vmatprep.mubr.bf16.mxu1 %v5133_v23  ;;  %v468_v22 = vld [vmem:[%s6739_s22 + $0x150] sm:$0xff] }
  0x79   : > { %v6509_v23 = vld [vmem:[%s8056_s1 + $0x2b0] sm:$0xff]   ;;  %v5006_v43 = vcombine.low %v460_v20, %v468_v22 }
  0x7e   : > { %3099 = vmatmul.mubr.bf16.gmra.mxu0 %v5130_v28  ;;  %v4990_v28 = vcombine.low %v444_v8, %v452_v9  ;;  %v517_v8 = vld [vmem:[%s6739_s22 + $0x2d8] sm:$0xff]  ;;  %v6533_v9 = vld [vmem:[%s8056_s1 + $0x280] sm:$0xff]  }
  0x7f   : > { %3260 = vmatmul.mubr.bf16.gmra.mxu1 %v5132_v29  ;;  %3106 = vmatprep.mubr.bf16.mxu0 %v5147_v30  ;;  %v4992_v29 = vcombine.low %v445_v11, %v453_v12  ;;  %v5007_v30 = vcombine.high %v460_v20, %v468_v22  ;;  %v6536_v12 = vld [vmem:[%s8056_s1 + $0x3f8] sm:$0xff]  }
  0x80   : > { %3267 = vmatprep.mubr.bf16.mxu1 %v5149_v31  ;;  %v5009_v31 = vcombine.high %v461_v25, %v469_v26 }
  0x86   : > { %3107 = vmatmul.mubr.bf16.gmra.mxu0 %v5146_v36  ;;  %v476_v36 = vld [vmem:[%s6739_s22 + $0x190] sm:$0xff] }
  0x87   : > { %3268 = vmatmul.mubr.bf16.gmra.mxu1 %v5148_v37  ;;  %3114 = vmatprep.mubr.bf16.mxu0 %v5163_v38  ;;  %v484_v37 = vld [vmem:[%s6739_s22 + $0x1d0] sm:$0xff]  ;;  %v477_v38 = vld [vmem:[%s6739_s22 + $0x198] sm:$0xff] }
  0x88   : > { %3275 = vmatprep.mubr.bf16.mxu1 %v5165_v39  ;;  %v6515_v39 = vld [vmem:[%s8056_s1 + $0x220] sm:$0xff]   ;;  %v5022_v59 = vcombine.low %v476_v36, %v484_v37 }
  0x8e   : > { %3115 = vmatmul.mubr.bf16.gmra.mxu0 %v5162_v44  ;;  %v6520_v44 = vld [vmem:[%s8056_s1 + $0x2d8] sm:$0xff]  }
  0x8f   : > { %3276 = vmatmul.mubr.bf16.gmra.mxu1 %v5164_v45  ;;  %3122 = vmatprep.mubr.bf16.mxu0 %v5179_v46  ;;  %v5008_v45 = vcombine.low %v461_v25, %v469_v26  ;;  %v5023_v46 = vcombine.high %v476_v36, %v484_v37  ;;  %v548_v25 = vld [vmem:[%s6739_s22 + $0x3d0] sm:$0xff]  ;;  %v541_v26 = vld [vmem:[%s6739_s22 + $0x398] sm:$0xff] }
  0x90   : > { %3283 = vmatprep.mubr.bf16.mxu1 %v5181_v47  ;;  %v5025_v47 = vcombine.high %v477_v38, %v485_v40 }
  0x96   : > { %3123 = vmatmul.mubr.bf16.gmra.mxu0 %v5178_v52  ;;  %v492_v52 = vld [vmem:[%s6739_s22 + $0x210] sm:$0xff] }
  0x97   : > { %3284 = vmatmul.mubr.bf16.gmra.mxu1 %v5180_v53  ;;  %3130 = vmatprep.mubr.bf16.mxu0 %v5195_v54  ;;  %v500_v53 = vld [vmem:[%s6739_s22 + $0x250] sm:$0xff]  ;;  %v493_v54 = vld [vmem:[%s6739_s22 + $0x218] sm:$0xff] }
  0x98   : > { %3291 = vmatprep.mubr.bf16.mxu1 %v5197_v55  ;;  %v6523_v55 = vld [vmem:[%s8056_s1 + $0x210] sm:$0xff]   ;;  %v5038_v11 = vcombine.low %v492_v52, %v500_v53 }
  0x9e   : > { %3131 = vmatmul.mubr.bf16.gmra.mxu0 %v5194_v60  ;;  %v6528_v60 = vld [vmem:[%s8056_s1 + $0x2c8] sm:$0xff]  }
  0x9f   : > { %3292 = vmatmul.mubr.bf16.gmra.mxu1 %v5196_v61  ;;  %3138 = vmatprep.mubr.bf16.mxu0 %v5211_v62  ;;  %v5024_v61 = vcombine.low %v477_v38, %v485_v40  ;;  %v5039_v62 = vcombine.high %v492_v52, %v500_v53  ;;  %v572_v40 = vld [vmem:[%s6739_s22 + $0x490] sm:$0xff] }
  0xa0   : > { %3299 = vmatprep.mubr.bf16.mxu1 %v5213_v63  ;;  %v5041_v63 = vcombine.high %v493_v54, %v501_v56  ;;  %v596_v52 = vld [vmem:[%s6739_s22 + $0x550] sm:$0xff] }
  0xa6   : > { %3139 = vmatmul.mubr.bf16.gmra.mxu0 %v5210_v4  ;;  %v508_v4 = vld [vmem:[%s6739_s22 + $0x290] sm:$0xff] }
  0xa7   : > { %3300 = vmatmul.mubr.bf16.gmra.mxu1 %v5212_v5  ;;  %3340 = vmatprep.mubr.bf16.mxu0 %v4975_v6  ;;  %v516_v5 = vld [vmem:[%s6739_s22 + $0x2d0] sm:$0xff]  ;;  %v509_v6 = vld [vmem:[%s6739_s22 + $0x298] sm:$0xff] }
  0xa8   : > { %3501 = vmatprep.mubr.bf16.mxu1 %v4977_v7  ;;  %v6531_v7 = vld [vmem:[%s8056_s1 + $0x200] sm:$0xff]   ;;  %v5054_v20 = vcombine.low %v508_v4, %v516_v5 }
  0xae   : > { %3341 = vmatmul.mubr.bf16.vlgmr.msra.gmra.mxu0 %v4974_v10  ;;  %v6534_v10 = vld [vmem:[%s8056_s1 + $0x378] sm:$0xff]  }
  0xaf   : > { %3502 = vmatmul.mubr.bf16.vlgmr.msra.gmra.mxu1 %v4976_v13  ;;  %5967 = vmatpush3.bf16.msra.mxu0 %v6503_v14  ;;  %v5040_v13 = vcombine.low %v493_v54, %v501_v56  ;;  %v5055_v14 = vcombine.high %v508_v4, %v516_v5  ;;  %v597_v56 = vld [vmem:[%s6739_s22 + $0x558] sm:$0xff] }
  0xb0   : > { %6079 = vmatpush3.bf16.msra.mxu1 %v6505_v15  ;;  %3348 = vmatprep.mubr.bf16.mxu0 %v4991_v16  ;;  %v5057_v15 = vcombine.high %v509_v6, %v517_v8  ;;  %v524_v16 = vld [vmem:[%s6739_s22 + $0x310] sm:$0xff] }
  0xb1   : > { %3509 = vmatprep.mubr.bf16.mxu1 %v4993_v17  ;;  %5968 = vmatprep.subr.bf16.mxu0 %v6506_v18  ;;  %v532_v17 = vld [vmem:[%s6739_s22 + $0x350] sm:$0xff]  ;;  %v525_v18 = vld [vmem:[%s6739_s22 + $0x318] sm:$0xff] }
  0xb2   : > { %6080 = vmatprep.subr.bf16.mxu1 %v6508_v19  ;;  %v533_v19 = vld [vmem:[%s6739_s22 + $0x358] sm:$0xff]  ;;  %v5071_v22 = vcombine.high %v524_v16, %v532_v17 }
  0xb3   : > { %5969 = vmatpush3.bf16.msra.mxu0 %v6507_v21  ;;  %v5056_v21 = vcombine.low %v509_v6, %v517_v8 }
  0xb4   : > { %6081 = vmatpush3.bf16.msra.mxu1 %v6509_v23  ;;  %5970 = vmatprep.subr.bf16.mxu0 %v6510_v24  ;;  %v5073_v23 = vcombine.high %v525_v18, %v533_v19  ;;  %v540_v24 = vld [vmem:[%s6739_s22 + $0x390] sm:$0xff] }
  0xb5   : > { %6082 = vmatprep.subr.bf16.mxu1 %v6512_v27  ;;  %v549_v27 = vld [vmem:[%s6739_s22 + $0x3d8] sm:$0xff]  ;;  %v5086_v36 = vcombine.low %v540_v24, %v548_v25 }
  0xb6   : > { %3349 = vmatmul.mubr.bf16.gmra.mxu0 %v4990_v28  ;;  %v5070_v28 = vcombine.low %v524_v16, %v532_v17  ;;  %v5088_v37 = vcombine.low %v541_v26, %v549_v27 }
  0xb7   : > { %3510 = vmatmul.mubr.bf16.gmra.mxu1 %v4992_v29  ;;  %3356 = vmatprep.mubr.bf16.mxu0 %v5007_v30  ;;  %v5072_v29 = vcombine.low %v525_v18, %v533_v19  ;;  %v5087_v30 = vcombine.high %v540_v24, %v548_v25 }
  0xb8   : > { %3517 = vmatprep.mubr.bf16.mxu1 %v5009_v31  ;;  %5971 = vmatpush3.bf16.msra.mxu0 %v6511_v32  ;;  %v5089_v31 = vcombine.high %v541_v26, %v549_v27  ;;  %v556_v32 = vld [vmem:[%s6739_s22 + $0x410] sm:$0xff] }
  0xb9   : > { %6083 = vmatpush3.bf16.msra.mxu1 %v6513_v33  ;;  %5972 = vmatprep.subr.bf16.mxu0 %v6514_v34  ;;  %v564_v33 = vld [vmem:[%s6739_s22 + $0x450] sm:$0xff]  ;;  %v557_v34 = vld [vmem:[%s6739_s22 + $0x418] sm:$0xff] }
  0xba   : > { %6084 = vmatprep.subr.bf16.mxu1 %v6516_v35  ;;  %v565_v35 = vld [vmem:[%s6739_s22 + $0x458] sm:$0xff]  ;;  %v5103_v38 = vcombine.high %v556_v32, %v564_v33 }
  0xbc   : > { %5973 = vmatpush3.bf16.msra.mxu0 %v6515_v39  ;;  %v5105_v39 = vcombine.high %v557_v34, %v565_v35 }
  0xbd   : > { %6085 = vmatpush3.bf16.msra.mxu1 %v6517_v41  ;;  %5974 = vmatprep.subr.bf16.mxu0 %v6518_v42  ;;  %v580_v41 = vld [vmem:[%s6739_s22 + $0x4d0] sm:$0xff]  ;;  %v573_v42 = vld [vmem:[%s6739_s22 + $0x498] sm:$0xff] }
  0xbe   : > { %3357 = vmatmul.mubr.bf16.gmra.mxu0 %v5006_v43  ;;  %6086 = vmatprep.subr.bf16.mxu1 %v6520_v44  ;;  %v581_v43 = vld [vmem:[%s6739_s22 + $0x4d8] sm:$0xff]  ;;  %v5102_v44 = vcombine.low %v556_v32, %v564_v33  ;;  %v628_v32 = vld [vmem:[%s6739_s22 + $0x650] sm:$0xff] }
  0xbf   : > { %3518 = vmatmul.mubr.bf16.gmra.mxu1 %v5008_v45  ;;  %3364 = vmatprep.mubr.bf16.mxu0 %v5023_v46  ;;  %v5104_v45 = vcombine.low %v557_v34, %v565_v35  ;;  %v5119_v46 = vcombine.high %v572_v40, %v580_v41  ;;  %v621_v35 = vld [vmem:[%s6739_s22 + $0x618] sm:$0xff] }
  0xc0   : > { %3525 = vmatprep.mubr.bf16.mxu1 %v5025_v47  ;;  %5975 = vmatpush3.bf16.msra.mxu0 %v6519_v48  ;;  %v5121_v47 = vcombine.high %v573_v42, %v581_v43 }
  0xc1   : > { %6087 = vmatpush3.bf16.msra.mxu1 %v6521_v49  ;;  %5976 = vmatprep.subr.bf16.mxu0 %v6522_v50 }
  0xc2   : > { %6088 = vmatprep.subr.bf16.mxu1 %v6524_v51  ;;  %v588_v51 = vld [vmem:[%s6739_s22 + $0x510] sm:$0xff] }
  0xc3   : > { %v5134_v17 = vcombine.low %v588_v51, %v596_v52 }
  0xc4   : > { %5977 = vmatpush3.bf16.msra.mxu0 %v6523_v55  ;;  %v589_v55 = vld [vmem:[%s6739_s22 + $0x518] sm:$0xff] }
  0xc5   : > { %6089 = vmatpush3.bf16.msra.mxu1 %v6525_v57  ;;  %5978 = vmatprep.subr.bf16.mxu0 %v6526_v58  ;;  %v5136_v19 = vcombine.low %v589_v55, %v597_v56 }
  0xc6   : > { %3365 = vmatmul.mubr.bf16.gmra.mxu0 %v5022_v59  ;;  %6090 = vmatprep.subr.bf16.mxu1 %v6528_v60  ;;  %v5118_v59 = vcombine.low %v572_v40, %v580_v41 }
  0xc7   : > { %3526 = vmatmul.mubr.bf16.gmra.mxu1 %v5024_v61  ;;  %3372 = vmatprep.mubr.bf16.mxu0 %v5039_v62  ;;  %v5120_v61 = vcombine.low %v573_v42, %v581_v43  ;;  %v5135_v62 = vcombine.high %v588_v51, %v596_v52 }
  0xc8   : > { %3533 = vmatprep.mubr.bf16.mxu1 %v5041_v63  ;;  %5979 = vmatpush3.bf16.msra.mxu0 %v6527_v0 }
  0xc9   : > { %6091 = vmatpush3.bf16.msra.mxu1 %v6529_v1  ;;  %5980 = vmatprep.subr.bf16.mxu0 %v6530_v2  ;;  %v5137_v1 = vcombine.high %v589_v55, %v597_v56 }
  0xca   : > { %6092 = vmatprep.subr.bf16.mxu1 %v6532_v3 }
  0xcc   : > { %5981 = vmatpush3.bf16.msra.mxu0 %v6531_v7 }
  0xcd   : > { %6093 = vmatpush3.bf16.msra.mxu1 %v6533_v9  ;;  %6190 = vmatprep.subr.bf16.mxu0 %v6534_v10  ;;  %v604_v9 = vld [vmem:[%s6739_s22 + $0x590] sm:$0xff] }
  0xce   : > { %3373 = vmatmul.mubr.bf16.gmra.mxu0 %v5038_v11  ;;  %6302 = vmatprep.subr.bf16.mxu1 %v6536_v12  ;;  %v612_v10 = vld [vmem:[%s6739_s22 + $0x5d0] sm:$0xff] }
  0xcf   : > { %3534 = vmatmul.mubr.bf16.gmra.mxu1 %v5040_v13  ;;  %3380 = vmatprep.mubr.bf16.mxu0 %v5055_v14  ;;  %v605_v13 = vld [vmem:[%s6739_s22 + $0x598] sm:$0xff] }
  0xd0   : > { %3541 = vmatprep.mubr.bf16.mxu1 %v5057_v15  ;;  %v613_v14 = vld [vmem:[%s6739_s22 + $0x5d8] sm:$0xff] }
  0xd1   : > { %v5152_v41 = vcombine.low %v605_v13, %v613_v14 }
  0xd6   : > { %3381 = vmatmul.mubr.bf16.gmra.mxu0 %v5054_v20  ;;  %v5151_v20 = vcombine.high %v604_v9, %v612_v10 }
  0xd7   : > { %3542 = vmatmul.mubr.bf16.gmra.mxu1 %v5056_v21  ;;  %3388 = vmatprep.mubr.bf16.mxu0 %v5071_v22 }
  0xd8   : > { %3549 = vmatprep.mubr.bf16.mxu1 %v5073_v23  ;;  %v5153_v23 = vcombine.high %v605_v13, %v613_v14  ;;  %v652_v13 = vld [vmem:[%s6739_s22 + $0x710] sm:$0xff] }
  0xd9   : > { %v660_v14 = vld [vmem:[%s6739_s22 + $0x750] sm:$0xff] }
  0xde   : > { %3389 = vmatmul.mubr.bf16.gmra.mxu0 %v5070_v28 }
  0xdf   : > { %3550 = vmatmul.mubr.bf16.gmra.mxu1 %v5072_v29  ;;  %3396 = vmatprep.mubr.bf16.mxu0 %v5087_v30 }
  0xe0   : > { %3557 = vmatprep.mubr.bf16.mxu1 %v5089_v31  ;;  %v620_v31 = vld [vmem:[%s6739_s22 + $0x610] sm:$0xff] }
  0xe1   : > { %v5167_v42 = vcombine.high %v620_v31, %v628_v32 }
  0xe6   : > { %3397 = vmatmul.mubr.bf16.gmra.mxu0 %v5086_v36  ;;  %v629_v36 = vld [vmem:[%s6739_s22 + $0x658] sm:$0xff] }
  0xe7   : > { %3558 = vmatmul.mubr.bf16.gmra.mxu1 %v5088_v37  ;;  %3404 = vmatprep.mubr.bf16.mxu0 %v5103_v38 }
  0xe8   : > { %3565 = vmatprep.mubr.bf16.mxu1 %v5105_v39  ;;  %v5150_v39 = vcombine.low %v604_v9, %v612_v10 }
  0xee   : > { %v5534_v48 = vpop.f32.mrf.mxu0  ;;  %3405 = vmatmul.mubr.bf16.gmra.mxu0 %v5102_v44 }
  0xef   : > { %v5646_v49 = vpop.f32.mrf.mxu1  ;;  %3566 = vmatmul.mubr.bf16.gmra.mxu1 %v5104_v45  ;;  %3412 = vmatprep.mubr.bf16.mxu0 %v5119_v46  ;;  %v5169_v45 = vcombine.high %v621_v35, %v629_v36 }
  0xf0   : > { %v5535_v50 = vpop.f32.mrf.mxu0  ;;  %3573 = vmatprep.mubr.bf16.mxu1 %v5121_v47 }
  0xf1   : > { %v5536_v53 = vadd.f32 %v5535_v50, %v5534_v48  ;;  %v5647_v54 = vpop.f32.mrf.mxu1 }
  0xf2   : > { %v5648_v57 = vadd.f32 %v5647_v54, %v5646_v49  ;;  %v5537_v58 = vpop.f32.mrf.mxu0  ;;  %v644_v54 = vld [vmem:[%s6739_s22 + $0x6d0] sm:$0xff] }
  0xf3   : > { %v5649_v60 = vpop.f32.mrf.mxu1 }
  0xf4   : > { %v7053_v63 = vadd.f32 %v5648_v57, %v5536_v53  ;;  %v5538_v0 = vpop.f32.mrf.mxu0  ;;  %v636_v53 = vld [vmem:[%s6739_s22 + $0x690] sm:$0xff]  ;;  %v637_v57 = vld [vmem:[%s6739_s22 + $0x698] sm:$0xff] }
  0xf5   : > { %v5539_v2 = vadd.f32 %v5538_v0, %v5537_v58  ;;  %v5650_v3 = vpop.f32.mrf.mxu1  ;;  %v645_v58 = vld [vmem:[%s6739_s22 + $0x6d8] sm:$0xff]  ;;  %v5168_v0 = vcombine.low %v621_v35, %v629_v36 }
  0xf6   : > { %v5651_v4 = vadd.f32 %v5650_v3, %v5649_v60  ;;  %v5540_v5 = vpop.f32.mrf.mxu0  ;;  %3413 = vmatmul.mubr.bf16.gmra.mxu0 %v5118_v59 }
  0xf7   : > { %v5652_v6 = vpop.f32.mrf.mxu1  ;;  %3574 = vmatmul.mubr.bf16.gmra.mxu1 %v5120_v61  ;;  %3420 = vmatprep.mubr.bf16.mxu0 %v5135_v62  ;;  %v5166_v61 = vcombine.low %v620_v31, %v628_v32 }
  0xf8   : > { %v7055_v7 = vadd.f32 %v5651_v4, %v5539_v2  ;;  %v5541_v8 = vpop.f32.mrf.mxu0  ;;  %3581 = vmatprep.mubr.bf16.mxu1 %v5137_v1  ;;  %v5183_v1 = vcombine.high %v636_v53, %v644_v54  ;;  %v5185_v4 = vcombine.high %v637_v57, %v645_v58 }
  0xf9   : > { %v5542_v11 = vadd.f32 %v5541_v8, %v5540_v5  ;;  %v5653_v12 = vpop.f32.mrf.mxu1 }
  0xfa   : > { %v5654_v15 = vadd.f32 %v5653_v12, %v5652_v6  ;;  %v5543_v16 = vpop.f32.mrf.mxu0 }
  0xfb   : > { %v5655_v18 = vpop.f32.mrf.mxu1 }
  0xfc   : > { %v7061_v21 = vadd.f32 %v5654_v15, %v5542_v11  ;;  %v5544_v22 = vpop.f32.mrf.mxu0 }
  0xfd   : > { %v5545_v24 = vadd.f32 %v5544_v22, %v5543_v16  ;;  %v5656_v25 = vpop.f32.mrf.mxu1  ;;  %v5182_v22 = vcombine.low %v636_v53, %v644_v54 }
  0xfe   : > { %v5657_v26 = vadd.f32 %v5656_v25, %v5655_v18  ;;  %v5546_v27 = vpop.f32.mrf.mxu0  ;;  %3421 = vmatmul.mubr.bf16.gmra.mxu0 %v5134_v17  ;;  %v653_v17 = vld [vmem:[%s6739_s22 + $0x718] sm:$0xff]  ;;  %v5199_v25 = vcombine.high %v652_v13, %v660_v14 }
  0xff   : > { %v5658_v28 = vpop.f32.mrf.mxu1  ;;  %3582 = vmatmul.mubr.bf16.gmra.mxu1 %v5136_v19  ;;  %3428 = vmatprep.mubr.bf16.mxu0 %v5151_v20  ;;  %v661_v18 = vld [vmem:[%s6739_s22 + $0x758] sm:$0xff] }
 0x100   : > { %v7063_v29 = vadd.f32 %v5657_v26, %v5545_v24  ;;  %v5547_v30 = vpop.f32.mrf.mxu0  ;;  %3589 = vmatprep.mubr.bf16.mxu1 %v5153_v23  ;;  %v5184_v24 = vcombine.low %v637_v57, %v645_v58 }
 0x101   : > { %v5548_v33 = vadd.f32 %v5547_v30, %v5546_v27  ;;  %v5659_v34 = vpop.f32.mrf.mxu1 }
 0x102   : > { %v5660_v37 = vadd.f32 %v5659_v34, %v5658_v28  ;;  %v5549_v38 = vpop.f32.mrf.mxu0  ;;  %v5201_v28 = vcombine.high %v653_v17, %v661_v18 }
 0x103   : > { %v5661_v40 = vpop.f32.mrf.mxu1 }
 0x104   : > { %v7069_v43 = vadd.f32 %v5660_v37, %v5548_v33  ;;  %v5550_v44 = vpop.f32.mrf.mxu0  ;;  %v668_v37 = vld [vmem:[%s6739_s22 + $0x790] sm:$0xff] }
 0x105   : > { %v5551_v46 = vadd.f32 %v5550_v44, %v5549_v38  ;;  %v5662_v47 = vpop.f32.mrf.mxu1  ;;  %v676_v38 = vld [vmem:[%s6739_s22 + $0x7d0] sm:$0xff] }
 0x106   : > { %v5663_v48 = vadd.f32 %v5662_v47, %v5661_v40  ;;  %v5552_v49 = vpop.f32.mrf.mxu0  ;;  %3429 = vmatmul.mubr.bf16.gmra.mxu0 %v5150_v39 }
 0x107   : > { %v5664_v50 = vpop.f32.mrf.mxu1  ;;  %3590 = vmatmul.mubr.bf16.gmra.mxu1 %v5152_v41  ;;  %3436 = vmatprep.mubr.bf16.mxu0 %v5167_v42  ;;  %v669_v41 = vld [vmem:[%s6739_s22 + $0x798] sm:$0xff] }
 0x108   : > { %v7071_v51 = vadd.f32 %v5663_v48, %v5551_v46  ;;  %v5553_v52 = vpop.f32.mrf.mxu0  ;;  %3597 = vmatprep.mubr.bf16.mxu1 %v5169_v45  ;;  %v677_v42 = vld [vmem:[%s6739_s22 + $0x7d8] sm:$0xff]  ;;  %v5198_v46 = vcombine.low %v652_v13, %v660_v14  ;;  %v5200_v48 = vcombine.low %v653_v17, %v661_v18 }
 0x109   : > { %v5554_v55 = vadd.f32 %v5553_v52, %v5552_v49  ;;  %v5665_v56 = vpop.f32.mrf.mxu1  ;;  %v5215_v49 = vcombine.high %v668_v37, %v676_v38  ;;  %v5217_v53 = vcombine.high %v669_v41, %v677_v42 }
 0x10a   : > { %v5666_v59 = vadd.f32 %v5665_v56, %v5664_v50  ;;  %v5555_v60 = vpop.f32.mrf.mxu0 }
 0x10b   : > { %v5667_v62 = vpop.f32.mrf.mxu1 }
 0x10c   : > { %v7077_v2 = vadd.f32 %v5666_v59, %v5554_v55  ;;  %v5556_v3 = vpop.f32.mrf.mxu0 }
 0x10d   : > { %v5557_v5 = vadd.f32 %v5556_v3, %v5555_v60  ;;  %v5668_v6 = vpop.f32.mrf.mxu1  ;;  %v431_v3 = vld [vmem:[%s6739_s22 + $0x28] sm:$0xff] }
 0x10e   : > { %v5669_v8 = vadd.f32 %v5668_v6, %v5667_v62  ;;  %v5558_v9 = vpop.f32.mrf.mxu0  ;;  %3437 = vmatmul.mubr.bf16.gmra.mxu0 %v5166_v61  ;;  %v430_v61 = vld [vmem:[%s6739_s22 + $0x20] sm:$0xff] }
 0x10f   : > { %v5670_v10 = vpop.f32.mrf.mxu1  ;;  %3598 = vmatmul.mubr.bf16.gmra.mxu1 %v5168_v0  ;;  %3444 = vmatprep.mubr.bf16.mxu0 %v5183_v1  ;;  %v438_v62 = vld [vmem:[%s6739_s22 + $0x60] sm:$0xff] }
 0x110   : > { %v7079_v11 = vadd.f32 %v5669_v8, %v5557_v5  ;;  %v5559_v12 = vpop.f32.mrf.mxu0  ;;  %3605 = vmatprep.mubr.bf16.mxu1 %v5185_v4  ;;  %v439_v4 = vld [vmem:[%s6739_s22 + $0x68] sm:$0xff]  ;;  %v5214_v8 = vcombine.low %v668_v37, %v676_v38  ;;  %v6535_v38 = vld [vmem:[%s8056_s1 + $0x338] sm:$0xff]  }
 0x111   : > { %v5560_v15 = vadd.f32 %v5559_v12, %v5558_v9  ;;  %v5671_v16 = vpop.f32.mrf.mxu1  ;;  %v4979_v12 = vcombine.high %v430_v61, %v438_v62  ;;  %v4980_v37 = vcombine.low %v431_v3, %v439_v4 }
 0x112   : > { %v5672_v19 = vadd.f32 %v5671_v16, %v5670_v10  ;;  %v5561_v20 = vpop.f32.mrf.mxu0  ;;  %v5216_v10 = vcombine.low %v669_v41, %v677_v42  ;;  %v6537_v41 = vld [vmem:[%s8056_s1 + $0x3b8] sm:$0xff]  }
 0x113   : > { %v5673_v23 = vpop.f32.mrf.mxu1 }
 0x114   : > { %v7085_v26 = vadd.f32 %v5672_v19, %v5560_v15  ;;  %v5562_v27 = vpop.f32.mrf.mxu0  ;;  %v4981_v15 = vcombine.high %v431_v3, %v439_v4  ;;  %v7144_v3 = vld [vmem:[%s6739_s22 + $0x168] sm:$0xff] }
 0x115   : > { %v5563_v30 = vadd.f32 %v5562_v27, %v5561_v20  ;;  %v5674_v31 = vpop.f32.mrf.mxu1  ;;  %v446_v27 = vld [vmem:[%s6739_s22 + $0xa0] sm:$0xff]  ;;  %v6544_v4 = vld [vmem:[%s8056_s1 + $0x3e8] sm:$0xff]  }
 0x116   : > { %v5675_v32 = vadd.f32 %v5674_v31, %v5673_v23  ;;  %v5564_v33 = vpop.f32.mrf.mxu0  ;;  %3445 = vmatmul.mubr.bf16.gmra.mxu0 %v5182_v22 }
 0x117   : > { %v5676_v34 = vpop.f32.mrf.mxu1  ;;  %3606 = vmatmul.mubr.bf16.gmra.mxu1 %v5184_v24  ;;  %3452 = vmatprep.mubr.bf16.mxu0 %v5199_v25 }
 0x118   : > { %v7087_v35 = vadd.f32 %v5675_v32, %v5563_v30  ;;  %v5565_v36 = vpop.f32.mrf.mxu0  ;;  %3613 = vmatprep.mubr.bf16.mxu1 %v5201_v28  ;;  %v454_v28 = vld [vmem:[%s6739_s22 + $0xe0] sm:$0xff]  ;;  %v4978_v32 = vcombine.low %v430_v61, %v438_v62  ;;  %v6542_v61 = vld [vmem:[%s8056_s1 + $0x368] sm:$0xff]  }
 0x119   : > { %v5566_v39 = vadd.f32 %v5565_v36, %v5564_v33  ;;  %v5677_v40 = vpop.f32.mrf.mxu1  ;;  %v447_v33 = vld [vmem:[%s6739_s22 + $0xa8] sm:$0xff]  ;;  %v4995_v42 = vcombine.high %v446_v27, %v454_v28 }
 0x11a   : > { %v5678_v44 = vadd.f32 %v5677_v40, %v5676_v34  ;;  %v5567_v45 = vpop.f32.mrf.mxu0  ;;  %v455_v34 = vld [vmem:[%s6739_s22 + $0xe8] sm:$0xff] }
 0x11b   : > { %v5679_v47 = vpop.f32.mrf.mxu1 }
 0x11c   : > { %v7093_v50 = vadd.f32 %v5678_v44, %v5566_v39  ;;  %v5568_v52 = vpop.f32.mrf.mxu0 }
 0x11d   : > { %v5569_v54 = vadd.f32 %v5568_v52, %v5567_v45  ;;  %v5680_v55 = vpop.f32.mrf.mxu1  ;;  %v6540_v52 = vld [vmem:[%s8056_s1 + $0x3f0] sm:$0xff]  }
 0x11e   : > { %v5681_v56 = vadd.f32 %v5680_v55, %v5679_v47  ;;  %v5570_v57 = vpop.f32.mrf.mxu0  ;;  %3453 = vmatmul.mubr.bf16.gmra.mxu0 %v5198_v46  ;;  %v4997_v46 = vcombine.high %v447_v33, %v455_v34  ;;  %v6538_v47 = vld [vmem:[%s8056_s1 + $0x370] sm:$0xff]  }
 0x11f   : > { %v5682_v58 = vpop.f32.mrf.mxu1  ;;  %3614 = vmatmul.mubr.bf16.gmra.mxu1 %v5200_v48  ;;  %3460 = vmatprep.mubr.bf16.mxu0 %v5215_v49  ;;  %v6539_v55 = vld [vmem:[%s8056_s1 + $0x330] sm:$0xff]  }
 0x120   : > { %v7095_v59 = vadd.f32 %v5681_v56, %v5569_v54  ;;  %v5571_v60 = vpop.f32.mrf.mxu0  ;;  %3621 = vmatprep.mubr.bf16.mxu1 %v5217_v53  ;;  %v7124_v54 = vld [vmem:[%s6739_s22 + $0x120] sm:$0xff] }
 0x121   : > { %v5572_v0 = vadd.f32 %v5571_v60, %v5570_v57  ;;  %v5683_v1 = vpop.f32.mrf.mxu1  ;;  %v6541_v60 = vld [vmem:[%s8056_s1 + $0x3b0] sm:$0xff]  }
 0x122   : > { %v5684_v5 = vadd.f32 %v5683_v1, %v5682_v58  ;;  %v5573_v6 = vpop.f32.mrf.mxu0  ;;  %v7132_v58 = vld [vmem:[%s6739_s22 + $0x160] sm:$0xff]  ;;  %v7141_v1 = vld [vmem:[%s6739_s22 + $0x128] sm:$0xff] }
 0x123   : > { %v5685_v9 = vpop.f32.mrf.mxu1 }
 0x124   : > { %v7101_v13 = vadd.f32 %v5684_v5, %v5572_v0  ;;  %v5574_v14 = vpop.f32.mrf.mxu0 }
 0x125   : > { %v5575_v16 = vadd.f32 %v5574_v14, %v5573_v6  ;;  %v5686_v17 = vpop.f32.mrf.mxu1 }
 0x126   : > { %v5687_v18 = vadd.f32 %v5686_v17, %v5685_v9  ;;  %v5576_v19 = vpop.f32.mrf.mxu0  ;;  %3461 = vmatmul.mubr.bf16.gmra.mxu0 %v5214_v8  ;;  %v4994_v8 = vcombine.low %v446_v27, %v454_v28  ;;  %v6543_v17 = vld [vmem:[%s8056_s1 + $0x328] sm:$0xff]   ;;  %v6548_v27 = vld [vmem:[%s8056_s1 + $0x3e0] sm:$0xff]  }
 0x127   : > { %v5688_v20 = vpop.f32.mrf.mxu1  ;;  %3622 = vmatmul.mubr.bf16.gmra.mxu1 %v5216_v10  ;;  %3662 = vmatprep.mubr.bf16.mxu0 %v4979_v12  ;;  %v4996_v10 = vcombine.low %v447_v33, %v455_v34  ;;  %v5011_v12 = vcombine.high %v7124_v54, %v7132_v58  ;;  %v7173_v33 = vld [vmem:[%s6739_s22 + $0x1e0] sm:$0xff]  ;;  %v7176_v34 = vld [vmem:[%s6739_s22 + $0x1a8] sm:$0xff] }
 0x128   : > { %v7103_v22 = vadd.f32 %v5687_v18, %v5575_v16  ;;  %v5577_v23 = vpop.f32.mrf.mxu0  ;;  %3823 = vmatprep.mubr.bf16.mxu1 %v4981_v15  ;;  %v5013_v16 = vcombine.high %v7141_v1, %v7144_v3 }
 0x129   : > { %v5578_v24 = vadd.f32 %v5577_v23, %v5576_v19  ;;  %v5689_v25 = vpop.f32.mrf.mxu1  ;;  %v6546_v23 = vld [vmem:[%s8056_s1 + $0x360] sm:$0xff]  }
 0x12a   : > { %v5690_v30 = vadd.f32 %v5689_v25, %v5688_v20  ;;  %v5579_v31 = vpop.f32.mrf.mxu0  ;;  %v6545_v20 = vld [vmem:[%s8056_s1 + $0x3a8] sm:$0xff]  }
 0x12b   : > { %v5691_v36 = vpop.f32.mrf.mxu1 }
 0x12c   : > { %v7112_v39 = vadd.f32 %v5690_v30, %v5578_v24  ;;  %v5580_v40 = vpop.f32.mrf.mxu0  ;;  %v7168_v30 = vld [vmem:[%s6739_s22 + $0x1a0] sm:$0xff] }
 0x12d   : > { %v5581_v44 = vadd.f32 %v5580_v40, %v5579_v31  ;;  %v5692_v45 = vpop.f32.mrf.mxu1  ;;  %v7182_v40 = vld [vmem:[%s6739_s22 + $0x1e8] sm:$0xff] }
 0x12e   : > { %v5693_v48 = vadd.f32 %v5692_v45, %v5691_v36  ;;  %v5582_v49 = vpop.f32.mrf.mxu0  ;;  %3663 = vmatmul.mubr.bf16.vlgmr.msra.gmra.mxu0 %v4978_v32  ;;  %v6547_v36 = vld [vmem:[%s8056_s1 + $0x320] sm:$0xff]  }
 0x12f   : > { %v5694_v53 = vpop.f32.mrf.mxu1  ;;  %3824 = vmatmul.mubr.bf16.vlgmr.msra.gmra.mxu1 %v4980_v37  ;;  %6191 = vmatpush3.bf16.msra.mxu0 %v6535_v38 }
 0x130   : > { %v7129_v56 = vadd.f32 %v5693_v48, %v5581_v44  ;;  %v5583_v57 = vpop.f32.mrf.mxu0  ;;  %6303 = vmatpush3.bf16.msra.mxu1 %v6537_v41  ;;  %3670 = vmatprep.mubr.bf16.mxu0 %v4995_v42  ;;  %v6549_v41 = vld [vmem:[%s8056_s1 + $0x3a0] sm:$0xff]   ;;  %v6550_v42 = vld [vmem:[%s8056_s1 + $0x358] sm:$0xff]  }
 0x131   : > { %v5584_v62 = vadd.f32 %v5583_v57, %v5582_v49  ;;  %v5695_v0 = vpop.f32.mrf.mxu1  ;;  %3831 = vmatprep.mubr.bf16.mxu1 %v4997_v46  ;;  %6192 = vmatprep.subr.bf16.mxu0 %v6538_v47  ;;  %v5010_v46 = vcombine.low %v7124_v54, %v7132_v58  ;;  %v6552_v47 = vld [vmem:[%s8056_s1 + $0x3d8] sm:$0xff]   ;;  %v5012_v49 = vcombine.low %v7141_v1, %v7144_v3  ;;  %v6556_v3 = vld [vmem:[%s8056_s1 + $0x3d0] sm:$0xff]  }
 0x132   : > { %v5696_v5 = vadd.f32 %v5695_v0, %v5694_v53  ;;  %v5585_v6 = vpop.f32.mrf.mxu0  ;;  %6304 = vmatprep.subr.bf16.mxu1 %v6540_v52  ;;  %v5027_v52 = vcombine.high %v7168_v30, %v7173_v33  ;;  %v5029_v57 = vcombine.high %v7176_v34, %v7182_v40  ;;  %v6551_v54 = vld [vmem:[%s8056_s1 + $0x318] sm:$0xff]  }
 0x133   : > { %v5697_v9 = vpop.f32.mrf.mxu1  ;;  %6193 = vmatpush3.bf16.msra.mxu0 %v6539_v55 }
 0x134   : > { %v7151_v14 = vadd.f32 %v5696_v5, %v5584_v62  ;;  %v5586_v15 = vpop.f32.mrf.mxu0  ;;  %6305 = vmatpush3.bf16.msra.mxu1 %v6541_v60  ;;  %6194 = vmatprep.subr.bf16.mxu0 %v6542_v61  ;;  %v6553_v61 = vld [vmem:[%s8056_s1 + $0x398] sm:$0xff]   ;;  %v6554_v62 = vld [vmem:[%s8056_s1 + $0x350] sm:$0xff]   ;;  %v7216_v5 = vld [vmem:[%s6739_s22 + $0x220] sm:$0xff] }
 0x135   : > { %v5587_v18 = vadd.f32 %v5586_v15, %v5585_v6  ;;  %v5698_v19 = vpop.f32.mrf.mxu1  ;;  %6306 = vmatprep.subr.bf16.mxu1 %v6544_v4 }
 0x136   : > { %v5699_v24 = vadd.f32 %v5698_v19, %v5697_v9  ;;  %v5588_v25 = vpop.f32.mrf.mxu0  ;;  %3671 = vmatmul.mubr.bf16.gmra.mxu0 %v4994_v8  ;;  %v7221_v9 = vld [vmem:[%s6739_s22 + $0x260] sm:$0xff]  ;;  %v6558_v19 = vld [vmem:[%s8056_s1 + $0x348] sm:$0xff]  }
 0x137   : > { %v5700_v28 = vpop.f32.mrf.mxu1  ;;  %3832 = vmatmul.mubr.bf16.gmra.mxu1 %v4996_v10  ;;  %3678 = vmatprep.mubr.bf16.mxu0 %v5011_v12  ;;  %v7224_v10 = vld [vmem:[%s6739_s22 + $0x228] sm:$0xff]  ;;  %v6555_v12 = vld [vmem:[%s8056_s1 + $0x310] sm:$0xff]  }
 0x138   : > { %v7170_v31 = vadd.f32 %v5699_v24, %v5587_v18  ;;  %v5589_v32 = vpop.f32.mrf.mxu0  ;;  %3839 = vmatprep.mubr.bf16.mxu1 %v5013_v16  ;;  %6195 = vmatpush3.bf16.msra.mxu0 %v6543_v17  ;;  %v7230_v17 = vld [vmem:[%s6739_s22 + $0x268] sm:$0xff]  ;;  %v6557_v18 = vld [vmem:[%s8056_s1 + $0x390] sm:$0xff]   ;;  %v5026_v24 = vcombine.low %v7168_v30, %v7173_v33 }
 0x139   : > { %v5590_v37 = vadd.f32 %v5589_v32, %v5588_v25  ;;  %v5701_v38 = vpop.f32.mrf.mxu1  ;;  %6307 = vmatpush3.bf16.msra.mxu1 %v6545_v20  ;;  %6196 = vmatprep.subr.bf16.mxu0 %v6546_v23  ;;  %v6560_v25 = vld [vmem:[%s8056_s1 + $0x3c8] sm:$0xff]   ;;  %v5043_v32 = vcombine.high %v7216_v5, %v7221_v9 }
 0x13a   : > { %v5702_v44 = vadd.f32 %v5701_v38, %v5700_v28  ;;  %v5591_v45 = vpop.f32.mrf.mxu0  ;;  %6308 = vmatprep.subr.bf16.mxu1 %v6548_v27  ;;  %v5028_v28 = vcombine.low %v7176_v34, %v7182_v40  ;;  %v5045_v38 = vcombine.high %v7224_v10, %v7230_v17  ;;  %v6559_v30 = vld [vmem:[%s8056_s1 + $0x308] sm:$0xff]   ;;  %v6562_v40 = vld [vmem:[%s8056_s1 + $0x340] sm:$0xff]  }
 0x13b   : > { %v5703_v48 = vpop.f32.mrf.mxu1  ;;  %v6561_v34 = vld [vmem:[%s8056_s1 + $0x388] sm:$0xff]  }
 0x13c   : > { %v7199_v53 = vadd.f32 %v5702_v44, %v5590_v37  ;;  %v5592_v55 = vpop.f32.mrf.mxu0  ;;  %6197 = vmatpush3.bf16.msra.mxu0 %v6547_v36 }
 0x13d   : > { %v5593_v58 = vadd.f32 %v5592_v55, %v5591_v45  ;;  %v5704_v60 = vpop.f32.mrf.mxu1  ;;  %6309 = vmatpush3.bf16.msra.mxu1 %v6549_v41  ;;  %6198 = vmatprep.subr.bf16.mxu0 %v6550_v42  ;;  %v6564_v45 = vld [vmem:[%s8056_s1 + $0x3c0] sm:$0xff]  }
 0x13e   : > { %v5705_v0 = vadd.f32 %v5704_v60, %v5703_v48  ;;  %v5594_v1 = vpop.f32.mrf.mxu0  ;;  %3679 = vmatmul.mubr.bf16.gmra.mxu0 %v5010_v46  ;;  %6310 = vmatprep.subr.bf16.mxu1 %v6552_v47  ;;  %v6563_v55 = vld [vmem:[%s8056_s1 + $0x300] sm:$0xff]   ;;  %v519_v60 = vld [vmem:[%s6739_s22 + $0x2e8] sm:$0xff] }
 0x13f   : > { %v5706_v4 = vpop.f32.mrf.mxu1  ;;  %3840 = vmatmul.mubr.bf16.gmra.mxu1 %v5012_v49  ;;  %3686 = vmatprep.mubr.bf16.mxu0 %v5027_v52  ;;  %v510_v49 = vld [vmem:[%s6739_s22 + $0x2a0] sm:$0xff] }
 0x140   : > { %v7218_v6 = vadd.f32 %v5705_v0, %v5593_v58  ;;  %v5595_v8 = vpop.f32.mrf.mxu0  ;;  %3847 = vmatprep.mubr.bf16.mxu1 %v5029_v57  ;;  %6199 = vmatpush3.bf16.msra.mxu0 %v6551_v54  ;;  %v518_v52 = vld [vmem:[%s6739_s22 + $0x2e0] sm:$0xff]  ;;  %v511_v58 = vld [vmem:[%s6739_s22 + $0x2a8] sm:$0xff] }
 0x141   : > { %v5596_v15 = vadd.f32 %v5595_v8, %v5594_v1  ;;  %v5707_v16 = vpop.f32.mrf.mxu1  ;;  %6311 = vmatpush3.bf16.msra.mxu1 %v6553_v61  ;;  %6200 = vmatprep.subr.bf16.mxu0 %v6554_v62  ;;  %v6565_v61 = vld [vmem:[%s8056_s1 + $0x380] sm:$0xff]   ;;  %v5042_v1 = vcombine.low %v7216_v5, %v7221_v9  ;;  %v5059_v8 = vcombine.high %v510_v49, %v518_v52 }
 0x142   : > { %v5708_v20 = vadd.f32 %v5707_v16, %v5706_v4  ;;  %v5597_v23 = vpop.f32.mrf.mxu0  ;;  %6312 = vmatprep.subr.bf16.mxu1 %v6556_v3  ;;  %v5044_v4 = vcombine.low %v7224_v10, %v7230_v17  ;;  %v5061_v16 = vcombine.high %v511_v58, %v519_v60 }
 0x143   : > { %v5709_v27 = vpop.f32.mrf.mxu1 }
 0x144   : > { %v7247_v36 = vadd.f32 %v5708_v20, %v5596_v15  ;;  %v5598_v37 = vpop.f32.mrf.mxu0  ;;  %6201 = vmatpush3.bf16.msra.mxu0 %v6555_v12 }
 0x145   : > { %v5599_v33 = vadd.f32 %v5598_v37, %v5597_v23  ;;  %v5710_v41 = vpop.f32.mrf.mxu1  ;;  %6313 = vmatpush3.bf16.msra.mxu1 %v6557_v18  ;;  %6202 = vmatprep.subr.bf16.mxu0 %v6558_v19  ;;  %v526_v23 = vld [vmem:[%s6739_s22 + $0x320] sm:$0xff] }
 0x146   : > { %v5711_v42 = vadd.f32 %v5710_v41, %v5709_v27  ;;  %v5600_v44 = vpop.f32.mrf.mxu0  ;;  %3687 = vmatmul.mubr.bf16.gmra.mxu0 %v5026_v24  ;;  %6314 = vmatprep.subr.bf16.mxu1 %v6560_v25  ;;  %v534_v24 = vld [vmem:[%s6739_s22 + $0x360] sm:$0xff]  ;;  %v5060_v41 = vcombine.low %v511_v58, %v519_v60 }
 0x147   : > { %v5712_v46 = vpop.f32.mrf.mxu1  ;;  %3848 = vmatmul.mubr.bf16.gmra.mxu1 %v5028_v28  ;;  %3694 = vmatprep.mubr.bf16.mxu0 %v5043_v32  ;;  %v527_v28 = vld [vmem:[%s6739_s22 + $0x328] sm:$0xff]  ;;  %v550_v58 = vld [vmem:[%s6739_s22 + $0x3e0] sm:$0xff] }
 0x148   : > { %v7263_v47 = vadd.f32 %v5711_v42, %v5599_v33  ;;  %v5601_v48 = vpop.f32.mrf.mxu0  ;;  %3855 = vmatprep.mubr.bf16.mxu1 %v5045_v38  ;;  %6203 = vmatpush3.bf16.msra.mxu0 %v6559_v30  ;;  %v535_v32 = vld [vmem:[%s6739_s22 + $0x368] sm:$0xff]  ;;  %v5058_v30 = vcombine.low %v510_v49, %v518_v52 }
 0x149   : > { %v5602_v57 = vadd.f32 %v5601_v48, %v5600_v44  ;;  %v5713_v54 = vpop.f32.mrf.mxu1  ;;  %6315 = vmatpush3.bf16.msra.mxu1 %v6561_v34  ;;  %6204 = vmatprep.subr.bf16.mxu0 %v6562_v40  ;;  %v5075_v34 = vcombine.high %v526_v23, %v534_v24  ;;  %v5077_v44 = vcombine.high %v527_v28, %v535_v32 }
 0x14a   : > { %v5714_v62 = vadd.f32 %v5713_v54, %v5712_v46  ;;  %v5603_v0 = vpop.f32.mrf.mxu0  ;;  %6316 = vmatprep.subr.bf16.mxu1 %v6564_v45  ;;  %v542_v54 = vld [vmem:[%s6739_s22 + $0x3a0] sm:$0xff] }
 0x14b   : > { %v5715_v3 = vpop.f32.mrf.mxu1 }
 0x14c   : > { %v7279_v12 = vadd.f32 %v5714_v62, %v5602_v57  ;;  %v5604_v15 = vpop.f32.mrf.mxu0  ;;  %6205 = vmatpush3.bf16.msra.mxu0 %v6563_v55  ;;  %v543_v62 = vld [vmem:[%s6739_s22 + $0x3a8] sm:$0xff] }
 0x14d   : > { %v5605_v18 = vadd.f32 %v5604_v15, %v5603_v0  ;;  %v5716_v19 = vpop.f32.mrf.mxu1  ;;  %6317 = vmatpush3.bf16.msra.mxu1 %v6565_v61  ;;  %v551_v0 = vld [vmem:[%s6739_s22 + $0x3e8] sm:$0xff]  ;;  %v5076_v15 = vcombine.low %v527_v28, %v535_v32  ;;  %v558_v28 = vld [vmem:[%s6739_s22 + $0x420] sm:$0xff] }
 0x14e   : > { %v5717_v20 = vadd.f32 %v5716_v19, %v5715_v3  ;;  %v5606_v5 = vpop.f32.mrf.mxu0  ;;  %3695 = vmatmul.mubr.bf16.gmra.mxu0 %v5042_v1  ;;  %v566_v32 = vld [vmem:[%s6739_s22 + $0x460] sm:$0xff] }
 0x14f   : > { %v5718_v9 = vpop.f32.mrf.mxu1  ;;  %3856 = vmatmul.mubr.bf16.gmra.mxu1 %v5044_v4  ;;  %3702 = vmatprep.mubr.bf16.mxu0 %v5059_v8  ;;  %v5074_v4 = vcombine.low %v526_v23, %v534_v24 }
 0x150   : > { %v7281_v10 = vadd.f32 %v5717_v20, %v5605_v18  ;;  %v5607_v17 = vpop.f32.mrf.mxu0  ;;  %3863 = vmatprep.mubr.bf16.mxu1 %v5061_v16  ;;  %v5091_v16 = vcombine.high %v542_v54, %v550_v58  ;;  %v5093_v20 = vcombine.high %v543_v62, %v551_v0 }
 0x151   : > { %v5608_v25 = vadd.f32 %v5607_v17, %v5606_v5  ;;  %v5719_v27 = vpop.f32.mrf.mxu1 }
 0x152   : > { %v5720_v37 = vadd.f32 %v5719_v27, %v5718_v9  ;;  %v5609_v38 = vpop.f32.mrf.mxu0 }
 0x153   : > { %v5721_v33 = vpop.f32.mrf.mxu1 }
 0x154   : > { %v7287_v40 = vadd.f32 %v5720_v37, %v5608_v25  ;;  %v5610_v42 = vpop.f32.mrf.mxu0 }
 0x155   : > { %v5611_v45 = vadd.f32 %v5610_v42, %v5609_v38  ;;  %v5722_v46 = vpop.f32.mrf.mxu1  ;;  %v5090_v42 = vcombine.low %v542_v54, %v550_v58 }
 0x156   : > { %v5723_v48 = vadd.f32 %v5722_v46, %v5721_v33  ;;  %v5612_v55 = vpop.f32.mrf.mxu0  ;;  %3703 = vmatmul.mubr.bf16.gmra.mxu0 %v5058_v30  ;;  %v559_v30 = vld [vmem:[%s6739_s22 + $0x428] sm:$0xff]  ;;  %v5107_v46 = vcombine.high %v558_v28, %v566_v32 }
 0x157   : > { %v5724_v57 = vpop.f32.mrf.mxu1  ;;  %3864 = vmatmul.mubr.bf16.gmra.mxu1 %v5060_v41  ;;  %3710 = vmatprep.mubr.bf16.mxu0 %v5075_v34  ;;  %v567_v33 = vld [vmem:[%s6739_s22 + $0x468] sm:$0xff] }
 0x158   : > { %v7289_v49 = vadd.f32 %v5723_v48, %v5611_v45  ;;  %v5613_v52 = vpop.f32.mrf.mxu0  ;;  %3871 = vmatprep.mubr.bf16.mxu1 %v5077_v44  ;;  %v5092_v45 = vcombine.low %v543_v62, %v551_v0  ;;  %v574_v62 = vld [vmem:[%s6739_s22 + $0x4a0] sm:$0xff] }
 0x159   : > { %v5614_v60 = vadd.f32 %v5613_v52, %v5612_v55  ;;  %v5725_v61 = vpop.f32.mrf.mxu1  ;;  %v582_v0 = vld [vmem:[%s6739_s22 + $0x4e0] sm:$0xff] }
 0x15a   : > { %v5726_v1 = vadd.f32 %v5725_v61, %v5724_v57  ;;  %v5615_v3 = vpop.f32.mrf.mxu0  ;;  %v5109_v57 = vcombine.high %v559_v30, %v567_v33 }
 0x15b   : > { %v5727_v8 = vpop.f32.mrf.mxu1 }
 0x15c   : > { %v7295_v18 = vadd.f32 %v5726_v1, %v5614_v60  ;;  %v5616_v19 = vpop.f32.mrf.mxu0 }
 0x15d   : > { %v5617_v5 = vadd.f32 %v5616_v19, %v5615_v3  ;;  %v5728_v9 = vpop.f32.mrf.mxu1 }
 0x15e   : > { %v5729_v17 = vadd.f32 %v5728_v9, %v5727_v8  ;;  %v5618_v25 = vpop.f32.mrf.mxu0  ;;  %3711 = vmatmul.mubr.bf16.gmra.mxu0 %v5074_v4 }
 0x15f   : > { %v5730_v27 = vpop.f32.mrf.mxu1  ;;  %3872 = vmatmul.mubr.bf16.gmra.mxu1 %v5076_v15  ;;  %3718 = vmatprep.mubr.bf16.mxu0 %v5091_v16  ;;  %v575_v15 = vld [vmem:[%s6739_s22 + $0x4a8] sm:$0xff] }
 0x160   : > { %v7297_v23 = vadd.f32 %v5729_v17, %v5617_v5  ;;  %v5619_v24 = vpop.f32.mrf.mxu0  ;;  %3879 = vmatprep.mubr.bf16.mxu1 %v5093_v20  ;;  %v583_v16 = vld [vmem:[%s6739_s22 + $0x4e8] sm:$0xff]  ;;  %v5106_v5 = vcombine.low %v558_v28, %v566_v32  ;;  %v5108_v17 = vcombine.low %v559_v30, %v567_v33  ;;  %v590_v30 = vld [vmem:[%s6739_s22 + $0x520] sm:$0xff] }
 0x161   : > { %v5620_v37 = vadd.f32 %v5619_v24, %v5618_v25  ;;  %v5731_v38 = vpop.f32.mrf.mxu1  ;;  %v5123_v25 = vcombine.high %v574_v62, %v582_v0  ;;  %v598_v33 = vld [vmem:[%s6739_s22 + $0x560] sm:$0xff] }
 0x162   : > { %v5732_v41 = vadd.f32 %v5731_v38, %v5730_v27  ;;  %v5621_v34 = vpop.f32.mrf.mxu0 }
 0x163   : > { %v5733_v44 = vpop.f32.mrf.mxu1 }
 0x164   : > { %v7303_v48 = vadd.f32 %v5732_v41, %v5620_v37  ;;  %v5622_v55 = vpop.f32.mrf.mxu0  ;;  %v5125_v37 = vcombine.high %v575_v15, %v583_v16 }
 0x165   : > { %v5623_v52 = vadd.f32 %v5622_v55, %v5621_v34  ;;  %v5734_v60 = vpop.f32.mrf.mxu1  ;;  %v591_v55 = vld [vmem:[%s6739_s22 + $0x528] sm:$0xff] }
 0x166   : > { %v5735_v61 = vadd.f32 %v5734_v60, %v5733_v44  ;;  %v5624_v1 = vpop.f32.mrf.mxu0  ;;  %3719 = vmatmul.mubr.bf16.gmra.mxu0 %v5090_v42 }
 0x167   : > { %v5736_v3 = vpop.f32.mrf.mxu1  ;;  %3880 = vmatmul.mubr.bf16.gmra.mxu1 %v5092_v45  ;;  %3726 = vmatprep.mubr.bf16.mxu0 %v5107_v46 }
 0x168   : > { %v7305_v54 = vadd.f32 %v5735_v61, %v5623_v52  ;;  %v5625_v58 = vpop.f32.mrf.mxu0  ;;  %3887 = vmatprep.mubr.bf16.mxu1 %v5109_v57  ;;  %v599_v57 = vld [vmem:[%s6739_s22 + $0x568] sm:$0xff]  ;;  %v5122_v61 = vcombine.low %v574_v62, %v582_v0 }
 0x169   : > { %v5626_v4 = vadd.f32 %v5625_v58, %v5624_v1  ;;  %v5737_v8 = vpop.f32.mrf.mxu1  ;;  %v5124_v58 = vcombine.low %v575_v15, %v583_v16  ;;  %v606_v15 = vld [vmem:[%s6739_s22 + $0x5a0] sm:$0xff] }
 0x16a   : > { %v5738_v19 = vadd.f32 %v5737_v8, %v5736_v3  ;;  %v5627_v20 = vpop.f32.mrf.mxu0  ;;  %v614_v16 = vld [vmem:[%s6739_s22 + $0x5e0] sm:$0xff] }
 0x16b   : > { %v5739_v9 = vpop.f32.mrf.mxu1 }
 0x16c   : > { %v7311_v27 = vadd.f32 %v5738_v19, %v5626_v4  ;;  %v5628_v24 = vpop.f32.mrf.mxu0  ;;  %v5139_v4 = vcombine.high %v590_v30, %v598_v33  ;;  %v5141_v19 = vcombine.high %v591_v55, %v599_v57 }
 0x16d   : > { %v5629_v38 = vadd.f32 %v5628_v24, %v5627_v20  ;;  %v5740_v41 = vpop.f32.mrf.mxu1 }
 0x16e   : > { %v5741_v34 = vadd.f32 %v5740_v41, %v5739_v9  ;;  %v5758_v42 = vpop.f32.mrf.mxu0  ;;  %3727 = vmatmul.mubr.bf16.gmra.mxu0 %v5106_v5  ;;  %v607_v41 = vld [vmem:[%s6739_s22 + $0x5a8] sm:$0xff] }
 0x16f   : > { %v5870_v44 = vpop.f32.mrf.mxu1  ;;  %3888 = vmatmul.mubr.bf16.gmra.mxu1 %v5108_v17  ;;  %3734 = vmatprep.mubr.bf16.mxu0 %v5123_v25 }
 0x170   : > { %v7313_v28 = vadd.f32 %v5741_v34, %v5629_v38  ;;  %v5759_v32 = vpop.f32.mrf.mxu0  ;;  %3895 = vmatprep.mubr.bf16.mxu1 %v5125_v37  ;;  %v615_v34 = vld [vmem:[%s6739_s22 + $0x5e8] sm:$0xff] }
 0x171   : > { %v5760_v45 = vadd.f32 %v5759_v32, %v5758_v42  ;;  %v5871_v46 = vpop.f32.mrf.mxu1  ;;  %v5138_v32 = vcombine.low %v590_v30, %v598_v33 }
 0x172   : > { %v5872_v52 = vadd.f32 %v5871_v46, %v5870_v44  ;;  %v5761_v60 = vpop.f32.mrf.mxu0 }
 0x173   : > { %v3343_v1 = vadd.f32 %v5760_v45, %v7053_v63  ;;  %v5873_v3 = vpop.f32.mrf.mxu1 }
 0x174   : > { %v5762_v8 = vpop.f32.mrf.mxu0 }
 0x175   : > { %v7320_v20 = vadd.f32 %v5872_v52, %v3343_v1  ;;  %v5763_v5 = vadd.f32 %v5762_v8, %v5761_v60  ;;  %v5874_v9 = vpop.f32.mrf.mxu1  ;;  %v5155_v52 = vcombine.high %v606_v15, %v614_v16 }
 0x176   : > { %v5875_v17 = vadd.f32 %v5874_v9, %v5873_v3  ;;  %v5764_v25 = vpop.f32.mrf.mxu0  ;;  %3735 = vmatmul.mubr.bf16.gmra.mxu0 %v5122_v61  ;;  %v5157_v61 = vcombine.high %v607_v41, %v615_v34 }
 0x177   : > { %v3346_v62 = vadd.f32 %v5763_v5, %v7055_v7  ;;  %v5876_v0 = vpop.f32.mrf.mxu1  ;;  %3896 = vmatmul.mubr.bf16.gmra.mxu1 %v5124_v58  ;;  %3742 = vmatprep.mubr.bf16.mxu0 %v5139_v4  ;;  %v5140_v7 = vcombine.low %v591_v55, %v599_v57  ;;  %v622_v55 = vld [vmem:[%s6739_s22 + $0x620] sm:$0xff] }
 0x178   : > { %v5765_v63 = vpop.f32.mrf.mxu0  ;;  %3903 = vmatprep.mubr.bf16.mxu1 %v5141_v19  ;;  %v630_v57 = vld [vmem:[%s6739_s22 + $0x660] sm:$0xff] }
 0x179   : > { %v7325_v24 = vadd.f32 %v5875_v17, %v3346_v62  ;;  %v5766_v37 = vadd.f32 %v5765_v63, %v5764_v25  ;;  %v5877_v38 = vpop.f32.mrf.mxu1  ;;  %v623_v17 = vld [vmem:[%s6739_s22 + $0x628] sm:$0xff]  ;;  %v5154_v63 = vcombine.low %v606_v15, %v614_v16 }
 0x17a   : > { %v5878_v42 = vadd.f32 %v5877_v38, %v5876_v0  ;;  %v5767_v44 = vpop.f32.mrf.mxu0  ;;  %v631_v25 = vld [vmem:[%s6739_s22 + $0x668] sm:$0xff] }
 0x17b   : > { %v3351_v45 = vadd.f32 %v5766_v37, %v7061_v21  ;;  %v5879_v46 = vpop.f32.mrf.mxu1 }
 0x17c   : > { %v5768_v60 = vpop.f32.mrf.mxu0 }
 0x17d   : > { %v7330_v1 = vadd.f32 %v5878_v42, %v3351_v45  ;;  %v5769_v3 = vadd.f32 %v5768_v60, %v5767_v44  ;;  %v5880_v58 = vpop.f32.mrf.mxu1  ;;  %v5171_v42 = vcombine.high %v622_v55, %v630_v57 }
 0x17e   : > { %v5881_v4 = vadd.f32 %v5880_v58, %v5879_v46  ;;  %v5770_v8 = vpop.f32.mrf.mxu0  ;;  %3743 = vmatmul.mubr.bf16.gmra.mxu0 %v5138_v32  ;;  %v5173_v32 = vcombine.high %v623_v17, %v631_v25 }
 0x17f   : > { %v3354_v30 = vadd.f32 %v5769_v3, %v7063_v29  ;;  %v5882_v33 = vpop.f32.mrf.mxu1  ;;  %3904 = vmatmul.mubr.bf16.gmra.mxu1 %v5140_v7  ;;  %3750 = vmatprep.mubr.bf16.mxu0 %v5155_v52  ;;  %v5156_v29 = vcombine.low %v607_v41, %v615_v34  ;;  %v638_v41 = vld [vmem:[%s6739_s22 + $0x6a0] sm:$0xff] }
 0x180   : > { %v5771_v21 = vpop.f32.mrf.mxu0  ;;  %3911 = vmatprep.mubr.bf16.mxu1 %v5157_v61  ;;  %v646_v34 = vld [vmem:[%s6739_s22 + $0x6e0] sm:$0xff] }
 0x181   : > { %v7335_v19 = vadd.f32 %v5881_v4, %v3354_v30  ;;  %v5772_v5 = vadd.f32 %v5771_v21, %v5770_v8  ;;  %v5883_v9 = vpop.f32.mrf.mxu1  ;;  %v639_v4 = vld [vmem:[%s6739_s22 + $0x6a8] sm:$0xff]  ;;  %v5170_v21 = vcombine.low %v622_v55, %v630_v57 }
 0x182   : > { %v5884_v62 = vadd.f32 %v5883_v9, %v5882_v33  ;;  %v5773_v0 = vpop.f32.mrf.mxu0  ;;  %v647_v8 = vld [vmem:[%s6739_s22 + $0x6e8] sm:$0xff] }
 0x183   : > { %v3359_v37 = vadd.f32 %v5772_v5, %v7069_v43  ;;  %v5885_v38 = vpop.f32.mrf.mxu1 }
 0x184   : > { %v5774_v44 = vpop.f32.mrf.mxu0 }
 0x185   : > { %v7340_v45 = vadd.f32 %v5884_v62, %v3359_v37  ;;  %v5775_v46 = vadd.f32 %v5774_v44, %v5773_v0  ;;  %v5886_v7 = vpop.f32.mrf.mxu1  ;;  %v5187_v62 = vcombine.high %v638_v41, %v646_v34 }
 0x186   : > { %v5887_v52 = vadd.f32 %v5886_v7, %v5885_v38  ;;  %v5776_v60 = vpop.f32.mrf.mxu0  ;;  %3751 = vmatmul.mubr.bf16.gmra.mxu0 %v5154_v63  ;;  %v5189_v63 = vcombine.high %v639_v4, %v647_v8 }
 0x187   : > { %v3362_v15 = vadd.f32 %v5775_v46, %v7071_v51  ;;  %v5888_v16 = vpop.f32.mrf.mxu1  ;;  %3912 = vmatmul.mubr.bf16.gmra.mxu1 %v5156_v29  ;;  %3758 = vmatprep.mubr.bf16.mxu0 %v5171_v42  ;;  %v5172_v51 = vcombine.low %v623_v17, %v631_v25  ;;  %v654_v17 = vld [vmem:[%s6739_s22 + $0x720] sm:$0xff] }
 0x188   : > { %v5777_v43 = vpop.f32.mrf.mxu0  ;;  %3919 = vmatprep.mubr.bf16.mxu1 %v5173_v32  ;;  %v662_v25 = vld [vmem:[%s6739_s22 + $0x760] sm:$0xff] }
 0x189   : > { %v7345_v61 = vadd.f32 %v5887_v52, %v3362_v15  ;;  %v5778_v3 = vadd.f32 %v5777_v43, %v5776_v60  ;;  %v5889_v58 = vpop.f32.mrf.mxu1  ;;  %v655_v52 = vld [vmem:[%s6739_s22 + $0x728] sm:$0xff]  ;;  %v5186_v43 = vcombine.low %v638_v41, %v646_v34 }
 0x18a   : > { %v5890_v30 = vadd.f32 %v5889_v58, %v5888_v16  ;;  %v5779_v33 = vpop.f32.mrf.mxu0  ;;  %v663_v60 = vld [vmem:[%s6739_s22 + $0x768] sm:$0xff] }
 0x18b   : > { %v3367_v5 = vadd.f32 %v5778_v3, %v7077_v2  ;;  %v5891_v9 = vpop.f32.mrf.mxu1 }
 0x18c   : > { %v5780_v0 = vpop.f32.mrf.mxu0 }
 0x18d   : > { %v7350_v37 = vadd.f32 %v5890_v30, %v3367_v5  ;;  %v5781_v38 = vadd.f32 %v5780_v0, %v5779_v33  ;;  %v5892_v29 = vpop.f32.mrf.mxu1  ;;  %v5203_v30 = vcombine.high %v654_v17, %v662_v25 }
 0x18e   : > { %v5893_v42 = vadd.f32 %v5892_v29, %v5891_v9  ;;  %v5782_v44 = vpop.f32.mrf.mxu0  ;;  %3759 = vmatmul.mubr.bf16.gmra.mxu0 %v5170_v21  ;;  %v5205_v21 = vcombine.high %v655_v52, %v663_v60 }
 0x18f   : > { %v3370_v55 = vadd.f32 %v5781_v38, %v7079_v11  ;;  %v5894_v57 = vpop.f32.mrf.mxu1  ;;  %3920 = vmatmul.mubr.bf16.gmra.mxu1 %v5172_v51  ;;  %3766 = vmatprep.mubr.bf16.mxu0 %v5187_v62  ;;  %v5188_v11 = vcombine.low %v639_v4, %v647_v8  ;;  %v670_v4 = vld [vmem:[%s6739_s22 + $0x7a0] sm:$0xff] }
 0x190   : > { %v5783_v2 = vpop.f32.mrf.mxu0  ;;  %3927 = vmatprep.mubr.bf16.mxu1 %v5189_v63  ;;  %v678_v8 = vld [vmem:[%s6739_s22 + $0x7e0] sm:$0xff] }
 0x191   : > { %v7355_v32 = vadd.f32 %v5893_v42, %v3370_v55  ;;  %v5784_v46 = vadd.f32 %v5783_v2, %v5782_v44  ;;  %v5895_v7 = vpop.f32.mrf.mxu1  ;;  %v671_v42 = vld [vmem:[%s6739_s22 + $0x7a8] sm:$0xff]  ;;  %v5202_v2 = vcombine.low %v654_v17, %v662_v25 }
 0x192   : > { %v5896_v15 = vadd.f32 %v5895_v7, %v5894_v57  ;;  %v5785_v16 = vpop.f32.mrf.mxu0  ;;  %v679_v44 = vld [vmem:[%s6739_s22 + $0x7e8] sm:$0xff] }
 0x193   : > { %v3375_v3 = vadd.f32 %v5784_v46, %v7085_v26  ;;  %v5897_v58 = vpop.f32.mrf.mxu1 }
 0x194   : > { %v5786_v33 = vpop.f32.mrf.mxu0 }
 0x195   : > { %v7360_v5 = vadd.f32 %v5896_v15, %v3375_v3  ;;  %v5787_v9 = vadd.f32 %v5786_v33, %v5785_v16  ;;  %v5898_v51 = vpop.f32.mrf.mxu1  ;;  %v5219_v15 = vcombine.high %v670_v4, %v678_v8 }
 0x196   : > { %v5899_v62 = vadd.f32 %v5898_v51, %v5897_v58  ;;  %v5788_v0 = vpop.f32.mrf.mxu0  ;;  %3767 = vmatmul.mubr.bf16.gmra.mxu0 %v5186_v43  ;;  %v5221_v43 = vcombine.high %v671_v42, %v679_v44 }
 0x197   : > { %v3378_v41 = vadd.f32 %v5787_v9, %v7087_v35  ;;  %v5900_v34 = vpop.f32.mrf.mxu1  ;;  %3928 = vmatmul.mubr.bf16.gmra.mxu1 %v5188_v11  ;;  %3774 = vmatprep.mubr.bf16.mxu0 %v5203_v30  ;;  %v5204_v35 = vcombine.low %v655_v52, %v663_v60  ;;  %v432_v52 = vld [vmem:[%s6739_s22 + $0x30] sm:$0xff] }
 0x198   : > { %v5789_v26 = vpop.f32.mrf.mxu0  ;;  %3935 = vmatprep.mubr.bf16.mxu1 %v5205_v21  ;;  %v440_v60 = vld [vmem:[%s6739_s22 + $0x70] sm:$0xff] }
 0x199   : > { %v7365_v63 = vadd.f32 %v5899_v62, %v3378_v41  ;;  %v5790_v38 = vadd.f32 %v5789_v26, %v5788_v0  ;;  %v5901_v29 = vpop.f32.mrf.mxu1  ;;  %v433_v62 = vld [vmem:[%s6739_s22 + $0x38] sm:$0xff]  ;;  %v5218_v26 = vcombine.low %v670_v4, %v678_v8 }
 0x19a   : > { %v5902_v55 = vadd.f32 %v5901_v29, %v5900_v34  ;;  %v5791_v57 = vpop.f32.mrf.mxu0  ;;  %v441_v0 = vld [vmem:[%s6739_s22 + $0x78] sm:$0xff] }
 0x19b   : > { %v3383_v46 = vadd.f32 %v5790_v38, %v7093_v50  ;;  %v5903_v7 = vpop.f32.mrf.mxu1 }
 0x19c   : > { %v5792_v16 = vpop.f32.mrf.mxu0 }
 0x19d   : > { %v7370_v3 = vadd.f32 %v5902_v55, %v3383_v46  ;;  %v5793_v58 = vadd.f32 %v5792_v16, %v5791_v57  ;;  %v5904_v11 = vpop.f32.mrf.mxu1  ;;  %v4983_v55 = vcombine.high %v432_v52, %v440_v60 }
 0x19e   : > { %v5905_v30 = vadd.f32 %v5904_v11, %v5903_v7  ;;  %v5794_v33 = vpop.f32.mrf.mxu0  ;;  %3775 = vmatmul.mubr.bf16.gmra.mxu0 %v5202_v2  ;;  %v4985_v2 = vcombine.high %v433_v62, %v441_v0 }
 0x19f   : > { %v3386_v17 = vadd.f32 %v5793_v58, %v7095_v59  ;;  %v5906_v25 = vpop.f32.mrf.mxu1  ;;  %3936 = vmatmul.mubr.bf16.gmra.mxu1 %v5204_v35  ;;  %3782 = vmatprep.mubr.bf16.mxu0 %v5219_v15  ;;  %v5220_v59 = vcombine.low %v671_v42, %v679_v44  ;;  %v448_v42 = vld [vmem:[%s6739_s22 + $0xb0] sm:$0xff] }
 0x1a0   : > { %v5795_v50 = vpop.f32.mrf.mxu0  ;;  %3943 = vmatprep.mubr.bf16.mxu1 %v5221_v43  ;;  %v456_v44 = vld [vmem:[%s6739_s22 + $0xf0] sm:$0xff] }
 0x1a1   : > { %v7375_v21 = vadd.f32 %v5905_v30, %v3386_v17  ;;  %v5796_v9 = vadd.f32 %v5795_v50, %v5794_v33  ;;  %v5907_v51 = vpop.f32.mrf.mxu1  ;;  %v449_v30 = vld [vmem:[%s6739_s22 + $0xb8] sm:$0xff]  ;;  %v4982_v50 = vcombine.low %v432_v52, %v440_v60 }
 0x1a2   : > { %v5908_v41 = vadd.f32 %v5907_v51, %v5906_v25  ;;  %v5797_v34 = vpop.f32.mrf.mxu0  ;;  %v457_v33 = vld [vmem:[%s6739_s22 + $0xf8] sm:$0xff] }
 0x1a3   : > { %v3391_v38 = vadd.f32 %v5796_v9, %v7101_v13  ;;  %v5909_v29 = vpop.f32.mrf.mxu1 }
 0x1a4   : > { %v5798_v57 = vpop.f32.mrf.mxu0 }
 0x1a5   : > { %v7380_v46 = vadd.f32 %v5908_v41, %v3391_v38  ;;  %v5799_v7 = vadd.f32 %v5798_v57, %v5797_v34  ;;  %v5910_v35 = vpop.f32.mrf.mxu1  ;;  %v4999_v41 = vcombine.high %v448_v42, %v456_v44 }
 0x1a6   : > { %v5911_v15 = vadd.f32 %v5910_v35, %v5909_v29  ;;  %v5800_v16 = vpop.f32.mrf.mxu0  ;;  %3783 = vmatmul.mubr.bf16.gmra.mxu0 %v5218_v26  ;;  %v5001_v26 = vcombine.high %v449_v30, %v457_v33 }
 0x1a7   : > { %v3394_v4 = vadd.f32 %v5799_v7, %v7103_v22  ;;  %v5912_v8 = vpop.f32.mrf.mxu1  ;;  %3944 = vmatmul.mubr.bf16.gmra.mxu1 %v5220_v59  ;;  %3984 = vmatprep.mubr.bf16.mxu0 %v4983_v55  ;;  %v4984_v22 = vcombine.low %v433_v62, %v441_v0  ;;  %v464_v62 = vld [vmem:[%s6739_s22 + $0x130] sm:$0xff] }
 0x1a8   : > { %v5801_v13 = vpop.f32.mrf.mxu0  ;;  %4145 = vmatprep.mubr.bf16.mxu1 %v4985_v2  ;;  %v472_v0 = vld [vmem:[%s6739_s22 + $0x170] sm:$0xff] }
 0x1a9   : > { %v7385_v43 = vadd.f32 %v5911_v15, %v3394_v4  ;;  %v5802_v58 = vadd.f32 %v5801_v13, %v5800_v16  ;;  %v5913_v11 = vpop.f32.mrf.mxu1  ;;  %v465_v15 = vld [vmem:[%s6739_s22 + $0x138] sm:$0xff]  ;;  %v4998_v13 = vcombine.low %v448_v42, %v456_v44 }
 0x1aa   : > { %v5914_v17 = vadd.f32 %v5913_v11, %v5912_v8  ;;  %v5803_v25 = vpop.f32.mrf.mxu0  ;;  %v473_v16 = vld [vmem:[%s6739_s22 + $0x178] sm:$0xff] }
 0x1ab   : > { %v3399_v9 = vadd.f32 %v5802_v58, %v7112_v39  ;;  %v5915_v51 = vpop.f32.mrf.mxu1 }
 0x1ac   : > { %v5804_v34 = vpop.f32.mrf.mxu0 }
 0x1ad   : > { %v7390_v38 = vadd.f32 %v5914_v17, %v3399_v9  ;;  %v5805_v29 = vadd.f32 %v5804_v34, %v5803_v25  ;;  %v5916_v59 = vpop.f32.mrf.mxu1  ;;  %v5015_v17 = vcombine.high %v464_v62, %v472_v0 }
 0x1ae   : > { %v5917_v55 = vadd.f32 %v5916_v59, %v5915_v51  ;;  %v5806_v57 = vpop.f32.mrf.mxu0  ;;  %3985 = vmatmul.mubr.bf16.vlgmr.msra.gmra.mxu0 %v4982_v50  ;;  %v5017_v50 = vcombine.high %v465_v15, %v473_v16 }
 0x1af   : > { %v3402_v52 = vadd.f32 %v5805_v29, %v7129_v56  ;;  %v5918_v60 = vpop.f32.mrf.mxu1  ;;  %4146 = vmatmul.mubr.bf16.vlgmr.msra.gmra.mxu1 %v4984_v22  ;;  %3992 = vmatprep.mubr.bf16.mxu0 %v4999_v41  ;;  %v5000_v56 = vcombine.low %v449_v30, %v457_v33  ;;  %v480_v30 = vld [vmem:[%s6739_s22 + $0x1b0] sm:$0xff] }
 0x1b0   : > { %v5807_v39 = vpop.f32.mrf.mxu0  ;;  %4153 = vmatprep.mubr.bf16.mxu1 %v5001_v26  ;;  %v488_v33 = vld [vmem:[%s6739_s22 + $0x1f0] sm:$0xff] }
 0x1b1   : > { %v7395_v2 = vadd.f32 %v5917_v55, %v3402_v52  ;;  %v5808_v7 = vadd.f32 %v5807_v39, %v5806_v57  ;;  %v5919_v35 = vpop.f32.mrf.mxu1  ;;  %v481_v55 = vld [vmem:[%s6739_s22 + $0x1b8] sm:$0xff]  ;;  %v5014_v39 = vcombine.low %v464_v62, %v472_v0 }
 0x1b2   : > { %v5920_v4 = vadd.f32 %v5919_v35, %v5918_v60  ;;  %v5809_v8 = vpop.f32.mrf.mxu0  ;;  %v489_v57 = vld [vmem:[%s6739_s22 + $0x1f8] sm:$0xff] }
 0x1b3   : > { %v3407_v58 = vadd.f32 %v5808_v7, %v7151_v14  ;;  %v5921_v11 = vpop.f32.mrf.mxu1 }
 0x1b4   : > { %v5810_v25 = vpop.f32.mrf.mxu0 }
 0x1b5   : > { %v7400_v9 = vadd.f32 %v5920_v4, %v3407_v58  ;;  %v5811_v51 = vadd.f32 %v5810_v25, %v5809_v8  ;;  %v5922_v22 = vpop.f32.mrf.mxu1  ;;  %v5031_v4 = vcombine.high %v480_v30, %v488_v33 }
 0x1b6   : > { %v5923_v41 = vadd.f32 %v5922_v22, %v5921_v11  ;;  %v5812_v34 = vpop.f32.mrf.mxu0  ;;  %3993 = vmatmul.mubr.bf16.gmra.mxu0 %v4998_v13  ;;  %v5033_v13 = vcombine.high %v481_v55, %v489_v57 }
 0x1b7   : > { %v3410_v42 = vadd.f32 %v5811_v51, %v7170_v31  ;;  %v5924_v44 = vpop.f32.mrf.mxu1  ;;  %4154 = vmatmul.mubr.bf16.gmra.mxu1 %v5000_v56  ;;  %4000 = vmatprep.mubr.bf16.mxu0 %v5015_v17  ;;  %v5016_v31 = vcombine.low %v465_v15, %v473_v16  ;;  %v496_v15 = vld [vmem:[%s6739_s22 + $0x230] sm:$0xff] }
 0x1b8   : > { %v5813_v14 = vpop.f32.mrf.mxu0  ;;  %4161 = vmatprep.mubr.bf16.mxu1 %v5017_v50  ;;  %v504_v16 = vld [vmem:[%s6739_s22 + $0x270] sm:$0xff] }
 0x1b9   : > { %v7405_v26 = vadd.f32 %v5923_v41, %v3410_v42  ;;  %v5814_v29 = vadd.f32 %v5813_v14, %v5812_v34  ;;  %v5925_v59 = vpop.f32.mrf.mxu1  ;;  %v497_v41 = vld [vmem:[%s6739_s22 + $0x238] sm:$0xff]  ;;  %v5030_v14 = vcombine.low %v480_v30, %v488_v33 }
 0x1ba   : > { %v5926_v52 = vadd.f32 %v5925_v59, %v5924_v44  ;;  %v5815_v60 = vpop.f32.mrf.mxu0  ;;  %v505_v34 = vld [vmem:[%s6739_s22 + $0x278] sm:$0xff] }
 0x1bb   : > { %v3415_v7 = vadd.f32 %v5814_v29, %v7199_v53  ;;  %v5927_v35 = vpop.f32.mrf.mxu1 }
 0x1bc   : > { %v5816_v8 = vpop.f32.mrf.mxu0 }
 0x1bd   : > { %v7410_v58 = vadd.f32 %v5926_v52, %v3415_v7  ;;  %v5817_v11 = vadd.f32 %v5816_v8, %v5815_v60  ;;  %v5928_v56 = vpop.f32.mrf.mxu1  ;;  %v5047_v52 = vcombine.high %v496_v15, %v504_v16 }
 0x1be   : > { %v5929_v17 = vadd.f32 %v5928_v56, %v5927_v35  ;;  %v5818_v25 = vpop.f32.mrf.mxu0  ;;  %4001 = vmatmul.mubr.bf16.gmra.mxu0 %v5014_v39  ;;  %v5049_v39 = vcombine.high %v497_v41, %v505_v34 }
 0x1bf   : > { %v3418_v62 = vadd.f32 %v5817_v11, %v7218_v6  ;;  %v5930_v0 = vpop.f32.mrf.mxu1  ;;  %4162 = vmatmul.mubr.bf16.gmra.mxu1 %v5016_v31  ;;  %4008 = vmatprep.mubr.bf16.mxu0 %v5031_v4  ;;  %v5032_v6 = vcombine.low %v481_v55, %v489_v57  ;;  %v512_v55 = vld [vmem:[%s6739_s22 + $0x2b0] sm:$0xff] }
 0x1c0   : > { %v5819_v53 = vpop.f32.mrf.mxu0  ;;  %4169 = vmatprep.mubr.bf16.mxu1 %v5033_v13  ;;  %v520_v57 = vld [vmem:[%s6739_s22 + $0x2f0] sm:$0xff] }
 0x1c1   : > { %v7415_v50 = vadd.f32 %v5929_v17, %v3418_v62  ;;  %v5820_v51 = vadd.f32 %v5819_v53, %v5818_v25  ;;  %v5931_v22 = vpop.f32.mrf.mxu1  ;;  %v513_v17 = vld [vmem:[%s6739_s22 + $0x2b8] sm:$0xff]  ;;  %v5046_v53 = vcombine.low %v496_v15, %v504_v16 }
 0x1c2   : > { %v5932_v42 = vadd.f32 %v5931_v22, %v5930_v0  ;;  %v5821_v44 = vpop.f32.mrf.mxu0  ;;  %v521_v25 = vld [vmem:[%s6739_s22 + $0x2f8] sm:$0xff] }
 0x1c3   : > { %v3423_v29 = vadd.f32 %v5820_v51, %v7247_v36  ;;  %v5933_v59 = vpop.f32.mrf.mxu1 }
 0x1c4   : > { %v5822_v60 = vpop.f32.mrf.mxu0 }
 0x1c5   : > { %v7420_v7 = vadd.f32 %v5932_v42, %v3423_v29  ;;  %v5823_v35 = vadd.f32 %v5822_v60, %v5821_v44  ;;  %v5934_v31 = vpop.f32.mrf.mxu1  ;;  %v5063_v42 = vcombine.high %v512_v55, %v520_v57 }
 0x1c6   : > { %v5935_v4 = vadd.f32 %v5934_v31, %v5933_v59  ;;  %v5824_v8 = vpop.f32.mrf.mxu0  ;;  %4009 = vmatmul.mubr.bf16.gmra.mxu0 %v5030_v14  ;;  %v5065_v14 = vcombine.high %v513_v17, %v521_v25 }
 0x1c7   : > { %v3426_v30 = vadd.f32 %v5823_v35, %v7263_v47  ;;  %v5936_v33 = vpop.f32.mrf.mxu1  ;;  %4170 = vmatmul.mubr.bf16.gmra.mxu1 %v5032_v6  ;;  %4016 = vmatprep.mubr.bf16.mxu0 %v5047_v52  ;;  %v5048_v47 = vcombine.low %v497_v41, %v505_v34  ;;  %v528_v41 = vld [vmem:[%s6739_s22 + $0x330] sm:$0xff] }
 0x1c8   : > { %v5825_v36 = vpop.f32.mrf.mxu0  ;;  %4177 = vmatprep.mubr.bf16.mxu1 %v5049_v39  ;;  %v536_v34 = vld [vmem:[%s6739_s22 + $0x370] sm:$0xff] }
 0x1c9   : > { %v7425_v13 = vadd.f32 %v5935_v4, %v3426_v30  ;;  %v5826_v11 = vadd.f32 %v5825_v36, %v5824_v8  ;;  %v5937_v56 = vpop.f32.mrf.mxu1  ;;  %v529_v4 = vld [vmem:[%s6739_s22 + $0x338] sm:$0xff]  ;;  %v5062_v36 = vcombine.low %v512_v55, %v520_v57 }
 0x1ca   : > { %v5938_v62 = vadd.f32 %v5937_v56, %v5936_v33  ;;  %v5827_v0 = vpop.f32.mrf.mxu0  ;;  %v537_v8 = vld [vmem:[%s6739_s22 + $0x378] sm:$0xff] }
 0x1cb   : > { %v3431_v51 = vadd.f32 %v5826_v11, %v7279_v12  ;;  %v5939_v22 = vpop.f32.mrf.mxu1 }
 0x1cc   : > { %v5828_v44 = vpop.f32.mrf.mxu0 }
 0x1cd   : > { %v7430_v29 = vadd.f32 %v5938_v62, %v3431_v51  ;;  %v5829_v59 = vadd.f32 %v5828_v44, %v5827_v0  ;;  %v5940_v6 = vpop.f32.mrf.mxu1  ;;  %v5079_v62 = vcombine.high %v528_v41, %v536_v34 }
 0x1ce   : > { %v5941_v52 = vadd.f32 %v5940_v6, %v5939_v22  ;;  %v5830_v60 = vpop.f32.mrf.mxu0  ;;  %4017 = vmatmul.mubr.bf16.gmra.mxu0 %v5046_v53  ;;  %v5081_v53 = vcombine.high %v529_v4, %v537_v8 }
 0x1cf   : > { %v3434_v15 = vadd.f32 %v5829_v59, %v7281_v10  ;;  %v5942_v16 = vpop.f32.mrf.mxu1  ;;  %4178 = vmatmul.mubr.bf16.gmra.mxu1 %v5048_v47  ;;  %4024 = vmatprep.mubr.bf16.mxu0 %v5063_v42  ;;  %v5064_v10 = vcombine.low %v513_v17, %v521_v25  ;;  %v544_v17 = vld [vmem:[%s6739_s22 + $0x3b0] sm:$0xff] }
 0x1d0   : > { %v5831_v12 = vpop.f32.mrf.mxu0  ;;  %4185 = vmatprep.mubr.bf16.mxu1 %v5065_v14  ;;  %v552_v25 = vld [vmem:[%s6739_s22 + $0x3f0] sm:$0xff] }
 0x1d1   : > { %v7435_v39 = vadd.f32 %v5941_v52, %v3434_v15  ;;  %v5832_v35 = vadd.f32 %v5831_v12, %v5830_v60  ;;  %v5943_v31 = vpop.f32.mrf.mxu1  ;;  %v545_v52 = vld [vmem:[%s6739_s22 + $0x3b8] sm:$0xff]  ;;  %v5078_v12 = vcombine.low %v528_v41, %v536_v34 }
 0x1d2   : > { %v5944_v30 = vadd.f32 %v5943_v31, %v5942_v16  ;;  %v5833_v33 = vpop.f32.mrf.mxu0  ;;  %v553_v60 = vld [vmem:[%s6739_s22 + $0x3f8] sm:$0xff] }
 0x1d3   : > { %v3439_v11 = vadd.f32 %v5832_v35, %v7287_v40  ;;  %v5945_v56 = vpop.f32.mrf.mxu1 }
 0x1d4   : > { %v5834_v0 = vpop.f32.mrf.mxu0 }
 0x1d5   : > { %v7440_v51 = vadd.f32 %v5944_v30, %v3439_v11  ;;  %v5835_v22 = vadd.f32 %v5834_v0, %v5833_v33  ;;  %v5946_v47 = vpop.f32.mrf.mxu1  ;;  %v5095_v30 = vcombine.high %v544_v17, %v552_v25 }
 0x1d6   : > { %v5947_v42 = vadd.f32 %v5946_v47, %v5945_v56  ;;  %v5836_v44 = vpop.f32.mrf.mxu0  ;;  %4025 = vmatmul.mubr.bf16.gmra.mxu0 %v5062_v36  ;;  %v5097_v36 = vcombine.high %v545_v52, %v553_v60 }
 0x1d7   : > { %v3442_v55 = vadd.f32 %v5835_v22, %v7289_v49  ;;  %v5948_v57 = vpop.f32.mrf.mxu1  ;;  %4186 = vmatmul.mubr.bf16.gmra.mxu1 %v5064_v10  ;;  %4032 = vmatprep.mubr.bf16.mxu0 %v5079_v62  ;;  %v5080_v49 = vcombine.low %v529_v4, %v537_v8  ;;  %v560_v4 = vld [vmem:[%s6739_s22 + $0x430] sm:$0xff] }
 0x1d8   : > { %v5837_v40 = vpop.f32.mrf.mxu0  ;;  %4193 = vmatprep.mubr.bf16.mxu1 %v5081_v53  ;;  %v568_v8 = vld [vmem:[%s6739_s22 + $0x470] sm:$0xff] }
 0x1d9   : > { %v7445_v14 = vadd.f32 %v5947_v42, %v3442_v55  ;;  %v5838_v59 = vadd.f32 %v5837_v40, %v5836_v44  ;;  %v5949_v6 = vpop.f32.mrf.mxu1  ;;  %v561_v42 = vld [vmem:[%s6739_s22 + $0x438] sm:$0xff]  ;;  %v5094_v40 = vcombine.low %v544_v17, %v552_v25 }
 0x1da   : > { %v5950_v15 = vadd.f32 %v5949_v6, %v5948_v57  ;;  %v5839_v16 = vpop.f32.mrf.mxu0  ;;  %v569_v44 = vld [vmem:[%s6739_s22 + $0x478] sm:$0xff] }
 0x1db   : > { %v3447_v35 = vadd.f32 %v5838_v59, %v7295_v18  ;;  %v5951_v31 = vpop.f32.mrf.mxu1 }
 0x1dc   : > { %v5840_v33 = vpop.f32.mrf.mxu0 }
 0x1dd   : > { %v7450_v11 = vadd.f32 %v5950_v15, %v3447_v35  ;;  %v5841_v56 = vadd.f32 %v5840_v33, %v5839_v16  ;;  %v5952_v10 = vpop.f32.mrf.mxu1  ;;  %v5111_v15 = vcombine.high %v560_v4, %v568_v8 }
 0x1de   : > { %v5953_v62 = vadd.f32 %v5952_v10, %v5951_v31  ;;  %v5842_v0 = vpop.f32.mrf.mxu0  ;;  %4033 = vmatmul.mubr.bf16.gmra.mxu0 %v5078_v12  ;;  %v5113_v12 = vcombine.high %v561_v42, %v569_v44 }
 0x1df   : > { %v3450_v41 = vadd.f32 %v5841_v56, %v7297_v23  ;;  %v5954_v34 = vpop.f32.mrf.mxu1  ;;  %4194 = vmatmul.mubr.bf16.gmra.mxu1 %v5080_v49  ;;  %4040 = vmatprep.mubr.bf16.mxu0 %v5095_v30  ;;  %v5096_v23 = vcombine.low %v545_v52, %v553_v60  ;;  %v576_v52 = vld [vmem:[%s6739_s22 + $0x4b0] sm:$0xff] }
 0x1e0   : > { %v5843_v18 = vpop.f32.mrf.mxu0  ;;  %4201 = vmatprep.mubr.bf16.mxu1 %v5097_v36  ;;  %v584_v60 = vld [vmem:[%s6739_s22 + $0x4f0] sm:$0xff] }
 0x1e1   : > { %v7455_v53 = vadd.f32 %v5953_v62, %v3450_v41  ;;  %v5844_v22 = vadd.f32 %v5843_v18, %v5842_v0  ;;  %v5955_v47 = vpop.f32.mrf.mxu1  ;;  %v577_v62 = vld [vmem:[%s6739_s22 + $0x4b8] sm:$0xff]  ;;  %v5110_v18 = vcombine.low %v560_v4, %v568_v8 }
 0x1e2   : > { %v5956_v55 = vadd.f32 %v5955_v47, %v5954_v34  ;;  %v5845_v57 = vpop.f32.mrf.mxu0  ;;  %v585_v0 = vld [vmem:[%s6739_s22 + $0x4f8] sm:$0xff] }
 0x1e3   : > { %v3455_v59 = vadd.f32 %v5844_v22, %v7303_v48  ;;  %v5957_v6 = vpop.f32.mrf.mxu1 }
 0x1e4   : > { %v5846_v16 = vpop.f32.mrf.mxu0 }
 0x1e5   : > { %v7460_v35 = vadd.f32 %v5956_v55, %v3455_v59  ;;  %v5847_v31 = vadd.f32 %v5846_v16, %v5845_v57  ;;  %v5958_v49 = vpop.f32.mrf.mxu1  ;;  %v5127_v55 = vcombine.high %v576_v52, %v584_v60 }
 0x1e6   : > { %v5959_v30 = vadd.f32 %v5958_v49, %v5957_v6  ;;  %v5848_v33 = vpop.f32.mrf.mxu0  ;;  %4041 = vmatmul.mubr.bf16.gmra.mxu0 %v5094_v40  ;;  %v5129_v40 = vcombine.high %v577_v62, %v585_v0 }
 0x1e7   : > { %v3458_v17 = vadd.f32 %v5847_v31, %v7305_v54  ;;  %v5960_v25 = vpop.f32.mrf.mxu1  ;;  %4202 = vmatmul.mubr.bf16.gmra.mxu1 %v5096_v23  ;;  %4048 = vmatprep.mubr.bf16.mxu0 %v5111_v15  ;;  %v5112_v54 = vcombine.low %v561_v42, %v569_v44  ;;  %v592_v42 = vld [vmem:[%s6739_s22 + $0x530] sm:$0xff] }
 0x1e8   : > { %v5849_v48 = vpop.f32.mrf.mxu0  ;;  %4209 = vmatprep.mubr.bf16.mxu1 %v5113_v12  ;;  %v600_v44 = vld [vmem:[%s6739_s22 + $0x570] sm:$0xff] }
 0x1e9   : > { %v7465_v36 = vadd.f32 %v5959_v30, %v3458_v17  ;;  %v5850_v56 = vadd.f32 %v5849_v48, %v5848_v33  ;;  %v5961_v10 = vpop.f32.mrf.mxu1  ;;  %v593_v30 = vld [vmem:[%s6739_s22 + $0x538] sm:$0xff]  ;;  %v5126_v48 = vcombine.low %v576_v52, %v584_v60 }
 0x1ea   : > { %v5962_v41 = vadd.f32 %v5961_v10, %v5960_v25  ;;  %v5851_v34 = vpop.f32.mrf.mxu0  ;;  %v601_v33 = vld [vmem:[%s6739_s22 + $0x578] sm:$0xff] }
 0x1eb   : > { %v3463_v22 = vadd.f32 %v5850_v56, %v7311_v27  ;;  %v5963_v47 = vpop.f32.mrf.mxu1 }
 0x1ec   : > { %v5852_v57 = vpop.f32.mrf.mxu0 }
 0x1ed   : > { %v7470_v59 = vadd.f32 %v5962_v41, %v3463_v22  ;;  %v5853_v6 = vadd.f32 %v5852_v57, %v5851_v34  ;;  %v5964_v23 = vpop.f32.mrf.mxu1  ;;  %v5143_v41 = vcombine.high %v592_v42, %v600_v44 }
 0x1ee   : > { %v5965_v15 = vadd.f32 %v5964_v23, %v5963_v47  ;;  %v5982_v16 = vpop.f32.mrf.mxu0  ;;  %4049 = vmatmul.mubr.bf16.gmra.mxu0 %v5110_v18  ;;  %v5145_v18 = vcombine.high %v593_v30, %v601_v33 }
 0x1ef   : > { %v3466_v4 = vadd.f32 %v5853_v6, %v7313_v28  ;;  %v6094_v8 = vpop.f32.mrf.mxu1  ;;  %4210 = vmatmul.mubr.bf16.gmra.mxu1 %v5112_v54  ;;  %4056 = vmatprep.mubr.bf16.mxu0 %v5127_v55  ;;  %v5128_v28 = vcombine.low %v577_v62, %v585_v0  ;;  %v608_v62 = vld [vmem:[%s6739_s22 + $0x5b0] sm:$0xff] }
 0x1f0   : > { %v5983_v27 = vpop.f32.mrf.mxu0  ;;  %4217 = vmatprep.mubr.bf16.mxu1 %v5129_v40  ;;  %v616_v0 = vld [vmem:[%s6739_s22 + $0x5f0] sm:$0xff] }
 0x1f1   : > { %v7475_v12 = vadd.f32 %v5965_v15, %v3466_v4  ;;  %v5984_v31 = vadd.f32 %v5983_v27, %v5982_v16  ;;  %v6095_v49 = vpop.f32.mrf.mxu1  ;;  %v609_v15 = vld [vmem:[%s6739_s22 + $0x5b8] sm:$0xff]  ;;  %v5142_v27 = vcombine.low %v592_v42, %v600_v44 }
 0x1f2   : > { %v6096_v17 = vadd.f32 %v6095_v49, %v6094_v8  ;;  %v5985_v25 = vpop.f32.mrf.mxu0  ;;  %v617_v16 = vld [vmem:[%s6739_s22 + $0x5f8] sm:$0xff] }
 0x1f3   : > { %v3665_v56 = vadd.f32 %v5984_v31, %v7320_v20  ;;  %v6097_v10 = vpop.f32.mrf.mxu1 }
 0x1f4   : > { %v5986_v34 = vpop.f32.mrf.mxu0 }
 0x1f5   : > { %v7480_v22 = vadd.f32 %v6096_v17, %v3665_v56  ;;  %v5987_v47 = vadd.f32 %v5986_v34, %v5985_v25  ;;  %v6098_v54 = vpop.f32.mrf.mxu1  ;;  %v5159_v17 = vcombine.high %v608_v62, %v616_v0 }
 0x1f6   : > { %v6099_v55 = vadd.f32 %v6098_v54, %v6097_v10  ;;  %v5988_v57 = vpop.f32.mrf.mxu0  ;;  %4057 = vmatmul.mubr.bf16.gmra.mxu0 %v5126_v48  ;;  %v5161_v48 = vcombine.high %v609_v15, %v617_v16 }
 0x1f7   : > { %v3668_v52 = vadd.f32 %v5987_v47, %v7325_v24  ;;  %v6100_v60 = vpop.f32.mrf.mxu1  ;;  %4218 = vmatmul.mubr.bf16.gmra.mxu1 %v5128_v28  ;;  %4064 = vmatprep.mubr.bf16.mxu0 %v5143_v41  ;;  %v5144_v24 = vcombine.low %v593_v30, %v601_v33  ;;  %v624_v30 = vld [vmem:[%s6739_s22 + $0x630] sm:$0xff] }
 0x1f8   : > { %v5989_v20 = vpop.f32.mrf.mxu0  ;;  %4225 = vmatprep.mubr.bf16.mxu1 %v5145_v18  ;;  %v632_v33 = vld [vmem:[%s6739_s22 + $0x670] sm:$0xff] }
 0x1f9   : > { %v7485_v40 = vadd.f32 %v6099_v55, %v3668_v52  ;;  %v5990_v6 = vadd.f32 %v5989_v20, %v5988_v57  ;;  %v6101_v23 = vpop.f32.mrf.mxu1  ;;  %v625_v55 = vld [vmem:[%s6739_s22 + $0x638] sm:$0xff]  ;;  %v5158_v20 = vcombine.low %v608_v62, %v616_v0 }
 0x1fa   : > { %v6102_v4 = vadd.f32 %v6101_v23, %v6100_v60  ;;  %v5991_v8 = vpop.f32.mrf.mxu0  ;;  %v633_v57 = vld [vmem:[%s6739_s22 + $0x678] sm:$0xff] }
 0x1fb   : > { %v3673_v31 = vadd.f32 %v5990_v6, %v7330_v1  ;;  %v6103_v49 = vpop.f32.mrf.mxu1 }
 0x1fc   : > { %v5992_v25 = vpop.f32.mrf.mxu0 }
 0x1fd   : > { %v7490_v56 = vadd.f32 %v6102_v4, %v3673_v31  ;;  %v5993_v10 = vadd.f32 %v5992_v25, %v5991_v8  ;;  %v6104_v28 = vpop.f32.mrf.mxu1  ;;  %v5175_v4 = vcombine.high %v624_v30, %v632_v33 }
 0x1fe   : > { %v6105_v41 = vadd.f32 %v6104_v28, %v6103_v49  ;;  %v5994_v34 = vpop.f32.mrf.mxu0  ;;  %4065 = vmatmul.mubr.bf16.gmra.mxu0 %v5142_v27  ;;  %v5177_v27 = vcombine.high %v625_v55, %v633_v57 }
 0x1ff   : > { %v3676_v42 = vadd.f32 %v5993_v10, %v7335_v19  ;;  %v6106_v44 = vpop.f32.mrf.mxu1  ;;  %4226 = vmatmul.mubr.bf16.gmra.mxu1 %v5144_v24  ;;  %4072 = vmatprep.mubr.bf16.mxu0 %v5159_v17  ;;  %v5160_v19 = vcombine.low %v609_v15, %v617_v16  ;;  %v640_v15 = vld [vmem:[%s6739_s22 + $0x6b0] sm:$0xff] }
 0x200   : > { %v5995_v1 = vpop.f32.mrf.mxu0  ;;  %4233 = vmatprep.mubr.bf16.mxu1 %v5161_v48  ;;  %v648_v16 = vld [vmem:[%s6739_s22 + $0x6f0] sm:$0xff] }
 0x201   : > { %v7495_v18 = vadd.f32 %v6105_v41, %v3676_v42  ;;  %v5996_v47 = vadd.f32 %v5995_v1, %v5994_v34  ;;  %v6107_v54 = vpop.f32.mrf.mxu1  ;;  %v641_v41 = vld [vmem:[%s6739_s22 + $0x6b8] sm:$0xff]  ;;  %v5174_v1 = vcombine.low %v624_v30, %v632_v33 }
 0x202   : > { %v6108_v52 = vadd.f32 %v6107_v54, %v6106_v44  ;;  %v5997_v60 = vpop.f32.mrf.mxu0  ;;  %v649_v34 = vld [vmem:[%s6739_s22 + $0x6f8] sm:$0xff] }
 0x203   : > { %v3681_v6 = vadd.f32 %v5996_v47, %v7340_v45  ;;  %v6109_v23 = vpop.f32.mrf.mxu1 }
 0x204   : > { %v5998_v8 = vpop.f32.mrf.mxu0 }
 0x205   : > { %v7500_v31 = vadd.f32 %v6108_v52, %v3681_v6  ;;  %v5999_v49 = vadd.f32 %v5998_v8, %v5997_v60  ;;  %v6110_v24 = vpop.f32.mrf.mxu1  ;;  %v5191_v52 = vcombine.high %v640_v15, %v648_v16 }
 0x206   : > { %v6111_v17 = vadd.f32 %v6110_v24, %v6109_v23  ;;  %v6000_v25 = vpop.f32.mrf.mxu0  ;;  %4073 = vmatmul.mubr.bf16.gmra.mxu0 %v5158_v20  ;;  %v5193_v20 = vcombine.high %v641_v41, %v649_v34 }
 0x207   : > { %v3684_v62 = vadd.f32 %v5999_v49, %v7345_v61  ;;  %v6112_v0 = vpop.f32.mrf.mxu1  ;;  %4234 = vmatmul.mubr.bf16.gmra.mxu1 %v5160_v19  ;;  %4080 = vmatprep.mubr.bf16.mxu0 %v5175_v4  ;;  %v5176_v61 = vcombine.low %v625_v55, %v633_v57  ;;  %v656_v55 = vld [vmem:[%s6739_s22 + $0x730] sm:$0xff] }
 0x208   : > { %v6001_v45 = vpop.f32.mrf.mxu0  ;;  %4241 = vmatprep.mubr.bf16.mxu1 %v5177_v27  ;;  %v664_v57 = vld [vmem:[%s6739_s22 + $0x770] sm:$0xff] }
 0x209   : > { %v7505_v48 = vadd.f32 %v6111_v17, %v3684_v62  ;;  %v6002_v10 = vadd.f32 %v6001_v45, %v6000_v25  ;;  %v6113_v28 = vpop.f32.mrf.mxu1  ;;  %v657_v17 = vld [vmem:[%s6739_s22 + $0x738] sm:$0xff]  ;;  %v5190_v45 = vcombine.low %v640_v15, %v648_v16 }
 0x20a   : > { %v6114_v42 = vadd.f32 %v6113_v28, %v6112_v0  ;;  %v6003_v44 = vpop.f32.mrf.mxu0  ;;  %v665_v25 = vld [vmem:[%s6739_s22 + $0x778] sm:$0xff] }
 0x20b   : > { %v3689_v47 = vadd.f32 %v6002_v10, %v7350_v37  ;;  %v6115_v54 = vpop.f32.mrf.mxu1 }
 0x20c   : > { %v6004_v60 = vpop.f32.mrf.mxu0 }
 0x20d   : > { %v7510_v6 = vadd.f32 %v6114_v42, %v3689_v47  ;;  %v6005_v23 = vadd.f32 %v6004_v60, %v6003_v44  ;;  %v6116_v19 = vpop.f32.mrf.mxu1  ;;  %v5207_v42 = vcombine.high %v656_v55, %v664_v57 }
 0x20e   : > { %v6117_v4 = vadd.f32 %v6116_v19, %v6115_v54  ;;  %v6006_v8 = vpop.f32.mrf.mxu0  ;;  %4081 = vmatmul.mubr.bf16.gmra.mxu0 %v5174_v1  ;;  %v5209_v1 = vcombine.high %v657_v17, %v665_v25 }
 0x20f   : > { %v3692_v30 = vadd.f32 %v6005_v23, %v7355_v32  ;;  %v6118_v33 = vpop.f32.mrf.mxu1  ;;  %4242 = vmatmul.mubr.bf16.gmra.mxu1 %v5176_v61  ;;  %4088 = vmatprep.mubr.bf16.mxu0 %v5191_v52  ;;  %v5192_v32 = vcombine.low %v641_v41, %v649_v34  ;;  %v672_v41 = vld [vmem:[%s6739_s22 + $0x7b0] sm:$0xff] }
 0x210   : > { %v6007_v37 = vpop.f32.mrf.mxu0  ;;  %4249 = vmatprep.mubr.bf16.mxu1 %v5193_v20  ;;  %v680_v34 = vld [vmem:[%s6739_s22 + $0x7f0] sm:$0xff] }
 0x211   : > { %v7515_v27 = vadd.f32 %v6117_v4, %v3692_v30  ;;  %v6008_v49 = vadd.f32 %v6007_v37, %v6006_v8  ;;  %v6119_v24 = vpop.f32.mrf.mxu1  ;;  %v673_v4 = vld [vmem:[%s6739_s22 + $0x7b8] sm:$0xff]  ;;  %v5206_v37 = vcombine.low %v656_v55, %v664_v57 }
 0x212   : > { %v6120_v62 = vadd.f32 %v6119_v24, %v6118_v33  ;;  %v6009_v0 = vpop.f32.mrf.mxu0  ;;  %v681_v8 = vld [vmem:[%s6739_s22 + $0x7f8] sm:$0xff] }
 0x213   : > { %v3697_v10 = vadd.f32 %v6008_v49, %v7360_v5  ;;  %v6121_v28 = vpop.f32.mrf.mxu1 }
 0x214   : > { %v6010_v44 = vpop.f32.mrf.mxu0 }
 0x215   : > { %v7520_v47 = vadd.f32 %v6120_v62, %v3697_v10  ;;  %v6011_v54 = vadd.f32 %v6010_v44, %v6009_v0  ;;  %v6122_v61 = vpop.f32.mrf.mxu1  ;;  %v5223_v62 = vcombine.high %v672_v41, %v680_v34 }
 0x216   : > { %v6123_v52 = vadd.f32 %v6122_v61, %v6121_v28  ;;  %v6012_v60 = vpop.f32.mrf.mxu0  ;;  %4089 = vmatmul.mubr.bf16.gmra.mxu0 %v5190_v45  ;;  %v5225_v45 = vcombine.high %v673_v4, %v681_v8 }
 0x217   : > { %v3700_v15 = vadd.f32 %v6011_v54, %v7365_v63  ;;  %v6124_v16 = vpop.f32.mrf.mxu1  ;;  %4250 = vmatmul.mubr.bf16.gmra.mxu1 %v5192_v32  ;;  %4096 = vmatprep.mubr.bf16.mxu0 %v5207_v42  ;;  %v5208_v63 = vcombine.low %v657_v17, %v665_v25 }
 0x218   : > { %v6013_v5 = vpop.f32.mrf.mxu0  ;;  %4257 = vmatprep.mubr.bf16.mxu1 %v5209_v1 }
 0x219   : > { %v7525_v20 = vadd.f32 %v6123_v52, %v3700_v15  ;;  %v6014_v23 = vadd.f32 %v6013_v5, %v6012_v60  ;;  %v6125_v19 = vpop.f32.mrf.mxu1  ;;  %v5222_v52 = vcombine.low %v672_v41, %v680_v34 }
 0x21a   : > { %v6126_v30 = vadd.f32 %v6125_v19, %v6124_v16  ;;  %v6015_v33 = vpop.f32.mrf.mxu0  ;;  %v5224_v16 = vcombine.low %v673_v4, %v681_v8 }
 0x21b   : > { %v3705_v49 = vadd.f32 %v6014_v23, %v7370_v3  ;;  %v6127_v24 = vpop.f32.mrf.mxu1 }
 0x21c   : > { %v6016_v0 = vpop.f32.mrf.mxu0 }
 0x21d   : > { %v7530_v10 = vadd.f32 %v6126_v30, %v3705_v49  ;;  %v6017_v28 = vadd.f32 %v6016_v0, %v6015_v33  ;;  %v6128_v32 = vpop.f32.mrf.mxu1 }
 0x21e   : > { %v6129_v42 = vadd.f32 %v6128_v32, %v6127_v24  ;;  %v6018_v44 = vpop.f32.mrf.mxu0  ;;  %4097 = vmatmul.mubr.bf16.gmra.mxu0 %v5206_v37 }
 0x21f   : > { %v3708_v1 = vadd.f32 %v6017_v28, %v7375_v21  ;;  %v6130_v54 = vpop.f32.mrf.mxu1  ;;  %4258 = vmatmul.mubr.bf16.gmra.mxu1 %v5208_v63  ;;  %4104 = vmatprep.mubr.bf16.mxu0 %v5223_v62 }
 0x220   : > { %v6019_v55 = vpop.f32.mrf.mxu0  ;;  %4265 = vmatprep.mubr.bf16.mxu1 %v5225_v45 }
 0x221   : > { %v7533_v3 = vadd.f32 %v6129_v42, %v3708_v1  ;;  %v6020_v57 = vadd.f32 %v6019_v55, %v6018_v44  ;;  %v6131_v17 = vpop.f32.mrf.mxu1 }
 0x222   : > { %v6132_v25 = vadd.f32 %v6131_v17, %v6130_v54  ;;  %v6021_v61 = vpop.f32.mrf.mxu0 }
 0x223   : > { %v3713_v60 = vadd.f32 %v6020_v57, %v7380_v46  ;;  %v6133_v15 = vpop.f32.mrf.mxu1 }
 0x224   : > { %v6022_v5 = vpop.f32.mrf.mxu0 }
 0x225   : > { %v7536_v23 = vadd.f32 %v6132_v25, %v3713_v60  ;;  %v6023_v21 = vadd.f32 %v6022_v5, %v6021_v61  ;;  %v6134_v19 = vpop.f32.mrf.mxu1 }
 0x226   : > { %v6135_v30 = vadd.f32 %v6134_v19, %v6133_v15  ;;  %v6024_v33 = vpop.f32.mrf.mxu0  ;;  %4105 = vmatmul.mubr.bf16.gmra.mxu0 %v5222_v52 }
 0x227   : > { %v3716_v37 = vadd.f32 %v6023_v21, %v7385_v43  ;;  %v6136_v49 = vpop.f32.mrf.mxu1  ;;  %4266 = vmatmul.mubr.bf16.gmra.mxu1 %v5224_v16 }
 0x228   : > { %v6025_v24 = vpop.f32.mrf.mxu0 }
 0x229   : > { %v7539_v63 = vadd.f32 %v6135_v30, %v3716_v37  ;;  %v6026_v41 = vadd.f32 %v6025_v24, %v6024_v33  ;;  %v6137_v34 = vpop.f32.mrf.mxu1 }
 0x22a   : > { %v6138_v46 = vadd.f32 %v6137_v34, %v6136_v49  ;;  %v6027_v62 = vpop.f32.mrf.mxu0 }
 0x22b   : > { %8061 = vst [vmem:[#allocation3_spill] sm:$0xff] %v7539_v63  ;;  %v3721_v4 = vadd.f32 %v6026_v41, %v7390_v38  ;;  %v6139_v8 = vpop.f32.mrf.mxu1 }
 0x22c   : > { %v6028_v0 = vpop.f32.mrf.mxu0 }
 0x22d   : > { %v7542_v45 = vadd.f32 %v6138_v46, %v3721_v4  ;;  %v6029_v28 = vadd.f32 %v6028_v0, %v6027_v62  ;;  %v6140_v32 = vpop.f32.mrf.mxu1 }
 0x22e   : > { %v6141_v42 = vadd.f32 %v6140_v32, %v6139_v8  ;;  %v6030_v44 = vpop.f32.mrf.mxu0 }
 0x22f   : > { %8062 = vst [vmem:[#allocation4_spill] sm:$0xff] %v7542_v45  ;;  %v3724_v43 = vadd.f32 %v6029_v28, %v7395_v2  ;;  %v6142_v1 = vpop.f32.mrf.mxu1 }
 0x230   : > { %v6031_v54 = vpop.f32.mrf.mxu0 }
 0x231   : > { %v7545_v55 = vadd.f32 %v6141_v42, %v3724_v43  ;;  %v6032_v57 = vadd.f32 %v6031_v54, %v6030_v44  ;;  %v6143_v17 = vpop.f32.mrf.mxu1 }
 0x232   : > { %v6144_v25 = vadd.f32 %v6143_v17, %v6142_v1  ;;  %v6033_v61 = vpop.f32.mrf.mxu0 }
 0x233   : > { %8063 = vst [vmem:[#allocation5_spill] sm:$0xff] %v7545_v55  ;;  %v3729_v38 = vadd.f32 %v6032_v57, %v7400_v9  ;;  %v6145_v52 = vpop.f32.mrf.mxu1 }
 0x234   : > { %v6034_v60 = vpop.f32.mrf.mxu0 }
 0x235   : > { %v7548_v15 = vadd.f32 %v6144_v25, %v3729_v38  ;;  %v6035_v16 = vadd.f32 %v6034_v60, %v6033_v61  ;;  %v6146_v5 = vpop.f32.mrf.mxu1 }
 0x236   : > { %v6147_v21 = vadd.f32 %v6146_v5, %v6145_v52  ;;  %v6036_v19 = vpop.f32.mrf.mxu0 }
 0x237   : > { %8064 = vst [vmem:[#allocation6_spill] sm:$0xff] %v7548_v15  ;;  %v3732_v2 = vadd.f32 %v6035_v16, %v7405_v26  ;;  %v6148_v30 = vpop.f32.mrf.mxu1 }
 0x238   : > { %v6037_v33 = vpop.f32.mrf.mxu0 }
 0x239   : > { %v7551_v37 = vadd.f32 %v6147_v21, %v3732_v2  ;;  %v6038_v49 = vadd.f32 %v6037_v33, %v6036_v19  ;;  %v6149_v24 = vpop.f32.mrf.mxu1 }
 0x23a   : > { %v6150_v41 = vadd.f32 %v6149_v24, %v6148_v30  ;;  %v6039_v34 = vpop.f32.mrf.mxu0 }
 0x23b   : > { %8065 = vst [vmem:[#allocation7_spill] sm:$0xff] %v7551_v37  ;;  %v3737_v9 = vadd.f32 %v6038_v49, %v7410_v58  ;;  %v6151_v46 = vpop.f32.mrf.mxu1 }
 0x23c   : > { %v6040_v62 = vpop.f32.mrf.mxu0 }
 0x23d   : > { %v7554_v4 = vadd.f32 %v6150_v41, %v3737_v9  ;;  %v6041_v8 = vadd.f32 %v6040_v62, %v6039_v34  ;;  %v6152_v0 = vpop.f32.mrf.mxu1 }
 0x23e   : > { %v6153_v28 = vadd.f32 %v6152_v0, %v6151_v46  ;;  %v6042_v32 = vpop.f32.mrf.mxu0 }
 0x23f   : > { %8066 = vst [vmem:[#allocation8_spill] sm:$0xff] %v7554_v4  ;;  %v3740_v26 = vadd.f32 %v6041_v8, %v7415_v50  ;;  %v6154_v42 = vpop.f32.mrf.mxu1 }
 0x240   : > { %v6043_v44 = vpop.f32.mrf.mxu0 }
 0x241   : > { %v7557_v43 = vadd.f32 %v6153_v28, %v3740_v26  ;;  %v6044_v1 = vadd.f32 %v6043_v44, %v6042_v32  ;;  %v6155_v54 = vpop.f32.mrf.mxu1 }
 0x242   : > { %v6156_v57 = vadd.f32 %v6155_v54, %v6154_v42  ;;  %v6045_v17 = vpop.f32.mrf.mxu0 }
 0x243   : > { %8067 = vst [vmem:[#allocation9_spill] sm:$0xff] %v7557_v43  ;;  %v3745_v58 = vadd.f32 %v6044_v1, %v7420_v7  ;;  %v6157_v25 = vpop.f32.mrf.mxu1 }
 0x244   : > { %v6046_v61 = vpop.f32.mrf.mxu0 }
 0x245   : > { %v7560_v38 = vadd.f32 %v6156_v57, %v3745_v58  ;;  %v6047_v52 = vadd.f32 %v6046_v61, %v6045_v17  ;;  %v6158_v60 = vpop.f32.mrf.mxu1 }
 0x246   : > { %v6159_v16 = vadd.f32 %v6158_v60, %v6157_v25  ;;  %v6048_v5 = vpop.f32.mrf.mxu0 }
 0x247   : > { %8068 = vst [vmem:[#allocation10_spill] sm:$0xff] %v7560_v38  ;;  %v3748_v50 = vadd.f32 %v6047_v52, %v7425_v13  ;;  %v6160_v21 = vpop.f32.mrf.mxu1 }
 0x248   : > { %v6049_v19 = vpop.f32.mrf.mxu0 }
 0x249   : > { %v7563_v2 = vadd.f32 %v6159_v16, %v3748_v50  ;;  %v6050_v30 = vadd.f32 %v6049_v19, %v6048_v5  ;;  %v6161_v33 = vpop.f32.mrf.mxu1 }
 0x24a   : > { %v6162_v49 = vadd.f32 %v6161_v33, %v6160_v21  ;;  %v6051_v24 = vpop.f32.mrf.mxu0 }
 0x24b   : > { %8069 = vst [vmem:[#allocation11_spill] sm:$0xff] %v7563_v2  ;;  %v3753_v7 = vadd.f32 %v6050_v30, %v7430_v29  ;;  %v6163_v41 = vpop.f32.mrf.mxu1 }
 0x24c   : > { %v6052_v34 = vpop.f32.mrf.mxu0 }
 0x24d   : > { %v7566_v9 = vadd.f32 %v6162_v49, %v3753_v7  ;;  %v6053_v46 = vadd.f32 %v6052_v34, %v6051_v24  ;;  %v6164_v62 = vpop.f32.mrf.mxu1 }
 0x24e   : > { %v6165_v8 = vadd.f32 %v6164_v62, %v6163_v41  ;;  %v6054_v0 = vpop.f32.mrf.mxu0 }
 0x24f   : > { %8070 = vst [vmem:[#allocation12_spill] sm:$0xff] %v7566_v9  ;;  %v3756_v13 = vadd.f32 %v6053_v46, %v7435_v39  ;;  %v6166_v28 = vpop.f32.mrf.mxu1 }
 0x250   : > { %v6055_v32 = vpop.f32.mrf.mxu0 }
 0x251   : > { %v7569_v26 = vadd.f32 %v6165_v8, %v3756_v13  ;;  %v6056_v42 = vadd.f32 %v6055_v32, %v6054_v0  ;;  %v6167_v44 = vpop.f32.mrf.mxu1 }
 0x252   : > { %v6168_v1 = vadd.f32 %v6167_v44, %v6166_v28  ;;  %v6057_v54 = vpop.f32.mrf.mxu0 }
 0x253   : > { %8071 = vst [vmem:[#allocation13_spill] sm:$0xff] %v7569_v26  ;;  %v3761_v29 = vadd.f32 %v6056_v42, %v7440_v51  ;;  %v6169_v57 = vpop.f32.mrf.mxu1 }
 0x254   : > { %v6058_v17 = vpop.f32.mrf.mxu0 }
 0x255   : > { %v7572_v58 = vadd.f32 %v6168_v1, %v3761_v29  ;;  %v6059_v25 = vadd.f32 %v6058_v17, %v6057_v54  ;;  %v6170_v61 = vpop.f32.mrf.mxu1 }
 0x256   : > { %v6171_v52 = vadd.f32 %v6170_v61, %v6169_v57  ;;  %v6060_v60 = vpop.f32.mrf.mxu0 }
 0x257   : > { %8072 = vst [vmem:[#allocation14_spill] sm:$0xff] %v7572_v58  ;;  %v3764_v39 = vadd.f32 %v6059_v25, %v7445_v14  ;;  %v6172_v16 = vpop.f32.mrf.mxu1 }
 0x258   : > { %v6061_v5 = vpop.f32.mrf.mxu0 }
 0x259   : > { %v7575_v50 = vadd.f32 %v6171_v52, %v3764_v39  ;;  %v6062_v21 = vadd.f32 %v6061_v5, %v6060_v60  ;;  %v6173_v19 = vpop.f32.mrf.mxu1 }
 0x25a   : > { %v6174_v30 = vadd.f32 %v6173_v19, %v6172_v16  ;;  %v6063_v33 = vpop.f32.mrf.mxu0 }
 0x25b   : > { %8073 = vst [vmem:[#allocation15_spill] sm:$0xff] %v7575_v50  ;;  %v3769_v51 = vadd.f32 %v6062_v21, %v7450_v11  ;;  %v6175_v49 = vpop.f32.mrf.mxu1 }
 0x25c   : > { %v6064_v24 = vpop.f32.mrf.mxu0 }
 0x25d   : > { %v7578_v7 = vadd.f32 %v6174_v30, %v3769_v51  ;;  %v6065_v41 = vadd.f32 %v6064_v24, %v6063_v33  ;;  %v6176_v34 = vpop.f32.mrf.mxu1 }
 0x25e   : > { %v6177_v46 = vadd.f32 %v6176_v34, %v6175_v49  ;;  %v6066_v62 = vpop.f32.mrf.mxu0 }
 0x25f   : > { %8074 = vst [vmem:[#allocation16_spill] sm:$0xff] %v7578_v7  ;;  %v3772_v14 = vadd.f32 %v6065_v41, %v7455_v53  ;;  %v6178_v8 = vpop.f32.mrf.mxu1 }
 0x260   : > { %v6067_v0 = vpop.f32.mrf.mxu0 }
 0x261   : > { %v7581_v13 = vadd.f32 %v6177_v46, %v3772_v14  ;;  %v6068_v28 = vadd.f32 %v6067_v0, %v6066_v62  ;;  %v6179_v32 = vpop.f32.mrf.mxu1 }
 0x262   : > { %v6180_v42 = vadd.f32 %v6179_v32, %v6178_v8  ;;  %v6069_v44 = vpop.f32.mrf.mxu0 }
 0x263   : > { %8075 = vst [vmem:[#allocation17_spill] sm:$0xff] %v7581_v13  ;;  %v3777_v11 = vadd.f32 %v6068_v28, %v7460_v35  ;;  %v6181_v1 = vpop.f32.mrf.mxu1 }
 0x264   : > { %v6070_v54 = vpop.f32.mrf.mxu0 }
 0x265   : > { %v7584_v29 = vadd.f32 %v6180_v42, %v3777_v11  ;;  %v6071_v57 = vadd.f32 %v6070_v54, %v6069_v44  ;;  %v6182_v17 = vpop.f32.mrf.mxu1 }
 0x266   : > { %v6183_v25 = vadd.f32 %v6182_v17, %v6181_v1  ;;  %v6072_v61 = vpop.f32.mrf.mxu0 }
 0x267   : > { %8076 = vst [vmem:[#allocation18_spill] sm:$0xff] %v7584_v29  ;;  %v3780_v53 = vadd.f32 %v6071_v57, %v7465_v36  ;;  %v6184_v52 = vpop.f32.mrf.mxu1 }
 0x268   : > { %v6073_v60 = vpop.f32.mrf.mxu0 }
 0x269   : > { %v7587_v39 = vadd.f32 %v6183_v25, %v3780_v53  ;;  %v6074_v16 = vadd.f32 %v6073_v60, %v6072_v61  ;;  %v6185_v5 = vpop.f32.mrf.mxu1 }
 0x26a   : > { %v6186_v21 = vadd.f32 %v6185_v5, %v6184_v52  ;;  %v6075_v19 = vpop.f32.mrf.mxu0 }
 0x26b   : > { %8077 = vst [vmem:[#allocation19_spill] sm:$0xff] %v7587_v39  ;;  %v3785_v35 = vadd.f32 %v6074_v16, %v7470_v59  ;;  %v6187_v30 = vpop.f32.mrf.mxu1 }
 0x26c   : > { %v6076_v33 = vpop.f32.mrf.mxu0 }
 0x26d   : > { %v7590_v51 = vadd.f32 %v6186_v21, %v3785_v35  ;;  %v6077_v49 = vadd.f32 %v6076_v33, %v6075_v19  ;;  %v6188_v24 = vpop.f32.mrf.mxu1 }
 0x26e   : > { %v6189_v41 = vadd.f32 %v6188_v24, %v6187_v30  ;;  %v6206_v34 = vpop.f32.mrf.mxu0 }
 0x26f   : > { %8078 = vst [vmem:[#allocation20_spill] sm:$0xff] %v7590_v51  ;;  %v3788_v36 = vadd.f32 %v6077_v49, %v7475_v12  ;;  %v6318_v46 = vpop.f32.mrf.mxu1 }
 0x270   : > { %v6207_v62 = vpop.f32.mrf.mxu0 }
 0x271   : > { %v7593_v14 = vadd.f32 %v6189_v41, %v3788_v36  ;;  %v6208_v8 = vadd.f32 %v6207_v62, %v6206_v34  ;;  %v6319_v0 = vpop.f32.mrf.mxu1 }
 0x272   : > { %v6320_v28 = vadd.f32 %v6319_v0, %v6318_v46  ;;  %v6209_v32 = vpop.f32.mrf.mxu0 }
 0x273   : > { %8079 = vst [vmem:[#allocation21_spill] sm:$0xff] %v7593_v14  ;;  %v3987_v59 = vadd.f32 %v6208_v8, %v7480_v22  ;;  %v6321_v42 = vpop.f32.mrf.mxu1 }
 0x274   : > { %v6210_v44 = vpop.f32.mrf.mxu0 }
 0x275   : > { %v7596_v11 = vadd.f32 %v6320_v28, %v3987_v59  ;;  %v6322_v1 = vpop.f32.mrf.mxu1  ;;  %v6211_v39 = vadd.f32 %v6210_v44, %v6209_v32 }
 0x276   : > { %v6212_v54 = vpop.f32.mrf.mxu0  ;;  %v6323_v43 = vadd.f32 %v6322_v1, %v6321_v42  ;;  %v7622_v42 = vld [vmem:[%s8057_s2] ss:$0 sm:$0xff] }
 0x277   : > { %v6324_v57 = vpop.f32.mrf.mxu1  ;;  %v3990_v26 = vadd.f32 %v6211_v39, %v7485_v40 }
 0x278   : > { %v6213_v17 = vpop.f32.mrf.mxu0 }
 0x279   : > { %v6325_v25 = vpop.f32.mrf.mxu1  ;;  %v6214_v7 = vadd.f32 %v6213_v17, %v6212_v54  ;;  %v4151_v32 = vadd.f32 %v6323_v43, %v3990_v26 }
 0x27a   : > { %v6215_v12 = vpop.f32.mrf.mxu0  ;;  %v6326_v44 = vadd.f32 %v6325_v25, %v6324_v57 }
 0x27b   : > { %v6327_v61 = vpop.f32.mrf.mxu1  ;;  %v3995_v4 = vadd.f32 %v6214_v7, %v7490_v56  ;;  %v7628_v43 = vadd.f32 %v7622_v42, %v4151_v32 }
 0x27c   : > { %v6216_v53 = vpop.f32.mrf.mxu0 }
 0x27d   : > { %v6328_v52 = vpop.f32.mrf.mxu1  ;;  %v6217_v9 = vadd.f32 %v6216_v53, %v6215_v12  ;;  %v4156_v40 = vadd.f32 %v6326_v44, %v3995_v4 }
 0x27e   : > { %v6218_v60 = vpop.f32.mrf.mxu0  ;;  %v6329_v39 = vadd.f32 %v6328_v52, %v6327_v61  ;;  %v7633_v61 = vadd.f32 %v7622_v42, %v7596_v11 }
 0x27f   : > { %v6330_v16 = vpop.f32.mrf.mxu1  ;;  %v3998_v54 = vadd.f32 %v6217_v9, %v7495_v18  ;;  %v7636_v53 = vadd.f32 %v7622_v42, %v4156_v40 }
 0x280   : > { %v6219_v5 = vpop.f32.mrf.mxu0 }
 0x281   : > { %v6331_v21 = vpop.f32.mrf.mxu1  ;;  %v6220_v15 = vadd.f32 %v6219_v5, %v6218_v60  ;;  %v4159_v18 = vadd.f32 %v6329_v39, %v3998_v54 }
 0x282   : > { %v6221_v19 = vpop.f32.mrf.mxu0  ;;  %v6332_v26 = vadd.f32 %v6331_v21, %v6330_v16  ;;  %v4373_v16 = vadd.f32 %v7628_v43, %v7633_v61 }
 0x283   : > { %v6333_v35 = vpop.f32.mrf.mxu1  ;;  %v4003_v56 = vadd.f32 %v6220_v15, %v7500_v31 }
 0x284   : > { %v6222_v22 = vpop.f32.mrf.mxu0 }
 0x285   : > { %v6334_v30 = vpop.f32.mrf.mxu1  ;;  %v6223_v45 = vadd.f32 %v6222_v22, %v6221_v19  ;;  %v4164_v15 = vadd.f32 %v6332_v26, %v4003_v56 }
 0x286   : > { %v6224_v33 = vpop.f32.mrf.mxu0  ;;  %v6335_v52 = vadd.f32 %v6334_v30, %v6333_v35 }
 0x287   : > { %v6336_v49 = vpop.f32.mrf.mxu1  ;;  %v4006_v4 = vadd.f32 %v6223_v45, %v7505_v48  ;;  %v7642_v48 = vadd.f32 %v7622_v42, %v4159_v18 }
 0x288   : > { %v6225_v24 = vpop.f32.mrf.mxu0 }
 0x289   : > { %v6337_v41 = vpop.f32.mrf.mxu1  ;;  %v6226_v7 = vadd.f32 %v6225_v24, %v6224_v33  ;;  %v4167_v21 = vadd.f32 %v6335_v52, %v4006_v4 }
 0x28a   : > { %v6227_v34 = vpop.f32.mrf.mxu0  ;;  %v6338_v11 = vadd.f32 %v6337_v41, %v6336_v49 }
 0x28b   : > { %v7598_v36 = vpop.f32.mrf.mxu1  ;;  %v4011_v60 = vadd.f32 %v6226_v7, %v7510_v6  ;;  %v7647_v6 = vadd.f32 %v7622_v42, %v4164_v15 }
 0x28c   : > { %v6228_v46 = vpop.f32.mrf.mxu0 }
 0x28d   : > { %v6340_v62 = vpop.f32.mrf.mxu1  ;;  %v6229_v57 = vadd.f32 %v6228_v46, %v6227_v34  ;;  %v4374_v34 = vadd.f32 %v4373_v16, %v7636_v53  ;;  %v4172_v30 = vadd.f32 %v6338_v11, %v4011_v60  ;;  %v8080_v16 = vld [vmem:[#allocation3_spill] sm:$0xff] }
 0x28e   : > { %v6230_v8 = vpop.f32.mrf.mxu0  ;;  %v6341_v46 = vadd.f32 %v6340_v62, %v7598_v36 }
 0x28f   : > { %v7600_v0 = vpop.f32.mrf.mxu1  ;;  %v4014_v22 = vadd.f32 %v6229_v57, %v7515_v27  ;;  %v4375_v32 = vadd.f32 %v4374_v34, %v7642_v48  ;;  %v7653_v27 = vadd.f32 %v7622_v42, %v4167_v21  ;;  %v8081_v34 = vld [vmem:[#allocation4_spill] sm:$0xff] }
 0x290   : > { %v6231_v28 = vpop.f32.mrf.mxu0 }
 0x291   : > { %v7602_v59 = vpop.f32.mrf.mxu1  ;;  %v6232_v5 = vadd.f32 %v6231_v28, %v6230_v8  ;;  %v4376_v36 = vadd.f32 %v4375_v32, %v7647_v6 }
 0x292   : > { %v6233_v14 = vpop.f32.mrf.mxu0 }
 0x293   : > { %v7604_v51 = vpop.f32.mrf.mxu1  ;;  %v4019_v8 = vadd.f32 %v6232_v5, %v7520_v47  ;;  %v7660_v47 = vadd.f32 %v7622_v42, %v4172_v30 }
 0x294   : > { %v6234_v29 = vpop.f32.mrf.mxu0 }
 0x295   : > { %v7606_v13 = vpop.f32.mrf.mxu1  ;;  %v6235_v33 = vadd.f32 %v6234_v29, %v6233_v14  ;;  %v4175_v29 = vadd.f32 %v6341_v46, %v4014_v22  ;;  %v6344_v14 = vadd.f32 %v7602_v59, %v7600_v0  ;;  %v4377_v0 = vadd.f32 %v4376_v36, %v7653_v27 }
 0x296   : > { %v6236_v50 = vpop.f32.mrf.mxu0 }
 0x297   : > { %v7608_v58 = vpop.f32.mrf.mxu1  ;;  %v4022_v41 = vadd.f32 %v6235_v33, %v7525_v20  ;;  %v4180_v62 = vadd.f32 %v6344_v14, %v4019_v8  ;;  %v7667_v20 = vadd.f32 %v7622_v42, %v4175_v29 }
 0x298   : > { %v6237_v2 = vpop.f32.mrf.mxu0 }
 0x299   : > { %v7611_v38 = vpop.f32.mrf.mxu1  ;;  %v6238_v44 = vadd.f32 %v6237_v2, %v6236_v50  ;;  %v6347_v2 = vadd.f32 %v7606_v13, %v7604_v51  ;;  %v4378_v13 = vadd.f32 %v4377_v0, %v7660_v47 }
 0x29a   : > { %v6239_v37 = vpop.f32.mrf.mxu0 }
 0x29b   : > { %v7614_v55 = vpop.f32.mrf.mxu1  ;;  %v4027_v56 = vadd.f32 %v6238_v44, %v7530_v10  ;;  %v7674_v10 = vadd.f32 %v7622_v42, %v4180_v62 }
 0x29c   : > { %v6240_v17 = vpop.f32.mrf.mxu0 }
 0x29d   : > { %v7617_v63 = vpop.f32.mrf.mxu1  ;;  %v6241_v40 = vadd.f32 %v6240_v17, %v6239_v37  ;;  %v4183_v37 = vadd.f32 %v6347_v2, %v4022_v41  ;;  %v6350_v17 = vadd.f32 %v7611_v38, %v7608_v58  ;;  %v4379_v38 = vadd.f32 %v4378_v13, %v7667_v20  ;;  %v8083_v2 = vld [vmem:[#allocation6_spill] sm:$0xff] }
 0x29e   : > { %v6242_v12 = vpop.f32.mrf.mxu0 }
 0x29f   : > { %v7625_v1 = vpop.f32.mrf.mxu1  ;;  %v4030_v26 = vadd.f32 %v6241_v40, %v7533_v3  ;;  %v7681_v3 = vadd.f32 %v7622_v42, %v4183_v37  ;;  %v4380_v22 = vadd.f32 %v4379_v38, %v7674_v10 }
 0x2a0   : > { %v6243_v9 = vpop.f32.mrf.mxu0 }
 0x2a1   : > { %v6355_v25 = vpop.f32.mrf.mxu1  ;;  %v6244_v7 = vadd.f32 %v6243_v9, %v6242_v12  ;;  %v4188_v12 = vadd.f32 %v6350_v17, %v4027_v56  ;;  %v6353_v9 = vadd.f32 %v7617_v63, %v7614_v55  ;;  %v4381_v46 = vadd.f32 %v4380_v22, %v7681_v3 }
 0x2a2   : > { %v6245_v31 = vpop.f32.mrf.mxu0  ;;  %v6356_v5 = vadd.f32 %v6355_v25, %v7625_v1 }
 0x2a3   : > { %v6357_v19 = vpop.f32.mrf.mxu1  ;;  %v4035_v15 = vadd.f32 %v6244_v7, %v7536_v23  ;;  %v7687_v23 = vadd.f32 %v7622_v42, %v4188_v12 }
 0x2a4   : > { %v6246_v45 = vpop.f32.mrf.mxu0 }
 0x2a5   : > { %v6358_v24 = vpop.f32.mrf.mxu1  ;;  %v6247_v4 = vadd.f32 %v6246_v45, %v6245_v31  ;;  %v4191_v31 = vadd.f32 %v6353_v9, %v4030_v26  ;;  %v4196_v55 = vadd.f32 %v6356_v5, %v4035_v15  ;;  %v8084_v26 = vld [vmem:[#allocation7_spill] sm:$0xff]  ;;  %v8085_v15 = vld [vmem:[#allocation8_spill] sm:$0xff] }
 0x2a6   : > { %v6248_v35 = vpop.f32.mrf.mxu0  ;;  %v6359_v33 = vadd.f32 %v6358_v24, %v6357_v19 }
 0x2a7   : > { %v6360_v28 = vpop.f32.mrf.mxu1  ;;  %v4038_v45 = vadd.f32 %v6247_v4, %v8080_v16  ;;  %v7692_v1 = vadd.f32 %v7622_v42, %v4191_v31  ;;  %v7697_v19 = vadd.f32 %v7622_v42, %v4196_v55 }
 0x2a8   : > { %v6249_v49 = vpop.f32.mrf.mxu0 }
 0x2a9   : > { %v6361_v54 = vpop.f32.mrf.mxu1  ;;  %v6250_v52 = vadd.f32 %v6249_v49, %v6248_v35  ;;  %v4199_v25 = vadd.f32 %v6359_v33, %v4038_v45  ;;  %v8082_v49 = vld [vmem:[#allocation5_spill] sm:$0xff] }
 0x2aa   : > { %v6251_v39 = vpop.f32.mrf.mxu0  ;;  %v6362_v44 = vadd.f32 %v6361_v54, %v6360_v28  ;;  %v8086_v45 = vld [vmem:[#allocation9_spill] sm:$0xff] }
 0x2ab   : > { %v6363_v50 = vpop.f32.mrf.mxu1  ;;  %v4043_v35 = vadd.f32 %v6250_v52, %v8081_v34  ;;  %v7702_v28 = vadd.f32 %v7622_v42, %v4199_v25 }
 0x2ac   : > { %v6252_v18 = vpop.f32.mrf.mxu0 }
 0x2ad   : > { %v6364_v59 = vpop.f32.mrf.mxu1  ;;  %v6253_v21 = vadd.f32 %v6252_v18, %v6251_v39  ;;  %v4382_v39 = vadd.f32 %v4381_v46, %v7687_v23  ;;  %v4204_v24 = vadd.f32 %v6362_v44, %v4043_v35  ;;  %v8087_v44 = vld [vmem:[#allocation10_spill] sm:$0xff] }
 0x2ae   : > { %v6254_v57 = vpop.f32.mrf.mxu0  ;;  %v6365_v36 = vadd.f32 %v6364_v59, %v6363_v50 }
 0x2af   : > { %v6366_v51 = vpop.f32.mrf.mxu1  ;;  %v4046_v29 = vadd.f32 %v6253_v21, %v8082_v49  ;;  %v4383_v0 = vadd.f32 %v4382_v39, %v7692_v1  ;;  %v7707_v50 = vadd.f32 %v7622_v42, %v4204_v24 }
 0x2b0   : > { %v6255_v60 = vpop.f32.mrf.mxu0 }
 0x2b1   : > { %v6367_v58 = vpop.f32.mrf.mxu1  ;;  %v6256_v8 = vadd.f32 %v6255_v60, %v6254_v57  ;;  %v4207_v54 = vadd.f32 %v6365_v36, %v4046_v29  ;;  %v4384_v13 = vadd.f32 %v4383_v0, %v7697_v19 }
 0x2b2   : > { %v6257_v11 = vpop.f32.mrf.mxu0  ;;  %v6368_v17 = vadd.f32 %v6367_v58, %v6366_v51 }
 0x2b3   : > { %v6369_v63 = vpop.f32.mrf.mxu1  ;;  %v4051_v56 = vadd.f32 %v6256_v8, %v8083_v2  ;;  %v4385_v31 = vadd.f32 %v4384_v13, %v7702_v28  ;;  %v7712_v5 = vadd.f32 %v7622_v42, %v4207_v54 }
 0x2b4   : > { %v6258_v30 = vpop.f32.mrf.mxu0 }
 0x2b5   : > { %v6370_v32 = vpop.f32.mrf.mxu1  ;;  %v6259_v41 = vadd.f32 %v6258_v30, %v6257_v11  ;;  %v4212_v12 = vadd.f32 %v6368_v17, %v4051_v56  ;;  %v4386_v22 = vadd.f32 %v4385_v31, %v7707_v50 }
 0x2b6   : > { %v6260_v14 = vpop.f32.mrf.mxu0  ;;  %v6371_v9 = vadd.f32 %v6370_v32, %v6369_v63 }
 0x2b7   : > { %v6372_v40 = vpop.f32.mrf.mxu1  ;;  %v4054_v4 = vadd.f32 %v6259_v41, %v8084_v26  ;;  %v7717_v63 = vadd.f32 %v7622_v42, %v4212_v12  ;;  %v4387_v46 = vadd.f32 %v4386_v22, %v7712_v5 }
 0x2b8   : > { %v6261_v62 = vpop.f32.mrf.mxu0 }
 0x2b9   : > { %v6262_v7 = vadd.f32 %v6261_v62, %v6260_v14  ;;  %v6373_v18 = vpop.f32.mrf.mxu1  ;;  %v4215_v58 = vadd.f32 %v6371_v9, %v4054_v4 }
 0x2ba   : > { %v6263_v37 = vpop.f32.mrf.mxu0  ;;  %v6374_v16 = vadd.f32 %v6373_v18, %v6372_v40  ;;  %v4388_v40 = vadd.f32 %v4387_v46, %v7717_v63  ;;  %v8088_v18 = vld [vmem:[#allocation11_spill] sm:$0xff] }
 0x2bb   : > { %v6375_v57 = vpop.f32.mrf.mxu1  ;;  %v4059_v52 = vadd.f32 %v6262_v7, %v8085_v15  ;;  %v7721_v32 = vadd.f32 %v7622_v42, %v4215_v58 }
 0x2bc   : > { %v6264_v59 = vpop.f32.mrf.mxu0 }
 0x2bd   : > { %v6265_v60 = vadd.f32 %v6264_v59, %v6263_v37  ;;  %v6376_v38 = vpop.f32.mrf.mxu1  ;;  %v4220_v33 = vadd.f32 %v6374_v16, %v4059_v52  ;;  %v4389_v56 = vadd.f32 %v4388_v40, %v7721_v32  ;;  %v8089_v52 = vld [vmem:[#allocation12_spill] sm:$0xff] }
 0x2be   : > { %v6266_v51 = vpop.f32.mrf.mxu0  ;;  %v6377_v34 = vadd.f32 %v6376_v38, %v6375_v57 }
 0x2bf   : > { %v4062_v21 = vadd.f32 %v6265_v60, %v8086_v45  ;;  %v6378_v11 = vpop.f32.mrf.mxu1  ;;  %v7726_v39 = vadd.f32 %v7622_v42, %v4220_v33  ;;  %v8090_v33 = vld [vmem:[#allocation13_spill] sm:$0xff] }
 0x2c0   : > { %v6267_v55 = vpop.f32.mrf.mxu0 }
 0x2c1   : > { %v6268_v35 = vadd.f32 %v6267_v55, %v6266_v51  ;;  %v6379_v30 = vpop.f32.mrf.mxu1  ;;  %v4223_v25 = vadd.f32 %v6377_v34, %v4062_v21  ;;  %v4390_v26 = vadd.f32 %v4389_v56, %v7726_v39 }
 0x2c2   : > { %v6269_v8 = vpop.f32.mrf.mxu0  ;;  %v6380_v29 = vadd.f32 %v6379_v30, %v6378_v11 }
 0x2c3   : > { %v4067_v49 = vadd.f32 %v6268_v35, %v8087_v44  ;;  %v6381_v14 = vpop.f32.mrf.mxu1  ;;  %v7730_v7 = vadd.f32 %v7622_v42, %v4223_v25 }
 0x2c4   : > { %v6270_v41 = vpop.f32.mrf.mxu0 }
 0x2c5   : > { %v4228_v24 = vadd.f32 %v6380_v29, %v4067_v49  ;;  %v6271_v36 = vadd.f32 %v6270_v41, %v6269_v8  ;;  %v6382_v62 = vpop.f32.mrf.mxu1  ;;  %v4391_v9 = vadd.f32 %v4390_v26, %v7730_v7  ;;  %v8091_v41 = vld [vmem:[#allocation14_spill] sm:$0xff] }
 0x2c6   : > { %v6272_v2 = vpop.f32.mrf.mxu0  ;;  %v6383_v54 = vadd.f32 %v6382_v62, %v6381_v14 }
 0x2c7   : > { %v4070_v0 = vadd.f32 %v6271_v36, %v8088_v18  ;;  %v6384_v37 = vpop.f32.mrf.mxu1  ;;  %v7735_v4 = vadd.f32 %v7622_v42, %v4228_v24 }
 0x2c8   : > { %v6273_v17 = vpop.f32.mrf.mxu0 }
 0x2c9   : > { %v4231_v57 = vadd.f32 %v6383_v54, %v4070_v0  ;;  %v6274_v13 = vadd.f32 %v6273_v17, %v6272_v2  ;;  %v6385_v59 = vpop.f32.mrf.mxu1  ;;  %v4392_v58 = vadd.f32 %v4391_v9, %v7735_v4  ;;  %v8092_v17 = vld [vmem:[#allocation15_spill] sm:$0xff] }
 0x2ca   : > { %v6275_v12 = vpop.f32.mrf.mxu0  ;;  %v6386_v38 = vadd.f32 %v6385_v59, %v6384_v37 }
 0x2cb   : > { %v7739_v15 = vadd.f32 %v7622_v42, %v4231_v57  ;;  %v4075_v60 = vadd.f32 %v6274_v13, %v8089_v52  ;;  %v6387_v31 = vpop.f32.mrf.mxu1 }
 0x2cc   : > { %v6276_v51 = vpop.f32.mrf.mxu0 }
 0x2cd   : > { %v4236_v16 = vadd.f32 %v6386_v38, %v4075_v60  ;;  %v6277_v45 = vadd.f32 %v6276_v51, %v6275_v12  ;;  %v6388_v21 = vpop.f32.mrf.mxu1  ;;  %v4393_v22 = vadd.f32 %v4392_v58, %v7739_v15  ;;  %v8093_v51 = vld [vmem:[#allocation16_spill] sm:$0xff] }
 0x2ce   : > { %v6278_v11 = vpop.f32.mrf.mxu0  ;;  %v6389_v35 = vadd.f32 %v6388_v21, %v6387_v31 }
 0x2cf   : > { %v7745_v55 = vadd.f32 %v7622_v42, %v4236_v16  ;;  %v4078_v34 = vadd.f32 %v6277_v45, %v8090_v33  ;;  %v6390_v30 = vpop.f32.mrf.mxu1 }
 0x2d0   : > { %v6279_v46 = vpop.f32.mrf.mxu0 }
 0x2d1   : > { %v4394_v8 = vadd.f32 %v4393_v22, %v7745_v55  ;;  %v4239_v25 = vadd.f32 %v6389_v35, %v4078_v34  ;;  %v6280_v44 = vadd.f32 %v6279_v46, %v6278_v11  ;;  %v6391_v49 = vpop.f32.mrf.mxu1  ;;  %v8094_v46 = vld [vmem:[#allocation17_spill] sm:$0xff] }
 0x2d2   : > { %v6281_v29 = vpop.f32.mrf.mxu0  ;;  %v6392_v24 = vadd.f32 %v6391_v49, %v6390_v30 }
 0x2d3   : > { %v7750_v14 = vadd.f32 %v7622_v42, %v4239_v25  ;;  %v4083_v40 = vadd.f32 %v6280_v44, %v8091_v41  ;;  %v6393_v36 = vpop.f32.mrf.mxu1 }
 0x2d4   : > { %v6282_v62 = vpop.f32.mrf.mxu0 }
 0x2d5   : > { %v4395_v2 = vadd.f32 %v4394_v8, %v7750_v14  ;;  %v4244_v56 = vadd.f32 %v6392_v24, %v4083_v40  ;;  %v6283_v18 = vadd.f32 %v6282_v62, %v6281_v29  ;;  %v6394_v0 = vpop.f32.mrf.mxu1 }
 0x2d6   : > { %v6284_v54 = vpop.f32.mrf.mxu0  ;;  %v6395_v57 = vadd.f32 %v6394_v0, %v6393_v36 }
 0x2d7   : > { %v7755_v37 = vadd.f32 %v7622_v42, %v4244_v56  ;;  %v4086_v26 = vadd.f32 %v6283_v18, %v8092_v17  ;;  %v6396_v13 = vpop.f32.mrf.mxu1 }
 0x2d8   : > { %v6285_v59 = vpop.f32.mrf.mxu0 }
 0x2d9   : > { %v4396_v12 = vadd.f32 %v4395_v2, %v7755_v37  ;;  %v4247_v9 = vadd.f32 %v6395_v57, %v4086_v26  ;;  %v6286_v52 = vadd.f32 %v6285_v59, %v6284_v54  ;;  %v6397_v60 = vpop.f32.mrf.mxu1  ;;  %v8095_v2 = vld [vmem:[#allocation18_spill] sm:$0xff] }
 0x2da   : > { %v6287_v38 = vpop.f32.mrf.mxu0  ;;  %v6398_v16 = vadd.f32 %v6397_v60, %v6396_v13 }
 0x2db   : > { %v7760_v31 = vadd.f32 %v7622_v42, %v4247_v9  ;;  %v4091_v58 = vadd.f32 %v6286_v52, %v8093_v51  ;;  %v6399_v45 = vpop.f32.mrf.mxu1  ;;  %v8096_v9 = vld [vmem:[#allocation19_spill] sm:$0xff] }
 0x2dc   : > { %v6288_v21 = vpop.f32.mrf.mxu0 }
 0x2dd   : > { %v4397_v11 = vadd.f32 %v4396_v12, %v7760_v31  ;;  %v4252_v22 = vadd.f32 %v6398_v16, %v4091_v58  ;;  %v6289_v33 = vadd.f32 %v6288_v21, %v6287_v38  ;;  %v6400_v34 = vpop.f32.mrf.mxu1 }
 0x2de   : > { %v6290_v35 = vpop.f32.mrf.mxu0  ;;  %v6401_v25 = vadd.f32 %v6400_v34, %v6399_v45 }
 0x2df   : > { %v4300_v30 = vadd.f32 %v7622_v42, %v4252_v22  ;;  %v4094_v8 = vadd.f32 %v6289_v33, %v8094_v46  ;;  %v6402_v44 = vpop.f32.mrf.mxu1  ;;  %v8097_v33 = vld [vmem:[#allocation20_spill] sm:$0xff] }
 0x2e0   : > { %v6291_v49 = vpop.f32.mrf.mxu0 }
 0x2e1   : > { %v4398_v29 = vadd.f32 %v4397_v11, %v4300_v30  ;;  %v4255_v41 = vadd.f32 %v6401_v25, %v4094_v8  ;;  %v6292_v40 = vadd.f32 %v6291_v49, %v6290_v35  ;;  %v6403_v24 = vpop.f32.mrf.mxu1 }
 0x2e2   : > { %v6293_v36 = vpop.f32.mrf.mxu0  ;;  %v6404_v18 = vadd.f32 %v6403_v24, %v6402_v44 }
 0x2e3   : > { %v4301_v62 = vadd.f32 %v7622_v42, %v4255_v41  ;;  %v4099_v56 = vadd.f32 %v6292_v40, %v8095_v2  ;;  %v6405_v0 = vpop.f32.mrf.mxu1  ;;  %v8098_v40 = vld [vmem:[#allocation21_spill] sm:$0xff] }
 0x2e4   : > { %v6294_v54 = vpop.f32.mrf.mxu0 }
 0x2e5   : > { %v4399_v17 = vadd.f32 %v4398_v29, %v4301_v62  ;;  %v4260_v26 = vadd.f32 %v6404_v18, %v4099_v56  ;;  %v6295_v57 = vadd.f32 %v6294_v54, %v6293_v36  ;;  %v6406_v13 = vpop.f32.mrf.mxu1 }
 0x2e6   : > { %v6296_v59 = vpop.f32.mrf.mxu0  ;;  %v6407_v60 = vadd.f32 %v6406_v13, %v6405_v0 }
 0x2e7   : > { %v4302_v12 = vadd.f32 %v7622_v42, %v4260_v26  ;;  %v4102_v52 = vadd.f32 %v6295_v57, %v8096_v9  ;;  %v6408_v38 = vpop.f32.mrf.mxu1 }
 0x2e8   : > { %v6297_v51 = vpop.f32.mrf.mxu0 }
 0x2e9   : > { %v4400_v58 = vadd.f32 %v4399_v17, %v4302_v12  ;;  %v4263_v16 = vadd.f32 %v6407_v60, %v4102_v52  ;;  %v6298_v45 = vadd.f32 %v6297_v51, %v6296_v59  ;;  %v6409_v21 = vpop.f32.mrf.mxu1 }
 0x2ea   : > { %v6299_v11 = vpop.f32.mrf.mxu0  ;;  %v6410_v35 = vadd.f32 %v6409_v21, %v6408_v38 }
 0x2eb   : > { %v4303_v22 = vadd.f32 %v7622_v42, %v4263_v16  ;;  %v4107_v34 = vadd.f32 %v6298_v45, %v8097_v33  ;;  %v6411_v46 = vpop.f32.mrf.mxu1 }
 0x2ec   : > { %v6300_v8 = vpop.f32.mrf.mxu0 }
 0x2ed   : > { %v4401_v25 = vadd.f32 %v4400_v58, %v4303_v22  ;;  %v4268_v44 = vadd.f32 %v6410_v35, %v4107_v34  ;;  %v6301_v49 = vadd.f32 %v6300_v8, %v6299_v11  ;;  %v6412_v29 = vpop.f32.mrf.mxu1 }
 0x2ee   : > { %v6413_v36 = vadd.f32 %v6412_v29, %v6411_v46 }
 0x2ef   : > { %v4304_v41 = vadd.f32 %v7622_v42, %v4268_v44  ;;  %v4110_v24 = vadd.f32 %v6301_v49, %v8098_v40 }
 0x2f1   : > { %v4402_v2 = vadd.f32 %v4401_v25, %v4304_v41  ;;  %v4271_v56 = vadd.f32 %v6413_v36, %v4110_v24 }
 0x2f3   : > { %v4305_v18 = vadd.f32 %v7622_v42, %v4271_v56 }
 0x2f5   : > { %v4403_v0 = vadd.f32 %v4402_v2, %v4305_v18 }
 0x2f7   : > { %v4404_v54 = vrot.slane %v4403_v0, 4 }
 0x2f9   : > { %v4405_v17 = vadd.f32 %v4404_v54, %v4403_v0 }
 0x2fb   : > { %v4406_v26 = vrot.slane %v4405_v17, 2 }
 0x2fd   : > { %v4407_v57 = vadd.f32 %v4406_v26, %v4405_v17 }
 0x2ff   : > { %v4408_v13 = vrot.slane %v4407_v57, 1 }
 0x301   : > { %v4409_v59 = vadd.f32 %v4408_v13, %v4407_v57 }
 0x303   : > { %v7775_v9 = vmul.f32 0.00390625, %v4409_v59 }
 0x305   : > { %v7779_v52 = vsub.f32 %v7739_v15, %v7775_v9  ;;  %v7783_v60 = vsub.f32 %v7745_v55, %v7775_v9  ;;  %v7787_v42 = vsub.f32 %v7750_v14, %v7775_v9  ;;  %v7791_v38 = vsub.f32 %v7755_v37, %v7775_v9 }
 0x306   : > { %v7795_v51 = vsub.f32 %v7760_v31, %v7775_v9  ;;  %v7798_v58 = vsub.f32 %v4300_v30, %v7775_v9  ;;  %v7801_v15 = vsub.f32 %v4301_v62, %v7775_v9  ;;  %v7804_v55 = vsub.f32 %v4302_v12, %v7775_v9 }
 0x307   : > { %v7807_v14 = vsub.f32 %v4303_v22, %v7775_v9  ;;  %v7810_v16 = vsub.f32 %v4304_v41, %v7775_v9  ;;  %v7813_v37 = vsub.f32 %v4305_v18, %v7775_v9  ;;  %v7817_v31 = vsub.f32 %v7633_v61, %v7775_v9 }
 0x308   : > { %v7821_v30 = vsub.f32 %v7628_v43, %v7775_v9  ;;  %v7825_v62 = vsub.f32 %v7636_v53, %v7775_v9  ;;  %v7833_v21 = vsub.f32 %v7642_v48, %v7775_v9  ;;  %v7837_v61 = vsub.f32 %v7647_v6, %v7775_v9 }
 0x309   : > { %v4443_v12 = vmul.f32 %v7817_v31, %v7817_v31  ;;  %v7843_v53 = vsub.f32 %v7653_v27, %v7775_v9  ;;  %v7849_v48 = vsub.f32 %v7660_v47, %v7775_v9  ;;  %v7855_v35 = vsub.f32 %v7667_v20, %v7775_v9 }
 0x30a   : > { %v4444_v45 = vmul.f32 %v7821_v30, %v7821_v30  ;;  %v4445_v43 = vmul.f32 %v7825_v62, %v7825_v62  ;;  %v4446_v22 = vmul.f32 %v7833_v21, %v7833_v21  ;;  %v4447_v6 = vmul.f32 %v7837_v61, %v7837_v61 }
 0x30b   : > { %v4448_v27 = vmul.f32 %v7843_v53, %v7843_v53  ;;  %v7861_v8 = vsub.f32 %v7674_v10, %v7775_v9  ;;  %v4449_v47 = vmul.f32 %v7849_v48, %v7849_v48  ;;  %v7867_v44 = vsub.f32 %v7681_v3, %v7775_v9 }
 0x30c   : > { %v4475_v11 = vadd.f32 %v4444_v45, %v4443_v12  ;;  %v4450_v20 = vmul.f32 %v7855_v35, %v7855_v35  ;;  %v7873_v29 = vsub.f32 %v7687_v23, %v7775_v9  ;;  %v7879_v40 = vsub.f32 %v7692_v1, %v7775_v9 }
 0x30d   : > { %v4451_v10 = vmul.f32 %v7861_v8, %v7861_v8  ;;  %v4452_v3 = vmul.f32 %v7867_v44, %v7867_v44  ;;  %v7885_v36 = vsub.f32 %v7697_v19, %v7775_v9  ;;  %v7891_v56 = vsub.f32 %v7702_v28, %v7775_v9 }
 0x30e   : > { %v4476_v33 = vadd.f32 %v4475_v11, %v4445_v43  ;;  %v4453_v23 = vmul.f32 %v7873_v29, %v7873_v29  ;;  %v4454_v1 = vmul.f32 %v7879_v40, %v7879_v40  ;;  %v7897_v0 = vsub.f32 %v7707_v50, %v7775_v9 }
 0x30f   : > { %v4455_v19 = vmul.f32 %v7885_v36, %v7885_v36  ;;  %v7903_v17 = vsub.f32 %v7712_v5, %v7775_v9  ;;  %v4456_v28 = vmul.f32 %v7891_v56, %v7891_v56  ;;  %v7909_v57 = vsub.f32 %v7717_v63, %v7775_v9 }
 0x310   : > { %v4477_v34 = vadd.f32 %v4476_v33, %v4446_v22  ;;  %v4457_v50 = vmul.f32 %v7897_v0, %v7897_v0  ;;  %v7915_v59 = vsub.f32 %v7721_v32, %v7775_v9  ;;  %v7921_v45 = vsub.f32 %v7726_v39, %v7775_v9 }
 0x311   : > { %v4458_v5 = vmul.f32 %v7903_v17, %v7903_v17  ;;  %v4459_v63 = vmul.f32 %v7909_v57, %v7909_v57  ;;  %v4430_v11 = vsub.f32 %v7730_v7, %v7775_v9  ;;  %v4431_v33 = vsub.f32 %v7735_v4, %v7775_v9 }
 0x312   : > { %v4478_v46 = vadd.f32 %v4477_v34, %v4447_v6  ;;  %v4460_v22 = vmul.f32 %v7915_v59, %v7915_v59  ;;  %v4461_v6 = vmul.f32 %v7921_v45, %v7921_v45  ;;  %v4465_v7 = vmul.f32 %v7783_v60, %v7783_v60 }
 0x313   : > { %v4462_v39 = vmul.f32 %v4430_v11, %v4430_v11  ;;  %v4467_v9 = vmul.f32 %v7791_v38, %v7791_v38 }
 0x314   : > { %v4479_v25 = vadd.f32 %v4478_v46, %v4448_v27  ;;  %v4463_v46 = vmul.f32 %v4431_v33, %v4431_v33 }
 0x316   : > { %v4480_v49 = vadd.f32 %v4479_v25, %v4449_v47  ;;  %v4464_v25 = vmul.f32 %v7779_v52, %v7779_v52 }
 0x318   : > { %v4481_v41 = vadd.f32 %v4480_v49, %v4450_v20 }
 0x31a   : > { %v4482_v24 = vadd.f32 %v4481_v41, %v4451_v10  ;;  %v4466_v10 = vmul.f32 %v7787_v42, %v7787_v42 }
 0x31c   : > { %v4483_v2 = vadd.f32 %v4482_v24, %v4452_v3  ;;  %v4468_v3 = vmul.f32 %v7795_v51, %v7795_v51 }
 0x31e   : > { %v4484_v18 = vadd.f32 %v4483_v2, %v4453_v23  ;;  %v4469_v23 = vmul.f32 %v7798_v58, %v7798_v58 }
 0x320   : > { %v4485_v54 = vadd.f32 %v4484_v18, %v4454_v1  ;;  %v4470_v1 = vmul.f32 %v7801_v15, %v7801_v15 }
 0x322   : > { %v4486_v26 = vadd.f32 %v4485_v54, %v4455_v19  ;;  %v4471_v19 = vmul.f32 %v7804_v55, %v7804_v55 }
 0x324   : > { %v4487_v13 = vadd.f32 %v4486_v26, %v4456_v28  ;;  %v4472_v28 = vmul.f32 %v7807_v14, %v7807_v14 }
 0x326   : > { %v4488_v12 = vadd.f32 %v4487_v13, %v4457_v50  ;;  %v4473_v50 = vmul.f32 %v7810_v16, %v7810_v16 }
 0x328   : > { %v4489_v43 = vadd.f32 %v4488_v12, %v4458_v5  ;;  %v4474_v5 = vmul.f32 %v7813_v37, %v7813_v37 }
 0x32a   : > { %v4490_v32 = vadd.f32 %v4489_v43, %v4459_v63 }
 0x32c   : > { %v4491_v34 = vadd.f32 %v4490_v32, %v4460_v22 }
 0x32e   : > { %v4492_v27 = vadd.f32 %v4491_v34, %v4461_v6 }
 0x330   : > { %v4493_v47 = vadd.f32 %v4492_v27, %v4462_v39 }
 0x332   : > { %v4494_v20 = vadd.f32 %v4493_v47, %v4463_v46 }
 0x334   : > { %v4495_v49 = vadd.f32 %v4494_v20, %v4464_v25 }
 0x336   : > { %v4496_v4 = vadd.f32 %v4495_v49, %v4465_v7 }
 0x338   : > { %v4497_v41 = vadd.f32 %v4496_v4, %v4466_v10 }
 0x33a   : > { %v4498_v24 = vadd.f32 %v4497_v41, %v4467_v9 }
 0x33c   : > { %v4499_v2 = vadd.f32 %v4498_v24, %v4468_v3 }
 0x33e   : > { %v4500_v18 = vadd.f32 %v4499_v2, %v4469_v23 }
 0x340   : > { %v4501_v54 = vadd.f32 %v4500_v18, %v4470_v1 }
 0x342   : > { %v4502_v26 = vadd.f32 %v4501_v54, %v4471_v19 }
 0x344   : > { %v4503_v13 = vadd.f32 %v4502_v26, %v4472_v28 }
 0x346   : > { %v4504_v12 = vadd.f32 %v4503_v13, %v4473_v50 }
 0x348   : > { %v4505_v63 = vadd.f32 %v4504_v12, %v4474_v5 }
 0x34a   : > { %v4506_v43 = vrot.slane %v4505_v63, 4 }
 0x34c   : > { %v4507_v22 = vadd.f32 %v4506_v43, %v4505_v63 }
 0x34e   : > { %v4508_v32 = vrot.slane %v4507_v22, 2 }
 0x350   : > { %v4509_v6 = vadd.f32 %v4508_v32, %v4507_v22  ;;  %v5355_v32 = vld [vmem:[%s8059_s4] ss:$0 sm:$0xff] }
 0x352   : > { %v4510_v34 = vrot.slane %v4509_v6, 1 }
 0x354   : > { %v4511_v39 = vadd.f32 %v4510_v34, %v4509_v6 }
 0x356   : > { %v4512_v27 = vmul.f32 0.00390625, %v4511_v39 }
 0x358   : > { %v4513_v46 = vadd.f32 1e-05, %v4512_v27 }
 0x35a   : > { %6566 = vrsqrt.f32 %v4513_v46 }
 0x367   : > { %v6567_v47 = vpop.eup %6566 }
 0x368   : > { %v4515_v25 = vmul.f32 %v6567_v47, %v7817_v31  ;;  %v4516_v20 = vmul.f32 %v6567_v47, %v7821_v30  ;;  %v4517_v7 = vmul.f32 %v6567_v47, %v7825_v62  ;;  %v4518_v49 = vmul.f32 %v6567_v47, %v7833_v21 }
 0x369   : > { %v4519_v10 = vmul.f32 %v6567_v47, %v7837_v61  ;;  %v4520_v4 = vmul.f32 %v6567_v47, %v7843_v53  ;;  %v4521_v9 = vmul.f32 %v6567_v47, %v7849_v48  ;;  %v4522_v41 = vmul.f32 %v6567_v47, %v7855_v35 }
 0x36a   : > { %v4523_v3 = vmul.f32 %v6567_v47, %v7861_v8  ;;  %v4524_v24 = vmul.f32 %v6567_v47, %v7867_v44  ;;  %v4525_v31 = vmul.f32 %v6567_v47, %v7873_v29  ;;  %v4526_v30 = vmul.f32 %v6567_v47, %v7879_v40 }
 0x36b   : > { %v4527_v62 = vmul.f32 %v6567_v47, %v7885_v36  ;;  %v4528_v21 = vmul.f32 %v6567_v47, %v7891_v56  ;;  %v4529_v61 = vmul.f32 %v6567_v47, %v7897_v0  ;;  %v4530_v53 = vmul.f32 %v6567_v47, %v7903_v17  ;;  %v5354_v56 = vld [vmem:[%s8058_s3] ss:$0 sm:$0xff] }
 0x36c   : > { %v4531_v48 = vmul.f32 %v6567_v47, %v7909_v57  ;;  %v4532_v35 = vmul.f32 %v6567_v47, %v7915_v59  ;;  %v4533_v8 = vmul.f32 %v6567_v47, %v7921_v45  ;;  %v4534_v23 = vmul.f32 %v6567_v47, %v4430_v11 }
 0x36d   : > { %v4535_v44 = vmul.f32 %v6567_v47, %v4431_v33  ;;  %v4536_v29 = vmul.f32 %v6567_v47, %v7779_v52  ;;  %v4537_v40 = vmul.f32 %v6567_v47, %v7783_v60  ;;  %v4538_v36 = vmul.f32 %v6567_v47, %v7787_v42 }
 0x36e   : > { %v4539_v0 = vmul.f32 %v6567_v47, %v7791_v38  ;;  %v4540_v17 = vmul.f32 %v6567_v47, %v7795_v51  ;;  %v4541_v57 = vmul.f32 %v6567_v47, %v7798_v58  ;;  %v4542_v59 = vmul.f32 %v6567_v47, %v7801_v15 }
 0x36f   : > { %v4543_v45 = vmul.f32 %v6567_v47, %v7804_v55  ;;  %v4544_v52 = vmul.f32 %v6567_v47, %v7807_v14  ;;  %v4545_v60 = vmul.f32 %v6567_v47, %v7810_v16  ;;  %v4546_v42 = vmul.f32 %v6567_v47, %v7813_v37 }
 0x370   : > { %v4554_v11 = vmul.f32 %v5354_v56, %v4515_v25  ;;  %v4555_v33 = vmul.f32 %v5354_v56, %v4516_v20  ;;  %v4556_v2 = vmul.f32 %v5354_v56, %v4517_v7  ;;  %v4557_v1 = vmul.f32 %v5354_v56, %v4518_v49 }
 0x371   : > { %v4558_v18 = vmul.f32 %v5354_v56, %v4519_v10  ;;  %v4559_v38 = vmul.f32 %v5354_v56, %v4520_v4  ;;  %v4560_v19 = vmul.f32 %v5354_v56, %v4521_v9  ;;  %v4561_v51 = vmul.f32 %v5354_v56, %v4522_v41 }
 0x372   : > { %v4562_v54 = vmul.f32 %v5354_v56, %v4523_v3  ;;  %v4563_v58 = vmul.f32 %v5354_v56, %v4524_v24  ;;  %v4564_v28 = vmul.f32 %v5354_v56, %v4525_v31  ;;  %v4565_v15 = vmul.f32 %v5354_v56, %v4526_v30 }
 0x373   : > { %v4566_v26 = vmul.f32 %v5354_v56, %v4527_v62  ;;  %v4567_v55 = vmul.f32 %v5354_v56, %v4528_v21  ;;  %v4568_v50 = vmul.f32 %v5354_v56, %v4529_v61  ;;  %v4569_v14 = vmul.f32 %v5354_v56, %v4530_v53 }
 0x374   : > { %v4570_v13 = vmul.f32 %v5354_v56, %v4531_v48  ;;  %v4571_v16 = vmul.f32 %v5354_v56, %v4532_v35  ;;  %v4572_v5 = vmul.f32 %v5354_v56, %v4533_v8  ;;  %v4573_v37 = vmul.f32 %v5354_v56, %v4534_v23 }
 0x375   : > { %v4574_v12 = vmul.f32 %v5354_v56, %v4535_v44  ;;  %v4575_v63 = vmul.f32 %v5354_v56, %v4536_v29  ;;  %v4576_v43 = vmul.f32 %v5354_v56, %v4537_v40  ;;  %v4577_v22 = vmul.f32 %v5354_v56, %v4538_v36 }
 0x376   : > { %v4578_v6 = vmul.f32 %v5354_v56, %v4539_v0  ;;  %v4579_v34 = vmul.f32 %v5354_v56, %v4540_v17  ;;  %v4580_v39 = vmul.f32 %v5354_v56, %v4541_v57  ;;  %v4581_v27 = vmul.f32 %v5354_v56, %v4542_v59 }
 0x377   : > { %v4582_v46 = vmul.f32 %v5354_v56, %v4543_v45  ;;  %v4583_v47 = vmul.f32 %v5354_v56, %v4544_v52  ;;  %v4584_v25 = vmul.f32 %v5354_v56, %v4545_v60  ;;  %v4585_v20 = vmul.f32 %v5354_v56, %v4546_v42 }
 0x378   : > { %v7991_v7 = vadd.f32 %v5355_v32, %v4554_v11  ;;  %v7993_v49 = vadd.f32 %v5355_v32, %v4555_v33  ;;  %v7995_v10 = vadd.f32 %v5355_v32, %v4556_v2  ;;  %v7997_v4 = vadd.f32 %v5355_v32, %v4557_v1 }
 0x379   : > { %v7999_v9 = vadd.f32 %v5355_v32, %v4558_v18  ;;  %v8001_v41 = vadd.f32 %v5355_v32, %v4559_v38  ;;  %v8003_v3 = vadd.f32 %v5355_v32, %v4560_v19  ;;  %v8005_v24 = vadd.f32 %v5355_v32, %v4561_v51 }
 0x37a   : > { %v8007_v31 = vadd.f32 %v5355_v32, %v4562_v54  ;;  %v4602_v30 = vadd.f32 %v5355_v32, %v4563_v58  ;;  %v4603_v62 = vadd.f32 %v5355_v32, %v4564_v28  ;;  %v4604_v21 = vadd.f32 %v5355_v32, %v4565_v15 }
 0x37b   : > { %v4605_v61 = vadd.f32 %v5355_v32, %v4566_v26  ;;  %v4606_v53 = vadd.f32 %v5355_v32, %v4567_v55  ;;  %v4607_v48 = vadd.f32 %v5355_v32, %v4568_v50  ;;  %v4608_v35 = vadd.f32 %v5355_v32, %v4569_v14 }
 0x37c   : > { %v8009_v8 = vadd.f32 %v5355_v32, %v4570_v13  ;;  %v4610_v23 = vadd.f32 %v5355_v32, %v4571_v16  ;;  %v4611_v44 = vadd.f32 %v5355_v32, %v4572_v5  ;;  %v4612_v29 = vadd.f32 %v5355_v32, %v4573_v37 }
 0x37d   : > { %v4613_v40 = vadd.f32 %v5355_v32, %v4574_v12  ;;  %v4614_v36 = vadd.f32 %v5355_v32, %v4575_v63  ;;  %v4615_v56 = vadd.f32 %v5355_v32, %v4576_v43  ;;  %v4616_v0 = vadd.f32 %v5355_v32, %v4577_v22 }
 0x37e   : > { %v8011_v17 = vadd.f32 %v5355_v32, %v4578_v6  ;;  %v4618_v57 = vadd.f32 %v5355_v32, %v4579_v34  ;;  %v4619_v59 = vadd.f32 %v5355_v32, %v4580_v39  ;;  %v4620_v45 = vadd.f32 %v5355_v32, %v4581_v27 }
 0x37f   : > { %v4621_v52 = vadd.f32 %v5355_v32, %v4582_v46  ;;  %v4622_v60 = vadd.f32 %v5355_v32, %v4583_v47  ;;  %v4623_v42 = vadd.f32 %v5355_v32, %v4584_v25  ;;  %v4624_v11 = vadd.f32 %v5355_v32, %v4585_v20 }
 0x380   : > { %v4625_v33 = vmax.f32 %v7991_v7, 0.0  ;;  %v4626_v2 = vmax.f32 %v7993_v49, 0.0  ;;  %v4627_v1 = vmax.f32 %v7995_v10, 0.0  ;;  %v4628_v18 = vmax.f32 %v7997_v4, 0.0 }
 0x381   : > { %v4629_v38 = vmax.f32 %v7999_v9, 0.0  ;;  %v4630_v19 = vmax.f32 %v8001_v41, 0.0  ;;  %v4631_v51 = vmax.f32 %v8003_v3, 0.0  ;;  %v4632_v54 = vmax.f32 %v8005_v24, 0.0 }
 0x382   : > { %v4633_v58 = vmax.f32 %v8007_v31, 0.0  ;;  %v4634_v28 = vmax.f32 %v4602_v30, 0.0  ;;  %v4635_v15 = vmax.f32 %v4603_v62, 0.0  ;;  %v4636_v26 = vmax.f32 %v4604_v21, 0.0 }
 0x383   : > { %v4637_v55 = vmax.f32 %v4605_v61, 0.0  ;;  %v4638_v50 = vmax.f32 %v4606_v53, 0.0  ;;  %v4639_v14 = vmax.f32 %v4607_v48, 0.0  ;;  %v4640_v13 = vmax.f32 %v4608_v35, 0.0 }
 0x384   : > { %v4641_v16 = vmax.f32 %v8009_v8, 0.0  ;;  %v4642_v5 = vmax.f32 %v4610_v23, 0.0  ;;  %v4643_v37 = vmax.f32 %v4611_v44, 0.0  ;;  %v4644_v12 = vmax.f32 %v4612_v29, 0.0 }
 0x385   : > { %v4645_v63 = vmax.f32 %v4613_v40, 0.0  ;;  %v4646_v43 = vmax.f32 %v4614_v36, 0.0  ;;  %v4647_v22 = vmax.f32 %v4615_v56, 0.0  ;;  %v4648_v32 = vmax.f32 %v4616_v0, 0.0 }
 0x386   : > { %v4649_v6 = vmax.f32 %v8011_v17, 0.0  ;;  %v4650_v34 = vmax.f32 %v4618_v57, 0.0  ;;  %v4651_v39 = vmax.f32 %v4619_v59, 0.0  ;;  %v4652_v27 = vmax.f32 %v4620_v45, 0.0 }
 0x387   : > { %v4653_v46 = vmax.f32 %v4621_v52, 0.0  ;;  %v4654_v47 = vmax.f32 %v4622_v60, 0.0  ;;  %v4655_v25 = vmax.f32 %v4623_v42, 0.0  ;;  %v4656_v20 = vmax.f32 %v4624_v11, 0.0 }
 0x388   : > { %v5426_v7 = vpack.c.bf16 %v4626_v2, %v4625_v33  ;;  %v5431_v49 = vpack.c.bf16 %v4628_v18, %v4627_v1  ;;  %v5436_v10 = vpack.c.bf16 %v4630_v19, %v4629_v38  ;;  %v5441_v4 = vpack.c.bf16 %v4632_v54, %v4631_v51 }
 0x389   : > { %v5446_v9 = vpack.c.bf16 %v4634_v28, %v4633_v58  ;;  %v5451_v41 = vpack.c.bf16 %v4636_v26, %v4635_v15  ;;  %v5456_v3 = vpack.c.bf16 %v4638_v50, %v4637_v55  ;;  %v5461_v24 = vpack.c.bf16 %v4640_v13, %v4639_v14 }
 0x38a   : > { %5427 = vst [vmem:[%s8028_s27] sm:$0xff] %v5426_v7   ;;  %5503 = vst [vmem:[%s8028_s27 + $0x8] sm:$0xff] %v5431_v49   ;;  %v5466_v31 = vpack.c.bf16 %v4642_v5, %v4641_v16  ;;  %v5471_v30 = vpack.c.bf16 %v4644_v12, %v4643_v37  ;;  %v5476_v62 = vpack.c.bf16 %v4646_v43, %v4645_v63 }
 0x38b   : > { %5504 = vst [vmem:[%s8028_s27 + $0x10] sm:$0xff] %v5436_v10   ;;  %5505 = vst [vmem:[%s8028_s27 + $0x18] sm:$0xff] %v5441_v4   ;;  %v5481_v21 = vpack.c.bf16 %v4648_v32, %v4647_v22  ;;  %v5486_v61 = vpack.c.bf16 %v4650_v34, %v4649_v6  ;;  %v5491_v53 = vpack.c.bf16 %v4652_v27, %v4651_v39 }
 0x38c   : > { %5506 = vst [vmem:[%s8028_s27 + $0x20] sm:$0xff] %v5446_v9   ;;  %5507 = vst [vmem:[%s8028_s27 + $0x28] sm:$0xff] %v5451_v41   ;;  %v5496_v48 = vpack.c.bf16 %v4654_v47, %v4653_v46  ;;  %v5501_v35 = vpack.c.bf16 %v4656_v20, %v4655_v25 }
 0x38d   : > { %5508 = vst [vmem:[%s8028_s27 + $0x30] sm:$0xff] %v5456_v3   ;;  %5509 = vst [vmem:[%s8028_s27 + $0x38] sm:$0xff] %v5461_v24  }
 0x38e   : > { %5510 = vst [vmem:[%s8028_s27 + $0x40] sm:$0xff] %v5466_v31   ;;  %5511 = vst [vmem:[%s8028_s27 + $0x48] sm:$0xff] %v5471_v30  }
 0x38f   : > { %5512 = vst [vmem:[%s8028_s27 + $0x50] sm:$0xff] %v5476_v62   ;;  %5513 = vst [vmem:[%s8028_s27 + $0x58] sm:$0xff] %v5481_v21  }
 0x390   : > { %5514 = vst [vmem:[%s8028_s27 + $0x60] sm:$0xff] %v5486_v61   ;;  %5515 = vst [vmem:[%s8028_s27 + $0x68] sm:$0xff] %v5491_v53  }
 0x391   : > { %5516 = vst [vmem:[%s8028_s27 + $0x70] sm:$0xff] %v5496_v48   ;;  %5517 = vst [vmem:[%s8028_s27 + $0x78] sm:$0xff] %v5501_v35  }
 0x392 PF: > { %s15_s20 = sadd.s32 1, %s6590_s20   ;;  %s8099_s18 = smov %s6586_s19 }
 0x393   : > { %p12_p5 = scmp.ge.s32.totalorder %s15_s20, 4   ;;  %s8100_s19 = smov %s8102_s21 }
 0x395   :  { %14 = sbr.rel (!%p12_p5) target bundleno = 2 (0x2), region = 90 }

// kernel: generator_forward.19
= control target key start
LH: loop header
LB: loop body
LE: loop exit
PB: predicated region body
PF: predicated region fallthrough
CT: control target
= control target key end

     0   :  { %s4070_s12 = smov 0   ;;  %s4072_s13 = smov 0   ;;  %s4881_s0 = inlined_call_operand.vmem [shape: bf16[512,6272], index: 0, kind: input, shape index: {}]   ;;  %s4882_s1 = inlined_call_operand.vmem [shape: bf16[6272,128], index: 1, kind: input, shape index: {}]   ;;  %s4883_s2 = inlined_call_operand.vmem [shape: f32[1,128], index: 2, kind: input, shape index: {}]   ;;  %s4884_s3 = inlined_call_operand.vmem [shape: bf16[512,128], index: 3, kind: output, shape index: {}]  }
   0x1   :  { %s4074_s14 = smov 0   ;;  %s4076_s15 = smov 0  }
   0x2   :  { %s4078_s16 = smov 0   ;;  %s4080_s17 = smov 0  }
   0x3   :  { %s4082_s18 = smov 0  }
   0x4 LB: > { %s25_s19 = sadd.s32 1, %s4040_s16  ;;  %s32_s20 = sadd.s32 1, %s4044_s17  ;;  %s4048_s18 = sphi %s4082_s18, %s13_s18   ;;  %s4044_s17 = sphi %s4080_s17, %s4914_s17   ;;  %s4040_s16 = sphi %s4078_s16, %s4913_s16   ;;  %s4036_s15 = sphi %s4076_s15, %s4912_s15   ;;  %s4032_s14 = sphi %s4074_s14, %s4911_s14   ;;  %s4028_s13 = sphi %s4072_s13, %s4910_s13   ;;  %s4024_s12 = sphi %s4070_s12, %s4909_s12  }
   0x5   : > { %p26_p0 = scmp.ge.s32.totalorder %s25_s19, 7  ;;  %p48_p1 = scmp.ne.s32.totalorder %s4028_s13, %s4024_s12 }
   0x6   : > { %p49_p2 = scmp.eq.s32.totalorder %s4048_s18, 0  ;;  %s41_s24 = sadd.s32 1, %s4028_s13 }
   0x7   : > { %s4916_s19 = smov (%p26_p0, %s25_s19), 0  ;;  %s4918_s20 = smov (!%p26_p0, %s32_s20), %s4044_s17 }
   0x8   : > { %p50_p3 = por %p49_p2, %p48_p1  ;;  %p34_p4 = scmp.ge.s32.totalorder %s4918_s20, 2 }
   0x9   : > { %s37_s21 = ssub.s32 %s4040_s16, %s4916_s19  ;;  %p2827_p6 = scmp.ge.s32.totalorder %s4048_s18, 14 }
   0xa   : > { %s4920_s20 = smov (%p34_p4, %s4918_s20), 0 }
   0xb   : > { %s36_s22 = ssub.s32 %s4044_s17, %s4920_s20  ;;  %162 = sbr.rel (%p2827_p6) target bundleno = 94 (0x5e), region = 20 }
   0xc   : > { %s38_s23 = sor.u32 %s37_s21, %s36_s22 }
   0xd   : > { %p39_p5 = scmp.eq.s32.totalorder %s38_s23, 0 }
   0xf   : > { %s4121_s25 = scalar_select %p39_p5, %s4028_s13, %s41_s24  }
  0x10   : > { %165 = sbr.rel (!%p50_p3) target bundleno = 94 (0x5e), region = 24  ;;  %s167_s26 = sand.u32 (%p50_p3), 1, %s4028_s13  }
  0x11   : > { %s171_s27 = smul.u32 (%p50_p3), 7, %s4040_s16 }
  0x12   : > { %s3655_s28 = smul.u32 (%p50_p3), 896, %s167_s26 }
  0x13   : > { %s3656_s29 = smul.u32 (%p50_p3), 1568, %s4044_s17 }
  0x14   : > { %s4135_s8 = scalar_lea.vmem (%p50_p3), [#allocation3], %s3655_s28 }
  0x15   : > { %s173_s30 = sadd.s32 %s3656_s29, %s171_s27 }
  0x16   : > { %s2830_s4 = sshll.u32 %s173_s30, 2 }
  0x17   : > { %s4130_s7 = scalar_lea.vmem %s4881_s0, %s2830_s4 }
  0x18   : > { %v190_v0 = vld [vmem:[%s4130_s7] sm:$0xff]  ;;  %v192_v1 = vld [vmem:[%s4130_s7 + $0x8] sm:$0xff]  ;;  %v194_v2 = vld [vmem:[%s4130_s7 + $0x10] sm:$0xff] }
  0x19   : > { %191 = vst [vmem:[%s4135_s8] sm:$0xff] %v190_v0  ;;  %193 = vst [vmem:[%s4135_s8 + $0x8] sm:$0xff] %v192_v1  ;;  %v196_v3 = vld [vmem:[%s4130_s7 + $0xc4] sm:$0xff]  ;;  %v198_v4 = vld [vmem:[%s4130_s7 + $0xcc] sm:$0xff] }
  0x1a   : > { %195 = vst [vmem:[%s4135_s8 + $0x10] sm:$0xff] %v194_v2  ;;  %v200_v5 = vld [vmem:[%s4130_s7 + $0xd4] sm:$0xff]  ;;  %197 = vst [vmem:[%s4135_s8 + $0x1c] sm:$0xff] %v196_v3  ;;  %v202_v6 = vld [vmem:[%s4130_s7 + $0x188] sm:$0xff] }
  0x1b   : > { %199 = vst [vmem:[%s4135_s8 + $0x24] sm:$0xff] %v198_v4  ;;  %201 = vst [vmem:[%s4135_s8 + $0x2c] sm:$0xff] %v200_v5  ;;  %v204_v7 = vld [vmem:[%s4130_s7 + $0x190] sm:$0xff]  ;;  %v206_v8 = vld [vmem:[%s4130_s7 + $0x198] sm:$0xff] }
  0x1c   : > { %203 = vst [vmem:[%s4135_s8 + $0x38] sm:$0xff] %v202_v6  ;;  %205 = vst [vmem:[%s4135_s8 + $0x40] sm:$0xff] %v204_v7  ;;  %v208_v9 = vld [vmem:[%s4130_s7 + $0x24c] sm:$0xff]  ;;  %v210_v10 = vld [vmem:[%s4130_s7 + $0x254] sm:$0xff] }
  0x1d   : > { %207 = vst [vmem:[%s4135_s8 + $0x48] sm:$0xff] %v206_v8  ;;  %v212_v11 = vld [vmem:[%s4130_s7 + $0x25c] sm:$0xff]  ;;  %209 = vst [vmem:[%s4135_s8 + $0x54] sm:$0xff] %v208_v9  ;;  %v214_v12 = vld [vmem:[%s4130_s7 + $0x310] sm:$0xff] }
  0x1e   : > { %211 = vst [vmem:[%s4135_s8 + $0x5c] sm:$0xff] %v210_v10  ;;  %213 = vst [vmem:[%s4135_s8 + $0x64] sm:$0xff] %v212_v11  ;;  %v216_v13 = vld [vmem:[%s4130_s7 + $0x318] sm:$0xff]  ;;  %v218_v14 = vld [vmem:[%s4130_s7 + $0x320] sm:$0xff] }
  0x1f   : > { %215 = vst [vmem:[%s4135_s8 + $0x70] sm:$0xff] %v214_v12  ;;  %217 = vst [vmem:[%s4135_s8 + $0x78] sm:$0xff] %v216_v13  ;;  %v220_v15 = vld [vmem:[%s4130_s7 + $0x3d4] sm:$0xff]  ;;  %v222_v16 = vld [vmem:[%s4130_s7 + $0x3dc] sm:$0xff] }
  0x20   : > { %219 = vst [vmem:[%s4135_s8 + $0x80] sm:$0xff] %v218_v14  ;;  %v224_v17 = vld [vmem:[%s4130_s7 + $0x3e4] sm:$0xff]  ;;  %221 = vst [vmem:[%s4135_s8 + $0x8c] sm:$0xff] %v220_v15  ;;  %v226_v18 = vld [vmem:[%s4130_s7 + $0x498] sm:$0xff] }
  0x21   : > { %223 = vst [vmem:[%s4135_s8 + $0x94] sm:$0xff] %v222_v16  ;;  %225 = vst [vmem:[%s4135_s8 + $0x9c] sm:$0xff] %v224_v17  ;;  %v228_v19 = vld [vmem:[%s4130_s7 + $0x4a0] sm:$0xff]  ;;  %v230_v20 = vld [vmem:[%s4130_s7 + $0x4a8] sm:$0xff] }
  0x22   : > { %227 = vst [vmem:[%s4135_s8 + $0xa8] sm:$0xff] %v226_v18  ;;  %229 = vst [vmem:[%s4135_s8 + $0xb0] sm:$0xff] %v228_v19  ;;  %v232_v21 = vld [vmem:[%s4130_s7 + $0x55c] sm:$0xff]  ;;  %v234_v22 = vld [vmem:[%s4130_s7 + $0x564] sm:$0xff] }
  0x23   : > { %231 = vst [vmem:[%s4135_s8 + $0xb8] sm:$0xff] %v230_v20  ;;  %v236_v23 = vld [vmem:[%s4130_s7 + $0x56c] sm:$0xff]  ;;  %233 = vst [vmem:[%s4135_s8 + $0xc4] sm:$0xff] %v232_v21  ;;  %v238_v24 = vld [vmem:[%s4130_s7 + $0x620] sm:$0xff] }
  0x24   : > { %235 = vst [vmem:[%s4135_s8 + $0xcc] sm:$0xff] %v234_v22  ;;  %237 = vst [vmem:[%s4135_s8 + $0xd4] sm:$0xff] %v236_v23  ;;  %v240_v25 = vld [vmem:[%s4130_s7 + $0x628] sm:$0xff]  ;;  %v242_v26 = vld [vmem:[%s4130_s7 + $0x630] sm:$0xff] }
  0x25   : > { %239 = vst [vmem:[%s4135_s8 + $0xe0] sm:$0xff] %v238_v24  ;;  %241 = vst [vmem:[%s4135_s8 + $0xe8] sm:$0xff] %v240_v25  ;;  %v244_v27 = vld [vmem:[%s4130_s7 + $0x6e4] sm:$0xff]  ;;  %v246_v28 = vld [vmem:[%s4130_s7 + $0x6ec] sm:$0xff] }
  0x26   : > { %243 = vst [vmem:[%s4135_s8 + $0xf0] sm:$0xff] %v242_v26  ;;  %v248_v29 = vld [vmem:[%s4130_s7 + $0x6f4] sm:$0xff]  ;;  %245 = vst [vmem:[%s4135_s8 + $0xfc] sm:$0xff] %v244_v27  ;;  %v250_v30 = vld [vmem:[%s4130_s7 + $0x7a8] sm:$0xff] }
  0x27   : > { %247 = vst [vmem:[%s4135_s8 + $0x104] sm:$0xff] %v246_v28  ;;  %249 = vst [vmem:[%s4135_s8 + $0x10c] sm:$0xff] %v248_v29  ;;  %v252_v31 = vld [vmem:[%s4130_s7 + $0x7b0] sm:$0xff]  ;;  %v254_v32 = vld [vmem:[%s4130_s7 + $0x7b8] sm:$0xff] }
  0x28   : > { %251 = vst [vmem:[%s4135_s8 + $0x118] sm:$0xff] %v250_v30  ;;  %253 = vst [vmem:[%s4135_s8 + $0x120] sm:$0xff] %v252_v31  ;;  %v256_v33 = vld [vmem:[%s4130_s7 + $0x86c] sm:$0xff]  ;;  %v258_v34 = vld [vmem:[%s4130_s7 + $0x874] sm:$0xff] }
  0x29   : > { %255 = vst [vmem:[%s4135_s8 + $0x128] sm:$0xff] %v254_v32  ;;  %v260_v35 = vld [vmem:[%s4130_s7 + $0x87c] sm:$0xff]  ;;  %257 = vst [vmem:[%s4135_s8 + $0x134] sm:$0xff] %v256_v33  ;;  %v262_v36 = vld [vmem:[%s4130_s7 + $0x930] sm:$0xff] }
  0x2a   : > { %259 = vst [vmem:[%s4135_s8 + $0x13c] sm:$0xff] %v258_v34  ;;  %261 = vst [vmem:[%s4135_s8 + $0x144] sm:$0xff] %v260_v35  ;;  %v264_v37 = vld [vmem:[%s4130_s7 + $0x938] sm:$0xff]  ;;  %v266_v38 = vld [vmem:[%s4130_s7 + $0x940] sm:$0xff] }
  0x2b   : > { %263 = vst [vmem:[%s4135_s8 + $0x150] sm:$0xff] %v262_v36  ;;  %265 = vst [vmem:[%s4135_s8 + $0x158] sm:$0xff] %v264_v37  ;;  %v268_v39 = vld [vmem:[%s4130_s7 + $0x9f4] sm:$0xff]  ;;  %v270_v40 = vld [vmem:[%s4130_s7 + $0x9fc] sm:$0xff] }
  0x2c   : > { %267 = vst [vmem:[%s4135_s8 + $0x160] sm:$0xff] %v266_v38  ;;  %v272_v41 = vld [vmem:[%s4130_s7 + $0xa04] sm:$0xff]  ;;  %269 = vst [vmem:[%s4135_s8 + $0x16c] sm:$0xff] %v268_v39  ;;  %v274_v42 = vld [vmem:[%s4130_s7 + $0xab8] sm:$0xff] }
  0x2d   : > { %271 = vst [vmem:[%s4135_s8 + $0x174] sm:$0xff] %v270_v40  ;;  %273 = vst [vmem:[%s4135_s8 + $0x17c] sm:$0xff] %v272_v41  ;;  %v276_v43 = vld [vmem:[%s4130_s7 + $0xac0] sm:$0xff]  ;;  %v278_v44 = vld [vmem:[%s4130_s7 + $0xac8] sm:$0xff] }
  0x2e   : > { %275 = vst [vmem:[%s4135_s8 + $0x188] sm:$0xff] %v274_v42  ;;  %277 = vst [vmem:[%s4135_s8 + $0x190] sm:$0xff] %v276_v43  ;;  %v280_v45 = vld [vmem:[%s4130_s7 + $0xb7c] sm:$0xff]  ;;  %v282_v46 = vld [vmem:[%s4130_s7 + $0xb84] sm:$0xff] }
  0x2f   : > { %279 = vst [vmem:[%s4135_s8 + $0x198] sm:$0xff] %v278_v44  ;;  %v284_v47 = vld [vmem:[%s4130_s7 + $0xb8c] sm:$0xff]  ;;  %281 = vst [vmem:[%s4135_s8 + $0x1a4] sm:$0xff] %v280_v45  ;;  %v286_v48 = vld [vmem:[%s4130_s7 + $0xc40] sm:$0xff] }
  0x30   : > { %283 = vst [vmem:[%s4135_s8 + $0x1ac] sm:$0xff] %v282_v46  ;;  %285 = vst [vmem:[%s4135_s8 + $0x1b4] sm:$0xff] %v284_v47  ;;  %v288_v49 = vld [vmem:[%s4130_s7 + $0xc48] sm:$0xff]  ;;  %v290_v50 = vld [vmem:[%s4130_s7 + $0xc50] sm:$0xff] }
  0x31   : > { %287 = vst [vmem:[%s4135_s8 + $0x1c0] sm:$0xff] %v286_v48  ;;  %289 = vst [vmem:[%s4135_s8 + $0x1c8] sm:$0xff] %v288_v49  ;;  %v292_v51 = vld [vmem:[%s4130_s7 + $0xd04] sm:$0xff]  ;;  %v294_v52 = vld [vmem:[%s4130_s7 + $0xd0c] sm:$0xff] }
  0x32   : > { %291 = vst [vmem:[%s4135_s8 + $0x1d0] sm:$0xff] %v290_v50  ;;  %v296_v53 = vld [vmem:[%s4130_s7 + $0xd14] sm:$0xff]  ;;  %293 = vst [vmem:[%s4135_s8 + $0x1dc] sm:$0xff] %v292_v51  ;;  %v298_v54 = vld [vmem:[%s4130_s7 + $0xdc8] sm:$0xff] }
  0x33   : > { %295 = vst [vmem:[%s4135_s8 + $0x1e4] sm:$0xff] %v294_v52  ;;  %297 = vst [vmem:[%s4135_s8 + $0x1ec] sm:$0xff] %v296_v53  ;;  %v300_v55 = vld [vmem:[%s4130_s7 + $0xdd0] sm:$0xff]  ;;  %v302_v56 = vld [vmem:[%s4130_s7 + $0xdd8] sm:$0xff] }
  0x34   : > { %299 = vst [vmem:[%s4135_s8 + $0x1f8] sm:$0xff] %v298_v54  ;;  %301 = vst [vmem:[%s4135_s8 + $0x200] sm:$0xff] %v300_v55  ;;  %v304_v57 = vld [vmem:[%s4130_s7 + $0xe8c] sm:$0xff]  ;;  %v306_v58 = vld [vmem:[%s4130_s7 + $0xe94] sm:$0xff] }
  0x35   : > { %303 = vst [vmem:[%s4135_s8 + $0x208] sm:$0xff] %v302_v56  ;;  %v308_v59 = vld [vmem:[%s4130_s7 + $0xe9c] sm:$0xff]  ;;  %305 = vst [vmem:[%s4135_s8 + $0x214] sm:$0xff] %v304_v57  ;;  %v310_v60 = vld [vmem:[%s4130_s7 + $0xf50] sm:$0xff] }
  0x36   : > { %307 = vst [vmem:[%s4135_s8 + $0x21c] sm:$0xff] %v306_v58  ;;  %309 = vst [vmem:[%s4135_s8 + $0x224] sm:$0xff] %v308_v59  ;;  %v312_v61 = vld [vmem:[%s4130_s7 + $0xf58] sm:$0xff]  ;;  %v314_v62 = vld [vmem:[%s4130_s7 + $0xf60] sm:$0xff] }
  0x37   : > { %311 = vst [vmem:[%s4135_s8 + $0x230] sm:$0xff] %v310_v60  ;;  %313 = vst [vmem:[%s4135_s8 + $0x238] sm:$0xff] %v312_v61  ;;  %v316_v63 = vld [vmem:[%s4130_s7 + $0x1014] sm:$0xff]  ;;  %v318_v0 = vld [vmem:[%s4130_s7 + $0x101c] sm:$0xff] }
  0x38   : > { %315 = vst [vmem:[%s4135_s8 + $0x240] sm:$0xff] %v314_v62  ;;  %v320_v1 = vld [vmem:[%s4130_s7 + $0x1024] sm:$0xff]  ;;  %317 = vst [vmem:[%s4135_s8 + $0x24c] sm:$0xff] %v316_v63  ;;  %v322_v2 = vld [vmem:[%s4130_s7 + $0x10d8] sm:$0xff] }
  0x39   : > { %319 = vst [vmem:[%s4135_s8 + $0x254] sm:$0xff] %v318_v0  ;;  %321 = vst [vmem:[%s4135_s8 + $0x25c] sm:$0xff] %v320_v1  ;;  %v324_v3 = vld [vmem:[%s4130_s7 + $0x10e0] sm:$0xff]  ;;  %v326_v4 = vld [vmem:[%s4130_s7 + $0x10e8] sm:$0xff] }
  0x3a   : > { %323 = vst [vmem:[%s4135_s8 + $0x268] sm:$0xff] %v322_v2  ;;  %325 = vst [vmem:[%s4135_s8 + $0x270] sm:$0xff] %v324_v3  ;;  %v328_v5 = vld [vmem:[%s4130_s7 + $0x119c] sm:$0xff]  ;;  %v330_v6 = vld [vmem:[%s4130_s7 + $0x11a4] sm:$0xff] }
  0x3b   : > { %327 = vst [vmem:[%s4135_s8 + $0x278] sm:$0xff] %v326_v4  ;;  %v332_v7 = vld [vmem:[%s4130_s7 + $0x11ac] sm:$0xff]  ;;  %329 = vst [vmem:[%s4135_s8 + $0x284] sm:$0xff] %v328_v5  ;;  %v334_v8 = vld [vmem:[%s4130_s7 + $0x1260] sm:$0xff] }
  0x3c   : > { %331 = vst [vmem:[%s4135_s8 + $0x28c] sm:$0xff] %v330_v6  ;;  %333 = vst [vmem:[%s4135_s8 + $0x294] sm:$0xff] %v332_v7  ;;  %v336_v9 = vld [vmem:[%s4130_s7 + $0x1268] sm:$0xff]  ;;  %v338_v10 = vld [vmem:[%s4130_s7 + $0x1270] sm:$0xff] }
  0x3d   : > { %335 = vst [vmem:[%s4135_s8 + $0x2a0] sm:$0xff] %v334_v8  ;;  %337 = vst [vmem:[%s4135_s8 + $0x2a8] sm:$0xff] %v336_v9  ;;  %v340_v11 = vld [vmem:[%s4130_s7 + $0x1324] sm:$0xff]  ;;  %v342_v12 = vld [vmem:[%s4130_s7 + $0x132c] sm:$0xff] }
  0x3e   : > { %339 = vst [vmem:[%s4135_s8 + $0x2b0] sm:$0xff] %v338_v10  ;;  %v344_v13 = vld [vmem:[%s4130_s7 + $0x1334] sm:$0xff]  ;;  %341 = vst [vmem:[%s4135_s8 + $0x2bc] sm:$0xff] %v340_v11  ;;  %v346_v14 = vld [vmem:[%s4130_s7 + $0x13e8] sm:$0xff] }
  0x3f   : > { %343 = vst [vmem:[%s4135_s8 + $0x2c4] sm:$0xff] %v342_v12  ;;  %345 = vst [vmem:[%s4135_s8 + $0x2cc] sm:$0xff] %v344_v13  ;;  %v348_v15 = vld [vmem:[%s4130_s7 + $0x13f0] sm:$0xff]  ;;  %v350_v16 = vld [vmem:[%s4130_s7 + $0x13f8] sm:$0xff] }
  0x40   : > { %347 = vst [vmem:[%s4135_s8 + $0x2d8] sm:$0xff] %v346_v14  ;;  %349 = vst [vmem:[%s4135_s8 + $0x2e0] sm:$0xff] %v348_v15  ;;  %v352_v17 = vld [vmem:[%s4130_s7 + $0x14ac] sm:$0xff]  ;;  %v354_v18 = vld [vmem:[%s4130_s7 + $0x14b4] sm:$0xff] }
  0x41   : > { %351 = vst [vmem:[%s4135_s8 + $0x2e8] sm:$0xff] %v350_v16  ;;  %v356_v19 = vld [vmem:[%s4130_s7 + $0x14bc] sm:$0xff]  ;;  %353 = vst [vmem:[%s4135_s8 + $0x2f4] sm:$0xff] %v352_v17  ;;  %v358_v20 = vld [vmem:[%s4130_s7 + $0x1570] sm:$0xff] }
  0x42   : > { %355 = vst [vmem:[%s4135_s8 + $0x2fc] sm:$0xff] %v354_v18  ;;  %357 = vst [vmem:[%s4135_s8 + $0x304] sm:$0xff] %v356_v19  ;;  %v360_v21 = vld [vmem:[%s4130_s7 + $0x1578] sm:$0xff]  ;;  %v362_v22 = vld [vmem:[%s4130_s7 + $0x1580] sm:$0xff] }
  0x43   : > { %359 = vst [vmem:[%s4135_s8 + $0x310] sm:$0xff] %v358_v20  ;;  %361 = vst [vmem:[%s4135_s8 + $0x318] sm:$0xff] %v360_v21  ;;  %v364_v23 = vld [vmem:[%s4130_s7 + $0x1634] sm:$0xff]  ;;  %v366_v24 = vld [vmem:[%s4130_s7 + $0x163c] sm:$0xff] }
  0x44   : > { %363 = vst [vmem:[%s4135_s8 + $0x320] sm:$0xff] %v362_v22  ;;  %v368_v25 = vld [vmem:[%s4130_s7 + $0x1644] sm:$0xff]  ;;  %365 = vst [vmem:[%s4135_s8 + $0x32c] sm:$0xff] %v364_v23  ;;  %v370_v26 = vld [vmem:[%s4130_s7 + $0x16f8] sm:$0xff] }
  0x45   : > { %367 = vst [vmem:[%s4135_s8 + $0x334] sm:$0xff] %v366_v24  ;;  %369 = vst [vmem:[%s4135_s8 + $0x33c] sm:$0xff] %v368_v25  ;;  %v372_v27 = vld [vmem:[%s4130_s7 + $0x1700] sm:$0xff]  ;;  %v374_v28 = vld [vmem:[%s4130_s7 + $0x1708] sm:$0xff] }
  0x46   : > { %371 = vst [vmem:[%s4135_s8 + $0x348] sm:$0xff] %v370_v26  ;;  %373 = vst [vmem:[%s4135_s8 + $0x350] sm:$0xff] %v372_v27  ;;  %v376_v29 = vld [vmem:[%s4130_s7 + $0x17bc] sm:$0xff]  ;;  %v378_v30 = vld [vmem:[%s4130_s7 + $0x17c4] sm:$0xff] }
  0x47   : > { %375 = vst [vmem:[%s4135_s8 + $0x358] sm:$0xff] %v374_v28  ;;  %v380_v31 = vld [vmem:[%s4130_s7 + $0x17cc] sm:$0xff]  ;;  %377 = vst [vmem:[%s4135_s8 + $0x364] sm:$0xff] %v376_v29  ;;  %v2831_v32 = vld [vmem:[%s4130_s7 + $0x18] sm:$0xf] }
  0x48   : > { %379 = vst [vmem:[%s4135_s8 + $0x36c] sm:$0xff] %v378_v30  ;;  %381 = vst [vmem:[%s4135_s8 + $0x374] sm:$0xff] %v380_v31  ;;  %v2833_v33 = vld [vmem:[%s4130_s7 + $0xdc] sm:$0xf]  ;;  %v2835_v34 = vld [vmem:[%s4130_s7 + $0x1a0] sm:$0xf] }
  0x49   : > { %2832 = vst [vmem:[%s4135_s8 + $0x18] sm:$0xf] %v2831_v32  ;;  %2834 = vst [vmem:[%s4135_s8 + $0x34] sm:$0xf] %v2833_v33  ;;  %v2837_v35 = vld [vmem:[%s4130_s7 + $0x264] sm:$0xf] }
  0x4a   : > { %2836 = vst [vmem:[%s4135_s8 + $0x50] sm:$0xf] %v2835_v34  ;;  %v2839_v36 = vld [vmem:[%s4130_s7 + $0x328] sm:$0xf]  ;;  %v2841_v37 = vld [vmem:[%s4130_s7 + $0x3ec] sm:$0xf] }
  0x4b   : > { %2838 = vst [vmem:[%s4135_s8 + $0x6c] sm:$0xf] %v2837_v35  ;;  %2840 = vst [vmem:[%s4135_s8 + $0x88] sm:$0xf] %v2839_v36  ;;  %v2843_v38 = vld [vmem:[%s4130_s7 + $0x4b0] sm:$0xf] }
  0x4c   : > { %2842 = vst [vmem:[%s4135_s8 + $0xa4] sm:$0xf] %v2841_v37  ;;  %v2845_v39 = vld [vmem:[%s4130_s7 + $0x574] sm:$0xf]  ;;  %v2847_v40 = vld [vmem:[%s4130_s7 + $0x638] sm:$0xf] }
  0x4d   : > { %2844 = vst [vmem:[%s4135_s8 + $0xc0] sm:$0xf] %v2843_v38  ;;  %2846 = vst [vmem:[%s4135_s8 + $0xdc] sm:$0xf] %v2845_v39  ;;  %v2849_v41 = vld [vmem:[%s4130_s7 + $0x6fc] sm:$0xf] }
  0x4e   : > { %2848 = vst [vmem:[%s4135_s8 + $0xf8] sm:$0xf] %v2847_v40  ;;  %v2851_v42 = vld [vmem:[%s4130_s7 + $0x7c0] sm:$0xf]  ;;  %v2853_v43 = vld [vmem:[%s4130_s7 + $0x884] sm:$0xf] }
  0x4f   : > { %2850 = vst [vmem:[%s4135_s8 + $0x114] sm:$0xf] %v2849_v41  ;;  %2852 = vst [vmem:[%s4135_s8 + $0x130] sm:$0xf] %v2851_v42  ;;  %v2855_v44 = vld [vmem:[%s4130_s7 + $0x948] sm:$0xf] }
  0x50   : > { %2854 = vst [vmem:[%s4135_s8 + $0x14c] sm:$0xf] %v2853_v43  ;;  %v2857_v45 = vld [vmem:[%s4130_s7 + $0xa0c] sm:$0xf]  ;;  %v2859_v46 = vld [vmem:[%s4130_s7 + $0xad0] sm:$0xf] }
  0x51   : > { %2856 = vst [vmem:[%s4135_s8 + $0x168] sm:$0xf] %v2855_v44  ;;  %2858 = vst [vmem:[%s4135_s8 + $0x184] sm:$0xf] %v2857_v45  ;;  %v2861_v47 = vld [vmem:[%s4130_s7 + $0xb94] sm:$0xf] }
  0x52   : > { %2860 = vst [vmem:[%s4135_s8 + $0x1a0] sm:$0xf] %v2859_v46  ;;  %v2863_v48 = vld [vmem:[%s4130_s7 + $0xc58] sm:$0xf]  ;;  %v2865_v49 = vld [vmem:[%s4130_s7 + $0xd1c] sm:$0xf] }
  0x53   : > { %2862 = vst [vmem:[%s4135_s8 + $0x1bc] sm:$0xf] %v2861_v47  ;;  %2864 = vst [vmem:[%s4135_s8 + $0x1d8] sm:$0xf] %v2863_v48  ;;  %v2867_v50 = vld [vmem:[%s4130_s7 + $0xde0] sm:$0xf] }
  0x54   : > { %2866 = vst [vmem:[%s4135_s8 + $0x1f4] sm:$0xf] %v2865_v49  ;;  %v2869_v51 = vld [vmem:[%s4130_s7 + $0xea4] sm:$0xf]  ;;  %v2871_v52 = vld [vmem:[%s4130_s7 + $0xf68] sm:$0xf] }
  0x55   : > { %2868 = vst [vmem:[%s4135_s8 + $0x210] sm:$0xf] %v2867_v50  ;;  %2870 = vst [vmem:[%s4135_s8 + $0x22c] sm:$0xf] %v2869_v51  ;;  %v2873_v53 = vld [vmem:[%s4130_s7 + $0x102c] sm:$0xf] }
  0x56   : > { %2872 = vst [vmem:[%s4135_s8 + $0x248] sm:$0xf] %v2871_v52  ;;  %v2875_v54 = vld [vmem:[%s4130_s7 + $0x10f0] sm:$0xf]  ;;  %v2877_v55 = vld [vmem:[%s4130_s7 + $0x11b4] sm:$0xf] }
  0x57   : > { %2874 = vst [vmem:[%s4135_s8 + $0x264] sm:$0xf] %v2873_v53  ;;  %2876 = vst [vmem:[%s4135_s8 + $0x280] sm:$0xf] %v2875_v54  ;;  %v2879_v56 = vld [vmem:[%s4130_s7 + $0x1278] sm:$0xf] }
  0x58   : > { %2878 = vst [vmem:[%s4135_s8 + $0x29c] sm:$0xf] %v2877_v55  ;;  %v2881_v57 = vld [vmem:[%s4130_s7 + $0x133c] sm:$0xf]  ;;  %v2883_v58 = vld [vmem:[%s4130_s7 + $0x1400] sm:$0xf] }
  0x59   : > { %2880 = vst [vmem:[%s4135_s8 + $0x2b8] sm:$0xf] %v2879_v56  ;;  %2882 = vst [vmem:[%s4135_s8 + $0x2d4] sm:$0xf] %v2881_v57  ;;  %v2885_v59 = vld [vmem:[%s4130_s7 + $0x14c4] sm:$0xf] }
  0x5a   : > { %2884 = vst [vmem:[%s4135_s8 + $0x2f0] sm:$0xf] %v2883_v58  ;;  %v2887_v60 = vld [vmem:[%s4130_s7 + $0x1588] sm:$0xf]  ;;  %v2889_v61 = vld [vmem:[%s4130_s7 + $0x164c] sm:$0xf] }
  0x5b   : > { %2886 = vst [vmem:[%s4135_s8 + $0x30c] sm:$0xf] %v2885_v59  ;;  %2888 = vst [vmem:[%s4135_s8 + $0x328] sm:$0xf] %v2887_v60  ;;  %v2891_v62 = vld [vmem:[%s4130_s7 + $0x1710] sm:$0xf] }
  0x5c   : > { %2890 = vst [vmem:[%s4135_s8 + $0x344] sm:$0xf] %v2889_v61  ;;  %v2893_v63 = vld [vmem:[%s4130_s7 + $0x17d4] sm:$0xf]  ;;  %2892 = vst [vmem:[%s4135_s8 + $0x360] sm:$0xf] %v2891_v62 }
  0x5d   : > { %2894 = vst [vmem:[%s4135_s8 + $0x37c] sm:$0xf] %v2893_v63 }
  0x5e PF: > { %p2895_p7 = scmp.ge.s32.totalorder %s4048_s18, 1  ;;  %p470_p8 = scmp.lt.s32.totalorder %s4048_s18, 15 }
  0x60   : > { %p471_p9 = pnand %p2895_p7, %p470_p8 }
  0x62   : > { %474 = sbr.rel (%p471_p9) target bundleno = 638 (0x27e), region = 54 }
  0x67   : > { %s477_s9 = sand.u32 1, %s4024_s12   ;;  %s516_s10 = smul.u32 112, %s4032_s14 }
  0x68   : > { %s3657_s11 = smul.u32 896, %s477_s9  ;;  %s2897_s21 = sshll.u32 %s4036_s15, 5 }
  0x69   : > { %p517_p10 = scmp.lt.s32.totalorder %s516_s10, 783  ;;  %p529_p11 = scmp.lt.s32.totalorder %s2897_s21, 63 }
  0x6a   : > { %s4405_s12 = scalar_lea.vmem [#allocation3], %s3657_s11  ;;  %p2899_p12 = scmp.ne.s32.totalorder %s4032_s14, 0 }
  0x6b   : > { %s4922_s10 = smov (!%p517_p10, %s516_s10), 783  ;;  %s4924_s21 = smov (!%p529_p11, %s2897_s21), 63 }
  0x6c   : > { %s2896_s22 = sshll.u32 %s4922_s10, 2  ;;  %s2898_s27 = sshll.u32 %s4924_s21, 2 }
  0x6d   : > { %s4398_s26 = scalar_lea.vmem %s4882_s1, %s2896_s22  ;;  %s4403_s30 = scalar_lea.vmem %s4884_s3, %s2898_s27 }
  0x6e   : > { %541 = sbr.rel (%p2899_p12) target bundleno = 132 (0x84), region = 62 }
  0x73   : > { %v2900_v0 = vld [vmem:[%s4883_s2] ss:$0 sm:$0xff] }
  0x74   : > { %550 = vst [vmem:[#allocation2 + $0xb0] sm:$0xff] %v2900_v0  ;;  %551 = vst [vmem:[#allocation2] sm:$0xff] %v2900_v0 }
  0x75   : > { %552 = vst [vmem:[#allocation2 + $0xd8] sm:$0xff] %v2900_v0  ;;  %553 = vst [vmem:[#allocation2 + $0x18] sm:$0xff] %v2900_v0 }
  0x76   : > { %554 = vst [vmem:[#allocation2 + $0x50] sm:$0xff] %v2900_v0  ;;  %555 = vst [vmem:[#allocation2 + $0x68] sm:$0xff] %v2900_v0 }
  0x77   : > { %556 = vst [vmem:[#allocation2 + $0x30] sm:$0xff] %v2900_v0  ;;  %557 = vst [vmem:[#allocation2 + $0x48] sm:$0xff] %v2900_v0 }
  0x78   : > { %558 = vst [vmem:[#allocation2 + $0x80] sm:$0xff] %v2900_v0  ;;  %559 = vst [vmem:[#allocation2 + $0x88] sm:$0xff] %v2900_v0 }
  0x79   : > { %560 = vst [vmem:[#allocation2 + $0xe8] sm:$0xff] %v2900_v0  ;;  %561 = vst [vmem:[#allocation2 + $0xb8] sm:$0xff] %v2900_v0 }
  0x7a   : > { %562 = vst [vmem:[#allocation2 + $0x60] sm:$0xff] %v2900_v0  ;;  %563 = vst [vmem:[#allocation2 + $0xf0] sm:$0xff] %v2900_v0 }
  0x7b   : > { %564 = vst [vmem:[#allocation2 + $0x8] sm:$0xff] %v2900_v0  ;;  %565 = vst [vmem:[#allocation2 + $0x78] sm:$0xff] %v2900_v0 }
  0x7c   : > { %566 = vst [vmem:[#allocation2 + $0x38] sm:$0xff] %v2900_v0  ;;  %567 = vst [vmem:[#allocation2 + $0x58] sm:$0xff] %v2900_v0 }
  0x7d   : > { %568 = vst [vmem:[#allocation2 + $0x40] sm:$0xff] %v2900_v0  ;;  %569 = vst [vmem:[#allocation2 + $0xc8] sm:$0xff] %v2900_v0 }
  0x7e   : > { %570 = vst [vmem:[#allocation2 + $0xe0] sm:$0xff] %v2900_v0  ;;  %571 = vst [vmem:[#allocation2 + $0x90] sm:$0xff] %v2900_v0 }
  0x7f   : > { %572 = vst [vmem:[#allocation2 + $0x70] sm:$0xff] %v2900_v0  ;;  %573 = vst [vmem:[#allocation2 + $0xc0] sm:$0xff] %v2900_v0 }
  0x80   : > { %574 = vst [vmem:[#allocation2 + $0xa8] sm:$0xff] %v2900_v0  ;;  %575 = vst [vmem:[#allocation2 + $0xd0] sm:$0xff] %v2900_v0 }
  0x81   : > { %576 = vst [vmem:[#allocation2 + $0x10] sm:$0xff] %v2900_v0  ;;  %577 = vst [vmem:[#allocation2 + $0x28] sm:$0xff] %v2900_v0 }
  0x82   : > { %578 = vst [vmem:[#allocation2 + $0xa0] sm:$0xff] %v2900_v0  ;;  %579 = vst [vmem:[#allocation2 + $0xf8] sm:$0xff] %v2900_v0 }
  0x83   : > { %580 = vst [vmem:[#allocation2 + $0x20] sm:$0xff] %v2900_v0  ;;  %581 = vst [vmem:[#allocation2 + $0x98] sm:$0xff] %v2900_v0 }
  0x84 PF: > { %v3714_v1 = vld [vmem:[%s4398_s26 + $0x78] sm:$0xff]   ;;  %v3716_v3 = vld [vmem:[%s4398_s26 + $0x70] sm:$0xff]   ;;  %v3718_v5 = vld [vmem:[%s4398_s26 + $0x68] sm:$0xff]   ;;  %p3069_p13 = scmp.ne.s32.totalorder %s4032_s14, 6 }
  0x85   : > { %v3715_v2 = vld [vmem:[%s4398_s26 + $0x38] sm:$0xff]   ;;  %3231 = vmatprep.subr.bf16.mxu0 %v3714_v1  ;;  %3639 = vmatprep.subr.bf16.mxu1 %v3714_v1  ;;  %v3717_v4 = vld [vmem:[%s4398_s26 + $0x30] sm:$0xff]   ;;  %v3719_v6 = vld [vmem:[%s4398_s26 + $0x28] sm:$0xff]  }
  0x86   : > { %3232 = vmatpush3.bf16.msra.mxu0 %v3715_v2  ;;  %3647 = vmatpush3.bf16.msra.mxu1 %v3715_v2  ;;  %v3720_v7 = vld [vmem:[%s4398_s26 + $0x60] sm:$0xff]   ;;  %v3722_v9 = vld [vmem:[%s4398_s26 + $0x58] sm:$0xff]   ;;  %v3724_v11 = vld [vmem:[%s4398_s26 + $0x50] sm:$0xff]  }
  0x87   : > { %3233 = vmatprep.subr.bf16.mxu0 %v3716_v3  ;;  %3640 = vmatprep.subr.bf16.mxu1 %v3716_v3  ;;  %v3721_v8 = vld [vmem:[%s4398_s26 + $0x20] sm:$0xff]   ;;  %v3723_v10 = vld [vmem:[%s4398_s26 + $0x18] sm:$0xff]   ;;  %v3725_v14 = vld [vmem:[%s4398_s26 + $0x10] sm:$0xff]  }
  0x88   : > { %v3732_v12 = vld [vmem:[%s4405_s12 + $0x4] ss:$28 sps:$4 sm:$0xff]   ;;  %v3726_v15 = vld [vmem:[%s4398_s26 + $0x48] sm:$0xff]   ;;  %v3736_v19 = vld [vmem:[%s4398_s26 + $0xf8] sm:$0xff]  }
  0x89   : > { %v3735_v13 = vld [vmem:[%s4405_s12 + $0x2a4] ss:$28 sps:$4 sm:$0xff]   ;;  %1798 = vmatprep.mubr.bf16.mxu0 %v3732_v12  ;;  %v3727_v16 = vld [vmem:[%s4398_s26 + $0x8] sm:$0xff]   ;;  %v3737_v22 = vld [vmem:[%s4398_s26 + $0x178] sm:$0xff]  }
  0x8a   : > { %3234 = vmatpush3.bf16.msra.mxu0 %v3717_v4  ;;  %3648 = vmatpush3.bf16.msra.mxu1 %v3717_v4  ;;  %v3728_v17 = vld [vmem:[%s4398_s26 + $0x40] sm:$0xff]   ;;  %v3738_v23 = vld [vmem:[%s4398_s26 + $0xb8] sm:$0xff]   ;;  %v3740_v25 = vld [vmem:[%s4398_s26 + $0xf0] sm:$0xff]  }
  0x8b   : > { %3235 = vmatprep.subr.bf16.mxu0 %v3718_v5  ;;  %3641 = vmatprep.subr.bf16.mxu1 %v3718_v5  ;;  %v3729_v18 = vld [vmem:[%s4398_s26] sm:$0xff]   ;;  %v3739_v24 = vld [vmem:[%s4398_s26 + $0x138] sm:$0xff]   ;;  %v3751_v28 = vld [vmem:[%s4398_s26 + $0x170] sm:$0xff]  }
  0x8c   : > { %1894 = vmatprep.mubr.bf16.mxu1 %v3735_v13  ;;  %v3730_v20 = vld [vmem:[%s4405_s12] ss:$28 sps:$4 sm:$0xff]   ;;  %v3741_v29 = vld [vmem:[%s4398_s26 + $0xb0] sm:$0xff]   ;;  %v3748_v33 = vld [vmem:[%s4398_s26 + $0xe8] sm:$0xff]  }
  0x8d   : > { %v3733_v21 = vld [vmem:[%s4405_s12 + $0x2a0] ss:$28 sps:$4 sm:$0xff]   ;;  %v3753_v30 = vld [vmem:[%s4398_s26 + $0x130] sm:$0xff]   ;;  %v3749_v34 = vld [vmem:[%s4398_s26 + $0xa8] sm:$0xff]  }
  0x8e   : > { %3236 = vmatpush3.bf16.msra.mxu0 %v3719_v6  ;;  %3649 = vmatpush3.bf16.msra.mxu1 %v3719_v6  ;;  %v3742_v26 = vld [vmem:[%s4405_s12 + $0x3c] ss:$28 sps:$4 sm:$0xff]   ;;  %v3750_v35 = vld [vmem:[%s4398_s26 + $0xe0] sm:$0xff]   ;;  %v3754_v36 = vld [vmem:[%s4405_s12 + $0x74] ss:$28 sps:$4 sm:$0xff]  }
  0x8f   : > { %3237 = vmatprep.subr.bf16.mxu0 %v3720_v7  ;;  %3642 = vmatprep.subr.bf16.mxu1 %v3720_v7  ;;  %v3744_v27 = vld [vmem:[%s4405_s12 + $0x2dc] ss:$28 sps:$4 sm:$0xff]   ;;  %v3756_v37 = vld [vmem:[%s4405_s12 + $0x314] ss:$28 sps:$4 sm:$0xff]   ;;  %v3752_v38 = vld [vmem:[%s4398_s26 + $0xa0] sm:$0xff]  }
  0x90   : > { %v3746_v31 = vld [vmem:[%s4405_s12 + $0x38] ss:$28 sps:$4 sm:$0xff]   ;;  %v3758_v40 = vld [vmem:[%s4405_s12 + $0x70] ss:$28 sps:$4 sm:$0xff]   ;;  %v3768_v50 = vld [vmem:[%s4405_s12 + $0xa8] ss:$28 sps:$4 sm:$0xff]  }
  0x91   : > { %v3747_v32 = vld [vmem:[%s4405_s12 + $0x2d8] ss:$28 sps:$4 sm:$0xff]   ;;  %v3759_v41 = vld [vmem:[%s4405_s12 + $0x310] ss:$28 sps:$4 sm:$0xff]   ;;  %v3769_v51 = vld [vmem:[%s4405_s12 + $0x348] ss:$28 sps:$4 sm:$0xff]  }
  0x92   : > { %3238 = vmatpush3.bf16.msra.mxu0 %v3721_v8  ;;  %3650 = vmatpush3.bf16.msra.mxu1 %v3721_v8  ;;  %v3760_v39 = vld [vmem:[%s4398_s26 + $0xd8] sm:$0xff]   ;;  %v3771_v42 = vld [vmem:[%s4398_s26 + $0x168] sm:$0xff]   ;;  %v3762_v44 = vld [vmem:[%s4398_s26 + $0xd0] sm:$0xff]  }
  0x93   : > { %3239 = vmatprep.subr.bf16.mxu0 %v3722_v9  ;;  %3643 = vmatprep.subr.bf16.mxu1 %v3722_v9  ;;  %v3761_v43 = vld [vmem:[%s4398_s26 + $0x98] sm:$0xff]   ;;  %v3773_v45 = vld [vmem:[%s4398_s26 + $0x128] sm:$0xff]   ;;  %v3763_v48 = vld [vmem:[%s4398_s26 + $0x90] sm:$0xff]  }
  0x94   : > { %v3764_v46 = vld [vmem:[%s4405_s12 + $0xac] ss:$28 sps:$4 sm:$0xff]   ;;  %v3782_v52 = vld [vmem:[%s4398_s26 + $0x160] sm:$0xff]   ;;  %v3783_v59 = vld [vmem:[%s4398_s26 + $0x1b8] sm:$0xff]  }
  0x95   : > { %v3766_v47 = vld [vmem:[%s4405_s12 + $0x34c] ss:$28 sps:$4 sm:$0xff]   ;;  %v3784_v54 = vld [vmem:[%s4398_s26 + $0x120] sm:$0xff]   ;;  %v3797_v61 = vld [vmem:[%s4398_s26 + $0x158] sm:$0xff]  }
  0x96   : > { %3240 = vmatpush3.bf16.msra.mxu0 %v3723_v10  ;;  %3651 = vmatpush3.bf16.msra.mxu1 %v3723_v10  ;;  %v3770_v49 = vld [vmem:[%s4398_s26 + $0xc8] sm:$0xff]   ;;  %v3776_v55 = vld [vmem:[%s4405_s12 + $0xe4] ss:$28 sps:$4 sm:$0xff]   ;;  %v3798_v62 = vld [vmem:[%s4398_s26 + $0x118] sm:$0xff]  }
  0x97   : > { %3241 = vmatprep.subr.bf16.mxu0 %v3724_v11  ;;  %3644 = vmatprep.subr.bf16.mxu1 %v3724_v11  ;;  %v3772_v53 = vld [vmem:[%s4398_s26 + $0x88] sm:$0xff]   ;;  %v3774_v56 = vld [vmem:[%s4398_s26 + $0xc0] sm:$0xff]   ;;  %v3785_v0 = vld [vmem:[%s4405_s12 + $0x11c] ss:$28 sps:$4 sm:$0xff]  }
  0x98   : > { %v3780_v57 = vld [vmem:[%s4405_s12 + $0xc] ss:$28 sps:$4 sm:$0xff]   ;;  %v3775_v58 = vld [vmem:[%s4398_s26 + $0x80] sm:$0xff]   ;;  %v3799_v2 = vld [vmem:[%s4398_s26 + $0x1b0] sm:$0xff]  }
  0x99   : > { %v3778_v60 = vld [vmem:[%s4405_s12 + $0x8] ss:$28 sps:$4 sm:$0xff]   ;;  %v3781_v63 = vld [vmem:[%s4405_s12 + $0xe0] ss:$28 sps:$4 sm:$0xff]   ;;  %v3806_v3 = vld [vmem:[%s4398_s26 + $0x150] sm:$0xff]  }
  0x9a   : > { %3242 = vmatpush3.bf16.msra.mxu0 %v3725_v14  ;;  %3652 = vmatpush3.bf16.msra.mxu1 %v3725_v14  ;;  %v3787_v1 = vld [vmem:[%s4405_s12 + $0x44] ss:$28 sps:$4 sm:$0xff]   ;;  %v3807_v4 = vld [vmem:[%s4398_s26 + $0x110] sm:$0xff]   ;;  %v3814_v8 = vld [vmem:[%s4398_s26 + $0x1a8] sm:$0xff]  }
  0x9b   : > { %3243 = vmatprep.subr.bf16.mxu0 %v3726_v15  ;;  %3645 = vmatprep.subr.bf16.mxu1 %v3726_v15  ;;  %v3789_v5 = vld [vmem:[%s4405_s12 + $0x118] ss:$28 sps:$4 sm:$0xff]   ;;  %v3790_v6 = vld [vmem:[%s4405_s12 + $0x40] ss:$28 sps:$4 sm:$0xff]   ;;  %v3821_v10 = vld [vmem:[%s4398_s26 + $0x148] sm:$0xff]  }
  0x9c   : > { %v3791_v7 = vld [vmem:[%s4405_s12 + $0x154] ss:$28 sps:$4 sm:$0xff]   ;;  %v3793_v9 = vld [vmem:[%s4405_s12 + $0x7c] ss:$28 sps:$4 sm:$0xff]   ;;  %v3822_v11 = vld [vmem:[%s4398_s26 + $0x108] sm:$0xff]  }
  0x9d   : > { %v3795_v12 = vld [vmem:[%s4405_s12 + $0x150] ss:$28 sps:$4 sm:$0xff]   ;;  %v3796_v13 = vld [vmem:[%s4405_s12 + $0x78] ss:$28 sps:$4 sm:$0xff]  }
  0x9e   : > { %3244 = vmatpush3.bf16.msra.mxu0 %v3727_v16  ;;  %3653 = vmatpush3.bf16.msra.mxu1 %v3727_v16  ;;  %v3800_v14 = vld [vmem:[%s4405_s12 + $0x18c] ss:$28 sps:$4 sm:$0xff]   ;;  %v3802_v15 = vld [vmem:[%s4405_s12 + $0xb4] ss:$28 sps:$4 sm:$0xff]   ;;  %v3829_v16 = vld [vmem:[%s4398_s26 + $0x140] sm:$0xff]  }
  0x9f   : > { %3245 = vmatprep.subr.bf16.mxu0 %v3728_v17  ;;  %3646 = vmatprep.subr.bf16.mxu1 %v3728_v17  ;;  %v3830_v17 = vld [vmem:[%s4398_s26 + $0x1a0] sm:$0xff]  }
  0xa2   : > { %3246 = vmatpush3.bf16.msra.mxu0 %v3729_v18  ;;  %3654 = vmatpush3.bf16.msra.mxu1 %v3729_v18  ;;  %v3831_v18 = vld [vmem:[%s4398_s26 + $0x100] sm:$0xff]  }
  0xa3   : > { %3343 = vmatprep.subr.bf16.mxu1 %v3736_v19  ;;  %3455 = vmatprep.subr.bf16.mxu0 %v3737_v22  ;;  %v3804_v19 = vld [vmem:[%s4405_s12 + $0x188] ss:$28 sps:$4 sm:$0xff]  }
  0xa4   : > { %v3810_v22 = vld [vmem:[%s4405_s12 + $0xec] ss:$28 sps:$4 sm:$0xff]  }
  0xa5   : > { %1799 = vmatmul.mubr.bf16.vlgmr.msra.gmra.mxu0 %v3730_v20  ;;  %1895 = vmatmul.mubr.bf16.vlgmr.msra.gmra.mxu1 %v3733_v21  ;;  %v3805_v20 = vld [vmem:[%s4405_s12 + $0xb0] ss:$28 sps:$4 sm:$0xff]   ;;  %v3808_v21 = vld [vmem:[%s4405_s12 + $0x1c4] ss:$28 sps:$4 sm:$0xff]  }
  0xa6   : > { %3344 = vmatpush3.bf16.msra.mxu1 %v3738_v23  ;;  %3456 = vmatpush3.bf16.msra.mxu0 %v3739_v24  ;;  %v3844_v23 = vld [vmem:[%s4398_s26 + $0x198] sm:$0xff]  }
  0xa7   : > { %3345 = vmatprep.subr.bf16.mxu1 %v3740_v25  ;;  %1806 = vmatprep.mubr.bf16.mxu0 %v3742_v26  ;;  %v3812_v24 = vld [vmem:[%s4405_s12 + $0x1c0] ss:$28 sps:$4 sm:$0xff]   ;;  %v3813_v25 = vld [vmem:[%s4405_s12 + $0xe8] ss:$28 sps:$4 sm:$0xff]   ;;  %v3857_v26 = vld [vmem:[%s4398_s26 + $0x190] sm:$0xff]  }
  0xa8   : > { %1902 = vmatprep.mubr.bf16.mxu1 %v3744_v27  ;;  %3457 = vmatprep.subr.bf16.mxu0 %v3751_v28  ;;  %v3815_v27 = vld [vmem:[%s4405_s12 + $0x1fc] ss:$28 sps:$4 sm:$0xff]   ;;  %v3817_v28 = vld [vmem:[%s4405_s12 + $0x124] ss:$28 sps:$4 sm:$0xff]  }
  0xaa   : > { %3346 = vmatpush3.bf16.msra.mxu1 %v3741_v29  ;;  %3458 = vmatpush3.bf16.msra.mxu0 %v3753_v30  ;;  %v3870_v29 = vld [vmem:[%s4398_s26 + $0x188] sm:$0xff]   ;;  %v3819_v30 = vld [vmem:[%s4405_s12 + $0x1f8] ss:$28 sps:$4 sm:$0xff]  }
  0xab   : > { %3347 = vmatprep.subr.bf16.mxu1 %v3748_v33  ;;  %3459 = vmatprep.subr.bf16.mxu0 %v3771_v42  ;;  %v3825_v33 = vld [vmem:[%s4405_s12 + $0x15c] ss:$28 sps:$4 sm:$0xff]   ;;  %v3842_v42 = vld [vmem:[%s4405_s12 + $0x14] ss:$28 sps:$4 sm:$0xff]  }
  0xad   : > { %1807 = vmatmul.mubr.bf16.gmra.mxu0 %v3746_v31  ;;  %1903 = vmatmul.mubr.bf16.gmra.mxu1 %v3747_v32  ;;  %v3820_v31 = vld [vmem:[%s4405_s12 + $0x120] ss:$28 sps:$4 sm:$0xff]   ;;  %v3823_v32 = vld [vmem:[%s4405_s12 + $0x234] ss:$28 sps:$4 sm:$0xff]  }
  0xae   : > { %3348 = vmatpush3.bf16.msra.mxu1 %v3749_v34  ;;  %1814 = vmatprep.mubr.bf16.mxu0 %v3754_v36  ;;  %v3883_v34 = vld [vmem:[%s4398_s26 + $0x180] sm:$0xff]   ;;  %v3828_v36 = vld [vmem:[%s4405_s12 + $0x158] ss:$28 sps:$4 sm:$0xff]  }
  0xaf   : > { %3349 = vmatprep.subr.bf16.mxu1 %v3750_v35  ;;  %1910 = vmatprep.mubr.bf16.mxu1 %v3756_v37  ;;  %v3827_v35 = vld [vmem:[%s4405_s12 + $0x230] ss:$28 sps:$4 sm:$0xff]  }
  0xb0   : > { %3460 = vmatpush3.bf16.msra.mxu0 %v3773_v45  ;;  %v3832_v37 = vld [vmem:[%s4405_s12 + $0x26c] ss:$28 sps:$4 sm:$0xff]   ;;  %v3845_v45 = vld [vmem:[%s4405_s12 + $0x204] ss:$28 sps:$4 sm:$0xff]  }
  0xb1   : > { %3461 = vmatprep.subr.bf16.mxu0 %v3782_v52  ;;  %v3856_v52 = vld [vmem:[%s4405_s12 + $0x80] ss:$28 sps:$4 sm:$0xff]  }
  0xb2   : > { %3350 = vmatpush3.bf16.msra.mxu1 %v3752_v38  ;;  %v3834_v38 = vld [vmem:[%s4405_s12 + $0x194] ss:$28 sps:$4 sm:$0xff]  }
  0xb3   : > { %3351 = vmatprep.subr.bf16.mxu1 %v3760_v39  ;;  %v3836_v39 = vld [vmem:[%s4405_s12 + $0x268] ss:$28 sps:$4 sm:$0xff]  }
  0xb4   : > { %3462 = vmatpush3.bf16.msra.mxu0 %v3784_v54  ;;  %v3860_v54 = vld [vmem:[%s4405_s12 + $0xbc] ss:$28 sps:$4 sm:$0xff]  }
  0xb5   : > { %1815 = vmatmul.mubr.bf16.gmra.mxu0 %v3758_v40  ;;  %1911 = vmatmul.mubr.bf16.gmra.mxu1 %v3759_v41  ;;  %v3837_v40 = vld [vmem:[%s4405_s12 + $0x190] ss:$28 sps:$4 sm:$0xff]  }
  0xb6   : > { %3352 = vmatpush3.bf16.msra.mxu1 %v3761_v43  ;;  %1822 = vmatprep.mubr.bf16.mxu0 %v3764_v46  ;;  %v3838_v41 = vld [vmem:[%s4405_s12 + $0x1cc] ss:$28 sps:$4 sm:$0xff]  }
  0xb7   : > { %3353 = vmatprep.subr.bf16.mxu1 %v3762_v44  ;;  %1918 = vmatprep.mubr.bf16.mxu1 %v3766_v47  ;;  %v3840_v43 = vld [vmem:[%s4405_s12 + $0x10] ss:$28 sps:$4 sm:$0xff]   ;;  %v3843_v44 = vld [vmem:[%s4405_s12 + $0x1c8] ss:$28 sps:$4 sm:$0xff]   ;;  %v3849_v47 = vld [vmem:[%s4405_s12 + $0x200] ss:$28 sps:$4 sm:$0xff]  }
  0xb8   : > { %3463 = vmatprep.subr.bf16.mxu0 %v3797_v61  ;;  %v3847_v46 = vld [vmem:[%s4405_s12 + $0x4c] ss:$28 sps:$4 sm:$0xff]   ;;  %v3871_v61 = vld [vmem:[%s4405_s12 + $0x2e4] ss:$28 sps:$4 sm:$0xff]  }
  0xb9   : > { %3464 = vmatpush3.bf16.msra.mxu0 %v3798_v62  ;;  %v3873_v62 = vld [vmem:[%s4405_s12 + $0x12c] ss:$28 sps:$4 sm:$0xff]  }
  0xba   : > { %3354 = vmatpush3.bf16.msra.mxu1 %v3763_v48  ;;  %3465 = vmatprep.subr.bf16.mxu0 %v3806_v3  ;;  %v3850_v48 = vld [vmem:[%s4405_s12 + $0x48] ss:$28 sps:$4 sm:$0xff]   ;;  %v3881_v3 = vld [vmem:[%s4405_s12 + $0x318] ss:$28 sps:$4 sm:$0xff]  }
  0xbb   : > { %3355 = vmatprep.subr.bf16.mxu1 %v3770_v49  ;;  %v3851_v49 = vld [vmem:[%s4405_s12 + $0x23c] ss:$28 sps:$4 sm:$0xff]  }
  0xbd   : > { %1823 = vmatmul.mubr.bf16.gmra.mxu0 %v3768_v50  ;;  %1919 = vmatmul.mubr.bf16.gmra.mxu1 %v3769_v51  ;;  %v3853_v50 = vld [vmem:[%s4405_s12 + $0x84] ss:$28 sps:$4 sm:$0xff]   ;;  %v3855_v51 = vld [vmem:[%s4405_s12 + $0x238] ss:$28 sps:$4 sm:$0xff]  }
  0xbe   : > { %3356 = vmatpush3.bf16.msra.mxu1 %v3772_v53  ;;  %1830 = vmatprep.mubr.bf16.mxu0 %v3776_v55  ;;  %v3858_v53 = vld [vmem:[%s4405_s12 + $0x274] ss:$28 sps:$4 sm:$0xff]  }
  0xbf   : > { %3357 = vmatprep.subr.bf16.mxu1 %v3774_v56  ;;  %1959 = vmatprep.mubr.bf16.mxu1 %v3780_v57  ;;  %v3862_v55 = vld [vmem:[%s4405_s12 + $0x270] ss:$28 sps:$4 sm:$0xff]   ;;  %v3863_v56 = vld [vmem:[%s4405_s12 + $0xb8] ss:$28 sps:$4 sm:$0xff]  }
  0xc0   : > { %3466 = vmatpush3.bf16.msra.mxu0 %v3807_v4  ;;  %v3864_v57 = vld [vmem:[%s4405_s12 + $0x2ac] ss:$28 sps:$4 sm:$0xff]   ;;  %v3882_v4 = vld [vmem:[%s4405_s12 + $0x160] ss:$28 sps:$4 sm:$0xff]  }
  0xc1   : > { %3467 = vmatprep.subr.bf16.mxu0 %v3821_v10  ;;  %v3892_v10 = vld [vmem:[%s4405_s12 + $0x18] ss:$28 sps:$4 sm:$0xff]  }
  0xc2   : > { %3358 = vmatpush3.bf16.msra.mxu1 %v3775_v58  ;;  %v3866_v58 = vld [vmem:[%s4405_s12 + $0xf4] ss:$28 sps:$4 sm:$0xff]  }
  0xc3   : > { %3591 = vmatprep.subr.bf16.mxu1 %v3783_v59 }
  0xc4   : > { %3468 = vmatpush3.bf16.msra.mxu0 %v3822_v11  ;;  %v3893_v11 = vld [vmem:[%s4405_s12 + $0x1d0] ss:$28 sps:$4 sm:$0xff]  }
  0xc5   : > { %1831 = vmatmul.mubr.bf16.gmra.mxu0 %v3781_v63  ;;  %1960 = vmatmul.mubr.bf16.vlgmr.msra.gmra.mxu1 %v3778_v60  ;;  %v3869_v60 = vld [vmem:[%s4405_s12 + $0xf0] ss:$28 sps:$4 sm:$0xff]   ;;  %v3875_v63 = vld [vmem:[%s4405_s12 + $0x2e0] ss:$28 sps:$4 sm:$0xff]  }
  0xc6   : > { %3592 = vmatpush3.bf16.msra.mxu1 %v3783_v59  ;;  %1838 = vmatprep.mubr.bf16.mxu0 %v3785_v0  ;;  %v3868_v59 = vld [vmem:[%s4405_s12 + $0x2a8] ss:$28 sps:$4 sm:$0xff]  }
  0xc7   : > { %1967 = vmatprep.mubr.bf16.mxu1 %v3787_v1  ;;  %3593 = vmatprep.subr.bf16.mxu1 %v3799_v2  ;;  %v3876_v0 = vld [vmem:[%s4405_s12 + $0x128] ss:$28 sps:$4 sm:$0xff]   ;;  %v3877_v1 = vld [vmem:[%s4405_s12 + $0x31c] ss:$28 sps:$4 sm:$0xff]  }
  0xc8   : > { %3469 = vmatprep.subr.bf16.mxu0 %v3829_v16  ;;  %v3899_v16 = vld [vmem:[%s4405_s12 + $0xc0] ss:$28 sps:$4 sm:$0xff]  }
  0xc9   : > { %3470 = vmatpush3.bf16.msra.mxu0 %v3831_v18  ;;  %v3902_v18 = vld [vmem:[%s4405_s12 + $0xf8] ss:$28 sps:$4 sm:$0xff]  }
  0xca   : > { %3594 = vmatpush3.bf16.msra.mxu1 %v3799_v2  ;;  %v3879_v2 = vld [vmem:[%s4405_s12 + $0x164] ss:$28 sps:$4 sm:$0xff]  }
  0xcb   : > { %3595 = vmatprep.subr.bf16.mxu1 %v3814_v8 }
  0xcd   : > { %1839 = vmatmul.mubr.bf16.gmra.mxu0 %v3789_v5  ;;  %1968 = vmatmul.mubr.bf16.gmra.mxu1 %v3790_v6  ;;  %v3884_v5 = vld [vmem:[%s4405_s12 + $0x354] ss:$28 sps:$4 sm:$0xff]   ;;  %v3886_v6 = vld [vmem:[%s4405_s12 + $0x19c] ss:$28 sps:$4 sm:$0xff]  }
  0xce   : > { %1846 = vmatprep.mubr.bf16.mxu0 %v3791_v7  ;;  %1975 = vmatprep.mubr.bf16.mxu1 %v3793_v9  ;;  %v3888_v7 = vld [vmem:[%s4405_s12 + $0x350] ss:$28 sps:$4 sm:$0xff]  }
  0xcf   : > { %3596 = vmatpush3.bf16.msra.mxu1 %v3814_v8  ;;  %v3889_v8 = vld [vmem:[%s4405_s12 + $0x198] ss:$28 sps:$4 sm:$0xff]  }
  0xd0   : > { %3597 = vmatprep.subr.bf16.mxu1 %v3830_v17  ;;  %v3890_v9 = vld [vmem:[%s4405_s12 + $0x1d4] ss:$28 sps:$4 sm:$0xff]  }
  0xd3   : > { %3598 = vmatpush3.bf16.msra.mxu1 %v3830_v17  ;;  %v3900_v17 = vld [vmem:[%s4405_s12 + $0x244] ss:$28 sps:$4 sm:$0xff]  }
  0xd4   : > { %3599 = vmatprep.subr.bf16.mxu1 %v3844_v23 }
  0xd5   : > { %1847 = vmatmul.mubr.bf16.gmra.mxu0 %v3795_v12  ;;  %1976 = vmatmul.mubr.bf16.gmra.mxu1 %v3796_v13  ;;  %v3894_v12 = vld [vmem:[%s4405_s12 + $0x50] ss:$28 sps:$4 sm:$0xff]  }
  0xd6   : > { %1854 = vmatprep.mubr.bf16.mxu0 %v3800_v14  ;;  %1983 = vmatprep.mubr.bf16.mxu1 %v3802_v15  ;;  %v3895_v13 = vld [vmem:[%s4405_s12 + $0x20c] ss:$28 sps:$4 sm:$0xff]  }
  0xd7   : > { %3600 = vmatpush3.bf16.msra.mxu1 %v3844_v23  ;;  %v3897_v14 = vld [vmem:[%s4405_s12 + $0x88] ss:$28 sps:$4 sm:$0xff]   ;;  %v3908_v23 = vld [vmem:[%s4405_s12 + $0x278] ss:$28 sps:$4 sm:$0xff]  }
  0xd8   : > { %3601 = vmatprep.subr.bf16.mxu1 %v3857_v26  ;;  %v3898_v15 = vld [vmem:[%s4405_s12 + $0x208] ss:$28 sps:$4 sm:$0xff]  }
  0xdb   : > { %3602 = vmatpush3.bf16.msra.mxu1 %v3857_v26  ;;  %v3912_v26 = vld [vmem:[%s4405_s12 + $0x1d8] ss:$28 sps:$4 sm:$0xff]  }
  0xdc   : > { %3603 = vmatprep.subr.bf16.mxu1 %v3870_v29 }
  0xdd   : > { %1855 = vmatmul.mubr.bf16.gmra.mxu0 %v3804_v19  ;;  %1984 = vmatmul.mubr.bf16.gmra.mxu1 %v3805_v20  ;;  %v3903_v19 = vld [vmem:[%s4405_s12 + $0x240] ss:$28 sps:$4 sm:$0xff]   ;;  %v3904_v20 = vld [vmem:[%s4405_s12 + $0x130] ss:$28 sps:$4 sm:$0xff]  }
  0xde   : > { %1862 = vmatprep.mubr.bf16.mxu0 %v3808_v21  ;;  %1991 = vmatprep.mubr.bf16.mxu1 %v3810_v22  ;;  %v3905_v21 = vld [vmem:[%s4405_s12 + $0x27c] ss:$28 sps:$4 sm:$0xff]   ;;  %v3907_v22 = vld [vmem:[%s4405_s12 + $0x168] ss:$28 sps:$4 sm:$0xff]  }
  0xdf   : > { %3604 = vmatpush3.bf16.msra.mxu1 %v3870_v29  ;;  %v3915_v29 = vld [vmem:[%s4405_s12 + $0x2ec] ss:$28 sps:$4 sm:$0xff]  }
  0xe0   : > { %3605 = vmatprep.subr.bf16.mxu1 %v3883_v34 }
  0xe3   : > { %3606 = vmatpush3.bf16.msra.mxu1 %v3883_v34 }
  0xe5   : > { %1863 = vmatmul.mubr.bf16.gmra.mxu0 %v3812_v24  ;;  %1992 = vmatmul.mubr.bf16.gmra.mxu1 %v3813_v25  ;;  %v3909_v24 = vld [vmem:[%s4405_s12 + $0x1a0] ss:$28 sps:$4 sm:$0xff]   ;;  %v3910_v25 = vld [vmem:[%s4405_s12 + $0x2b4] ss:$28 sps:$4 sm:$0xff]  }
  0xe6   : > { %1870 = vmatprep.mubr.bf16.mxu0 %v3815_v27  ;;  %1999 = vmatprep.mubr.bf16.mxu1 %v3817_v28  ;;  %v3913_v27 = vld [vmem:[%s4405_s12 + $0x2b0] ss:$28 sps:$4 sm:$0xff]  }
  0xe7   : > { %v3914_v28 = vld [vmem:[%s4405_s12 + $0x210] ss:$28 sps:$4 sm:$0xff]  }
  0xed   : > { %1871 = vmatmul.mubr.bf16.gmra.mxu0 %v3819_v30  ;;  %2000 = vmatmul.mubr.bf16.gmra.mxu1 %v3820_v31  ;;  %v3917_v30 = vld [vmem:[%s4405_s12 + $0x248] ss:$28 sps:$4 sm:$0xff]  }
  0xee   : > { %1878 = vmatprep.mubr.bf16.mxu0 %v3823_v32  ;;  %2007 = vmatprep.mubr.bf16.mxu1 %v3825_v33 }
  0xf5   : > { %1879 = vmatmul.mubr.bf16.gmra.mxu0 %v3827_v35  ;;  %2008 = vmatmul.mubr.bf16.gmra.mxu1 %v3828_v36 }
  0xf6   : > { %1886 = vmatprep.mubr.bf16.mxu0 %v3832_v37  ;;  %2015 = vmatprep.mubr.bf16.mxu1 %v3834_v38 }
  0xfd   : > { %1887 = vmatmul.mubr.bf16.gmra.mxu0 %v3836_v39  ;;  %2016 = vmatmul.mubr.bf16.gmra.mxu1 %v3837_v40  ;;  %v3918_v39 = vld [vmem:[%s4405_s12 + $0x2e8] ss:$28 sps:$4 sm:$0xff]   ;;  %v3919_v40 = vld [vmem:[%s4405_s12 + $0x280] ss:$28 sps:$4 sm:$0xff]  }
  0xfe   : > { %2023 = vmatprep.mubr.bf16.mxu1 %v3838_v41  ;;  %2120 = vmatprep.mubr.bf16.mxu0 %v3842_v42  ;;  %v3920_v41 = vld [vmem:[%s4405_s12 + $0x324] ss:$28 sps:$4 sm:$0xff]   ;;  %v3922_v42 = vld [vmem:[%s4405_s12 + $0x2b8] ss:$28 sps:$4 sm:$0xff]  }
 0x105   : > { %2024 = vmatmul.mubr.bf16.gmra.mxu1 %v3843_v44  ;;  %2121 = vmatmul.mubr.bf16.vlgmr.msra.gmra.mxu0 %v3840_v43 }
 0x106   : > { %2031 = vmatprep.mubr.bf16.mxu1 %v3845_v45  ;;  %2128 = vmatprep.mubr.bf16.mxu0 %v3847_v46 }
 0x10d   : > { %2032 = vmatmul.mubr.bf16.gmra.mxu1 %v3849_v47  ;;  %2129 = vmatmul.mubr.bf16.gmra.mxu0 %v3850_v48 }
 0x10e   : > { %2039 = vmatprep.mubr.bf16.mxu1 %v3851_v49  ;;  %2136 = vmatprep.mubr.bf16.mxu0 %v3853_v50 }
 0x115   : > { %2040 = vmatmul.mubr.bf16.gmra.mxu1 %v3855_v51  ;;  %2137 = vmatmul.mubr.bf16.gmra.mxu0 %v3856_v52 }
 0x116   : > { %2047 = vmatprep.mubr.bf16.mxu1 %v3858_v53  ;;  %2144 = vmatprep.mubr.bf16.mxu0 %v3860_v54 }
 0x11d   : > { %2048 = vmatmul.mubr.bf16.gmra.mxu1 %v3862_v55  ;;  %2145 = vmatmul.mubr.bf16.gmra.mxu0 %v3863_v56  ;;  %v3923_v55 = vld [vmem:[%s4405_s12 + $0x320] ss:$28 sps:$4 sm:$0xff]   ;;  %v3924_v56 = vld [vmem:[%s4405_s12 + $0x2f0] ss:$28 sps:$4 sm:$0xff]  }
 0x11e   : > { %2055 = vmatprep.mubr.bf16.mxu1 %v3864_v57  ;;  %2152 = vmatprep.mubr.bf16.mxu0 %v3866_v58  ;;  %v3925_v57 = vld [vmem:[%s4405_s12 + $0x35c] ss:$28 sps:$4 sm:$0xff]   ;;  %v3927_v58 = vld [vmem:[%s4405_s12 + $0x328] ss:$28 sps:$4 sm:$0xff]  }
 0x125   : > { %2056 = vmatmul.mubr.bf16.gmra.mxu1 %v3868_v59  ;;  %2153 = vmatmul.mubr.bf16.gmra.mxu0 %v3869_v60 }
 0x126   : > { %2063 = vmatprep.mubr.bf16.mxu1 %v3871_v61  ;;  %2160 = vmatprep.mubr.bf16.mxu0 %v3873_v62 }
 0x12d   : > { %2064 = vmatmul.mubr.bf16.gmra.mxu1 %v3875_v63  ;;  %2161 = vmatmul.mubr.bf16.gmra.mxu0 %v3876_v0 }
 0x12e   : > { %2071 = vmatprep.mubr.bf16.mxu1 %v3877_v1  ;;  %2168 = vmatprep.mubr.bf16.mxu0 %v3879_v2 }
 0x135   : > { %2072 = vmatmul.mubr.bf16.gmra.mxu1 %v3881_v3  ;;  %2169 = vmatmul.mubr.bf16.gmra.mxu0 %v3882_v4 }
 0x136   : > { %2079 = vmatprep.mubr.bf16.mxu1 %v3884_v5  ;;  %2176 = vmatprep.mubr.bf16.mxu0 %v3886_v6 }
 0x13d   : > { %2080 = vmatmul.mubr.bf16.gmra.mxu1 %v3888_v7  ;;  %2177 = vmatmul.mubr.bf16.gmra.mxu0 %v3889_v8  ;;  %v3928_v7 = vld [vmem:[%s4405_s12 + $0x358] ss:$28 sps:$4 sm:$0xff]   ;;  %v3929_v8 = vld [vmem:[%s4405_s12 + $0x360] ss:$28 sps:$4 sm:$0xff]  }
 0x13e   : > { %2184 = vmatprep.mubr.bf16.mxu0 %v3890_v9  ;;  %3607 = vmatprep.mubr.bf16.mxu1 %v3892_v10 }
 0x145   : > { %2185 = vmatmul.mubr.bf16.gmra.mxu0 %v3893_v11  ;;  %3608 = vmatmul.mubr.bf16.vlgmr.msra.gmra.mxu1 %v3894_v12 }
 0x146   : > { %2192 = vmatprep.mubr.bf16.mxu0 %v3895_v13  ;;  %3611 = vmatprep.mubr.bf16.mxu1 %v3897_v14 }
 0x14d   : > { %2193 = vmatmul.mubr.bf16.gmra.mxu0 %v3898_v15  ;;  %3612 = vmatmul.mubr.bf16.gmra.mxu1 %v3899_v16 }
 0x14e   : > { %2200 = vmatprep.mubr.bf16.mxu0 %v3900_v17  ;;  %3615 = vmatprep.mubr.bf16.mxu1 %v3902_v18 }
 0x155   : > { %2201 = vmatmul.mubr.bf16.gmra.mxu0 %v3903_v19  ;;  %3616 = vmatmul.mubr.bf16.gmra.mxu1 %v3904_v20 }
 0x156   : > { %2208 = vmatprep.mubr.bf16.mxu0 %v3905_v21  ;;  %3619 = vmatprep.mubr.bf16.mxu1 %v3907_v22 }
 0x15d   : > { %2209 = vmatmul.mubr.bf16.gmra.mxu0 %v3908_v23  ;;  %3620 = vmatmul.mubr.bf16.gmra.mxu1 %v3909_v24 }
 0x15e   : > { %2216 = vmatprep.mubr.bf16.mxu0 %v3910_v25  ;;  %3623 = vmatprep.mubr.bf16.mxu1 %v3912_v26 }
 0x165   : > { %v3247_v31 = vpop.f32.mrf.mxu0  ;;  %v3319_v32 = vpop.f32.mrf.mxu1  ;;  %2217 = vmatmul.mubr.bf16.gmra.mxu0 %v3913_v27  ;;  %3624 = vmatmul.mubr.bf16.gmra.mxu1 %v3914_v28 }
 0x166   : > { %2224 = vmatprep.mubr.bf16.mxu0 %v3915_v29  ;;  %3627 = vmatprep.mubr.bf16.mxu1 %v3917_v30 }
 0x167   : > { %v3248_v33 = vpop.f32.mrf.mxu0  ;;  %v3320_v34 = vpop.f32.mrf.mxu1 }
 0x168   : > { %v4569_v35 = vadd.f32 %v3248_v33, %v3247_v31  ;;  %v4571_v36 = vadd.f32 %v3320_v34, %v3319_v32 }
 0x169   : > { %v3250_v37 = vpop.f32.mrf.mxu0  ;;  %v3322_v38 = vpop.f32.mrf.mxu1 }
 0x16b   : > { %v3251_v43 = vpop.f32.mrf.mxu0  ;;  %v3323_v44 = vpop.f32.mrf.mxu1 }
 0x16c   : > { %v4577_v45 = vadd.f32 %v3251_v43, %v3250_v37  ;;  %v4579_v46 = vadd.f32 %v3323_v44, %v3322_v38 }
 0x16d   : > { %v3253_v47 = vpop.f32.mrf.mxu0  ;;  %v3325_v48 = vpop.f32.mrf.mxu1  ;;  %2225 = vmatmul.mubr.bf16.gmra.mxu0 %v3918_v39  ;;  %3628 = vmatmul.mubr.bf16.gmra.mxu1 %v3919_v40 }
 0x16e   : > { %2232 = vmatprep.mubr.bf16.mxu0 %v3920_v41  ;;  %3631 = vmatprep.mubr.bf16.mxu1 %v3922_v42 }
 0x16f   : > { %v3254_v49 = vpop.f32.mrf.mxu0  ;;  %v3326_v50 = vpop.f32.mrf.mxu1 }
 0x170   : > { %v4581_v51 = vadd.f32 %v3254_v49, %v3253_v47  ;;  %v4583_v52 = vadd.f32 %v3326_v50, %v3325_v48 }
 0x171   : > { %v3256_v53 = vpop.f32.mrf.mxu0  ;;  %v3328_v54 = vpop.f32.mrf.mxu1 }
 0x173   : > { %v3257_v59 = vpop.f32.mrf.mxu0  ;;  %v3329_v60 = vpop.f32.mrf.mxu1 }
 0x174   : > { %v4589_v61 = vadd.f32 %v3257_v59, %v3256_v53  ;;  %v4591_v62 = vadd.f32 %v3329_v60, %v3328_v54 }
 0x175   : > { %v3259_v63 = vpop.f32.mrf.mxu0  ;;  %v3331_v0 = vpop.f32.mrf.mxu1  ;;  %2233 = vmatmul.mubr.bf16.gmra.mxu0 %v3923_v55  ;;  %3632 = vmatmul.mubr.bf16.gmra.mxu1 %v3924_v56 }
 0x176   : > { %2240 = vmatprep.mubr.bf16.mxu0 %v3925_v57  ;;  %3635 = vmatprep.mubr.bf16.mxu1 %v3927_v58 }
 0x177   : > { %v3260_v1 = vpop.f32.mrf.mxu0  ;;  %v3332_v2 = vpop.f32.mrf.mxu1 }
 0x178   : > { %v3261_v3 = vadd.f32 %v3260_v1, %v3259_v63  ;;  %v4593_v4 = vadd.f32 %v3332_v2, %v3331_v0 }
 0x179   : > { %v3262_v5 = vpop.f32.mrf.mxu0  ;;  %v3334_v6 = vpop.f32.mrf.mxu1 }
 0x17b   : > { %v3263_v9 = vpop.f32.mrf.mxu0  ;;  %v3335_v10 = vpop.f32.mrf.mxu1 }
 0x17c   : > { %v3264_v11 = vadd.f32 %v3263_v9, %v3262_v5  ;;  %v4597_v12 = vadd.f32 %v3335_v10, %v3334_v6 }
 0x17d   : > { %v3265_v13 = vpop.f32.mrf.mxu0  ;;  %v3337_v14 = vpop.f32.mrf.mxu1  ;;  %2241 = vmatmul.mubr.bf16.gmra.mxu0 %v3928_v7  ;;  %3636 = vmatmul.mubr.bf16.gmra.mxu1 %v3929_v8 }
 0x17f   : > { %v3266_v15 = vpop.f32.mrf.mxu0  ;;  %v3338_v16 = vpop.f32.mrf.mxu1 }
 0x180   : > { %v3267_v17 = vadd.f32 %v3266_v15, %v3265_v13  ;;  %v4599_v18 = vadd.f32 %v3338_v16, %v3337_v14 }
 0x181   : > { %v3268_v19 = vpop.f32.mrf.mxu0  ;;  %v3340_v20 = vpop.f32.mrf.mxu1 }
 0x183   : > { %v3269_v21 = vpop.f32.mrf.mxu0  ;;  %v3341_v22 = vpop.f32.mrf.mxu1 }
 0x184   : > { %v3270_v23 = vadd.f32 %v3269_v21, %v3268_v19  ;;  %v4601_v24 = vadd.f32 %v3341_v22, %v3340_v20 }
 0x185   : > { %v3271_v25 = vpop.f32.mrf.mxu0  ;;  %v3359_v26 = vpop.f32.mrf.mxu1 }
 0x187   : > { %v3272_v27 = vpop.f32.mrf.mxu0  ;;  %v3360_v28 = vpop.f32.mrf.mxu1 }
 0x188   : > { %v3273_v29 = vadd.f32 %v3272_v27, %v3271_v25  ;;  %v3361_v30 = vadd.f32 %v3360_v28, %v3359_v26 }
 0x189   : > { %v3274_v31 = vpop.f32.mrf.mxu0  ;;  %v3362_v32 = vpop.f32.mrf.mxu1 }
 0x18a   : > { %v4604_v33 = vadd.f32 %v3361_v30, %v4569_v35 }
 0x18b   : > { %v3275_v34 = vpop.f32.mrf.mxu0  ;;  %v3363_v37 = vpop.f32.mrf.mxu1 }
 0x18c   : > { %v3276_v38 = vadd.f32 %v3275_v34, %v3274_v31  ;;  %v3364_v39 = vadd.f32 %v3363_v37, %v3362_v32 }
 0x18d   : > { %v3277_v40 = vpop.f32.mrf.mxu0  ;;  %v3365_v41 = vpop.f32.mrf.mxu1 }
 0x18e   : > { %v4607_v42 = vadd.f32 %v3364_v39, %v4577_v45 }
 0x18f   : > { %v3278_v43 = vpop.f32.mrf.mxu0  ;;  %v3366_v44 = vpop.f32.mrf.mxu1 }
 0x190   : > { %v3279_v47 = vadd.f32 %v3278_v43, %v3277_v40  ;;  %v3367_v48 = vadd.f32 %v3366_v44, %v3365_v41 }
 0x191   : > { %v3280_v49 = vpop.f32.mrf.mxu0  ;;  %v3368_v50 = vpop.f32.mrf.mxu1 }
 0x192   : > { %v4610_v53 = vadd.f32 %v3367_v48, %v4581_v51 }
 0x193   : > { %v3281_v35 = vpop.f32.mrf.mxu0  ;;  %v3369_v54 = vpop.f32.mrf.mxu1 }
 0x194   : > { %v3282_v55 = vadd.f32 %v3281_v35, %v3280_v49  ;;  %v3370_v56 = vadd.f32 %v3369_v54, %v3368_v50 }
 0x195   : > { %v3283_v57 = vpop.f32.mrf.mxu0  ;;  %v3371_v58 = vpop.f32.mrf.mxu1 }
 0x196   : > { %v4613_v59 = vadd.f32 %v3370_v56, %v4589_v61 }
 0x197   : > { %v3284_v45 = vpop.f32.mrf.mxu0  ;;  %v3372_v60 = vpop.f32.mrf.mxu1 }
 0x198   : > { %v3285_v63 = vadd.f32 %v3284_v45, %v3283_v57  ;;  %v3373_v0 = vadd.f32 %v3372_v60, %v3371_v58 }
 0x199   : > { %v3286_v1 = vpop.f32.mrf.mxu0  ;;  %v3374_v2 = vpop.f32.mrf.mxu1 }
 0x19a   : > { %v4615_v5 = vadd.f32 %v3373_v0, %v3261_v3 }
 0x19b   : > { %v3287_v6 = vpop.f32.mrf.mxu0  ;;  %v3375_v51 = vpop.f32.mrf.mxu1 }
 0x19c   : > { %v3288_v7 = vadd.f32 %v3287_v6, %v3286_v1  ;;  %v3376_v8 = vadd.f32 %v3375_v51, %v3374_v2 }
 0x19d   : > { %v3289_v9 = vpop.f32.mrf.mxu0  ;;  %v3377_v10 = vpop.f32.mrf.mxu1 }
 0x19e   : > { %v4617_v13 = vadd.f32 %v3376_v8, %v3264_v11 }
 0x19f   : > { %v3290_v14 = vpop.f32.mrf.mxu0  ;;  %v3378_v15 = vpop.f32.mrf.mxu1 }
 0x1a0   : > { %v3291_v61 = vadd.f32 %v3290_v14, %v3289_v9  ;;  %v3379_v16 = vadd.f32 %v3378_v15, %v3377_v10 }
 0x1a1   : > { %v3292_v19 = vpop.f32.mrf.mxu0  ;;  %v3380_v20 = vpop.f32.mrf.mxu1 }
 0x1a2   : > { %v4619_v21 = vadd.f32 %v3379_v16, %v3267_v17 }
 0x1a3   : > { %v3293_v22 = vpop.f32.mrf.mxu0  ;;  %v3381_v25 = vpop.f32.mrf.mxu1 }
 0x1a4   : > { %v3294_v3 = vadd.f32 %v3293_v22, %v3292_v19  ;;  %v3382_v26 = vadd.f32 %v3381_v25, %v3380_v20 }
 0x1a5   : > { %v3295_v27 = vpop.f32.mrf.mxu0  ;;  %v3383_v28 = vpop.f32.mrf.mxu1 }
 0x1a6   : > { %v4621_v30 = vadd.f32 %v3382_v26, %v3270_v23 }
 0x1a7   : > { %v3296_v31 = vpop.f32.mrf.mxu0  ;;  %v3384_v32 = vpop.f32.mrf.mxu1 }
 0x1a8   : > { %v3297_v11 = vadd.f32 %v3296_v31, %v3295_v27  ;;  %v3385_v34 = vadd.f32 %v3384_v32, %v3383_v28 }
 0x1a9   : > { %v3298_v37 = vpop.f32.mrf.mxu0  ;;  %v3386_v39 = vpop.f32.mrf.mxu1 }
 0x1aa   : > { %v4623_v40 = vadd.f32 %v3385_v34, %v3273_v29 }
 0x1ab   : > { %v3299_v41 = vpop.f32.mrf.mxu0  ;;  %v3387_v43 = vpop.f32.mrf.mxu1 }
 0x1ac   : > { %v3300_v17 = vadd.f32 %v3299_v41, %v3298_v37  ;;  %v3388_v44 = vadd.f32 %v3387_v43, %v3386_v39 }
 0x1ad   : > { %v3301_v48 = vpop.f32.mrf.mxu0  ;;  %v3389_v49 = vpop.f32.mrf.mxu1 }
 0x1ae   : > { %v4625_v50 = vadd.f32 %v3388_v44, %v3276_v38 }
 0x1af   : > { %v3302_v35 = vpop.f32.mrf.mxu0  ;;  %v3390_v54 = vpop.f32.mrf.mxu1 }
 0x1b0   : > { %v3303_v23 = vadd.f32 %v3302_v35, %v3301_v48  ;;  %v3391_v56 = vadd.f32 %v3390_v54, %v3389_v49 }
 0x1b1   : > { %v3304_v57 = vpop.f32.mrf.mxu0  ;;  %v3392_v58 = vpop.f32.mrf.mxu1 }
 0x1b2   : > { %v4627_v45 = vadd.f32 %v3391_v56, %v3279_v47 }
 0x1b3   : > { %v3305_v60 = vpop.f32.mrf.mxu0  ;;  %v3393_v0 = vpop.f32.mrf.mxu1 }
 0x1b4   : > { %v3306_v29 = vadd.f32 %v3305_v60, %v3304_v57  ;;  %v3394_v1 = vadd.f32 %v3393_v0, %v3392_v58 }
 0x1b5   : > { %v3307_v2 = vpop.f32.mrf.mxu0  ;;  %v3395_v6 = vpop.f32.mrf.mxu1 }
 0x1b6   : > { %v4629_v51 = vadd.f32 %v3394_v1, %v3282_v55 }
 0x1b7   : > { %v3308_v8 = vpop.f32.mrf.mxu0  ;;  %v3396_v9 = vpop.f32.mrf.mxu1 }
 0x1b8   : > { %v3309_v38 = vadd.f32 %v3308_v8, %v3307_v2  ;;  %v3397_v10 = vadd.f32 %v3396_v9, %v3395_v6 }
 0x1b9   : > { %v3310_v14 = vpop.f32.mrf.mxu0  ;;  %v3398_v15 = vpop.f32.mrf.mxu1 }
 0x1ba   : > { %v4631_v16 = vadd.f32 %v3397_v10, %v3285_v63 }
 0x1bb   : > { %v3311_v19 = vpop.f32.mrf.mxu0  ;;  %v3399_v20 = vpop.f32.mrf.mxu1 }
 0x1bc   : > { %v3312_v47 = vadd.f32 %v3311_v19, %v3310_v14  ;;  %v3400_v22 = vadd.f32 %v3399_v20, %v3398_v15 }
 0x1bd   : > { %v3313_v25 = vpop.f32.mrf.mxu0  ;;  %v3401_v26 = vpop.f32.mrf.mxu1 }
 0x1be   : > { %v4633_v27 = vadd.f32 %v3400_v22, %v3288_v7 }
 0x1bf   : > { %v3314_v28 = vpop.f32.mrf.mxu0  ;;  %v3402_v31 = vpop.f32.mrf.mxu1 }
 0x1c0   : > { %v3315_v55 = vadd.f32 %v3314_v28, %v3313_v25  ;;  %v3403_v32 = vadd.f32 %v3402_v31, %v3401_v26 }
 0x1c1   : > { %v3316_v34 = vpop.f32.mrf.mxu0  ;;  %v3404_v37 = vpop.f32.mrf.mxu1 }
 0x1c2   : > { %v4635_v39 = vadd.f32 %v3403_v32, %v3291_v61 }
 0x1c3   : > { %v3317_v41 = vpop.f32.mrf.mxu0  ;;  %v3405_v43 = vpop.f32.mrf.mxu1 }
 0x1c4   : > { %v3318_v63 = vadd.f32 %v3317_v41, %v3316_v34  ;;  %v3406_v44 = vadd.f32 %v3405_v43, %v3404_v37 }
 0x1c5   : > { %v3407_v48 = vpop.f32.mrf.mxu1  ;;  %v4637_v49 = vpop.f32.mrf.mxu0 }
 0x1c6   : > { %v4639_v35 = vadd.f32 %v3406_v44, %v3294_v3 }
 0x1c7   : > { %v3408_v54 = vpop.f32.mrf.mxu1  ;;  %v4641_v7 = vpop.f32.mrf.mxu0 }
 0x1c8   : > { %v3409_v56 = vadd.f32 %v3408_v54, %v3407_v48 }
 0x1c9   : > { %v3410_v57 = vpop.f32.mrf.mxu1  ;;  %v4643_v58 = vpop.f32.mrf.mxu0 }
 0x1ca   : > { %v4645_v60 = vadd.f32 %v3409_v56, %v3297_v11 }
 0x1cb   : > { %v3411_v61 = vpop.f32.mrf.mxu1  ;;  %v4647_v0 = vpop.f32.mrf.mxu0 }
 0x1cc   : > { %v3412_v1 = vadd.f32 %v3411_v61, %v3410_v57 }
 0x1cd   : > { %v3413_v2 = vpop.f32.mrf.mxu1  ;;  %v4649_v6 = vpop.f32.mrf.mxu0 }
 0x1ce   : > { %v4651_v8 = vadd.f32 %v3412_v1, %v3300_v17 }
 0x1cf   : > { %v3414_v3 = vpop.f32.mrf.mxu1  ;;  %v4653_v9 = vpop.f32.mrf.mxu0 }
 0x1d0   : > { %4885 = vst [vmem:[#allocation4_spill] sm:$0xff] %v4651_v8  ;;  %v3415_v10 = vadd.f32 %v3414_v3, %v3413_v2 }
 0x1d1   : > { %v3416_v14 = vpop.f32.mrf.mxu1  ;;  %v4655_v15 = vpop.f32.mrf.mxu0 }
 0x1d2   : > { %v4657_v19 = vadd.f32 %v3415_v10, %v3303_v23 }
 0x1d3   : > { %v3417_v11 = vpop.f32.mrf.mxu1  ;;  %v4659_v20 = vpop.f32.mrf.mxu0 }
 0x1d4   : > { %v3418_v22 = vadd.f32 %v3417_v11, %v3416_v14 }
 0x1d5   : > { %v3419_v25 = vpop.f32.mrf.mxu1  ;;  %v4661_v26 = vpop.f32.mrf.mxu0 }
 0x1d6   : > { %v4663_v28 = vadd.f32 %v3418_v22, %v3306_v29 }
 0x1d7   : > { %v3420_v17 = vpop.f32.mrf.mxu1  ;;  %v4665_v31 = vpop.f32.mrf.mxu0 }
 0x1d8   : > { %v3421_v32 = vadd.f32 %v3420_v17, %v3419_v25 }
 0x1d9   : > { %v3422_v34 = vpop.f32.mrf.mxu1  ;;  %v4667_v37 = vpop.f32.mrf.mxu0 }
 0x1da   : > { %v4669_v41 = vadd.f32 %v3421_v32, %v3309_v38 }
 0x1db   : > { %v3423_v23 = vpop.f32.mrf.mxu1  ;;  %v4671_v43 = vpop.f32.mrf.mxu0 }
 0x1dc   : > { %4886 = vst [vmem:[#allocation5_spill] sm:$0xff] %v4669_v41  ;;  %v3424_v44 = vadd.f32 %v3423_v23, %v3422_v34 }
 0x1dd   : > { %v3425_v48 = vpop.f32.mrf.mxu1  ;;  %v4673_v54 = vpop.f32.mrf.mxu0 }
 0x1de   : > { %v4675_v56 = vadd.f32 %v3424_v44, %v3312_v47 }
 0x1df   : > { %v3426_v29 = vpop.f32.mrf.mxu1  ;;  %v4677_v57 = vpop.f32.mrf.mxu0 }
 0x1e0   : > { %4887 = vst [vmem:[#allocation6_spill] sm:$0xff] %v4675_v56  ;;  %v3427_v61 = vadd.f32 %v3426_v29, %v3425_v48 }
 0x1e1   : > { %v3428_v1 = vpop.f32.mrf.mxu1  ;;  %v4679_v2 = vpop.f32.mrf.mxu0 }
 0x1e2   : > { %v4681_v3 = vadd.f32 %v3427_v61, %v3315_v55 }
 0x1e3   : > { %v3429_v38 = vpop.f32.mrf.mxu1  ;;  %v4683_v10 = vpop.f32.mrf.mxu0 }
 0x1e4   : > { %4888 = vst [vmem:[#allocation7_spill] sm:$0xff] %v4681_v3  ;;  %v3430_v14 = vadd.f32 %v3429_v38, %v3428_v1 }
 0x1e5   : > { %v3431_v11 = vpop.f32.mrf.mxu1  ;;  %v4685_v22 = vpop.f32.mrf.mxu0 }
 0x1e6   : > { %v4687_v25 = vadd.f32 %v3430_v14, %v3318_v63 }
 0x1e7   : > { %v3432_v47 = vpop.f32.mrf.mxu1  ;;  %v4689_v17 = vpop.f32.mrf.mxu0 }
 0x1e8   : > { %4889 = vst [vmem:[#allocation8_spill] sm:$0xff] %v4687_v25  ;;  %v3433_v32 = vadd.f32 %v3432_v47, %v3431_v11 }
 0x1e9   : > { %v3434_v34 = vpop.f32.mrf.mxu1  ;;  %v4691_v23 = vpop.f32.mrf.mxu0 }
 0x1ea   : > { %v4694_v44 = vadd.f32 %v3433_v32, %v4571_v36 }
 0x1eb   : > { %v3435_v55 = vpop.f32.mrf.mxu1  ;;  %v4696_v48 = vpop.f32.mrf.mxu0 }
 0x1ec   : > { %4890 = vst [vmem:[#allocation9_spill] sm:$0xff] %v4694_v44  ;;  %v3436_v29 = vadd.f32 %v3435_v55, %v3434_v34 }
 0x1ed   : > { %v3437_v61 = vpop.f32.mrf.mxu1  ;;  %v4698_v1 = vpop.f32.mrf.mxu0 }
 0x1ee   : > { %v4701_v63 = vadd.f32 %v3436_v29, %v4579_v46 }
 0x1ef   : > { %v3438_v38 = vpop.f32.mrf.mxu1  ;;  %v4703_v14 = vpop.f32.mrf.mxu0 }
 0x1f0   : > { %4891 = vst [vmem:[#allocation10_spill] sm:$0xff] %v4701_v63  ;;  %v3439_v11 = vadd.f32 %v3438_v38, %v3437_v61 }
 0x1f1   : > { %v3440_v47 = vpop.f32.mrf.mxu1  ;;  %v4705_v56 = vpop.f32.mrf.mxu0 }
 0x1f2   : > { %v4708_v36 = vadd.f32 %v3439_v11, %v4583_v52 }
 0x1f3   : > { %v3441_v32 = vpop.f32.mrf.mxu1  ;;  %v4710_v44 = vpop.f32.mrf.mxu0 }
 0x1f4   : > { %4892 = vst [vmem:[#allocation11_spill] sm:$0xff] %v4708_v36  ;;  %v3442_v34 = vadd.f32 %v3441_v32, %v3440_v47 }
 0x1f5   : > { %v3443_v55 = vpop.f32.mrf.mxu1  ;;  %v4712_v25 = vpop.f32.mrf.mxu0 }
 0x1f6   : > { %v4715_v46 = vadd.f32 %v3442_v34, %v4591_v62 }
 0x1f7   : > { %v3444_v29 = vpop.f32.mrf.mxu1  ;;  %v4717_v63 = vpop.f32.mrf.mxu0 }
 0x1f8   : > { %4893 = vst [vmem:[#allocation12_spill] sm:$0xff] %v4715_v46  ;;  %v3445_v61 = vadd.f32 %v3444_v29, %v3443_v55  ;;  %v3479_v55 = vadd.f32 %v4653_v9, %v4649_v6  ;;  %v584_v9 = vld [vmem:[#allocation2 + $0xd8] sm:$0xff] }
 0x1f9   : > { %v3446_v38 = vpop.f32.mrf.mxu1  ;;  %v4719_v41 = vpop.f32.mrf.mxu0 }
 0x1fa   : > { %v4722_v52 = vadd.f32 %v3445_v61, %v4593_v4  ;;  %v3473_v61 = vadd.f32 %v4641_v7, %v4637_v49 }
 0x1fb   : > { %v3447_v11 = vpop.f32.mrf.mxu1  ;;  %v4724_v36 = vpop.f32.mrf.mxu0 }
 0x1fc   : > { %4894 = vst [vmem:[#allocation13_spill] sm:$0xff] %v4722_v52  ;;  %v3448_v47 = vadd.f32 %v3447_v11, %v3446_v38  ;;  %v2123_v7 = vadd.f32 %v3473_v61, %v4604_v33 }
 0x1fd   : > { %v3449_v32 = vpop.f32.mrf.mxu1  ;;  %v4726_v3 = vpop.f32.mrf.mxu0 }
 0x1fe   : > { %v4729_v62 = vadd.f32 %v3448_v47, %v4597_v12  ;;  %v3482_v12 = vadd.f32 %v4659_v20, %v4655_v15 }
 0x1ff   : > { %v3450_v34 = vpop.f32.mrf.mxu1  ;;  %v4731_v46 = vpop.f32.mrf.mxu0 }
 0x200   : > { %4895 = vst [vmem:[#allocation14_spill] sm:$0xff] %v4729_v62  ;;  %v3451_v29 = vadd.f32 %v3450_v34, %v3449_v32  ;;  %v2131_v62 = vadd.f32 %v3479_v55, %v4610_v53  ;;  %v3476_v34 = vadd.f32 %v4647_v0, %v4643_v58  ;;  %v3491_v53 = vadd.f32 %v4677_v57, %v4673_v54  ;;  %v585_v58 = vld [vmem:[#allocation2 + $0x18] sm:$0xff] }
 0x201   : > { %v3452_v8 = vpop.f32.mrf.mxu1  ;;  %v4735_v4 = vpop.f32.mrf.mxu0  ;;  %v2134_v55 = vadd.f32 %v3482_v12, %v4613_v59  ;;  %v3494_v57 = vadd.f32 %v4683_v10, %v4679_v2  ;;  %v586_v2 = vld [vmem:[#allocation2 + $0x50] sm:$0xff] }
 0x202   : > { %v4740_v38 = vadd.f32 %v3451_v29, %v4599_v18  ;;  %v2126_v61 = vadd.f32 %v3476_v34, %v4607_v42 }
 0x203   : > { %v3453_v11 = vpop.f32.mrf.mxu1  ;;  %v4742_v52 = vpop.f32.mrf.mxu0 }
 0x204   : > { %4896 = vst [vmem:[#allocation15_spill] sm:$0xff] %v4740_v38  ;;  %v3454_v47 = vadd.f32 %v3453_v11, %v3452_v8  ;;  %v582_v38 = vld [vmem:[#allocation2 + $0xb0] sm:$0xff] }
 0x205   : > { %v4747_v6 = vpop.f32.mrf.mxu0  ;;  %v3609_v32 = vpop.f32.mrf.mxu1 }
 0x206   : > { %v4752_v49 = vadd.f32 %v3454_v47, %v4601_v24  ;;  %v2292_v18 = vadd.f32 %v3609_v32, %v2131_v62  ;;  %v3485_v24 = vadd.f32 %v4665_v31, %v4661_v26  ;;  %v583_v32 = vld [vmem:[#allocation2] sm:$0xff]  ;;  %v588_v26 = vld [vmem:[#allocation2 + $0x30] sm:$0xff] }
 0x207   : > { %v4755_v29 = vpop.f32.mrf.mxu0  ;;  %v2283_v15 = vpop.f32.mrf.mxu1 }
 0x208   : > { %v2412_v8 = vadd.f32 %v2292_v18, %v584_v9  ;;  %v2284_v20 = vadd.f32 %v2283_v15, %v2123_v7  ;;  %v2147_v9 = vadd.f32 %v3491_v53, %v4619_v21  ;;  %v2139_v7 = vadd.f32 %v3485_v24, %v4615_v5 }
 0x209   : > { %v4760_v11 = vpop.f32.mrf.mxu0  ;;  %v3610_v0 = vpop.f32.mrf.mxu1 }
 0x20a   : > { %2444 = vst [vmem:[#allocation2 + $0xd8] sm:$0xff] %v2412_v8  ;;  %v2410_v33 = vadd.f32 %v2284_v20, %v582_v38  ;;  %v2295_v62 = vadd.f32 %v3610_v0, %v2134_v55  ;;  %v3488_v38 = vadd.f32 %v4671_v43, %v4667_v37  ;;  %v3503_v8 = vadd.f32 %v4703_v14, %v4698_v1  ;;  %v589_v37 = vld [vmem:[#allocation2 + $0x48] sm:$0xff] }
 0x20b   : > { %v4765_v47 = vpop.f32.mrf.mxu0  ;;  %v2286_v54 = vpop.f32.mrf.mxu1  ;;  %v2150_v20 = vadd.f32 %v3494_v57, %v4621_v30  ;;  %v587_v1 = vld [vmem:[#allocation2 + $0x68] sm:$0xff]  ;;  %v3500_v57 = vadd.f32 %v4696_v48, %v4691_v23  ;;  %v593_v23 = vld [vmem:[#allocation2 + $0xb8] sm:$0xff] }
 0x20c   : > { %2442 = vst [vmem:[#allocation2 + $0xb0] sm:$0xff] %v2410_v33  ;;  %v2413_v59 = vadd.f32 %v2295_v62, %v585_v58  ;;  %v2287_v12 = vadd.f32 %v2286_v54, %v2126_v61  ;;  %v3497_v58 = vadd.f32 %v4689_v17, %v4685_v22  ;;  %v2142_v24 = vadd.f32 %v3488_v38, %v4617_v13  ;;  %v592_v22 = vld [vmem:[#allocation2 + $0xe8] sm:$0xff] }
 0x20d   : > { %v4770_v18 = vpop.f32.mrf.mxu0  ;;  %v3613_v31 = vpop.f32.mrf.mxu1  ;;  %v3506_v62 = vadd.f32 %v4710_v44, %v4705_v56  ;;  %v590_v56 = vld [vmem:[#allocation2 + $0x80] sm:$0xff] }
 0x20e   : > { %2445 = vst [vmem:[#allocation2 + $0x18] sm:$0xff] %v2413_v59  ;;  %v2411_v42 = vadd.f32 %v2287_v12, %v583_v32  ;;  %v2308_v34 = vadd.f32 %v3613_v31, %v2147_v9  ;;  %v2163_v32 = vadd.f32 %v3503_v8, %v4627_v45  ;;  %v2155_v12 = vadd.f32 %v3497_v58, %v4623_v40 }
 0x20f   : > { %v4775_v15 = vpop.f32.mrf.mxu0  ;;  %v2299_v10 = vpop.f32.mrf.mxu1  ;;  %v2166_v38 = vadd.f32 %v3506_v62, %v4629_v51  ;;  %v3518_v8 = vadd.f32 %v4742_v52, %v4735_v4  ;;  %v597_v62 = vld [vmem:[#allocation2 + $0x78] sm:$0xff] }
 0x210   : > { %2443 = vst [vmem:[#allocation2] sm:$0xff] %v2411_v42  ;;  %v2416_v21 = vadd.f32 %v2308_v34, %v588_v26  ;;  %v2300_v53 = vadd.f32 %v2299_v10, %v2139_v7  ;;  %v3515_v26 = vadd.f32 %v4731_v46, %v4726_v3  ;;  %v3509_v34 = vadd.f32 %v4717_v63, %v4712_v25  ;;  %v591_v3 = vld [vmem:[#allocation2 + $0x88] sm:$0xff] }
 0x211   : > { %v4780_v55 = vpop.f32.mrf.mxu0  ;;  %v3614_v43 = vpop.f32.mrf.mxu1  ;;  %v3512_v63 = vadd.f32 %v4724_v36, %v4719_v41  ;;  %v3527_v52 = vadd.f32 %v4775_v15, %v4770_v18  ;;  %v3521_v41 = vadd.f32 %v4755_v29, %v4747_v6  ;;  %v3524_v6 = vadd.f32 %v4765_v47, %v4760_v11 }
 0x212   : > { %2448 = vst [vmem:[#allocation2 + $0x30] sm:$0xff] %v2416_v21  ;;  %v2414_v5 = vadd.f32 %v2300_v53, %v586_v2  ;;  %v2311_v0 = vadd.f32 %v3614_v43, %v2150_v20  ;;  %v2158_v2 = vadd.f32 %v3500_v57, %v4625_v50  ;;  %v2179_v53 = vadd.f32 %v3515_v26, %v4635_v39  ;;  %v598_v26 = vld [vmem:[#allocation2 + $0x38] sm:$0xff] }
 0x213   : > { %v4785_v33 = vpop.f32.mrf.mxu0  ;;  %v2302_v14 = vpop.f32.mrf.mxu1  ;;  %v2171_v58 = vadd.f32 %v3509_v34, %v4631_v16  ;;  %v2195_v57 = vadd.f32 %v3527_v52, %v4657_v19 }
 0x214   : > { %2446 = vst [vmem:[#allocation2 + $0x50] sm:$0xff] %v2414_v5  ;;  %v2417_v30 = vadd.f32 %v2311_v0, %v589_v37  ;;  %v2303_v61 = vadd.f32 %v2302_v14, %v2142_v24  ;;  %v596_v37 = vld [vmem:[#allocation2 + $0x8] sm:$0xff]  ;;  %v594_v0 = vld [vmem:[#allocation2 + $0x60] sm:$0xff]  ;;  %v3530_v18 = vadd.f32 %v4785_v33, %v4780_v55 }
 0x215   : > { %v4790_v54 = vpop.f32.mrf.mxu0  ;;  %v3617_v17 = vpop.f32.mrf.mxu1 }
 0x216   : > { %2449 = vst [vmem:[#allocation2 + $0x48] sm:$0xff] %v2417_v30  ;;  %v2415_v13 = vadd.f32 %v2303_v61, %v587_v1  ;;  %v2324_v59 = vadd.f32 %v3617_v17, %v2163_v32  ;;  %v2182_v1 = vadd.f32 %v3518_v8, %v4639_v35  ;;  %v2174_v61 = vadd.f32 %v3512_v63, %v4633_v27  ;;  %v4899_v63 = vld [vmem:[#allocation5_spill] sm:$0xff] }
 0x217   : > { %v4795_v9 = vpop.f32.mrf.mxu0  ;;  %v2315_v44 = vpop.f32.mrf.mxu1  ;;  %v2198_v19 = vadd.f32 %v3530_v18, %v4663_v28 }
 0x218   : > { %2447 = vst [vmem:[#allocation2 + $0x68] sm:$0xff] %v2415_v13  ;;  %v2420_v45 = vadd.f32 %v2324_v59, %v592_v22  ;;  %v2316_v31 = vadd.f32 %v2315_v44, %v2155_v12  ;;  %v595_v22 = vld [vmem:[#allocation2 + $0xf0] sm:$0xff]  ;;  %v600_v59 = vld [vmem:[#allocation2 + $0x40] sm:$0xff]  ;;  %v3533_v11 = vadd.f32 %v4795_v9, %v4790_v54 }
 0x219   : > { %v4800_v42 = vpop.f32.mrf.mxu0  ;;  %v3618_v48 = vpop.f32.mrf.mxu1 }
 0x21a   : > { %2452 = vst [vmem:[#allocation2 + $0xe8] sm:$0xff] %v2420_v45  ;;  %v2418_v40 = vadd.f32 %v2316_v31, %v590_v56  ;;  %v2327_v7 = vadd.f32 %v3618_v48, %v2166_v38  ;;  %v2187_v56 = vadd.f32 %v3521_v41, %v4645_v60  ;;  %v4901_v41 = vld [vmem:[#allocation6_spill] sm:$0xff] }
 0x21b   : > { %v4805_v10 = vpop.f32.mrf.mxu0  ;;  %v2318_v46 = vpop.f32.mrf.mxu1 }
 0x21c   : > { %2450 = vst [vmem:[#allocation2 + $0x80] sm:$0xff] %v2418_v40  ;;  %v2421_v51 = vadd.f32 %v2327_v7, %v593_v23  ;;  %v2319_v21 = vadd.f32 %v2318_v46, %v2158_v2  ;;  %v601_v23 = vld [vmem:[#allocation2 + $0xc8] sm:$0xff]  ;;  %v4897_v40 = vld [vmem:[#allocation4_spill] sm:$0xff]  ;;  %v599_v2 = vld [vmem:[#allocation2 + $0x58] sm:$0xff]  ;;  %v3536_v54 = vadd.f32 %v4805_v10, %v4800_v42 }
 0x21d   : > { %v3537_v20 = vpop.f32.mrf.mxu0  ;;  %v3621_v25 = vpop.f32.mrf.mxu1  ;;  %v2190_v60 = vadd.f32 %v3524_v6, %v4897_v40  ;;  %v4905_v40 = vld [vmem:[#allocation10_spill] sm:$0xff] }
 0x21e   : > { %2453 = vst [vmem:[#allocation2 + $0xb8] sm:$0xff] %v2421_v51  ;;  %v2419_v50 = vadd.f32 %v2319_v21, %v591_v3  ;;  %v2340_v43 = vadd.f32 %v3621_v25, %v2179_v53  ;;  %v4898_v21 = vld [vmem:[#allocation7_spill] sm:$0xff] }
 0x21f   : > { %v3538_v5 = vpop.f32.mrf.mxu0  ;;  %v2331_v24 = vpop.f32.mrf.mxu1 }
 0x220   : > { %2451 = vst [vmem:[#allocation2 + $0x88] sm:$0xff] %v2419_v50  ;;  %v2424_v4 = vadd.f32 %v2340_v43, %v596_v37  ;;  %v2332_v39 = vadd.f32 %v2331_v24, %v2171_v58  ;;  %v3539_v55 = vadd.f32 %v3538_v5, %v3537_v20  ;;  %v604_v20 = vld [vmem:[#allocation2 + $0x70] sm:$0xff]  ;;  %v2203_v50 = vadd.f32 %v3533_v11, %v4899_v63  ;;  %v602_v58 = vld [vmem:[#allocation2 + $0xe0] sm:$0xff] }
 0x221   : > { %v3540_v14 = vpop.f32.mrf.mxu0  ;;  %v3622_v30 = vpop.f32.mrf.mxu1 }
 0x222   : > { %2456 = vst [vmem:[#allocation2 + $0x8] sm:$0xff] %v2424_v4  ;;  %v2422_v36 = vadd.f32 %v2332_v39, %v594_v0  ;;  %v2343_v16 = vadd.f32 %v3622_v30, %v2182_v1  ;;  %v2211_v28 = vadd.f32 %v3539_v55, %v4898_v21  ;;  %v4900_v4 = vld [vmem:[#allocation8_spill] sm:$0xff] }
 0x223   : > { %v3541_v32 = vpop.f32.mrf.mxu0  ;;  %v2334_v17 = vpop.f32.mrf.mxu1 }
 0x224   : > { %2454 = vst [vmem:[#allocation2 + $0x60] sm:$0xff] %v2422_v36  ;;  %v2425_v15 = vadd.f32 %v2343_v16, %v597_v62  ;;  %v2335_v35 = vadd.f32 %v2334_v17, %v2174_v61  ;;  %v3542_v46 = vadd.f32 %v3541_v32, %v3540_v14  ;;  %v605_v14 = vld [vmem:[#allocation2 + $0xc0] sm:$0xff]  ;;  %v2206_v36 = vadd.f32 %v3536_v54, %v4901_v41  ;;  %v603_v61 = vld [vmem:[#allocation2 + $0x90] sm:$0xff] }
 0x225   : > { %v3543_v13 = vpop.f32.mrf.mxu0  ;;  %v3625_v12 = vpop.f32.mrf.mxu1 }
 0x226   : > { %2457 = vst [vmem:[#allocation2 + $0x78] sm:$0xff] %v2425_v15  ;;  %v2423_v29 = vadd.f32 %v2335_v35, %v595_v22  ;;  %v2356_v27 = vadd.f32 %v3625_v12, %v2195_v57  ;;  %v2214_v39 = vadd.f32 %v3542_v46, %v4900_v4  ;;  %v4902_v15 = vld [vmem:[#allocation11_spill] sm:$0xff] }
 0x227   : > { %v3544_v44 = vpop.f32.mrf.mxu0  ;;  %v2347_v45 = vpop.f32.mrf.mxu1 }
 0x228   : > { %2455 = vst [vmem:[#allocation2 + $0xf0] sm:$0xff] %v2423_v29  ;;  %v2428_v33 = vadd.f32 %v2356_v27, %v600_v59  ;;  %v2348_v31 = vadd.f32 %v2347_v45, %v2187_v56  ;;  %v3545_v30 = vadd.f32 %v3544_v44, %v3543_v13  ;;  %v608_v59 = vld [vmem:[#allocation2 + $0x10] sm:$0xff]  ;;  %v4903_v27 = vld [vmem:[#allocation9_spill] sm:$0xff] }
 0x229   : > { %v3546_v38 = vpop.f32.mrf.mxu0  ;;  %v3626_v48 = vpop.f32.mrf.mxu1 }
 0x22a   : > { %2460 = vst [vmem:[#allocation2 + $0x40] sm:$0xff] %v2428_v33  ;;  %v2426_v47 = vadd.f32 %v2348_v31, %v598_v26  ;;  %v2359_v34 = vadd.f32 %v3626_v48, %v2198_v19  ;;  %v2219_v56 = vadd.f32 %v3545_v30, %v4903_v27  ;;  %v606_v26 = vld [vmem:[#allocation2 + $0xa8] sm:$0xff]  ;;  %v4904_v31 = vld [vmem:[#allocation12_spill] sm:$0xff] }
 0x22b   : > { %v3547_v7 = vpop.f32.mrf.mxu0  ;;  %v2350_v3 = vpop.f32.mrf.mxu1  ;;  %v609_v48 = vld [vmem:[#allocation2 + $0x28] sm:$0xff] }
 0x22c   : > { %2458 = vst [vmem:[#allocation2 + $0x38] sm:$0xff] %v2426_v47  ;;  %v2429_v8 = vadd.f32 %v2359_v34, %v601_v23  ;;  %v2351_v51 = vadd.f32 %v2350_v3, %v2190_v60  ;;  %v3548_v6 = vadd.f32 %v3547_v7, %v3546_v38 }
 0x22d   : > { %v3549_v53 = vpop.f32.mrf.mxu0  ;;  %v3629_v37 = vpop.f32.mrf.mxu1 }
 0x22e   : > { %2461 = vst [vmem:[#allocation2 + $0xc8] sm:$0xff] %v2429_v8  ;;  %v2427_v9 = vadd.f32 %v2351_v51, %v599_v2  ;;  %v2372_v25 = vadd.f32 %v3629_v37, %v2211_v28  ;;  %v2222_v60 = vadd.f32 %v3548_v6, %v4905_v40  ;;  %v607_v2 = vld [vmem:[#allocation2 + $0xd0] sm:$0xff] }
 0x22f   : > { %v3550_v43 = vpop.f32.mrf.mxu0  ;;  %v2363_v5 = vpop.f32.mrf.mxu1 }
 0x230   : > { %2459 = vst [vmem:[#allocation2 + $0x58] sm:$0xff] %v2427_v9  ;;  %v2432_v0 = vadd.f32 %v2372_v25, %v604_v20  ;;  %v3551_v24 = vadd.f32 %v3550_v43, %v3549_v53  ;;  %v2364_v52 = vadd.f32 %v2363_v5, %v2203_v50  ;;  %v4906_v20 = vld [vmem:[#allocation13_spill] sm:$0xff]  ;;  %v610_v9 = vld [vmem:[#allocation2 + $0xa0] sm:$0xff]  ;;  %v4907_v5 = vld [vmem:[#allocation15_spill] sm:$0xff] }
 0x231   : > { %v3552_v1 = vpop.f32.mrf.mxu0  ;;  %v3630_v62 = vpop.f32.mrf.mxu1 }
 0x232   : > { %2464 = vst [vmem:[#allocation2 + $0x70] sm:$0xff] %v2432_v0  ;;  %v2430_v42 = vadd.f32 %v2364_v52, %v602_v58  ;;  %v2375_v10 = vadd.f32 %v3630_v62, %v2214_v39  ;;  %v2227_v35 = vadd.f32 %v3551_v24, %v4902_v15  ;;  %v4908_v52 = vld [vmem:[#allocation14_spill] sm:$0xff]  ;;  %v612_v39 = vld [vmem:[#allocation2 + $0x20] sm:$0xff] }
 0x233   : > { %v3553_v16 = vpop.f32.mrf.mxu0  ;;  %v2366_v32 = vpop.f32.mrf.mxu1 }
 0x234   : > { %2462 = vst [vmem:[#allocation2 + $0xe0] sm:$0xff] %v2430_v42  ;;  %v2433_v22 = vadd.f32 %v2375_v10, %v605_v14  ;;  %v3554_v17 = vadd.f32 %v3553_v16, %v3552_v1  ;;  %v2367_v18 = vadd.f32 %v2366_v32, %v2206_v36  ;;  %v611_v14 = vld [vmem:[#allocation2 + $0xf8] sm:$0xff] }
 0x235   : > { %v3555_v57 = vpop.f32.mrf.mxu0  ;;  %v3633_v12 = vpop.f32.mrf.mxu1 }
 0x236   : > { %2465 = vst [vmem:[#allocation2 + $0xc0] sm:$0xff] %v2433_v22  ;;  %v2431_v13 = vadd.f32 %v2367_v18, %v603_v61  ;;  %v2388_v29 = vadd.f32 %v3633_v12, %v2227_v35  ;;  %v2230_v19 = vadd.f32 %v3554_v17, %v4904_v31  ;;  %v613_v61 = vld [vmem:[#allocation2 + $0x98] sm:$0xff] }
 0x237   : > { %v3556_v44 = vpop.f32.mrf.mxu0  ;;  %v2379_v45 = vpop.f32.mrf.mxu1 }
 0x238   : > { %2463 = vst [vmem:[#allocation2 + $0x90] sm:$0xff] %v2431_v13  ;;  %v2436_v55 = vadd.f32 %v2388_v29, %v608_v59  ;;  %v2380_v33 = vadd.f32 %v2379_v45, %v2219_v56  ;;  %v3557_v47 = vadd.f32 %v3556_v44, %v3555_v57 }
 0x239   : > { %v3558_v23 = vpop.f32.mrf.mxu0  ;;  %v3634_v11 = vpop.f32.mrf.mxu1 }
 0x23a   : > { %2468 = vst [vmem:[#allocation2 + $0x10] sm:$0xff] %v2436_v55  ;;  %v2434_v34 = vadd.f32 %v2380_v33, %v606_v26  ;;  %v2391_v38 = vadd.f32 %v3634_v11, %v2230_v19  ;;  %v2235_v37 = vadd.f32 %v3557_v47, %v4906_v20 }
 0x23b   : > { %v3559_v7 = vpop.f32.mrf.mxu0  ;;  %v2382_v3 = vpop.f32.mrf.mxu1 }
 0x23c   : > { %2466 = vst [vmem:[#allocation2 + $0xa8] sm:$0xff] %v2434_v34  ;;  %v2437_v46 = vadd.f32 %v2391_v38, %v609_v48  ;;  %v2383_v8 = vadd.f32 %v2382_v3, %v2222_v60  ;;  %v3560_v28 = vadd.f32 %v3559_v7, %v3558_v23 }
 0x23d   : > { %v3561_v51 = vpop.f32.mrf.mxu0  ;;  %v3637_v21 = vpop.f32.mrf.mxu1 }
 0x23e   : > { %2469 = vst [vmem:[#allocation2 + $0x28] sm:$0xff] %v2437_v46  ;;  %v2435_v53 = vadd.f32 %v2383_v8, %v607_v2  ;;  %v2238_v4 = vadd.f32 %v3560_v28, %v4908_v52 }
 0x23f   : > { %v3562_v54 = vpop.f32.mrf.mxu0  ;;  %v2395_v25 = vpop.f32.mrf.mxu1 }
 0x240   : > { %2467 = vst [vmem:[#allocation2 + $0xd0] sm:$0xff] %v2435_v53  ;;  %v3563_v63 = vadd.f32 %v3562_v54, %v3561_v51  ;;  %v2396_v50 = vadd.f32 %v2395_v25, %v2235_v37 }
 0x241   : > { %v3564_v43 = vpop.f32.mrf.mxu0  ;;  %v3638_v58 = vpop.f32.mrf.mxu1 }
 0x242   : > { %v2243_v0 = vadd.f32 %v3563_v63, %v4907_v5  ;;  %v2438_v24 = vadd.f32 %v2396_v50, %v610_v9 }
 0x243   : > { %v3565_v1 = vpop.f32.mrf.mxu0  ;;  %v2398_v62 = vpop.f32.mrf.mxu1 }
 0x244   : > { %v2404_v30 = vadd.f32 %v3637_v21, %v2243_v0  ;;  %2470 = vst [vmem:[#allocation2 + $0xa0] sm:$0xff] %v2438_v24  ;;  %v3566_v42 = vadd.f32 %v3565_v1, %v3564_v43  ;;  %v2399_v10 = vadd.f32 %v2398_v62, %v2238_v4 }
 0x246   : > { %v2440_v41 = vadd.f32 %v2404_v30, %v612_v39  ;;  %v2246_v36 = vadd.f32 %v3566_v42, %v4752_v49  ;;  %v2439_v16 = vadd.f32 %v2399_v10, %v611_v14 }
 0x248   : > { %2472 = vst [vmem:[#allocation2 + $0x20] sm:$0xff] %v2440_v41  ;;  %v2407_v32 = vadd.f32 %v3638_v58, %v2246_v36  ;;  %2471 = vst [vmem:[#allocation2 + $0xf8] sm:$0xff] %v2439_v16  ;;  %2477 = sbr.rel (%p3069_p13) target bundleno = 638 (0x27e), region = 66 }
 0x24a   : > { %v2441_v22 = vadd.f32 %v2407_v32, %v613_v61 }
 0x24c   : > { %2473 = vst [vmem:[#allocation2 + $0x98] sm:$0xff] %v2441_v22 }
 0x24d   : > { %v2478_v17 = vld [vmem:[#allocation2 + $0xb0] sm:$0xff]  ;;  %v2479_v18 = vld [vmem:[#allocation2] sm:$0xff]  ;;  %v2480_v15 = vld [vmem:[#allocation2 + $0xd8] sm:$0xff] }
 0x24e   : > { %3930 = vtanh.f32 %v2478_v17  ;;  %v2481_v35 = vld [vmem:[#allocation2 + $0x18] sm:$0xff]  ;;  %v2482_v57 = vld [vmem:[#allocation2 + $0x50] sm:$0xff]  ;;  %v2483_v59 = vld [vmem:[#allocation2 + $0x68] sm:$0xff] }
 0x24f   : > { %3932 = vtanh.f32 %v2479_v18  ;;  %v2484_v49 = vld [vmem:[#allocation2 + $0x30] sm:$0xff]  ;;  %v2485_v12 = vld [vmem:[#allocation2 + $0x48] sm:$0xff]  ;;  %v2486_v6 = vld [vmem:[#allocation2 + $0x80] sm:$0xff] }
 0x250   : > { %3934 = vtanh.f32 %v2480_v15  ;;  %v2487_v13 = vld [vmem:[#allocation2 + $0x88] sm:$0xff]  ;;  %v2489_v27 = vld [vmem:[#allocation2 + $0xb8] sm:$0xff]  ;;  %v2490_v56 = vld [vmem:[#allocation2 + $0x60] sm:$0xff] }
 0x251   : > { %3936 = vtanh.f32 %v2481_v35  ;;  %v2488_v29 = vld [vmem:[#allocation2 + $0xe8] sm:$0xff]  ;;  %v2491_v44 = vld [vmem:[#allocation2 + $0xf0] sm:$0xff]  ;;  %v2493_v45 = vld [vmem:[#allocation2 + $0x78] sm:$0xff] }
 0x252   : > { %3938 = vtanh.f32 %v2482_v57  ;;  %v2492_v26 = vld [vmem:[#allocation2 + $0x8] sm:$0xff]  ;;  %v2494_v33 = vld [vmem:[#allocation2 + $0x38] sm:$0xff]  ;;  %v2496_v11 = vld [vmem:[#allocation2 + $0x40] sm:$0xff] }
 0x253   : > { %3940 = vtanh.f32 %v2483_v59  ;;  %v2495_v19 = vld [vmem:[#allocation2 + $0x58] sm:$0xff]  ;;  %v2497_v34 = vld [vmem:[#allocation2 + $0xc8] sm:$0xff]  ;;  %v2498_v60 = vld [vmem:[#allocation2 + $0xe0] sm:$0xff] }
 0x254   : > { %3942 = vtanh.f32 %v2484_v49  ;;  %v2499_v2 = vld [vmem:[#allocation2 + $0x90] sm:$0xff]  ;;  %v2501_v21 = vld [vmem:[#allocation2 + $0xc0] sm:$0xff]  ;;  %v2502_v20 = vld [vmem:[#allocation2 + $0xa8] sm:$0xff] }
 0x255   : > { %3944 = vtanh.f32 %v2485_v12  ;;  %v2500_v8 = vld [vmem:[#allocation2 + $0x70] sm:$0xff]  ;;  %v2505_v43 = vld [vmem:[#allocation2 + $0x28] sm:$0xff]  ;;  %v2506_v0 = vld [vmem:[#allocation2 + $0xa0] sm:$0xff] }
 0x256   : > { %3946 = vtanh.f32 %v2486_v6  ;;  %v2503_v54 = vld [vmem:[#allocation2 + $0xd0] sm:$0xff]  ;;  %v2507_v52 = vld [vmem:[#allocation2 + $0xf8] sm:$0xff]  ;;  %v2508_v1 = vld [vmem:[#allocation2 + $0x20] sm:$0xff] }
 0x257   : > { %3948 = vtanh.f32 %v2487_v13  ;;  %v2504_v63 = vld [vmem:[#allocation2 + $0x10] sm:$0xff]  ;;  %v2509_v62 = vld [vmem:[#allocation2 + $0x98] sm:$0xff] }
 0x258   : > { %3950 = vtanh.f32 %v2488_v29 }
 0x259   : > { %3952 = vtanh.f32 %v2489_v27 }
 0x25a   : > { %3954 = vtanh.f32 %v2490_v56 }
 0x25b   : > { %v3931_v55 = vpop.eup %3930  ;;  %3956 = vtanh.f32 %v2491_v44 }
 0x25c   : > { %v3933_v31 = vpop.eup %3932  ;;  %3958 = vtanh.f32 %v2492_v26 }
 0x25d   : > { %v3935_v23 = vpop.eup %3934  ;;  %v3139_v48 = vpack.c.bf16 %v3933_v31, %v3931_v55  ;;  %3960 = vtanh.f32 %v2493_v45 }
 0x25e   : > { %v3937_v47 = vpop.eup %3936  ;;  %3962 = vtanh.f32 %v2494_v33 }
 0x25f   : > { %v3939_v38 = vpop.eup %3938  ;;  %3140 = vst [vmem:[%s4403_s30] sm:$0xff] %v3139_v48   ;;  %v3144_v40 = vpack.c.bf16 %v3937_v47, %v3935_v23  ;;  %3964 = vtanh.f32 %v2495_v19 }
 0x260   : > { %v3941_v7 = vpop.eup %3940  ;;  %3966 = vtanh.f32 %v2496_v11 }
 0x261   : > { %v3943_v3 = vpop.eup %3942  ;;  %3216 = vst [vmem:[%s4403_s30 + $0x8] sm:$0xff] %v3144_v40   ;;  %v3149_v46 = vpack.c.bf16 %v3941_v7, %v3939_v38  ;;  %3968 = vtanh.f32 %v2497_v34 }
 0x262   : > { %v3945_v51 = vpop.eup %3944  ;;  %3970 = vtanh.f32 %v2498_v60 }
 0x263   : > { %v3947_v28 = vpop.eup %3946  ;;  %3217 = vst [vmem:[%s4403_s30 + $0x10] sm:$0xff] %v3149_v46   ;;  %v3154_v53 = vpack.c.bf16 %v3945_v51, %v3943_v3  ;;  %3972 = vtanh.f32 %v2499_v2 }
 0x264   : > { %v3949_v37 = vpop.eup %3948  ;;  %3974 = vtanh.f32 %v2500_v8 }
 0x265   : > { %v3951_v9 = vpop.eup %3950  ;;  %3218 = vst [vmem:[%s4403_s30 + $0x18] sm:$0xff] %v3154_v53   ;;  %v3159_v25 = vpack.c.bf16 %v3949_v37, %v3947_v28  ;;  %3976 = vtanh.f32 %v2501_v21 }
 0x266   : > { %v3953_v50 = vpop.eup %3952  ;;  %3978 = vtanh.f32 %v2502_v20 }
 0x267   : > { %v3955_v58 = vpop.eup %3954  ;;  %3219 = vst [vmem:[%s4403_s30 + $0x20] sm:$0xff] %v3159_v25   ;;  %v3164_v5 = vpack.c.bf16 %v3953_v50, %v3951_v9  ;;  %3980 = vtanh.f32 %v2503_v54 }
 0x268   : > { %v3957_v24 = vpop.eup %3956  ;;  %3982 = vtanh.f32 %v2504_v63 }
 0x269   : > { %v3959_v4 = vpop.eup %3958  ;;  %3220 = vst [vmem:[%s4403_s30 + $0x28] sm:$0xff] %v3164_v5   ;;  %v3169_v39 = vpack.c.bf16 %v3957_v24, %v3955_v58  ;;  %3984 = vtanh.f32 %v2505_v43 }
 0x26a   : > { %v3961_v14 = vpop.eup %3960  ;;  %3986 = vtanh.f32 %v2506_v0 }
 0x26b   : > { %v3963_v30 = vpop.eup %3962  ;;  %3221 = vst [vmem:[%s4403_s30 + $0x30] sm:$0xff] %v3169_v39   ;;  %v3174_v42 = vpack.c.bf16 %v3961_v14, %v3959_v4  ;;  %3988 = vtanh.f32 %v2507_v52 }
 0x26c   : > { %v3965_v10 = vpop.eup %3964  ;;  %3990 = vtanh.f32 %v2508_v1 }
 0x26d   : > { %v3967_v41 = vpop.eup %3966  ;;  %3222 = vst [vmem:[%s4403_s30 + $0x38] sm:$0xff] %v3174_v42   ;;  %v3179_v36 = vpack.c.bf16 %v3965_v10, %v3963_v30  ;;  %3992 = vtanh.f32 %v2509_v62 }
 0x26e   : > { %v3969_v16 = vpop.eup %3968 }
 0x26f   : > { %v3971_v61 = vpop.eup %3970  ;;  %3223 = vst [vmem:[%s4403_s30 + $0x40] sm:$0xff] %v3179_v36   ;;  %v3184_v32 = vpack.c.bf16 %v3969_v16, %v3967_v41 }
 0x270   : > { %v3973_v22 = vpop.eup %3972 }
 0x271   : > { %v3975_v17 = vpop.eup %3974  ;;  %3224 = vst [vmem:[%s4403_s30 + $0x48] sm:$0xff] %v3184_v32   ;;  %v3189_v18 = vpack.c.bf16 %v3973_v22, %v3971_v61 }
 0x272   : > { %v3977_v15 = vpop.eup %3976 }
 0x273   : > { %v3979_v35 = vpop.eup %3978  ;;  %3225 = vst [vmem:[%s4403_s30 + $0x50] sm:$0xff] %v3189_v18   ;;  %v3194_v57 = vpack.c.bf16 %v3977_v15, %v3975_v17 }
 0x274   : > { %v3981_v59 = vpop.eup %3980 }
 0x275   : > { %v3983_v49 = vpop.eup %3982  ;;  %3226 = vst [vmem:[%s4403_s30 + $0x58] sm:$0xff] %v3194_v57   ;;  %v3199_v12 = vpack.c.bf16 %v3981_v59, %v3979_v35 }
 0x276   : > { %v3985_v6 = vpop.eup %3984 }
 0x277   : > { %v3987_v13 = vpop.eup %3986  ;;  %3227 = vst [vmem:[%s4403_s30 + $0x60] sm:$0xff] %v3199_v12   ;;  %v3204_v29 = vpack.c.bf16 %v3985_v6, %v3983_v49 }
 0x278   : > { %v3989_v27 = vpop.eup %3988 }
 0x279   : > { %v3991_v56 = vpop.eup %3990  ;;  %3228 = vst [vmem:[%s4403_s30 + $0x68] sm:$0xff] %v3204_v29   ;;  %v3209_v44 = vpack.c.bf16 %v3989_v27, %v3987_v13 }
 0x27a   : > { %v3993_v26 = vpop.eup %3992 }
 0x27b   : > { %3229 = vst [vmem:[%s4403_s30 + $0x70] sm:$0xff] %v3209_v44   ;;  %v3214_v45 = vpack.c.bf16 %v3993_v26, %v3991_v56 }
 0x27d   : > { %3230 = vst [vmem:[%s4403_s30 + $0x78] sm:$0xff] %v3214_v45  }
 0x27e PF: > { %s13_s18 = sadd.s32 1, %s4048_s18   ;;  %s4909_s12 = smov %s4028_s13 }
 0x27f   : > { %p10_p0 = scmp.ge.s32.totalorder %s13_s18, 16   ;;  %s4910_s13 = smov %s4121_s25 }
 0x280   : > { %s4911_s14 = smov %s4040_s16  ;;  %s4912_s15 = smov %s4044_s17 }
 0x281   : > { %s4913_s16 = smov %s4916_s19  ;;  %s4914_s17 = smov %s4920_s20 }
 0x282   :  { %12 = sbr.rel (!%p10_p0) target bundleno = 4 (0x4), region = 113 }

</bundles_post_ra>
